<compile_context>
chip_gen: v6e
topology: v6e:2x2x1
jax: 0.10.0
libtpu: 0.0.40
codegen_flags: <defaults>
</compile_context>

<pallas_src>
import math
from functools import partial

import numpy as np
import jax
import jax.numpy as jnp
from jax import lax
from jax.experimental import pallas as pl
from jax.experimental.pallas import tpu as pltpu

D_MODEL = 256  # gen_sineembed_for_position hardcodes 128 (y) + 128 (x)

# ---------------------------------------------------------------------------
# Kernel 1: ref_point_head MLP + sigmoid + gen_sineembed_for_position (fused)
# ---------------------------------------------------------------------------
def _qse_base_kernel(qp_ref, w1_ref, b1_ref, w2_ref, b2_ref,
                     invf_ref, phase_ref, ymask_ref, o_ref):
    bf16, f32 = jnp.bfloat16, jnp.float32
    h = jnp.dot(qp_ref[...].astype(bf16), w1_ref[...],
                preferred_element_type=f32) + b1_ref[...]
    h = jnp.maximum(h, 0.0)
    r = jnp.dot(h.astype(bf16), w2_ref[...],
                preferred_element_type=f32) + b2_ref[...]        # (M, 128) padded
    xy = 1.0 / (1.0 + jnp.exp(-r[:, 0:2]))                       # sigmoid, (M, 2)
    two_pi = 2.0 * math.pi
    x = xy[:, 0:1] * two_pi
    y = xy[:, 1:2] * two_pi
    ymask = ymask_ref[...]                                       # (1,256): 1 for cols<128
    base = y * ymask + x * (1.0 - ymask)                         # pos_y first, then pos_x
    val = base * invf_ref[...]                                   # / dim_t
    o_ref[...] = jnp.sin(val + phase_ref[...])                   # sin/cos interleave


def compute_qse_base(qp_flat, ref_w1, ref_b1, ref_w2p, ref_b2p):
    M = qp_flat.shape[0]
    i = np.arange(D_MODEL)
    im = i % 128
    dim_t = 10000.0 ** (2.0 * (im // 2) / 128.0)
    invf = (1.0 / dim_t).reshape(1, D_MODEL).astype(np.float32)
    phase = np.where(im % 2 == 0, 0.0, math.pi / 2.0).reshape(1, D_MODEL).astype(np.float32)
    ymask = (i < 128).astype(np.float32).reshape(1, D_MODEL)
    vmem = pl.BlockSpec(memory_space=pltpu.MemorySpace.VMEM)
    return pl.pallas_call(
        _qse_base_kernel,
        out_shape=jax.ShapeDtypeStruct((M, D_MODEL), jnp.float32),
        in_specs=[vmem] * 8,
        out_specs=vmem,
    )(qp_flat, ref_w1, ref_b1, ref_w2p, ref_b2p,
      jnp.asarray(invf), jnp.asarray(phase), jnp.asarray(ymask))


# ---------------------------------------------------------------------------
# Kernel 2: whole decoder, grid = (batch, num_layers)
# ---------------------------------------------------------------------------
_SHARED_B = ["tgt0", "qpos", "qse", "mem", "pos"]        # blocked over batch
_SHARED_C = ["qs_w1", "qs_b1", "qs_w2", "qs_b2"]         # decoder-level (shared)
_PER_LAYER = ["w_sa_t", "b_sa_t", "w_qp", "b_qp", "w_sa_o", "b_sa_o",
              "w_ca_q", "b_ca_q", "w_mem", "b_mem", "w_kpos", "b_kpos",
              "w_sine", "b_sine", "w_ca_o", "b_ca_o",
              "w_ff1", "b_ff1", "w_ff2", "b_ff2", "ln", "isf"]
_ALL = _SHARED_B + _SHARED_C + _PER_LAYER


def _decoder_kernel(nhead, *refs):
    r = dict(zip(_ALL, refs))
    out_ref = refs[len(_ALL)]
    bf16, f32 = jnp.bfloat16, jnp.float32
    D = out_ref.shape[1]
    hd = D // nhead

    def lin(x, wname, bname):
        return (jnp.dot(x.astype(bf16), r[wname][...],
                        preferred_element_type=f32) + r[bname][...])

    def ln_res(x, res, row):
        w = r["ln"][2 * row:2 * row + 1, :]
        b = r["ln"][2 * row + 1:2 * row + 2, :]
        y = x + res
        mu = jnp.mean(y, axis=-1, keepdims=True)
        yc = y - mu
        var = jnp.mean(yc * yc, axis=-1, keepdims=True)
        return yc * lax.rsqrt(var + 1e-5) * w + b

    def attn(q, k, v, scale, q2=None, k2=None):
        outs = []
        for h in range(nhead):
            sl = slice(h * hd, (h + 1) * hd)
            s = jnp.einsum("md,nd->mn", q[:, sl].astype(bf16), k[:, sl].astype(bf16),
                           preferred_element_type=f32)
            if q2 is not None:  # concat-free conditional cross-attention scores
                s = s + jnp.einsum("md,nd->mn", q2[:, sl].astype(bf16),
                                   k2[:, sl].astype(bf16),
                                   preferred_element_type=f32)
            s = s * scale
            s = s - jnp.max(s, axis=-1, keepdims=True)
            p = jnp.exp(s)
            p = p * pl.reciprocal(jnp.sum(p, axis=-1, keepdims=True), approx=True)
            outs.append(jnp.einsum("mn,nd->md", p.astype(bf16), v[:, sl].astype(bf16),
                                   preferred_element_type=f32))
        return jnp.concatenate(outs, axis=-1)

    first_v = r["isf"][...]                       # (1,1) f32: 1.0 on layer 0 else 0.0

    @pl.when(pl.program_id(1) == 0)
    def _():
        out_ref[...] = r["tgt0"][...]

    t = out_ref[...]                              # running activation (Q, D), f32

    # pos_transformation: 1 on layer 0, query_scale MLP(output) otherwise
    qs_h = jnp.maximum(jnp.dot(t.astype(bf16), r["qs_w1"][...],
                               preferred_element_type=f32) + r["qs_b1"][...], 0.0)
    pt = jnp.dot(qs_h.astype(bf16), r["qs_w2"][...],
                 preferred_element_type=f32) + r["qs_b2"][...]
    pt = first_v + (1.0 - first_v) * pt
    qse = r["qse"][...] * pt                      # scaled query_sine_embed (Q, D)

    # ------------------------ self attention ------------------------
    qkv = lin(t, "w_sa_t", "b_sa_t")              # [q_content | k_content | v]
    qp3 = lin(r["qpos"][...], "w_qp", "b_qp")     # [sa_qpos | sa_kpos | ca_qpos]
    q_sa = qkv[:, 0:D] + qp3[:, 0:D]
    k_sa = qkv[:, D:2 * D] + qp3[:, D:2 * D]
    v_sa = qkv[:, 2 * D:3 * D]
    ca_qpos = qp3[:, 2 * D:3 * D]                 # zero weights for layers > 0
    sa = attn(q_sa, k_sa, v_sa, 1.0 / math.sqrt(hd))
    sa = lin(sa, "w_sa_o", "b_sa_o")
    t = ln_res(sa, t, 0)

    # ------------------------ cross attention ------------------------
    q_ca = lin(t, "w_ca_q", "b_ca_q") + ca_qpos
    kv = lin(r["mem"][...], "w_mem", "b_mem")     # [k_content | v]
    k_ca = kv[:, 0:D]
    v_ca = kv[:, D:2 * D]
    kpos = lin(r["pos"][...], "w_kpos", "b_kpos")
    k_ca = k_ca + first_v * kpos                  # k = k_content (+ k_pos if first)
    qse_p = lin(qse, "w_sine", "b_sine")
    ca = attn(q_ca, k_ca, v_ca, 1.0 / math.sqrt(2 * hd), q2=qse_p, k2=kpos)
    ca = lin(ca, "w_ca_o", "b_ca_o")
    t = ln_res(ca, t, 1)

    # ------------------------ FFN (hidden padded to 128 lanes) ------------------------
    ff = jnp.maximum(lin(t, "w_ff1", "b_ff1"), 0.0)
    ff = lin(ff, "w_ff2", "b_ff2")
    t = ln_res(ff, t, 2)

    out_ref[...] = t


@partial(jax.jit, static_argnums=(5, 6))
def transformer_decoder_forward(packed, tgt, memory, pos, query_pos,
                                num_layers, nhead):
    Q, B, D = tgt.shape
    HW = memory.shape[0]
    assert D == D_MODEL
    assert Q % 8 == 0 and HW % 8 == 0, "per-batch blocks need sublane-aligned rows"

    # sequence-first -> batch-first flat layout (row = b*S + s)
    t0 = tgt.transpose(1, 0, 2).reshape(B * Q, D).astype(jnp.float32)
    qp = query_pos.transpose(1, 0, 2).reshape(B * Q, D).astype(jnp.float32)
    mem = memory.transpose(1, 0, 2).reshape(B * HW, D).astype(jnp.float32)
    posf = pos.transpose(1, 0, 2).reshape(B * HW, D).astype(jnp.float32)

    qse_base = compute_qse_base(qp, packed["ref_w1"], packed["ref_b1"],
                                packed["ref_w2"], packed["ref_b2"])

    inputs = {"tgt0": t0, "qpos": qp, "qse": qse_base, "mem": mem, "pos": posf,
              "qs_w1": packed["qs_w1"], "qs_b1": packed["qs_b1"],
              "qs_w2": packed["qs_w2"], "qs_b2": packed["qs_b2"]}
    inputs.update({k: packed[k] for k in _PER_LAYER})

    def spec_for(name, arr):
        if name in ("tgt0", "qpos", "qse"):
            return pl.BlockSpec((Q, D), lambda b, l: (b, 0))
        if name in ("mem", "pos"):
            return pl.BlockSpec((HW, D), lambda b, l: (b, 0))
        if name in _SHARED_C:
            nd = arr.ndim
            return pl.BlockSpec(arr.shape, lambda b, l: (0,) * nd)
        return pl.BlockSpec((None,) + arr.shape[1:], lambda b, l: (l, 0, 0))

    ordered = [inputs[n] for n in _ALL]
    in_specs = [spec_for(n, inputs[n]) for n in _ALL]

    out = pl.pallas_call(
        partial(_decoder_kernel, nhead),
        out_shape=jax.ShapeDtypeStruct((B * Q, D), jnp.float32),
        grid=(B, num_layers),
        in_specs=in_specs,
        out_specs=pl.BlockSpec((Q, D), lambda b, l: (b, 0)),
        compiler_params=pltpu.CompilerParams(
            dimension_semantics=("parallel", "arbitrary")),
    )(*ordered)

    # norm=None, return_intermediate=False  ->  output.unsqueeze(0)
    return out.reshape(B, Q, D).transpose(1, 0, 2)[None]


# ---------------------------------------------------------------------------
# Parameters (torch-like raw init, then packing into fused/stacked arrays)
# ---------------------------------------------------------------------------
def init_params(key, d_model, dff, num_layers):
    keys = iter(jax.random.split(key, 256))

    def lin_p(in_d, out_d):
        w = jax.random.normal(next(keys), (in_d, out_d), jnp.float32) * 0.02
        b = jax.random.normal(next(keys), (out_d,), jnp.float32) * 0.02
        return w, b

    raw = {}
    raw["ref_w1"], raw["ref_b1"] = lin_p(d_model, d_model)   # ref_point_head
    raw["ref_w2"], raw["ref_b2"] = lin_p(d_model, 2)
    raw["qs_w1"], raw["qs_b1"] = lin_p(d_model, d_model)     # query_scale
    raw["qs_w2"], raw["qs_b2"] = lin_p(d_model, d_model)

    layers = []
    for lid in range(num_layers):
        p = {}
        for name in ["sa_qcontent", "sa_qpos", "sa_kcontent", "sa_kpos", "sa_v",
                     "sa_out", "ca_qcontent", "ca_kcontent", "ca_v", "ca_kpos",
                     "ca_qpos_sine", "ca_out"]:
            p[name + "_w"], p[name + "_b"] = lin_p(d_model, d_model)
        if lid == 0:  # ca_qpos_proj is set to None for layers > 0 in __init__
            p["ca_qpos_w"], p["ca_qpos_b"] = lin_p(d_model, d_model)
        p["ff_w1"], p["ff_b1"] = lin_p(d_model, dff)
        p["ff_w2"], p["ff_b2"] = lin_p(dff, d_model)
        for n in ["norm1", "norm2", "norm3"]:
            p[n + "_w"] = jnp.ones((d_model,), jnp.float32)
            p[n + "_b"] = jnp.zeros((d_model,), jnp.float32)
        layers.append(p)
    raw["layers"] = layers
    return raw


def pack_params(raw, num_layers, dff):
    D = D_MODEL
    Hp = max(128, ((dff + 127) // 128) * 128)
    f32, bf16 = jnp.float32, jnp.bfloat16
    L = num_layers
    zw = jnp.zeros((D, D), f32)
    zb = jnp.zeros((D,), f32)

    def per_layer(fn, dtype):
        return jnp.stack([fn(raw["layers"][l], l) for l in range(L)]).astype(dtype)

    packed = {}
    packed["w_sa_t"] = per_layer(lambda p, l: jnp.concatenate(
        [p["sa_qcontent_w"], p["sa_kcontent_w"], p["sa_v_w"]], axis=1), bf16)
    packed["b_sa_t"] = per_layer(lambda p, l: jnp.concatenate(
        [p["sa_qcontent_b"], p["sa_kcontent_b"], p["sa_v_b"]]).reshape(1, -1), f32)
    packed["w_qp"] = per_layer(lambda p, l: jnp.concatenate(
        [p["sa_qpos_w"], p["sa_kpos_w"],
         p["ca_qpos_w"] if l == 0 else zw], axis=1), bf16)
    packed["b_qp"] = per_layer(lambda p, l: jnp.concatenate(
        [p["sa_qpos_b"], p["sa_kpos_b"],
         p["ca_qpos_b"] if l == 0 else zb]).reshape(1, -1), f32)
    packed["w_sa_o"] = per_layer(lambda p, l: p["sa_out_w"], bf16)
    packed["b_sa_o"] = per_layer(lambda p, l: p["sa_out_b"].reshape(1, -1), f32)
    packed["w_ca_q"] = per_layer(lambda p, l: p["ca_qcontent_w"], bf16)
    packed["b_ca_q"] = per_layer(lambda p, l: p["ca_qcontent_b"].reshape(1, -1), f32)
    packed["w_mem"] = per_layer(lambda p, l: jnp.concatenate(
        [p["ca_kcontent_w"], p["ca_v_w"]], axis=1), bf16)
    packed["b_mem"] = per_layer(lambda p, l: jnp.concatenate(
        [p["ca_kcontent_b"], p["ca_v_b"]]).reshape(1, -1), f32)
    packed["w_kpos"] = per_layer(lambda p, l: p["ca_kpos_w"], bf16)
    packed["b_kpos"] = per_layer(lambda p, l: p["ca_kpos_b"].reshape(1, -1), f32)
    packed["w_sine"] = per_layer(lambda p, l: p["ca_qpos_sine_w"], bf16)
    packed["b_sine"] = per_layer(lambda p, l: p["ca_qpos_sine_b"].reshape(1, -1), f32)
    packed["w_ca_o"] = per_layer(lambda p, l: p["ca_out_w"], bf16)
    packed["b_ca_o"] = per_layer(lambda p, l: p["ca_out_b"].reshape(1, -1), f32)
    packed["w_ff1"] = per_layer(
        lambda p, l: jnp.pad(p["ff_w1"], ((0, 0), (0, Hp - dff))), bf16)
    packed["b_ff1"] = per_layer(
        lambda p, l: jnp.pad(p["ff_b1"], (0, Hp - dff)).reshape(1, -1), f32)
    packed["w_ff2"] = per_layer(
        lambda p, l: jnp.pad(p["ff_w2"], ((0, Hp - dff), (0, 0))), bf16)
    packed["b_ff2"] = per_layer(lambda p, l: p["ff_b2"].reshape(1, -1), f32)
    packed["ln"] = per_layer(lambda p, l: jnp.stack(
        [p["norm1_w"], p["norm1_b"], p["norm2_w"], p["norm2_b"],
         p["norm3_w"], p["norm3_b"]]), f32)
    packed["isf"] = jnp.zeros((L, 1, 1), f32).at[0, 0, 0].set(1.0)

    # decoder-level (shared) modules
    packed["qs_w1"] = raw["qs_w1"].astype(bf16)
    packed["qs_b1"] = raw["qs_b1"].reshape(1, -1).astype(f32)
    packed["qs_w2"] = raw["qs_w2"].astype(bf16)
    packed["qs_b2"] = raw["qs_b2"].reshape(1, -1).astype(f32)
    packed["ref_w1"] = raw["ref_w1"].astype(bf16)
    packed["ref_b1"] = raw["ref_b1"].reshape(1, -1).astype(f32)
    packed["ref_w2"] = jnp.pad(raw["ref_w2"], ((0, 0), (0, 126))).astype(bf16)   # 2 -> 128
    packed["ref_b2"] = jnp.pad(raw["ref_b2"], (0, 126)).reshape(1, -1).astype(f32)
    return packed


# ---------------------------------------------------------------------------
if __name__ == "__main__":
    D_M, NHEAD, DFF, NUM_LAYERS = 256, 8, 64, 2
    NUM_QUERIES, BATCH, MEM_LEN = 8, 2, 16

    key = jax.random.PRNGKey(0)
    kp, kt, km, kpos, kqp = jax.random.split(key, 5)
    raw = init_params(kp, D_M, DFF, NUM_LAYERS)
    packed = pack_params(raw, NUM_LAYERS, DFF)

    tgt = jax.random.normal(kt, (NUM_QUERIES, BATCH, D_M), jnp.float32) * 0.1
    memory = jax.random.normal(km, (MEM_LEN, BATCH, D_M), jnp.float32)
    pos = jax.random.normal(kpos, (MEM_LEN, BATCH, D_M), jnp.float32)
    query_pos = jax.random.normal(kqp, (NUM_QUERIES, BATCH, D_M), jnp.float32)

    out = transformer_decoder_forward(packed, tgt, memory, pos, query_pos,
                                      NUM_LAYERS, NHEAD)
    out = jax.block_until_ready(out)
    assert out.shape == (1, NUM_QUERIES, BATCH, D_M), out.shape
    assert bool(jnp.all(jnp.isfinite(out)))
    print("KERNEL_OK")
</pallas_src>

<mosaic_0001>
module attributes {stable_mosaic.version = 11 : i64} {
  func.func @_qse_base_kernel(%arg0: memref<16x256xf32, #tpu.memory_space<vmem>>, %arg1: memref<256x256xbf16, #tpu.memory_space<vmem>>, %arg2: memref<1x256xf32, #tpu.memory_space<vmem>>, %arg3: memref<256x128xbf16, #tpu.memory_space<vmem>>, %arg4: memref<1x128xf32, #tpu.memory_space<vmem>>, %arg5: memref<1x256xf32, #tpu.memory_space<vmem>>, %arg6: memref<1x256xf32, #tpu.memory_space<vmem>>, %arg7: memref<1x256xf32, #tpu.memory_space<vmem>>, %arg8: memref<16x256xf32, #tpu.memory_space<vmem>>) attributes {dimension_semantics = [], scalar_prefetch = 0 : i64, scratch_operands = 0 : i64, tpu.core_type = #tpu.core_type<tc>} {
    %c0 = arith.constant 0 : index
    %c0_0 = arith.constant 0 : index
    %0 = vector.load %arg0[%c0, %c0_0] : memref<16x256xf32, #tpu.memory_space<vmem>>, vector<16x256xf32>
    %1 = arith.truncf %0 : vector<16x256xf32> to vector<16x256xbf16>
    %c0_1 = arith.constant 0 : index
    %c0_2 = arith.constant 0 : index
    %2 = vector.load %arg1[%c0_1, %c0_2] : memref<256x256xbf16, #tpu.memory_space<vmem>>, vector<256x256xbf16>
    %cst = arith.constant dense<0.000000e+00> : vector<16x256xf32>
    %3 = tpu.matmul %1, %2, %cst {dimension_numbers = #tpu.dot_dimension_numbers<[1], [0], [0], [1], [0, 0, 1, 1], [], []>} : vector<16x256xbf16>, vector<256x256xbf16>, vector<16x256xf32> -> vector<16x256xf32>
    %c0_3 = arith.constant 0 : index
    %c0_4 = arith.constant 0 : index
    %4 = vector.load %arg2[%c0_3, %c0_4] : memref<1x256xf32, #tpu.memory_space<vmem>>, vector<1x256xf32>
    %5 = vector.broadcast %4 : vector<1x256xf32> to vector<16x256xf32>
    %6 = arith.addf %3, %5 : vector<16x256xf32>
    %cst_5 = arith.constant 0.000000e+00 : f32
    %7 = vector.broadcast %cst_5 : f32 to vector<16x256xf32>
    %8 = arith.maximumf %6, %7 : vector<16x256xf32>
    %9 = arith.truncf %8 : vector<16x256xf32> to vector<16x256xbf16>
    %c0_6 = arith.constant 0 : index
    %c0_7 = arith.constant 0 : index
    %10 = vector.load %arg3[%c0_6, %c0_7] : memref<256x128xbf16, #tpu.memory_space<vmem>>, vector<256x128xbf16>
    %cst_8 = arith.constant dense<0.000000e+00> : vector<16x128xf32>
    %11 = tpu.matmul %9, %10, %cst_8 {dimension_numbers = #tpu.dot_dimension_numbers<[1], [0], [0], [1], [0, 0, 1, 1], [], []>} : vector<16x256xbf16>, vector<256x128xbf16>, vector<16x128xf32> -> vector<16x128xf32>
    %c0_9 = arith.constant 0 : index
    %c0_10 = arith.constant 0 : index
    %12 = vector.load %arg4[%c0_9, %c0_10] : memref<1x128xf32, #tpu.memory_space<vmem>>, vector<1x128xf32>
    %13 = vector.broadcast %12 : vector<1x128xf32> to vector<16x128xf32>
    %14 = arith.addf %11, %13 : vector<16x128xf32>
    %15 = vector.extract_strided_slice %14 {offsets = [0, 0], sizes = [16, 2], strides = [1, 1]} : vector<16x128xf32> to vector<16x2xf32>
    %cst_11 = arith.constant 0.000000e+00 : f32
    %16 = vector.broadcast %cst_11 : f32 to vector<16x2xf32>
    %17 = arith.subf %16, %15 : vector<16x2xf32>
    %18 = math.exp %17 : vector<16x2xf32>
    %cst_12 = arith.constant 1.000000e+00 : f32
    %19 = vector.broadcast %cst_12 : f32 to vector<16x2xf32>
    %20 = arith.addf %19, %18 : vector<16x2xf32>
    %cst_13 = arith.constant 1.000000e+00 : f32
    %21 = vector.broadcast %cst_13 : f32 to vector<16x2xf32>
    %22 = arith.divf %21, %20 : vector<16x2xf32>
    %23 = vector.extract_strided_slice %22 {offsets = [0, 0], sizes = [16, 1], strides = [1, 1]} : vector<16x2xf32> to vector<16x1xf32>
    %cst_14 = arith.constant 6.28318548 : f32
    %24 = vector.broadcast %cst_14 : f32 to vector<16x1xf32>
    %25 = arith.mulf %23, %24 : vector<16x1xf32>
    %26 = vector.extract_strided_slice %22 {offsets = [0, 1], sizes = [16, 1], strides = [1, 1]} : vector<16x2xf32> to vector<16x1xf32>
    %cst_15 = arith.constant 6.28318548 : f32
    %27 = vector.broadcast %cst_15 : f32 to vector<16x1xf32>
    %28 = arith.mulf %26, %27 : vector<16x1xf32>
    %c0_16 = arith.constant 0 : index
    %c0_17 = arith.constant 0 : index
    %29 = vector.load %arg7[%c0_16, %c0_17] : memref<1x256xf32, #tpu.memory_space<vmem>>, vector<1x256xf32>
    %30 = vector.broadcast %28 : vector<16x1xf32> to vector<16x256xf32>
    %31 = vector.broadcast %29 : vector<1x256xf32> to vector<16x256xf32>
    %32 = arith.mulf %30, %31 : vector<16x256xf32>
    %cst_18 = arith.constant 1.000000e+00 : f32
    %33 = vector.broadcast %cst_18 : f32 to vector<1x256xf32>
    %34 = arith.subf %33, %29 : vector<1x256xf32>
    %35 = vector.broadcast %25 : vector<16x1xf32> to vector<16x256xf32>
    %36 = vector.broadcast %34 : vector<1x256xf32> to vector<16x256xf32>
    %37 = arith.mulf %35, %36 : vector<16x256xf32>
    %38 = arith.addf %32, %37 : vector<16x256xf32>
    %c0_19 = arith.constant 0 : index
    %c0_20 = arith.constant 0 : index
    %39 = vector.load %arg5[%c0_19, %c0_20] : memref<1x256xf32, #tpu.memory_space<vmem>>, vector<1x256xf32>
    %40 = vector.broadcast %39 : vector<1x256xf32> to vector<16x256xf32>
    %41 = arith.mulf %38, %40 : vector<16x256xf32>
    %c0_21 = arith.constant 0 : index
    %c0_22 = arith.constant 0 : index
    %42 = vector.load %arg6[%c0_21, %c0_22] : memref<1x256xf32, #tpu.memory_space<vmem>>, vector<1x256xf32>
    %43 = vector.broadcast %42 : vector<1x256xf32> to vector<16x256xf32>
    %44 = arith.addf %41, %43 : vector<16x256xf32>
    %45 = math.sin %44 : vector<16x256xf32>
    %c0_23 = arith.constant 0 : index
    %c0_24 = arith.constant 0 : index
    %46 = vector.load %arg8[%c0_23, %c0_24] : memref<16x256xf32, #tpu.memory_space<vmem>>, vector<16x256xf32>
    tpu.vector_store %arg8[%c0_23, %c0_24], %45 {strides = array<i32>} : memref<16x256xf32, #tpu.memory_space<vmem>>, vector<16x256xf32>,
    return
  }
}

module attributes {stable_mosaic.version = 11 : i64} {
  func.func @_decoder_kernel(%arg0: i32, %arg1: i32, %arg2: memref<8x256xf32, #tpu.memory_space<vmem>>, %arg3: memref<8x256xf32, #tpu.memory_space<vmem>>, %arg4: memref<8x256xf32, #tpu.memory_space<vmem>>, %arg5: memref<16x256xf32, #tpu.memory_space<vmem>>, %arg6: memref<16x256xf32, #tpu.memory_space<vmem>>, %arg7: memref<256x256xbf16, #tpu.memory_space<vmem>>, %arg8: memref<1x256xf32, #tpu.memory_space<vmem>>, %arg9: memref<256x256xbf16, #tpu.memory_space<vmem>>, %arg10: memref<1x256xf32, #tpu.memory_space<vmem>>, %arg11: memref<1x256x768xbf16, #tpu.memory_space<vmem>>, %arg12: memref<1x1x768xf32, #tpu.memory_space<vmem>>, %arg13: memref<1x256x768xbf16, #tpu.memory_space<vmem>>, %arg14: memref<1x1x768xf32, #tpu.memory_space<vmem>>, %arg15: memref<1x256x256xbf16, #tpu.memory_space<vmem>>, %arg16: memref<1x1x256xf32, #tpu.memory_space<vmem>>, %arg17: memref<1x256x256xbf16, #tpu.memory_space<vmem>>, %arg18: memref<1x1x256xf32, #tpu.memory_space<vmem>>, %arg19: memref<1x256x512xbf16, #tpu.memory_space<vmem>>, %arg20: memref<1x1x512xf32, #tpu.memory_space<vmem>>, %arg21: memref<1x256x256xbf16, #tpu.memory_space<vmem>>, %arg22: memref<1x1x256xf32, #tpu.memory_space<vmem>>, %arg23: memref<1x256x256xbf16, #tpu.memory_space<vmem>>, %arg24: memref<1x1x256xf32, #tpu.memory_space<vmem>>, %arg25: memref<1x256x256xbf16, #tpu.memory_space<vmem>>, %arg26: memref<1x1x256xf32, #tpu.memory_space<vmem>>, %arg27: memref<1x256x128xbf16, #tpu.memory_space<vmem>>, %arg28: memref<1x1x128xf32, #tpu.memory_space<vmem>>, %arg29: memref<1x128x256xbf16, #tpu.memory_space<vmem>>, %arg30: memref<1x1x256xf32, #tpu.memory_space<vmem>>, %arg31: memref<1x6x256xf32, #tpu.memory_space<vmem>>, %arg32: memref<1x1x1xf32, #tpu.memory_space<vmem>>, %arg33: memref<8x256xf32, #tpu.memory_space<vmem>>) attributes {dimension_semantics = [#tpu.dimension_semantics<parallel>, #tpu.dimension_semantics<arbitrary>], iteration_bounds = array<i64: 2, 2>, scalar_prefetch = 0 : i64, scratch_operands = 0 : i64, tpu.core_type = #tpu.core_type<tc>, window_params = [{transform_indices = @transform_0, window_bounds = array<i64: 8, 256>}, {transform_indices = @transform_1, window_bounds = array<i64: 8, 256>}, {transform_indices = @transform_2, window_bounds = array<i64: 8, 256>}, {transform_indices = @transform_3, window_bounds = array<i64: 16, 256>}, {transform_indices = @transform_4, window_bounds = array<i64: 16, 256>}, {pipeline_mode = #tpu.pipeline_mode<synchronous>, transform_indices = @transform_5, window_bounds = array<i64: 256, 256>}, {pipeline_mode = #tpu.pipeline_mode<synchronous>, transform_indices = @transform_6, window_bounds = array<i64: 1, 256>}, {pipeline_mode = #tpu.pipeline_mode<synchronous>, transform_indices = @transform_7, window_bounds = array<i64: 256, 256>}, {pipeline_mode = #tpu.pipeline_mode<synchronous>, transform_indices = @transform_8, window_bounds = array<i64: 1, 256>}, {transform_indices = @transform_9, window_bounds = array<i64: 1, 256, 768>}, {transform_indices = @transform_10, window_bounds = array<i64: 1, 1, 768>}, {transform_indices = @transform_11, window_bounds = array<i64: 1, 256, 768>}, {transform_indices = @transform_12, window_bounds = array<i64: 1, 1, 768>}, {transform_indices = @transform_13, window_bounds = array<i64: 1, 256, 256>}, {transform_indices = @transform_14, window_bounds = array<i64: 1, 1, 256>}, {transform_indices = @transform_15, window_bounds = array<i64: 1, 256, 256>}, {transform_indices = @transform_16, window_bounds = array<i64: 1, 1, 256>}, {transform_indices = @transform_17, window_bounds = array<i64: 1, 256, 512>}, {transform_indices = @transform_18, window_bounds = array<i64: 1, 1, 512>}, {transform_indices = @transform_19, window_bounds = array<i64: 1, 256, 256>}, {transform_indices = @transform_20, window_bounds = array<i64: 1, 1, 256>}, {transform_indices = @transform_21, window_bounds = array<i64: 1, 256, 256>}, {transform_indices = @transform_22, window_bounds = array<i64: 1, 1, 256>}, {transform_indices = @transform_23, window_bounds = array<i64: 1, 256, 256>}, {transform_indices = @transform_24, window_bounds = array<i64: 1, 1, 256>}, {transform_indices = @transform_25, window_bounds = array<i64: 1, 256, 128>}, {transform_indices = @transform_26, window_bounds = array<i64: 1, 1, 128>}, {transform_indices = @transform_27, window_bounds = array<i64: 1, 128, 256>}, {transform_indices = @transform_28, window_bounds = array<i64: 1, 1, 256>}, {transform_indices = @transform_29, window_bounds = array<i64: 1, 6, 256>}, {transform_indices = @transform_30, window_bounds = array<i64: 1, 1, 1>}, {transform_indices = @transform_31, window_bounds = array<i64: 8, 256>}]} {
    %c0 = arith.constant 0 : index
    %c0_0 = arith.constant 0 : index
    %c0_1 = arith.constant 0 : index
    %0 = vector.load %arg32[%c0, %c0_0, %c0_1] : memref<1x1x1xf32, #tpu.memory_space<vmem>>, vector<1x1x1xf32>
    %1 = vector.shape_cast %0 : vector<1x1x1xf32> to vector<1x1xf32>
    %c0_i32 = arith.constant 0 : i32
    %2 = arith.cmpi eq, %arg1, %c0_i32 : i32
    %3 = arith.extui %2 : i1 to i32
    %c0_i32_2 = arith.constant 0 : i32
    %4 = arith.cmpi ne, %3, %c0_i32_2 : i32
    scf.if %4 {
      %c0_213 = arith.constant 0 : index
      %c0_214 = arith.constant 0 : index
      %589 = vector.load %arg2[%c0_213, %c0_214] : memref<8x256xf32, #tpu.memory_space<vmem>>, vector<8x256xf32>
      %c0_215 = arith.constant 0 : index
      %c0_216 = arith.constant 0 : index
      %590 = vector.load %arg33[%c0_215, %c0_216] : memref<8x256xf32, #tpu.memory_space<vmem>>, vector<8x256xf32>
      tpu.vector_store %arg33[%c0_215, %c0_216], %589 {strides = array<i32>} : memref<8x256xf32, #tpu.memory_space<vmem>>, vector<8x256xf32>,
    } else {
    }
    %c0_3 = arith.constant 0 : index
    %c0_4 = arith.constant 0 : index
    %5 = vector.load %arg33[%c0_3, %c0_4] : memref<8x256xf32, #tpu.memory_space<vmem>>, vector<8x256xf32>
    %6 = arith.truncf %5 : vector<8x256xf32> to vector<8x256xbf16>
    %c0_5 = arith.constant 0 : index
    %c0_6 = arith.constant 0 : index
    %7 = vector.load %arg7[%c0_5, %c0_6] : memref<256x256xbf16, #tpu.memory_space<vmem>>, vector<256x256xbf16>
    %cst = arith.constant dense<0.000000e+00> : vector<8x256xf32>
    %8 = tpu.matmul %6, %7, %cst {dimension_numbers = #tpu.dot_dimension_numbers<[1], [0], [0], [1], [0, 0, 1, 1], [], []>} : vector<8x256xbf16>, vector<256x256xbf16>, vector<8x256xf32> -> vector<8x256xf32>
    %c0_7 = arith.constant 0 : index
    %c0_8 = arith.constant 0 : index
    %9 = vector.load %arg8[%c0_7, %c0_8] : memref<1x256xf32, #tpu.memory_space<vmem>>, vector<1x256xf32>
    %10 = vector.broadcast %9 : vector<1x256xf32> to vector<8x256xf32>
    %11 = arith.addf %8, %10 : vector<8x256xf32>
    %cst_9 = arith.constant 0.000000e+00 : f32
    %12 = vector.broadcast %cst_9 : f32 to vector<8x256xf32>
    %13 = arith.maximumf %11, %12 : vector<8x256xf32>
    %14 = arith.truncf %13 : vector<8x256xf32> to vector<8x256xbf16>
    %c0_10 = arith.constant 0 : index
    %c0_11 = arith.constant 0 : index
    %15 = vector.load %arg9[%c0_10, %c0_11] : memref<256x256xbf16, #tpu.memory_space<vmem>>, vector<256x256xbf16>
    %cst_12 = arith.constant dense<0.000000e+00> : vector<8x256xf32>
    %16 = tpu.matmul %14, %15, %cst_12 {dimension_numbers = #tpu.dot_dimension_numbers<[1], [0], [0], [1], [0, 0, 1, 1], [], []>} : vector<8x256xbf16>, vector<256x256xbf16>, vector<8x256xf32> -> vector<8x256xf32>
    %c0_13 = arith.constant 0 : index
    %c0_14 = arith.constant 0 : index
    %17 = vector.load %arg10[%c0_13, %c0_14] : memref<1x256xf32, #tpu.memory_space<vmem>>, vector<1x256xf32>
    %18 = vector.broadcast %17 : vector<1x256xf32> to vector<8x256xf32>
    %19 = arith.addf %16, %18 : vector<8x256xf32>
    %cst_15 = arith.constant 1.000000e+00 : f32
    %20 = vector.broadcast %cst_15 : f32 to vector<1x1xf32>
    %21 = arith.subf %20, %1 : vector<1x1xf32>
    %22 = vector.broadcast %21 : vector<1x1xf32> to vector<8x256xf32>
    %23 = arith.mulf %22, %19 : vector<8x256xf32>
    %24 = vector.broadcast %1 : vector<1x1xf32> to vector<8x256xf32>
    %25 = arith.addf %24, %23 : vector<8x256xf32>
    %c0_16 = arith.constant 0 : index
    %c0_17 = arith.constant 0 : index
    %26 = vector.load %arg4[%c0_16, %c0_17] : memref<8x256xf32, #tpu.memory_space<vmem>>, vector<8x256xf32>
    %27 = arith.mulf %26, %25 : vector<8x256xf32>
    %28 = arith.truncf %5 : vector<8x256xf32> to vector<8x256xbf16>
    %c0_18 = arith.constant 0 : index
    %c0_19 = arith.constant 0 : index
    %c0_20 = arith.constant 0 : index
    %29 = vector.load %arg11[%c0_18, %c0_19, %c0_20] : memref<1x256x768xbf16, #tpu.memory_space<vmem>>, vector<1x256x768xbf16>
    %30 = vector.shape_cast %29 : vector<1x256x768xbf16> to vector<256x768xbf16>
    %cst_21 = arith.constant dense<0.000000e+00> : vector<8x768xf32>
    %31 = tpu.matmul %28, %30, %cst_21 {dimension_numbers = #tpu.dot_dimension_numbers<[1], [0], [0], [1], [0, 0, 1, 1], [], []>} : vector<8x256xbf16>, vector<256x768xbf16>, vector<8x768xf32> -> vector<8x768xf32>
    %c0_22 = arith.constant 0 : index
    %c0_23 = arith.constant 0 : index
    %c0_24 = arith.constant 0 : index
    %32 = vector.load %arg12[%c0_22, %c0_23, %c0_24] : memref<1x1x768xf32, #tpu.memory_space<vmem>>, vector<1x1x768xf32>
    %33 = vector.shape_cast %32 : vector<1x1x768xf32> to vector<1x768xf32>
    %34 = vector.broadcast %33 : vector<1x768xf32> to vector<8x768xf32>
    %35 = arith.addf %31, %34 : vector<8x768xf32>
    %c0_25 = arith.constant 0 : index
    %c0_26 = arith.constant 0 : index
    %36 = vector.load %arg3[%c0_25, %c0_26] : memref<8x256xf32, #tpu.memory_space<vmem>>, vector<8x256xf32>
    %37 = arith.truncf %36 : vector<8x256xf32> to vector<8x256xbf16>
    %c0_27 = arith.constant 0 : index
    %c0_28 = arith.constant 0 : index
    %c0_29 = arith.constant 0 : index
    %38 = vector.load %arg13[%c0_27, %c0_28, %c0_29] : memref<1x256x768xbf16, #tpu.memory_space<vmem>>, vector<1x256x768xbf16>
    %39 = vector.shape_cast %38 : vector<1x256x768xbf16> to vector<256x768xbf16>
    %cst_30 = arith.constant dense<0.000000e+00> : vector<8x768xf32>
    %40 = tpu.matmul %37, %39, %cst_30 {dimension_numbers = #tpu.dot_dimension_numbers<[1], [0], [0], [1], [0, 0, 1, 1], [], []>} : vector<8x256xbf16>, vector<256x768xbf16>, vector<8x768xf32> -> vector<8x768xf32>
    %c0_31 = arith.constant 0 : index
    %c0_32 = arith.constant 0 : index
    %c0_33 = arith.constant 0 : index
    %41 = vector.load %arg14[%c0_31, %c0_32, %c0_33] : memref<1x1x768xf32, #tpu.memory_space<vmem>>, vector<1x1x768xf32>
    %42 = vector.shape_cast %41 : vector<1x1x768xf32> to vector<1x768xf32>
    %43 = vector.broadcast %42 : vector<1x768xf32> to vector<8x768xf32>
    %44 = arith.addf %40, %43 : vector<8x768xf32>
    %45 = vector.extract_strided_slice %35 {offsets = [0, 0], sizes = [8, 256], strides = [1, 1]} : vector<8x768xf32> to vector<8x256xf32>
    %46 = vector.extract_strided_slice %44 {offsets = [0, 0], sizes = [8, 256], strides = [1, 1]} : vector<8x768xf32> to vector<8x256xf32>
    %47 = arith.addf %45, %46 : vector<8x256xf32>
    %48 = vector.extract_strided_slice %35 {offsets = [0, 256], sizes = [8, 256], strides = [1, 1]} : vector<8x768xf32> to vector<8x256xf32>
    %49 = vector.extract_strided_slice %44 {offsets = [0, 256], sizes = [8, 256], strides = [1, 1]} : vector<8x768xf32> to vector<8x256xf32>
    %50 = arith.addf %48, %49 : vector<8x256xf32>
    %51 = vector.extract_strided_slice %35 {offsets = [0, 512], sizes = [8, 256], strides = [1, 1]} : vector<8x768xf32> to vector<8x256xf32>
    %52 = vector.extract_strided_slice %44 {offsets = [0, 512], sizes = [8, 256], strides = [1, 1]} : vector<8x768xf32> to vector<8x256xf32>
    %53 = vector.extract_strided_slice %47 {offsets = [0, 0], sizes = [8, 32], strides = [1, 1]} : vector<8x256xf32> to vector<8x32xf32>
    %54 = arith.truncf %53 : vector<8x32xf32> to vector<8x32xbf16>
    %55 = vector.extract_strided_slice %50 {offsets = [0, 0], sizes = [8, 32], strides = [1, 1]} : vector<8x256xf32> to vector<8x32xf32>
    %56 = arith.truncf %55 : vector<8x32xf32> to vector<8x32xbf16>
    "tpu.trace_start"() <{level = 10 : i32, message = "md,nd->mn"}> : () -> ()
    %cst_34 = arith.constant dense<0.000000e+00> : vector<8x8xf32>
    %57 = tpu.matmul %54, %56, %cst_34 {dimension_numbers = #tpu.dot_dimension_numbers<[1], [1], [0], [0], [0, 0, 1, 0], [], []>} : vector<8x32xbf16>, vector<8x32xbf16>, vector<8x8xf32> -> vector<8x8xf32>
    "tpu.trace_stop"() : () -> ()
    %cst_35 = arith.constant 0.176776692 : f32
    %58 = vector.broadcast %cst_35 : f32 to vector<8x8xf32>
    %59 = arith.mulf %57, %58 : vector<8x8xf32>
    %cst_36 = arith.constant dense<0xFF800000> : vector<8xf32>
    %60 = vector.multi_reduction <maximumf>, %59, %cst_36 [1] : vector<8x8xf32> to vector<8xf32>
    %61 = vector.shape_cast %60 : vector<8xf32> to vector<8x1xf32>
    %62 = vector.broadcast %61 : vector<8x1xf32> to vector<8x8xf32>
    %63 = arith.subf %59, %62 : vector<8x8xf32>
    %64 = math.exp %63 : vector<8x8xf32>
    %cst_37 = arith.constant dense<0.000000e+00> : vector<8xf32>
    %65 = vector.multi_reduction <add>, %64, %cst_37 [1] : vector<8x8xf32> to vector<8xf32>
    %66 = vector.shape_cast %65 : vector<8xf32> to vector<8x1xf32>
    %67 = tpu.reciprocal %66 {approx = true} : vector<8x1xf32> -> vector<8x1xf32>
    %68 = vector.broadcast %67 : vector<8x1xf32> to vector<8x8xf32>
    %69 = arith.mulf %64, %68 : vector<8x8xf32>
    %70 = arith.truncf %69 : vector<8x8xf32> to vector<8x8xbf16>
    %71 = vector.extract_strided_slice %51 {offsets = [0, 0], sizes = [8, 32], strides = [1, 1]} : vector<8x256xf32> to vector<8x32xf32>
    %72 = arith.truncf %71 : vector<8x32xf32> to vector<8x32xbf16>
    "tpu.trace_start"() <{level = 10 : i32, message = "mn,nd->md"}> : () -> ()
    %cst_38 = arith.constant dense<0.000000e+00> : vector<8x32xf32>
    %73 = tpu.matmul %70, %72, %cst_38 {dimension_numbers = #tpu.dot_dimension_numbers<[1], [0], [0], [1], [0, 0, 1, 1], [], []>} : vector<8x8xbf16>, vector<8x32xbf16>, vector<8x32xf32> -> vector<8x32xf32>
    "tpu.trace_stop"() : () -> ()
    %74 = vector.extract_strided_slice %47 {offsets = [0, 32], sizes = [8, 32], strides = [1, 1]} : vector<8x256xf32> to vector<8x32xf32>
    %75 = arith.truncf %74 : vector<8x32xf32> to vector<8x32xbf16>
    %76 = vector.extract_strided_slice %50 {offsets = [0, 32], sizes = [8, 32], strides = [1, 1]} : vector<8x256xf32> to vector<8x32xf32>
    %77 = arith.truncf %76 : vector<8x32xf32> to vector<8x32xbf16>
    "tpu.trace_start"() <{level = 10 : i32, message = "md,nd->mn"}> : () -> ()
    %cst_39 = arith.constant dense<0.000000e+00> : vector<8x8xf32>
    %78 = tpu.matmul %75, %77, %cst_39 {dimension_numbers = #tpu.dot_dimension_numbers<[1], [1], [0], [0], [0, 0, 1, 0], [], []>} : vector<8x32xbf16>, vector<8x32xbf16>, vector<8x8xf32> -> vector<8x8xf32>
    "tpu.trace_stop"() : () -> ()
    %cst_40 = arith.constant 0.176776692 : f32
    %79 = vector.broadcast %cst_40 : f32 to vector<8x8xf32>
    %80 = arith.mulf %78, %79 : vector<8x8xf32>
    %cst_41 = arith.constant dense<0xFF800000> : vector<8xf32>
    %81 = vector.multi_reduction <maximumf>, %80, %cst_41 [1] : vector<8x8xf32> to vector<8xf32>
    %82 = vector.shape_cast %81 : vector<8xf32> to vector<8x1xf32>
    %83 = vector.broadcast %82 : vector<8x1xf32> to vector<8x8xf32>
    %84 = arith.subf %80, %83 : vector<8x8xf32>
    %85 = math.exp %84 : vector<8x8xf32>
    %cst_42 = arith.constant dense<0.000000e+00> : vector<8xf32>
    %86 = vector.multi_reduction <add>, %85, %cst_42 [1] : vector<8x8xf32> to vector<8xf32>
    %87 = vector.shape_cast %86 : vector<8xf32> to vector<8x1xf32>
    %88 = tpu.reciprocal %87 {approx = true} : vector<8x1xf32> -> vector<8x1xf32>
    %89 = vector.broadcast %88 : vector<8x1xf32> to vector<8x8xf32>
    %90 = arith.mulf %85, %89 : vector<8x8xf32>
    %91 = arith.truncf %90 : vector<8x8xf32> to vector<8x8xbf16>
    %92 = vector.extract_strided_slice %51 {offsets = [0, 32], sizes = [8, 32], strides = [1, 1]} : vector<8x256xf32> to vector<8x32xf32>
    %93 = arith.truncf %92 : vector<8x32xf32> to vector<8x32xbf16>
    "tpu.trace_start"() <{level = 10 : i32, message = "mn,nd->md"}> : () -> ()
    %cst_43 = arith.constant dense<0.000000e+00> : vector<8x32xf32>
    %94 = tpu.matmul %91, %93, %cst_43 {dimension_numbers = #tpu.dot_dimension_numbers<[1], [0], [0], [1], [0, 0, 1, 1], [], []>} : vector<8x8xbf16>, vector<8x32xbf16>, vector<8x32xf32> -> vector<8x32xf32>
    "tpu.trace_stop"() : () -> ()
    %95 = vector.extract_strided_slice %47 {offsets = [0, 64], sizes = [8, 32], strides = [1, 1]} : vector<8x256xf32> to vector<8x32xf32>
    %96 = arith.truncf %95 : vector<8x32xf32> to vector<8x32xbf16>
    %97 = vector.extract_strided_slice %50 {offsets = [0, 64], sizes = [8, 32], strides = [1, 1]} : vector<8x256xf32> to vector<8x32xf32>
    %98 = arith.truncf %97 : vector<8x32xf32> to vector<8x32xbf16>
    "tpu.trace_start"() <{level = 10 : i32, message = "md,nd->mn"}> : () -> ()
    %cst_44 = arith.constant dense<0.000000e+00> : vector<8x8xf32>
    %99 = tpu.matmul %96, %98, %cst_44 {dimension_numbers = #tpu.dot_dimension_numbers<[1], [1], [0], [0], [0, 0, 1, 0], [], []>} : vector<8x32xbf16>, vector<8x32xbf16>, vector<8x8xf32> -> vector<8x8xf32>
    "tpu.trace_stop"() : () -> ()
    %cst_45 = arith.constant 0.176776692 : f32
    %100 = vector.broadcast %cst_45 : f32 to vector<8x8xf32>
    %101 = arith.mulf %99, %100 : vector<8x8xf32>
    %cst_46 = arith.constant dense<0xFF800000> : vector<8xf32>
    %102 = vector.multi_reduction <maximumf>, %101, %cst_46 [1] : vector<8x8xf32> to vector<8xf32>
    %103 = vector.shape_cast %102 : vector<8xf32> to vector<8x1xf32>
    %104 = vector.broadcast %103 : vector<8x1xf32> to vector<8x8xf32>
    %105 = arith.subf %101, %104 : vector<8x8xf32>
    %106 = math.exp %105 : vector<8x8xf32>
    %cst_47 = arith.constant dense<0.000000e+00> : vector<8xf32>
    %107 = vector.multi_reduction <add>, %106, %cst_47 [1] : vector<8x8xf32> to vector<8xf32>
    %108 = vector.shape_cast %107 : vector<8xf32> to vector<8x1xf32>
    %109 = tpu.reciprocal %108 {approx = true} : vector<8x1xf32> -> vector<8x1xf32>
    %110 = vector.broadcast %109 : vector<8x1xf32> to vector<8x8xf32>
    %111 = arith.mulf %106, %110 : vector<8x8xf32>
    %112 = arith.truncf %111 : vector<8x8xf32> to vector<8x8xbf16>
    %113 = vector.extract_strided_slice %51 {offsets = [0, 64], sizes = [8, 32], strides = [1, 1]} : vector<8x256xf32> to vector<8x32xf32>
    %114 = arith.truncf %113 : vector<8x32xf32> to vector<8x32xbf16>
    "tpu.trace_start"() <{level = 10 : i32, message = "mn,nd->md"}> : () -> ()
    %cst_48 = arith.constant dense<0.000000e+00> : vector<8x32xf32>
    %115 = tpu.matmul %112, %114, %cst_48 {dimension_numbers = #tpu.dot_dimension_numbers<[1], [0], [0], [1], [0, 0, 1, 1], [], []>} : vector<8x8xbf16>, vector<8x32xbf16>, vector<8x32xf32> -> vector<8x32xf32>
    "tpu.trace_stop"() : () -> ()
    %116 = vector.extract_strided_slice %47 {offsets = [0, 96], sizes = [8, 32], strides = [1, 1]} : vector<8x256xf32> to vector<8x32xf32>
    %117 = arith.truncf %116 : vector<8x32xf32> to vector<8x32xbf16>
    %118 = vector.extract_strided_slice %50 {offsets = [0, 96], sizes = [8, 32], strides = [1, 1]} : vector<8x256xf32> to vector<8x32xf32>
    %119 = arith.truncf %118 : vector<8x32xf32> to vector<8x32xbf16>
    "tpu.trace_start"() <{level = 10 : i32, message = "md,nd->mn"}> : () -> ()
    %cst_49 = arith.constant dense<0.000000e+00> : vector<8x8xf32>
    %120 = tpu.matmul %117, %119, %cst_49 {dimension_numbers = #tpu.dot_dimension_numbers<[1], [1], [0], [0], [0, 0, 1, 0], [], []>} : vector<8x32xbf16>, vector<8x32xbf16>, vector<8x8xf32> -> vector<8x8xf32>
    "tpu.trace_stop"() : () -> ()
    %cst_50 = arith.constant 0.176776692 : f32
    %121 = vector.broadcast %cst_50 : f32 to vector<8x8xf32>
    %122 = arith.mulf %120, %121 : vector<8x8xf32>
    %cst_51 = arith.constant dense<0xFF800000> : vector<8xf32>
    %123 = vector.multi_reduction <maximumf>, %122, %cst_51 [1] : vector<8x8xf32> to vector<8xf32>
    %124 = vector.shape_cast %123 : vector<8xf32> to vector<8x1xf32>
    %125 = vector.broadcast %124 : vector<8x1xf32> to vector<8x8xf32>
    %126 = arith.subf %122, %125 : vector<8x8xf32>
    %127 = math.exp %126 : vector<8x8xf32>
    %cst_52 = arith.constant dense<0.000000e+00> : vector<8xf32>
    %128 = vector.multi_reduction <add>, %127, %cst_52 [1] : vector<8x8xf32> to vector<8xf32>
    %129 = vector.shape_cast %128 : vector<8xf32> to vector<8x1xf32>
    %130 = tpu.reciprocal %129 {approx = true} : vector<8x1xf32> -> vector<8x1xf32>
    %131 = vector.broadcast %130 : vector<8x1xf32> to vector<8x8xf32>
    %132 = arith.mulf %127, %131 : vector<8x8xf32>
    %133 = arith.truncf %132 : vector<8x8xf32> to vector<8x8xbf16>
    %134 = vector.extract_strided_slice %51 {offsets = [0, 96], sizes = [8, 32], strides = [1, 1]} : vector<8x256xf32> to vector<8x32xf32>
    %135 = arith.truncf %134 : vector<8x32xf32> to vector<8x32xbf16>
    "tpu.trace_start"() <{level = 10 : i32, message = "mn,nd->md"}> : () -> ()
    %cst_53 = arith.constant dense<0.000000e+00> : vector<8x32xf32>
    %136 = tpu.matmul %133, %135, %cst_53 {dimension_numbers = #tpu.dot_dimension_numbers<[1], [0], [0], [1], [0, 0, 1, 1], [], []>} : vector<8x8xbf16>, vector<8x32xbf16>, vector<8x32xf32> -> vector<8x32xf32>
    "tpu.trace_stop"() : () -> ()
    %137 = vector.extract_strided_slice %47 {offsets = [0, 128], sizes = [8, 32], strides = [1, 1]} : vector<8x256xf32> to vector<8x32xf32>
    %138 = arith.truncf %137 : vector<8x32xf32> to vector<8x32xbf16>
    %139 = vector.extract_strided_slice %50 {offsets = [0, 128], sizes = [8, 32], strides = [1, 1]} : vector<8x256xf32> to vector<8x32xf32>
    %140 = arith.truncf %139 : vector<8x32xf32> to vector<8x32xbf16>
    "tpu.trace_start"() <{level = 10 : i32, message = "md,nd->mn"}> : () -> ()
    %cst_54 = arith.constant dense<0.000000e+00> : vector<8x8xf32>
    %141 = tpu.matmul %138, %140, %cst_54 {dimension_numbers = #tpu.dot_dimension_numbers<[1], [1], [0], [0], [0, 0, 1, 0], [], []>} : vector<8x32xbf16>, vector<8x32xbf16>, vector<8x8xf32> -> vector<8x8xf32>
    "tpu.trace_stop"() : () -> ()
    %cst_55 = arith.constant 0.176776692 : f32
    %142 = vector.broadcast %cst_55 : f32 to vector<8x8xf32>
    %143 = arith.mulf %141, %142 : vector<8x8xf32>
    %cst_56 = arith.constant dense<0xFF800000> : vector<8xf32>
    %144 = vector.multi_reduction <maximumf>, %143, %cst_56 [1] : vector<8x8xf32> to vector<8xf32>
    %145 = vector.shape_cast %144 : vector<8xf32> to vector<8x1xf32>
    %146 = vector.broadcast %145 : vector<8x1xf32> to vector<8x8xf32>
    %147 = arith.subf %143, %146 : vector<8x8xf32>
    %148 = math.exp %147 : vector<8x8xf32>
    %cst_57 = arith.constant dense<0.000000e+00> : vector<8xf32>
    %149 = vector.multi_reduction <add>, %148, %cst_57 [1] : vector<8x8xf32> to vector<8xf32>
    %150 = vector.shape_cast %149 : vector<8xf32> to vector<8x1xf32>
    %151 = tpu.reciprocal %150 {approx = true} : vector<8x1xf32> -> vector<8x1xf32>
    %152 = vector.broadcast %151 : vector<8x1xf32> to vector<8x8xf32>
    %153 = arith.mulf %148, %152 : vector<8x8xf32>
    %154 = arith.truncf %153 : vector<8x8xf32> to vector<8x8xbf16>
    %155 = vector.extract_strided_slice %51 {offsets = [0, 128], sizes = [8, 32], strides = [1, 1]} : vector<8x256xf32> to vector<8x32xf32>
    %156 = arith.truncf %155 : vector<8x32xf32> to vector<8x32xbf16>
    "tpu.trace_start"() <{level = 10 : i32, message = "mn,nd->md"}> : () -> ()
    %cst_58 = arith.constant dense<0.000000e+00> : vector<8x32xf32>
    %157 = tpu.matmul %154, %156, %cst_58 {dimension_numbers = #tpu.dot_dimension_numbers<[1], [0], [0], [1], [0, 0, 1, 1], [], []>} : vector<8x8xbf16>, vector<8x32xbf16>, vector<8x32xf32> -> vector<8x32xf32>
    "tpu.trace_stop"() : () -> ()
    %158 = vector.extract_strided_slice %47 {offsets = [0, 160], sizes = [8, 32], strides = [1, 1]} : vector<8x256xf32> to vector<8x32xf32>
    %159 = arith.truncf %158 : vector<8x32xf32> to vector<8x32xbf16>
    %160 = vector.extract_strided_slice %50 {offsets = [0, 160], sizes = [8, 32], strides = [1, 1]} : vector<8x256xf32> to vector<8x32xf32>
    %161 = arith.truncf %160 : vector<8x32xf32> to vector<8x32xbf16>
    "tpu.trace_start"() <{level = 10 : i32, message = "md,nd->mn"}> : () -> ()
    %cst_59 = arith.constant dense<0.000000e+00> : vector<8x8xf32>
    %162 = tpu.matmul %159, %161, %cst_59 {dimension_numbers = #tpu.dot_dimension_numbers<[1], [1], [0], [0], [0, 0, 1, 0], [], []>} : vector<8x32xbf16>, vector<8x32xbf16>, vector<8x8xf32> -> vector<8x8xf32>
    "tpu.trace_stop"() : () -> ()
    %cst_60 = arith.constant 0.176776692 : f32
    %163 = vector.broadcast %cst_60 : f32 to vector<8x8xf32>
    %164 = arith.mulf %162, %163 : vector<8x8xf32>
    %cst_61 = arith.constant dense<0xFF800000> : vector<8xf32>
    %165 = vector.multi_reduction <maximumf>, %164, %cst_61 [1] : vector<8x8xf32> to vector<8xf32>
    %166 = vector.shape_cast %165 : vector<8xf32> to vector<8x1xf32>
    %167 = vector.broadcast %166 : vector<8x1xf32> to vector<8x8xf32>
    %168 = arith.subf %164, %167 : vector<8x8xf32>
    %169 = math.exp %168 : vector<8x8xf32>
    %cst_62 = arith.constant dense<0.000000e+00> : vector<8xf32>
    %170 = vector.multi_reduction <add>, %169, %cst_62 [1] : vector<8x8xf32> to vector<8xf32>
    %171 = vector.shape_cast %170 : vector<8xf32> to vector<8x1xf32>
    %172 = tpu.reciprocal %171 {approx = true} : vector<8x1xf32> -> vector<8x1xf32>
    %173 = vector.broadcast %172 : vector<8x1xf32> to vector<8x8xf32>
    %174 = arith.mulf %169, %173 : vector<8x8xf32>
    %175 = arith.truncf %174 : vector<8x8xf32> to vector<8x8xbf16>
    %176 = vector.extract_strided_slice %51 {offsets = [0, 160], sizes = [8, 32], strides = [1, 1]} : vector<8x256xf32> to vector<8x32xf32>
    %177 = arith.truncf %176 : vector<8x32xf32> to vector<8x32xbf16>
    "tpu.trace_start"() <{level = 10 : i32, message = "mn,nd->md"}> : () -> ()
    %cst_63 = arith.constant dense<0.000000e+00> : vector<8x32xf32>
    %178 = tpu.matmul %175, %177, %cst_63 {dimension_numbers = #tpu.dot_dimension_numbers<[1], [0], [0], [1], [0, 0, 1, 1], [], []>} : vector<8x8xbf16>, vector<8x32xbf16>, vector<8x32xf32> -> vector<8x32xf32>
    "tpu.trace_stop"() : () -> ()
    %179 = vector.extract_strided_slice %47 {offsets = [0, 192], sizes = [8, 32], strides = [1, 1]} : vector<8x256xf32> to vector<8x32xf32>
    %180 = arith.truncf %179 : vector<8x32xf32> to vector<8x32xbf16>
    %181 = vector.extract_strided_slice %50 {offsets = [0, 192], sizes = [8, 32], strides = [1, 1]} : vector<8x256xf32> to vector<8x32xf32>
    %182 = arith.truncf %181 : vector<8x32xf32> to vector<8x32xbf16>
    "tpu.trace_start"() <{level = 10 : i32, message = "md,nd->mn"}> : () -> ()
    %cst_64 = arith.constant dense<0.000000e+00> : vector<8x8xf32>
    %183 = tpu.matmul %180, %182, %cst_64 {dimension_numbers = #tpu.dot_dimension_numbers<[1], [1], [0], [0], [0, 0, 1, 0], [], []>} : vector<8x32xbf16>, vector<8x32xbf16>, vector<8x8xf32> -> vector<8x8xf32>
    "tpu.trace_stop"() : () -> ()
    %cst_65 = arith.constant 0.176776692 : f32
    %184 = vector.broadcast %cst_65 : f32 to vector<8x8xf32>
    %185 = arith.mulf %183, %184 : vector<8x8xf32>
    %cst_66 = arith.constant dense<0xFF800000> : vector<8xf32>
    %186 = vector.multi_reduction <maximumf>, %185, %cst_66 [1] : vector<8x8xf32> to vector<8xf32>
    %187 = vector.shape_cast %186 : vector<8xf32> to vector<8x1xf32>
    %188 = vector.broadcast %187 : vector<8x1xf32> to vector<8x8xf32>
    %189 = arith.subf %185, %188 : vector<8x8xf32>
    %190 = math.exp %189 : vector<8x8xf32>
    %cst_67 = arith.constant dense<0.000000e+00> : vector<8xf32>
    %191 = vector.multi_reduction <add>, %190, %cst_67 [1] : vector<8x8xf32> to vector<8xf32>
    %192 = vector.shape_cast %191 : vector<8xf32> to vector<8x1xf32>
    %193 = tpu.reciprocal %192 {approx = true} : vector<8x1xf32> -> vector<8x1xf32>
    %194 = vector.broadcast %193 : vector<8x1xf32> to vector<8x8xf32>
    %195 = arith.mulf %190, %194 : vector<8x8xf32>
    %196 = arith.truncf %195 : vector<8x8xf32> to vector<8x8xbf16>
    %197 = vector.extract_strided_slice %51 {offsets = [0, 192], sizes = [8, 32], strides = [1, 1]} : vector<8x256xf32> to vector<8x32xf32>
    %198 = arith.truncf %197 : vector<8x32xf32> to vector<8x32xbf16>
    "tpu.trace_start"() <{level = 10 : i32, message = "mn,nd->md"}> : () -> ()
    %cst_68 = arith.constant dense<0.000000e+00> : vector<8x32xf32>
    %199 = tpu.matmul %196, %198, %cst_68 {dimension_numbers = #tpu.dot_dimension_numbers<[1], [0], [0], [1], [0, 0, 1, 1], [], []>} : vector<8x8xbf16>, vector<8x32xbf16>, vector<8x32xf32> -> vector<8x32xf32>
    "tpu.trace_stop"() : () -> ()
    %200 = vector.extract_strided_slice %47 {offsets = [0, 224], sizes = [8, 32], strides = [1, 1]} : vector<8x256xf32> to vector<8x32xf32>
    %201 = arith.truncf %200 : vector<8x32xf32> to vector<8x32xbf16>
    %202 = vector.extract_strided_slice %50 {offsets = [0, 224], sizes = [8, 32], strides = [1, 1]} : vector<8x256xf32> to vector<8x32xf32>
    %203 = arith.truncf %202 : vector<8x32xf32> to vector<8x32xbf16>
    "tpu.trace_start"() <{level = 10 : i32, message = "md,nd->mn"}> : () -> ()
    %cst_69 = arith.constant dense<0.000000e+00> : vector<8x8xf32>
    %204 = tpu.matmul %201, %203, %cst_69 {dimension_numbers = #tpu.dot_dimension_numbers<[1], [1], [0], [0], [0, 0, 1, 0], [], []>} : vector<8x32xbf16>, vector<8x32xbf16>, vector<8x8xf32> -> vector<8x8xf32>
    "tpu.trace_stop"() : () -> ()
    %cst_70 = arith.constant 0.176776692 : f32
    %205 = vector.broadcast %cst_70 : f32 to vector<8x8xf32>
    %206 = arith.mulf %204, %205 : vector<8x8xf32>
    %cst_71 = arith.constant dense<0xFF800000> : vector<8xf32>
    %207 = vector.multi_reduction <maximumf>, %206, %cst_71 [1] : vector<8x8xf32> to vector<8xf32>
    %208 = vector.shape_cast %207 : vector<8xf32> to vector<8x1xf32>
    %209 = vector.broadcast %208 : vector<8x1xf32> to vector<8x8xf32>
    %210 = arith.subf %206, %209 : vector<8x8xf32>
    %211 = math.exp %210 : vector<8x8xf32>
    %cst_72 = arith.constant dense<0.000000e+00> : vector<8xf32>
    %212 = vector.multi_reduction <add>, %211, %cst_72 [1] : vector<8x8xf32> to vector<8xf32>
    %213 = vector.shape_cast %212 : vector<8xf32> to vector<8x1xf32>
    %214 = tpu.reciprocal %213 {approx = true} : vector<8x1xf32> -> vector<8x1xf32>
    %215 = vector.broadcast %214 : vector<8x1xf32> to vector<8x8xf32>
    %216 = arith.mulf %211, %215 : vector<8x8xf32>
    %217 = arith.truncf %216 : vector<8x8xf32> to vector<8x8xbf16>
    %218 = vector.extract_strided_slice %51 {offsets = [0, 224], sizes = [8, 32], strides = [1, 1]} : vector<8x256xf32> to vector<8x32xf32>
    %219 = arith.truncf %218 : vector<8x32xf32> to vector<8x32xbf16>
    "tpu.trace_start"() <{level = 10 : i32, message = "mn,nd->md"}> : () -> ()
    %cst_73 = arith.constant dense<0.000000e+00> : vector<8x32xf32>
    %220 = tpu.matmul %217, %219, %cst_73 {dimension_numbers = #tpu.dot_dimension_numbers<[1], [0], [0], [1], [0, 0, 1, 1], [], []>} : vector<8x8xbf16>, vector<8x32xbf16>, vector<8x32xf32> -> vector<8x32xf32>
    "tpu.trace_stop"() : () -> ()
    %221 = tpu.concatenate %73, %94, %115, %136, %157, %178, %199, %220 in 1 : vector<8x32xf32>, vector<8x32xf32>, vector<8x32xf32>, vector<8x32xf32>, vector<8x32xf32>, vector<8x32xf32>, vector<8x32xf32>, vector<8x32xf32> -> vector<8x256xf32>
    %222 = arith.truncf %221 : vector<8x256xf32> to vector<8x256xbf16>
    %c0_74 = arith.constant 0 : index
    %c0_75 = arith.constant 0 : index
    %c0_76 = arith.constant 0 : index
    %223 = vector.load %arg15[%c0_74, %c0_75, %c0_76] : memref<1x256x256xbf16, #tpu.memory_space<vmem>>, vector<1x256x256xbf16>
    %224 = vector.shape_cast %223 : vector<1x256x256xbf16> to vector<256x256xbf16>
    %cst_77 = arith.constant dense<0.000000e+00> : vector<8x256xf32>
    %225 = tpu.matmul %222, %224, %cst_77 {dimension_numbers = #tpu.dot_dimension_numbers<[1], [0], [0], [1], [0, 0, 1, 1], [], []>} : vector<8x256xbf16>, vector<256x256xbf16>, vector<8x256xf32> -> vector<8x256xf32>
    %c0_78 = arith.constant 0 : index
    %c0_79 = arith.constant 0 : index
    %c0_80 = arith.constant 0 : index
    %226 = vector.load %arg16[%c0_78, %c0_79, %c0_80] : memref<1x1x256xf32, #tpu.memory_space<vmem>>, vector<1x1x256xf32>
    %227 = vector.shape_cast %226 : vector<1x1x256xf32> to vector<1x256xf32>
    %228 = vector.broadcast %227 : vector<1x256xf32> to vector<8x256xf32>
    %229 = arith.addf %225, %228 : vector<8x256xf32>
    %c0_81 = arith.constant 0 : index
    %c0_82 = arith.constant 0 : index
    %c0_83 = arith.constant 0 : index
    %230 = vector.load %arg31[%c0_81, %c0_82, %c0_83] : memref<1x6x256xf32, #tpu.memory_space<vmem>>, vector<1x1x256xf32>
    %231 = vector.shape_cast %230 : vector<1x1x256xf32> to vector<1x256xf32>
    %c0_84 = arith.constant 0 : index
    %c1 = arith.constant 1 : index
    %c0_85 = arith.constant 0 : index
    %232 = vector.load %arg31[%c0_84, %c1, %c0_85] : memref<1x6x256xf32, #tpu.memory_space<vmem>>, vector<1x1x256xf32>
    %233 = vector.shape_cast %232 : vector<1x1x256xf32> to vector<1x256xf32>
    %234 = arith.addf %229, %5 : vector<8x256xf32>
    %cst_86 = arith.constant dense<0.000000e+00> : vector<8xf32>
    %235 = vector.multi_reduction <add>, %234, %cst_86 [1] : vector<8x256xf32> to vector<8xf32>
    %236 = vector.shape_cast %235 : vector<8xf32> to vector<8x1xf32>
    %cst_87 = arith.constant 2.560000e+02 : f32
    %237 = vector.broadcast %cst_87 : f32 to vector<8x1xf32>
    %238 = arith.divf %236, %237 : vector<8x1xf32>
    %239 = vector.broadcast %238 : vector<8x1xf32> to vector<8x256xf32>
    %240 = arith.subf %234, %239 : vector<8x256xf32>
    %241 = arith.mulf %240, %240 : vector<8x256xf32>
    %cst_88 = arith.constant dense<0.000000e+00> : vector<8xf32>
    %242 = vector.multi_reduction <add>, %241, %cst_88 [1] : vector<8x256xf32> to vector<8xf32>
    %243 = vector.shape_cast %242 : vector<8xf32> to vector<8x1xf32>
    %cst_89 = arith.constant 2.560000e+02 : f32
    %244 = vector.broadcast %cst_89 : f32 to vector<8x1xf32>
    %245 = arith.divf %243, %244 : vector<8x1xf32>
    %cst_90 = arith.constant 9.99999974E-6 : f32
    %246 = vector.broadcast %cst_90 : f32 to vector<8x1xf32>
    %247 = arith.addf %245, %246 : vector<8x1xf32>
    %248 = math.rsqrt %247 : vector<8x1xf32>
    %249 = vector.broadcast %248 : vector<8x1xf32> to vector<8x256xf32>
    %250 = arith.mulf %240, %249 : vector<8x256xf32>
    %251 = vector.broadcast %231 : vector<1x256xf32> to vector<8x256xf32>
    %252 = arith.mulf %250, %251 : vector<8x256xf32>
    %253 = vector.broadcast %233 : vector<1x256xf32> to vector<8x256xf32>
    %254 = arith.addf %252, %253 : vector<8x256xf32>
    %255 = arith.truncf %254 : vector<8x256xf32> to vector<8x256xbf16>
    %c0_91 = arith.constant 0 : index
    %c0_92 = arith.constant 0 : index
    %c0_93 = arith.constant 0 : index
    %256 = vector.load %arg17[%c0_91, %c0_92, %c0_93] : memref<1x256x256xbf16, #tpu.memory_space<vmem>>, vector<1x256x256xbf16>
    %257 = vector.shape_cast %256 : vector<1x256x256xbf16> to vector<256x256xbf16>
    %cst_94 = arith.constant dense<0.000000e+00> : vector<8x256xf32>
    %258 = tpu.matmul %255, %257, %cst_94 {dimension_numbers = #tpu.dot_dimension_numbers<[1], [0], [0], [1], [0, 0, 1, 1], [], []>} : vector<8x256xbf16>, vector<256x256xbf16>, vector<8x256xf32> -> vector<8x256xf32>
    %c0_95 = arith.constant 0 : index
    %c0_96 = arith.constant 0 : index
    %c0_97 = arith.constant 0 : index
    %259 = vector.load %arg18[%c0_95, %c0_96, %c0_97] : memref<1x1x256xf32, #tpu.memory_space<vmem>>, vector<1x1x256xf32>
    %260 = vector.shape_cast %259 : vector<1x1x256xf32> to vector<1x256xf32>
    %261 = vector.broadcast %260 : vector<1x256xf32> to vector<8x256xf32>
    %262 = arith.addf %258, %261 : vector<8x256xf32>
    %263 = arith.addf %262, %52 : vector<8x256xf32>
    %c0_98 = arith.constant 0 : index
    %c0_99 = arith.constant 0 : index
    %264 = vector.load %arg5[%c0_98, %c0_99] : memref<16x256xf32, #tpu.memory_space<vmem>>, vector<16x256xf32>
    %265 = arith.truncf %264 : vector<16x256xf32> to vector<16x256xbf16>
    %c0_100 = arith.constant 0 : index
    %c0_101 = arith.constant 0 : index
    %c0_102 = arith.constant 0 : index
    %266 = vector.load %arg19[%c0_100, %c0_101, %c0_102] : memref<1x256x512xbf16, #tpu.memory_space<vmem>>, vector<1x256x512xbf16>
    %267 = vector.shape_cast %266 : vector<1x256x512xbf16> to vector<256x512xbf16>
    %cst_103 = arith.constant dense<0.000000e+00> : vector<16x512xf32>
    %268 = tpu.matmul %265, %267, %cst_103 {dimension_numbers = #tpu.dot_dimension_numbers<[1], [0], [0], [1], [0, 0, 1, 1], [], []>} : vector<16x256xbf16>, vector<256x512xbf16>, vector<16x512xf32> -> vector<16x512xf32>
    %c0_104 = arith.constant 0 : index
    %c0_105 = arith.constant 0 : index
    %c0_106 = arith.constant 0 : index
    %269 = vector.load %arg20[%c0_104, %c0_105, %c0_106] : memref<1x1x512xf32, #tpu.memory_space<vmem>>, vector<1x1x512xf32>
    %270 = vector.shape_cast %269 : vector<1x1x512xf32> to vector<1x512xf32>
    %271 = vector.broadcast %270 : vector<1x512xf32> to vector<16x512xf32>
    %272 = arith.addf %268, %271 : vector<16x512xf32>
    %273 = vector.extract_strided_slice %272 {offsets = [0, 0], sizes = [16, 256], strides = [1, 1]} : vector<16x512xf32> to vector<16x256xf32>
    %274 = vector.extract_strided_slice %272 {offsets = [0, 256], sizes = [16, 256], strides = [1, 1]} : vector<16x512xf32> to vector<16x256xf32>
    %c0_107 = arith.constant 0 : index
    %c0_108 = arith.constant 0 : index
    %275 = vector.load %arg6[%c0_107, %c0_108] : memref<16x256xf32, #tpu.memory_space<vmem>>, vector<16x256xf32>
    %276 = arith.truncf %275 : vector<16x256xf32> to vector<16x256xbf16>
    %c0_109 = arith.constant 0 : index
    %c0_110 = arith.constant 0 : index
    %c0_111 = arith.constant 0 : index
    %277 = vector.load %arg21[%c0_109, %c0_110, %c0_111] : memref<1x256x256xbf16, #tpu.memory_space<vmem>>, vector<1x256x256xbf16>
    %278 = vector.shape_cast %277 : vector<1x256x256xbf16> to vector<256x256xbf16>
    %cst_112 = arith.constant dense<0.000000e+00> : vector<16x256xf32>
    %279 = tpu.matmul %276, %278, %cst_112 {dimension_numbers = #tpu.dot_dimension_numbers<[1], [0], [0], [1], [0, 0, 1, 1], [], []>} : vector<16x256xbf16>, vector<256x256xbf16>, vector<16x256xf32> -> vector<16x256xf32>
    %c0_113 = arith.constant 0 : index
    %c0_114 = arith.constant 0 : index
    %c0_115 = arith.constant 0 : index
    %280 = vector.load %arg22[%c0_113, %c0_114, %c0_115] : memref<1x1x256xf32, #tpu.memory_space<vmem>>, vector<1x1x256xf32>
    %281 = vector.shape_cast %280 : vector<1x1x256xf32> to vector<1x256xf32>
    %282 = vector.broadcast %281 : vector<1x256xf32> to vector<16x256xf32>
    %283 = arith.addf %279, %282 : vector<16x256xf32>
    %284 = vector.broadcast %1 : vector<1x1xf32> to vector<16x256xf32>
    %285 = arith.mulf %284, %283 : vector<16x256xf32>
    %286 = arith.addf %273, %285 : vector<16x256xf32>
    %287 = arith.truncf %27 : vector<8x256xf32> to vector<8x256xbf16>
    %c0_116 = arith.constant 0 : index
    %c0_117 = arith.constant 0 : index
    %c0_118 = arith.constant 0 : index
    %288 = vector.load %arg23[%c0_116, %c0_117, %c0_118] : memref<1x256x256xbf16, #tpu.memory_space<vmem>>, vector<1x256x256xbf16>
    %289 = vector.shape_cast %288 : vector<1x256x256xbf16> to vector<256x256xbf16>
    %cst_119 = arith.constant dense<0.000000e+00> : vector<8x256xf32>
    %290 = tpu.matmul %287, %289, %cst_119 {dimension_numbers = #tpu.dot_dimension_numbers<[1], [0], [0], [1], [0, 0, 1, 1], [], []>} : vector<8x256xbf16>, vector<256x256xbf16>, vector<8x256xf32> -> vector<8x256xf32>
    %c0_120 = arith.constant 0 : index
    %c0_121 = arith.constant 0 : index
    %c0_122 = arith.constant 0 : index
    %291 = vector.load %arg24[%c0_120, %c0_121, %c0_122] : memref<1x1x256xf32, #tpu.memory_space<vmem>>, vector<1x1x256xf32>
    %292 = vector.shape_cast %291 : vector<1x1x256xf32> to vector<1x256xf32>
    %293 = vector.broadcast %292 : vector<1x256xf32> to vector<8x256xf32>
    %294 = arith.addf %290, %293 : vector<8x256xf32>
    %295 = vector.extract_strided_slice %263 {offsets = [0, 0], sizes = [8, 32], strides = [1, 1]} : vector<8x256xf32> to vector<8x32xf32>
    %296 = arith.truncf %295 : vector<8x32xf32> to vector<8x32xbf16>
    %297 = vector.extract_strided_slice %286 {offsets = [0, 0], sizes = [16, 32], strides = [1, 1]} : vector<16x256xf32> to vector<16x32xf32>
    %298 = arith.truncf %297 : vector<16x32xf32> to vector<16x32xbf16>
    "tpu.trace_start"() <{level = 10 : i32, message = "md,nd->mn"}> : () -> ()
    %cst_123 = arith.constant dense<0.000000e+00> : vector<8x16xf32>
    %299 = tpu.matmul %296, %298, %cst_123 {dimension_numbers = #tpu.dot_dimension_numbers<[1], [1], [0], [0], [0, 0, 1, 0], [], []>} : vector<8x32xbf16>, vector<16x32xbf16>, vector<8x16xf32> -> vector<8x16xf32>
    "tpu.trace_stop"() : () -> ()
    %300 = vector.extract_strided_slice %294 {offsets = [0, 0], sizes = [8, 32], strides = [1, 1]} : vector<8x256xf32> to vector<8x32xf32>
    %301 = arith.truncf %300 : vector<8x32xf32> to vector<8x32xbf16>
    %302 = vector.extract_strided_slice %283 {offsets = [0, 0], sizes = [16, 32], strides = [1, 1]} : vector<16x256xf32> to vector<16x32xf32>
    %303 = arith.truncf %302 : vector<16x32xf32> to vector<16x32xbf16>
    "tpu.trace_start"() <{level = 10 : i32, message = "md,nd->mn"}> : () -> ()
    %cst_124 = arith.constant dense<0.000000e+00> : vector<8x16xf32>
    %304 = tpu.matmul %301, %303, %cst_124 {dimension_numbers = #tpu.dot_dimension_numbers<[1], [1], [0], [0], [0, 0, 1, 0], [], []>} : vector<8x32xbf16>, vector<16x32xbf16>, vector<8x16xf32> -> vector<8x16xf32>
    "tpu.trace_stop"() : () -> ()
    %305 = arith.addf %299, %304 : vector<8x16xf32>
    %cst_125 = arith.constant 1.250000e-01 : f32
    %306 = vector.broadcast %cst_125 : f32 to vector<8x16xf32>
    %307 = arith.mulf %305, %306 : vector<8x16xf32>
    %cst_126 = arith.constant dense<0xFF800000> : vector<8xf32>
    %308 = vector.multi_reduction <maximumf>, %307, %cst_126 [1] : vector<8x16xf32> to vector<8xf32>
    %309 = vector.shape_cast %308 : vector<8xf32> to vector<8x1xf32>
    %310 = vector.broadcast %309 : vector<8x1xf32> to vector<8x16xf32>
    %311 = arith.subf %307, %310 : vector<8x16xf32>
    %312 = math.exp %311 : vector<8x16xf32>
    %cst_127 = arith.constant dense<0.000000e+00> : vector<8xf32>
    %313 = vector.multi_reduction <add>, %312, %cst_127 [1] : vector<8x16xf32> to vector<8xf32>
    %314 = vector.shape_cast %313 : vector<8xf32> to vector<8x1xf32>
    %315 = tpu.reciprocal %314 {approx = true} : vector<8x1xf32> -> vector<8x1xf32>
    %316 = vector.broadcast %315 : vector<8x1xf32> to vector<8x16xf32>
    %317 = arith.mulf %312, %316 : vector<8x16xf32>
    %318 = arith.truncf %317 : vector<8x16xf32> to vector<8x16xbf16>
    %319 = vector.extract_strided_slice %274 {offsets = [0, 0], sizes = [16, 32], strides = [1, 1]} : vector<16x256xf32> to vector<16x32xf32>
    %320 = arith.truncf %319 : vector<16x32xf32> to vector<16x32xbf16>
    "tpu.trace_start"() <{level = 10 : i32, message = "mn,nd->md"}> : () -> ()
    %cst_128 = arith.constant dense<0.000000e+00> : vector<8x32xf32>
    %321 = tpu.matmul %318, %320, %cst_128 {dimension_numbers = #tpu.dot_dimension_numbers<[1], [0], [0], [1], [0, 0, 1, 1], [], []>} : vector<8x16xbf16>, vector<16x32xbf16>, vector<8x32xf32> -> vector<8x32xf32>
    "tpu.trace_stop"() : () -> ()
    %322 = vector.extract_strided_slice %263 {offsets = [0, 32], sizes = [8, 32], strides = [1, 1]} : vector<8x256xf32> to vector<8x32xf32>
    %323 = arith.truncf %322 : vector<8x32xf32> to vector<8x32xbf16>
    %324 = vector.extract_strided_slice %286 {offsets = [0, 32], sizes = [16, 32], strides = [1, 1]} : vector<16x256xf32> to vector<16x32xf32>
    %325 = arith.truncf %324 : vector<16x32xf32> to vector<16x32xbf16>
    "tpu.trace_start"() <{level = 10 : i32, message = "md,nd->mn"}> : () -> ()
    %cst_129 = arith.constant dense<0.000000e+00> : vector<8x16xf32>
    %326 = tpu.matmul %323, %325, %cst_129 {dimension_numbers = #tpu.dot_dimension_numbers<[1], [1], [0], [0], [0, 0, 1, 0], [], []>} : vector<8x32xbf16>, vector<16x32xbf16>, vector<8x16xf32> -> vector<8x16xf32>
    "tpu.trace_stop"() : () -> ()
    %327 = vector.extract_strided_slice %294 {offsets = [0, 32], sizes = [8, 32], strides = [1, 1]} : vector<8x256xf32> to vector<8x32xf32>
    %328 = arith.truncf %327 : vector<8x32xf32> to vector<8x32xbf16>
    %329 = vector.extract_strided_slice %283 {offsets = [0, 32], sizes = [16, 32], strides = [1, 1]} : vector<16x256xf32> to vector<16x32xf32>
    %330 = arith.truncf %329 : vector<16x32xf32> to vector<16x32xbf16>
    "tpu.trace_start"() <{level = 10 : i32, message = "md,nd->mn"}> : () -> ()
    %cst_130 = arith.constant dense<0.000000e+00> : vector<8x16xf32>
    %331 = tpu.matmul %328, %330, %cst_130 {dimension_numbers = #tpu.dot_dimension_numbers<[1], [1], [0], [0], [0, 0, 1, 0], [], []>} : vector<8x32xbf16>, vector<16x32xbf16>, vector<8x16xf32> -> vector<8x16xf32>
    "tpu.trace_stop"() : () -> ()
    %332 = arith.addf %326, %331 : vector<8x16xf32>
    %cst_131 = arith.constant 1.250000e-01 : f32
    %333 = vector.broadcast %cst_131 : f32 to vector<8x16xf32>
    %334 = arith.mulf %332, %333 : vector<8x16xf32>
    %cst_132 = arith.constant dense<0xFF800000> : vector<8xf32>
    %335 = vector.multi_reduction <maximumf>, %334, %cst_132 [1] : vector<8x16xf32> to vector<8xf32>
    %336 = vector.shape_cast %335 : vector<8xf32> to vector<8x1xf32>
    %337 = vector.broadcast %336 : vector<8x1xf32> to vector<8x16xf32>
    %338 = arith.subf %334, %337 : vector<8x16xf32>
    %339 = math.exp %338 : vector<8x16xf32>
    %cst_133 = arith.constant dense<0.000000e+00> : vector<8xf32>
    %340 = vector.multi_reduction <add>, %339, %cst_133 [1] : vector<8x16xf32> to vector<8xf32>
    %341 = vector.shape_cast %340 : vector<8xf32> to vector<8x1xf32>
    %342 = tpu.reciprocal %341 {approx = true} : vector<8x1xf32> -> vector<8x1xf32>
    %343 = vector.broadcast %342 : vector<8x1xf32> to vector<8x16xf32>
    %344 = arith.mulf %339, %343 : vector<8x16xf32>
    %345 = arith.truncf %344 : vector<8x16xf32> to vector<8x16xbf16>
    %346 = vector.extract_strided_slice %274 {offsets = [0, 32], sizes = [16, 32], strides = [1, 1]} : vector<16x256xf32> to vector<16x32xf32>
    %347 = arith.truncf %346 : vector<16x32xf32> to vector<16x32xbf16>
    "tpu.trace_start"() <{level = 10 : i32, message = "mn,nd->md"}> : () -> ()
    %cst_134 = arith.constant dense<0.000000e+00> : vector<8x32xf32>
    %348 = tpu.matmul %345, %347, %cst_134 {dimension_numbers = #tpu.dot_dimension_numbers<[1], [0], [0], [1], [0, 0, 1, 1], [], []>} : vector<8x16xbf16>, vector<16x32xbf16>, vector<8x32xf32> -> vector<8x32xf32>
    "tpu.trace_stop"() : () -> ()
    %349 = vector.extract_strided_slice %263 {offsets = [0, 64], sizes = [8, 32], strides = [1, 1]} : vector<8x256xf32> to vector<8x32xf32>
    %350 = arith.truncf %349 : vector<8x32xf32> to vector<8x32xbf16>
    %351 = vector.extract_strided_slice %286 {offsets = [0, 64], sizes = [16, 32], strides = [1, 1]} : vector<16x256xf32> to vector<16x32xf32>
    %352 = arith.truncf %351 : vector<16x32xf32> to vector<16x32xbf16>
    "tpu.trace_start"() <{level = 10 : i32, message = "md,nd->mn"}> : () -> ()
    %cst_135 = arith.constant dense<0.000000e+00> : vector<8x16xf32>
    %353 = tpu.matmul %350, %352, %cst_135 {dimension_numbers = #tpu.dot_dimension_numbers<[1], [1], [0], [0], [0, 0, 1, 0], [], []>} : vector<8x32xbf16>, vector<16x32xbf16>, vector<8x16xf32> -> vector<8x16xf32>
    "tpu.trace_stop"() : () -> ()
    %354 = vector.extract_strided_slice %294 {offsets = [0, 64], sizes = [8, 32], strides = [1, 1]} : vector<8x256xf32> to vector<8x32xf32>
    %355 = arith.truncf %354 : vector<8x32xf32> to vector<8x32xbf16>
    %356 = vector.extract_strided_slice %283 {offsets = [0, 64], sizes = [16, 32], strides = [1, 1]} : vector<16x256xf32> to vector<16x32xf32>
    %357 = arith.truncf %356 : vector<16x32xf32> to vector<16x32xbf16>
    "tpu.trace_start"() <{level = 10 : i32, message = "md,nd->mn"}> : () -> ()
    %cst_136 = arith.constant dense<0.000000e+00> : vector<8x16xf32>
    %358 = tpu.matmul %355, %357, %cst_136 {dimension_numbers = #tpu.dot_dimension_numbers<[1], [1], [0], [0], [0, 0, 1, 0], [], []>} : vector<8x32xbf16>, vector<16x32xbf16>, vector<8x16xf32> -> vector<8x16xf32>
    "tpu.trace_stop"() : () -> ()
    %359 = arith.addf %353, %358 : vector<8x16xf32>
    %cst_137 = arith.constant 1.250000e-01 : f32
    %360 = vector.broadcast %cst_137 : f32 to vector<8x16xf32>
    %361 = arith.mulf %359, %360 : vector<8x16xf32>
    %cst_138 = arith.constant dense<0xFF800000> : vector<8xf32>
    %362 = vector.multi_reduction <maximumf>, %361, %cst_138 [1] : vector<8x16xf32> to vector<8xf32>
    %363 = vector.shape_cast %362 : vector<8xf32> to vector<8x1xf32>
    %364 = vector.broadcast %363 : vector<8x1xf32> to vector<8x16xf32>
    %365 = arith.subf %361, %364 : vector<8x16xf32>
    %366 = math.exp %365 : vector<8x16xf32>
    %cst_139 = arith.constant dense<0.000000e+00> : vector<8xf32>
    %367 = vector.multi_reduction <add>, %366, %cst_139 [1] : vector<8x16xf32> to vector<8xf32>
    %368 = vector.shape_cast %367 : vector<8xf32> to vector<8x1xf32>
    %369 = tpu.reciprocal %368 {approx = true} : vector<8x1xf32> -> vector<8x1xf32>
    %370 = vector.broadcast %369 : vector<8x1xf32> to vector<8x16xf32>
    %371 = arith.mulf %366, %370 : vector<8x16xf32>
    %372 = arith.truncf %371 : vector<8x16xf32> to vector<8x16xbf16>
    %373 = vector.extract_strided_slice %274 {offsets = [0, 64], sizes = [16, 32], strides = [1, 1]} : vector<16x256xf32> to vector<16x32xf32>
    %374 = arith.truncf %373 : vector<16x32xf32> to vector<16x32xbf16>
    "tpu.trace_start"() <{level = 10 : i32, message = "mn,nd->md"}> : () -> ()
    %cst_140 = arith.constant dense<0.000000e+00> : vector<8x32xf32>
    %375 = tpu.matmul %372, %374, %cst_140 {dimension_numbers = #tpu.dot_dimension_numbers<[1], [0], [0], [1], [0, 0, 1, 1], [], []>} : vector<8x16xbf16>, vector<16x32xbf16>, vector<8x32xf32> -> vector<8x32xf32>
    "tpu.trace_stop"() : () -> ()
    %376 = vector.extract_strided_slice %263 {offsets = [0, 96], sizes = [8, 32], strides = [1, 1]} : vector<8x256xf32> to vector<8x32xf32>
    %377 = arith.truncf %376 : vector<8x32xf32> to vector<8x32xbf16>
    %378 = vector.extract_strided_slice %286 {offsets = [0, 96], sizes = [16, 32], strides = [1, 1]} : vector<16x256xf32> to vector<16x32xf32>
    %379 = arith.truncf %378 : vector<16x32xf32> to vector<16x32xbf16>
    "tpu.trace_start"() <{level = 10 : i32, message = "md,nd->mn"}> : () -> ()
    %cst_141 = arith.constant dense<0.000000e+00> : vector<8x16xf32>
    %380 = tpu.matmul %377, %379, %cst_141 {dimension_numbers = #tpu.dot_dimension_numbers<[1], [1], [0], [0], [0, 0, 1, 0], [], []>} : vector<8x32xbf16>, vector<16x32xbf16>, vector<8x16xf32> -> vector<8x16xf32>
    "tpu.trace_stop"() : () -> ()
    %381 = vector.extract_strided_slice %294 {offsets = [0, 96], sizes = [8, 32], strides = [1, 1]} : vector<8x256xf32> to vector<8x32xf32>
    %382 = arith.truncf %381 : vector<8x32xf32> to vector<8x32xbf16>
    %383 = vector.extract_strided_slice %283 {offsets = [0, 96], sizes = [16, 32], strides = [1, 1]} : vector<16x256xf32> to vector<16x32xf32>
    %384 = arith.truncf %383 : vector<16x32xf32> to vector<16x32xbf16>
    "tpu.trace_start"() <{level = 10 : i32, message = "md,nd->mn"}> : () -> ()
    %cst_142 = arith.constant dense<0.000000e+00> : vector<8x16xf32>
    %385 = tpu.matmul %382, %384, %cst_142 {dimension_numbers = #tpu.dot_dimension_numbers<[1], [1], [0], [0], [0, 0, 1, 0], [], []>} : vector<8x32xbf16>, vector<16x32xbf16>, vector<8x16xf32> -> vector<8x16xf32>
    "tpu.trace_stop"() : () -> ()
    %386 = arith.addf %380, %385 : vector<8x16xf32>
    %cst_143 = arith.constant 1.250000e-01 : f32
    %387 = vector.broadcast %cst_143 : f32 to vector<8x16xf32>
    %388 = arith.mulf %386, %387 : vector<8x16xf32>
    %cst_144 = arith.constant dense<0xFF800000> : vector<8xf32>
    %389 = vector.multi_reduction <maximumf>, %388, %cst_144 [1] : vector<8x16xf32> to vector<8xf32>
    %390 = vector.shape_cast %389 : vector<8xf32> to vector<8x1xf32>
    %391 = vector.broadcast %390 : vector<8x1xf32> to vector<8x16xf32>
    %392 = arith.subf %388, %391 : vector<8x16xf32>
    %393 = math.exp %392 : vector<8x16xf32>
    %cst_145 = arith.constant dense<0.000000e+00> : vector<8xf32>
    %394 = vector.multi_reduction <add>, %393, %cst_145 [1] : vector<8x16xf32> to vector<8xf32>
    %395 = vector.shape_cast %394 : vector<8xf32> to vector<8x1xf32>
    %396 = tpu.reciprocal %395 {approx = true} : vector<8x1xf32> -> vector<8x1xf32>
    %397 = vector.broadcast %396 : vector<8x1xf32> to vector<8x16xf32>
    %398 = arith.mulf %393, %397 : vector<8x16xf32>
    %399 = arith.truncf %398 : vector<8x16xf32> to vector<8x16xbf16>
    %400 = vector.extract_strided_slice %274 {offsets = [0, 96], sizes = [16, 32], strides = [1, 1]} : vector<16x256xf32> to vector<16x32xf32>
    %401 = arith.truncf %400 : vector<16x32xf32> to vector<16x32xbf16>
    "tpu.trace_start"() <{level = 10 : i32, message = "mn,nd->md"}> : () -> ()
    %cst_146 = arith.constant dense<0.000000e+00> : vector<8x32xf32>
    %402 = tpu.matmul %399, %401, %cst_146 {dimension_numbers = #tpu.dot_dimension_numbers<[1], [0], [0], [1], [0, 0, 1, 1], [], []>} : vector<8x16xbf16>, vector<16x32xbf16>, vector<8x32xf32> -> vector<8x32xf32>
    "tpu.trace_stop"() : () -> ()
    %403 = vector.extract_strided_slice %263 {offsets = [0, 128], sizes = [8, 32], strides = [1, 1]} : vector<8x256xf32> to vector<8x32xf32>
    %404 = arith.truncf %403 : vector<8x32xf32> to vector<8x32xbf16>
    %405 = vector.extract_strided_slice %286 {offsets = [0, 128], sizes = [16, 32], strides = [1, 1]} : vector<16x256xf32> to vector<16x32xf32>
    %406 = arith.truncf %405 : vector<16x32xf32> to vector<16x32xbf16>
    "tpu.trace_start"() <{level = 10 : i32, message = "md,nd->mn"}> : () -> ()
    %cst_147 = arith.constant dense<0.000000e+00> : vector<8x16xf32>
    %407 = tpu.matmul %404, %406, %cst_147 {dimension_numbers = #tpu.dot_dimension_numbers<[1], [1], [0], [0], [0, 0, 1, 0], [], []>} : vector<8x32xbf16>, vector<16x32xbf16>, vector<8x16xf32> -> vector<8x16xf32>
    "tpu.trace_stop"() : () -> ()
    %408 = vector.extract_strided_slice %294 {offsets = [0, 128], sizes = [8, 32], strides = [1, 1]} : vector<8x256xf32> to vector<8x32xf32>
    %409 = arith.truncf %408 : vector<8x32xf32> to vector<8x32xbf16>
    %410 = vector.extract_strided_slice %283 {offsets = [0, 128], sizes = [16, 32], strides = [1, 1]} : vector<16x256xf32> to vector<16x32xf32>
    %411 = arith.truncf %410 : vector<16x32xf32> to vector<16x32xbf16>
    "tpu.trace_start"() <{level = 10 : i32, message = "md,nd->mn"}> : () -> ()
    %cst_148 = arith.constant dense<0.000000e+00> : vector<8x16xf32>
    %412 = tpu.matmul %409, %411, %cst_148 {dimension_numbers = #tpu.dot_dimension_numbers<[1], [1], [0], [0], [0, 0, 1, 0], [], []>} : vector<8x32xbf16>, vector<16x32xbf16>, vector<8x16xf32> -> vector<8x16xf32>
    "tpu.trace_stop"() : () -> ()
    %413 = arith.addf %407, %412 : vector<8x16xf32>
    %cst_149 = arith.constant 1.250000e-01 : f32
    %414 = vector.broadcast %cst_149 : f32 to vector<8x16xf32>
    %415 = arith.mulf %413, %414 : vector<8x16xf32>
    %cst_150 = arith.constant dense<0xFF800000> : vector<8xf32>
    %416 = vector.multi_reduction <maximumf>, %415, %cst_150 [1] : vector<8x16xf32> to vector<8xf32>
    %417 = vector.shape_cast %416 : vector<8xf32> to vector<8x1xf32>
    %418 = vector.broadcast %417 : vector<8x1xf32> to vector<8x16xf32>
    %419 = arith.subf %415, %418 : vector<8x16xf32>
    %420 = math.exp %419 : vector<8x16xf32>
    %cst_151 = arith.constant dense<0.000000e+00> : vector<8xf32>
    %421 = vector.multi_reduction <add>, %420, %cst_151 [1] : vector<8x16xf32> to vector<8xf32>
    %422 = vector.shape_cast %421 : vector<8xf32> to vector<8x1xf32>
    %423 = tpu.reciprocal %422 {approx = true} : vector<8x1xf32> -> vector<8x1xf32>
    %424 = vector.broadcast %423 : vector<8x1xf32> to vector<8x16xf32>
    %425 = arith.mulf %420, %424 : vector<8x16xf32>
    %426 = arith.truncf %425 : vector<8x16xf32> to vector<8x16xbf16>
    %427 = vector.extract_strided_slice %274 {offsets = [0, 128], sizes = [16, 32], strides = [1, 1]} : vector<16x256xf32> to vector<16x32xf32>
    %428 = arith.truncf %427 : vector<16x32xf32> to vector<16x32xbf16>
    "tpu.trace_start"() <{level = 10 : i32, message = "mn,nd->md"}> : () -> ()
    %cst_152 = arith.constant dense<0.000000e+00> : vector<8x32xf32>
    %429 = tpu.matmul %426, %428, %cst_152 {dimension_numbers = #tpu.dot_dimension_numbers<[1], [0], [0], [1], [0, 0, 1, 1], [], []>} : vector<8x16xbf16>, vector<16x32xbf16>, vector<8x32xf32> -> vector<8x32xf32>
    "tpu.trace_stop"() : () -> ()
    %430 = vector.extract_strided_slice %263 {offsets = [0, 160], sizes = [8, 32], strides = [1, 1]} : vector<8x256xf32> to vector<8x32xf32>
    %431 = arith.truncf %430 : vector<8x32xf32> to vector<8x32xbf16>
    %432 = vector.extract_strided_slice %286 {offsets = [0, 160], sizes = [16, 32], strides = [1, 1]} : vector<16x256xf32> to vector<16x32xf32>
    %433 = arith.truncf %432 : vector<16x32xf32> to vector<16x32xbf16>
    "tpu.trace_start"() <{level = 10 : i32, message = "md,nd->mn"}> : () -> ()
    %cst_153 = arith.constant dense<0.000000e+00> : vector<8x16xf32>
    %434 = tpu.matmul %431, %433, %cst_153 {dimension_numbers = #tpu.dot_dimension_numbers<[1], [1], [0], [0], [0, 0, 1, 0], [], []>} : vector<8x32xbf16>, vector<16x32xbf16>, vector<8x16xf32> -> vector<8x16xf32>
    "tpu.trace_stop"() : () -> ()
    %435 = vector.extract_strided_slice %294 {offsets = [0, 160], sizes = [8, 32], strides = [1, 1]} : vector<8x256xf32> to vector<8x32xf32>
    %436 = arith.truncf %435 : vector<8x32xf32> to vector<8x32xbf16>
    %437 = vector.extract_strided_slice %283 {offsets = [0, 160], sizes = [16, 32], strides = [1, 1]} : vector<16x256xf32> to vector<16x32xf32>
    %438 = arith.truncf %437 : vector<16x32xf32> to vector<16x32xbf16>
    "tpu.trace_start"() <{level = 10 : i32, message = "md,nd->mn"}> : () -> ()
    %cst_154 = arith.constant dense<0.000000e+00> : vector<8x16xf32>
    %439 = tpu.matmul %436, %438, %cst_154 {dimension_numbers = #tpu.dot_dimension_numbers<[1], [1], [0], [0], [0, 0, 1, 0], [], []>} : vector<8x32xbf16>, vector<16x32xbf16>, vector<8x16xf32> -> vector<8x16xf32>
    "tpu.trace_stop"() : () -> ()
    %440 = arith.addf %434, %439 : vector<8x16xf32>
    %cst_155 = arith.constant 1.250000e-01 : f32
    %441 = vector.broadcast %cst_155 : f32 to vector<8x16xf32>
    %442 = arith.mulf %440, %441 : vector<8x16xf32>
    %cst_156 = arith.constant dense<0xFF800000> : vector<8xf32>
    %443 = vector.multi_reduction <maximumf>, %442, %cst_156 [1] : vector<8x16xf32> to vector<8xf32>
    %444 = vector.shape_cast %443 : vector<8xf32> to vector<8x1xf32>
    %445 = vector.broadcast %444 : vector<8x1xf32> to vector<8x16xf32>
    %446 = arith.subf %442, %445 : vector<8x16xf32>
    %447 = math.exp %446 : vector<8x16xf32>
    %cst_157 = arith.constant dense<0.000000e+00> : vector<8xf32>
    %448 = vector.multi_reduction <add>, %447, %cst_157 [1] : vector<8x16xf32> to vector<8xf32>
    %449 = vector.shape_cast %448 : vector<8xf32> to vector<8x1xf32>
    %450 = tpu.reciprocal %449 {approx = true} : vector<8x1xf32> -> vector<8x1xf32>
    %451 = vector.broadcast %450 : vector<8x1xf32> to vector<8x16xf32>
    %452 = arith.mulf %447, %451 : vector<8x16xf32>
    %453 = arith.truncf %452 : vector<8x16xf32> to vector<8x16xbf16>
    %454 = vector.extract_strided_slice %274 {offsets = [0, 160], sizes = [16, 32], strides = [1, 1]} : vector<16x256xf32> to vector<16x32xf32>
    %455 = arith.truncf %454 : vector<16x32xf32> to vector<16x32xbf16>
    "tpu.trace_start"() <{level = 10 : i32, message = "mn,nd->md"}> : () -> ()
    %cst_158 = arith.constant dense<0.000000e+00> : vector<8x32xf32>
    %456 = tpu.matmul %453, %455, %cst_158 {dimension_numbers = #tpu.dot_dimension_numbers<[1], [0], [0], [1], [0, 0, 1, 1], [], []>} : vector<8x16xbf16>, vector<16x32xbf16>, vector<8x32xf32> -> vector<8x32xf32>
    "tpu.trace_stop"() : () -> ()
    %457 = vector.extract_strided_slice %263 {offsets = [0, 192], sizes = [8, 32], strides = [1, 1]} : vector<8x256xf32> to vector<8x32xf32>
    %458 = arith.truncf %457 : vector<8x32xf32> to vector<8x32xbf16>
    %459 = vector.extract_strided_slice %286 {offsets = [0, 192], sizes = [16, 32], strides = [1, 1]} : vector<16x256xf32> to vector<16x32xf32>
    %460 = arith.truncf %459 : vector<16x32xf32> to vector<16x32xbf16>
    "tpu.trace_start"() <{level = 10 : i32, message = "md,nd->mn"}> : () -> ()
    %cst_159 = arith.constant dense<0.000000e+00> : vector<8x16xf32>
    %461 = tpu.matmul %458, %460, %cst_159 {dimension_numbers = #tpu.dot_dimension_numbers<[1], [1], [0], [0], [0, 0, 1, 0], [], []>} : vector<8x32xbf16>, vector<16x32xbf16>, vector<8x16xf32> -> vector<8x16xf32>
    "tpu.trace_stop"() : () -> ()
    %462 = vector.extract_strided_slice %294 {offsets = [0, 192], sizes = [8, 32], strides = [1, 1]} : vector<8x256xf32> to vector<8x32xf32>
    %463 = arith.truncf %462 : vector<8x32xf32> to vector<8x32xbf16>
    %464 = vector.extract_strided_slice %283 {offsets = [0, 192], sizes = [16, 32], strides = [1, 1]} : vector<16x256xf32> to vector<16x32xf32>
    %465 = arith.truncf %464 : vector<16x32xf32> to vector<16x32xbf16>
    "tpu.trace_start"() <{level = 10 : i32, message = "md,nd->mn"}> : () -> ()
    %cst_160 = arith.constant dense<0.000000e+00> : vector<8x16xf32>
    %466 = tpu.matmul %463, %465, %cst_160 {dimension_numbers = #tpu.dot_dimension_numbers<[1], [1], [0], [0], [0, 0, 1, 0], [], []>} : vector<8x32xbf16>, vector<16x32xbf16>, vector<8x16xf32> -> vector<8x16xf32>
    "tpu.trace_stop"() : () -> ()
    %467 = arith.addf %461, %466 : vector<8x16xf32>
    %cst_161 = arith.constant 1.250000e-01 : f32
    %468 = vector.broadcast %cst_161 : f32 to vector<8x16xf32>
    %469 = arith.mulf %467, %468 : vector<8x16xf32>
    %cst_162 = arith.constant dense<0xFF800000> : vector<8xf32>
    %470 = vector.multi_reduction <maximumf>, %469, %cst_162 [1] : vector<8x16xf32> to vector<8xf32>
    %471 = vector.shape_cast %470 : vector<8xf32> to vector<8x1xf32>
    %472 = vector.broadcast %471 : vector<8x1xf32> to vector<8x16xf32>
    %473 = arith.subf %469, %472 : vector<8x16xf32>
    %474 = math.exp %473 : vector<8x16xf32>
    %cst_163 = arith.constant dense<0.000000e+00> : vector<8xf32>
    %475 = vector.multi_reduction <add>, %474, %cst_163 [1] : vector<8x16xf32> to vector<8xf32>
    %476 = vector.shape_cast %475 : vector<8xf32> to vector<8x1xf32>
    %477 = tpu.reciprocal %476 {approx = true} : vector<8x1xf32> -> vector<8x1xf32>
    %478 = vector.broadcast %477 : vector<8x1xf32> to vector<8x16xf32>
    %479 = arith.mulf %474, %478 : vector<8x16xf32>
    %480 = arith.truncf %479 : vector<8x16xf32> to vector<8x16xbf16>
    %481 = vector.extract_strided_slice %274 {offsets = [0, 192], sizes = [16, 32], strides = [1, 1]} : vector<16x256xf32> to vector<16x32xf32>
    %482 = arith.truncf %481 : vector<16x32xf32> to vector<16x32xbf16>
    "tpu.trace_start"() <{level = 10 : i32, message = "mn,nd->md"}> : () -> ()
    %cst_164 = arith.constant dense<0.000000e+00> : vector<8x32xf32>
    %483 = tpu.matmul %480, %482, %cst_164 {dimension_numbers = #tpu.dot_dimension_numbers<[1], [0], [0], [1], [0, 0, 1, 1], [], []>} : vector<8x16xbf16>, vector<16x32xbf16>, vector<8x32xf32> -> vector<8x32xf32>
    "tpu.trace_stop"() : () -> ()
    %484 = vector.extract_strided_slice %263 {offsets = [0, 224], sizes = [8, 32], strides = [1, 1]} : vector<8x256xf32> to vector<8x32xf32>
    %485 = arith.truncf %484 : vector<8x32xf32> to vector<8x32xbf16>
    %486 = vector.extract_strided_slice %286 {offsets = [0, 224], sizes = [16, 32], strides = [1, 1]} : vector<16x256xf32> to vector<16x32xf32>
    %487 = arith.truncf %486 : vector<16x32xf32> to vector<16x32xbf16>
    "tpu.trace_start"() <{level = 10 : i32, message = "md,nd->mn"}> : () -> ()
    %cst_165 = arith.constant dense<0.000000e+00> : vector<8x16xf32>
    %488 = tpu.matmul %485, %487, %cst_165 {dimension_numbers = #tpu.dot_dimension_numbers<[1], [1], [0], [0], [0, 0, 1, 0], [], []>} : vector<8x32xbf16>, vector<16x32xbf16>, vector<8x16xf32> -> vector<8x16xf32>
    "tpu.trace_stop"() : () -> ()
    %489 = vector.extract_strided_slice %294 {offsets = [0, 224], sizes = [8, 32], strides = [1, 1]} : vector<8x256xf32> to vector<8x32xf32>
    %490 = arith.truncf %489 : vector<8x32xf32> to vector<8x32xbf16>
    %491 = vector.extract_strided_slice %283 {offsets = [0, 224], sizes = [16, 32], strides = [1, 1]} : vector<16x256xf32> to vector<16x32xf32>
    %492 = arith.truncf %491 : vector<16x32xf32> to vector<16x32xbf16>
    "tpu.trace_start"() <{level = 10 : i32, message = "md,nd->mn"}> : () -> ()
    %cst_166 = arith.constant dense<0.000000e+00> : vector<8x16xf32>
    %493 = tpu.matmul %490, %492, %cst_166 {dimension_numbers = #tpu.dot_dimension_numbers<[1], [1], [0], [0], [0, 0, 1, 0], [], []>} : vector<8x32xbf16>, vector<16x32xbf16>, vector<8x16xf32> -> vector<8x16xf32>
    "tpu.trace_stop"() : () -> ()
    %494 = arith.addf %488, %493 : vector<8x16xf32>
    %cst_167 = arith.constant 1.250000e-01 : f32
    %495 = vector.broadcast %cst_167 : f32 to vector<8x16xf32>
    %496 = arith.mulf %494, %495 : vector<8x16xf32>
    %cst_168 = arith.constant dense<0xFF800000> : vector<8xf32>
    %497 = vector.multi_reduction <maximumf>, %496, %cst_168 [1] : vector<8x16xf32> to vector<8xf32>
    %498 = vector.shape_cast %497 : vector<8xf32> to vector<8x1xf32>
    %499 = vector.broadcast %498 : vector<8x1xf32> to vector<8x16xf32>
    %500 = arith.subf %496, %499 : vector<8x16xf32>
    %501 = math.exp %500 : vector<8x16xf32>
    %cst_169 = arith.constant dense<0.000000e+00> : vector<8xf32>
    %502 = vector.multi_reduction <add>, %501, %cst_169 [1] : vector<8x16xf32> to vector<8xf32>
    %503 = vector.shape_cast %502 : vector<8xf32> to vector<8x1xf32>
    %504 = tpu.reciprocal %503 {approx = true} : vector<8x1xf32> -> vector<8x1xf32>
    %505 = vector.broadcast %504 : vector<8x1xf32> to vector<8x16xf32>
    %506 = arith.mulf %501, %505 : vector<8x16xf32>
    %507 = arith.truncf %506 : vector<8x16xf32> to vector<8x16xbf16>
    %508 = vector.extract_strided_slice %274 {offsets = [0, 224], sizes = [16, 32], strides = [1, 1]} : vector<16x256xf32> to vector<16x32xf32>
    %509 = arith.truncf %508 : vector<16x32xf32> to vector<16x32xbf16>
    "tpu.trace_start"() <{level = 10 : i32, message = "mn,nd->md"}> : () -> ()
    %cst_170 = arith.constant dense<0.000000e+00> : vector<8x32xf32>
    %510 = tpu.matmul %507, %509, %cst_170 {dimension_numbers = #tpu.dot_dimension_numbers<[1], [0], [0], [1], [0, 0, 1, 1], [], []>} : vector<8x16xbf16>, vector<16x32xbf16>, vector<8x32xf32> -> vector<8x32xf32>
    "tpu.trace_stop"() : () -> ()
    %511 = tpu.concatenate %321, %348, %375, %402, %429, %456, %483, %510 in 1 : vector<8x32xf32>, vector<8x32xf32>, vector<8x32xf32>, vector<8x32xf32>, vector<8x32xf32>, vector<8x32xf32>, vector<8x32xf32>, vector<8x32xf32> -> vector<8x256xf32>
    %512 = arith.truncf %511 : vector<8x256xf32> to vector<8x256xbf16>
    %c0_171 = arith.constant 0 : index
    %c0_172 = arith.constant 0 : index
    %c0_173 = arith.constant 0 : index
    %513 = vector.load %arg25[%c0_171, %c0_172, %c0_173] : memref<1x256x256xbf16, #tpu.memory_space<vmem>>, vector<1x256x256xbf16>
    %514 = vector.shape_cast %513 : vector<1x256x256xbf16> to vector<256x256xbf16>
    %cst_174 = arith.constant dense<0.000000e+00> : vector<8x256xf32>
    %515 = tpu.matmul %512, %514, %cst_174 {dimension_numbers = #tpu.dot_dimension_numbers<[1], [0], [0], [1], [0, 0, 1, 1], [], []>} : vector<8x256xbf16>, vector<256x256xbf16>, vector<8x256xf32> -> vector<8x256xf32>
    %c0_175 = arith.constant 0 : index
    %c0_176 = arith.constant 0 : index
    %c0_177 = arith.constant 0 : index
    %516 = vector.load %arg26[%c0_175, %c0_176, %c0_177] : memref<1x1x256xf32, #tpu.memory_space<vmem>>, vector<1x1x256xf32>
    %517 = vector.shape_cast %516 : vector<1x1x256xf32> to vector<1x256xf32>
    %518 = vector.broadcast %517 : vector<1x256xf32> to vector<8x256xf32>
    %519 = arith.addf %515, %518 : vector<8x256xf32>
    %c0_178 = arith.constant 0 : index
    %c2 = arith.constant 2 : index
    %c0_179 = arith.constant 0 : index
    %520 = vector.load %arg31[%c0_178, %c2, %c0_179] : memref<1x6x256xf32, #tpu.memory_space<vmem>>, vector<1x1x256xf32>
    %521 = vector.shape_cast %520 : vector<1x1x256xf32> to vector<1x256xf32>
    %c0_180 = arith.constant 0 : index
    %c3 = arith.constant 3 : index
    %c0_181 = arith.constant 0 : index
    %522 = vector.load %arg31[%c0_180, %c3, %c0_181] : memref<1x6x256xf32, #tpu.memory_space<vmem>>, vector<1x1x256xf32>
    %523 = vector.shape_cast %522 : vector<1x1x256xf32> to vector<1x256xf32>
    %524 = arith.addf %519, %254 : vector<8x256xf32>
    %cst_182 = arith.constant dense<0.000000e+00> : vector<8xf32>
    %525 = vector.multi_reduction <add>, %524, %cst_182 [1] : vector<8x256xf32> to vector<8xf32>
    %526 = vector.shape_cast %525 : vector<8xf32> to vector<8x1xf32>
    %cst_183 = arith.constant 2.560000e+02 : f32
    %527 = vector.broadcast %cst_183 : f32 to vector<8x1xf32>
    %528 = arith.divf %526, %527 : vector<8x1xf32>
    %529 = vector.broadcast %528 : vector<8x1xf32> to vector<8x256xf32>
    %530 = arith.subf %524, %529 : vector<8x256xf32>
    %531 = arith.mulf %530, %530 : vector<8x256xf32>
    %cst_184 = arith.constant dense<0.000000e+00> : vector<8xf32>
    %532 = vector.multi_reduction <add>, %531, %cst_184 [1] : vector<8x256xf32> to vector<8xf32>
    %533 = vector.shape_cast %532 : vector<8xf32> to vector<8x1xf32>
    %cst_185 = arith.constant 2.560000e+02 : f32
    %534 = vector.broadcast %cst_185 : f32 to vector<8x1xf32>
    %535 = arith.divf %533, %534 : vector<8x1xf32>
    %cst_186 = arith.constant 9.99999974E-6 : f32
    %536 = vector.broadcast %cst_186 : f32 to vector<8x1xf32>
    %537 = arith.addf %535, %536 : vector<8x1xf32>
    %538 = math.rsqrt %537 : vector<8x1xf32>
    %539 = vector.broadcast %538 : vector<8x1xf32> to vector<8x256xf32>
    %540 = arith.mulf %530, %539 : vector<8x256xf32>
    %541 = vector.broadcast %521 : vector<1x256xf32> to vector<8x256xf32>
    %542 = arith.mulf %540, %541 : vector<8x256xf32>
    %543 = vector.broadcast %523 : vector<1x256xf32> to vector<8x256xf32>
    %544 = arith.addf %542, %543 : vector<8x256xf32>
    %545 = arith.truncf %544 : vector<8x256xf32> to vector<8x256xbf16>
    %c0_187 = arith.constant 0 : index
    %c0_188 = arith.constant 0 : index
    %c0_189 = arith.constant 0 : index
    %546 = vector.load %arg27[%c0_187, %c0_188, %c0_189] : memref<1x256x128xbf16, #tpu.memory_space<vmem>>, vector<1x256x128xbf16>
    %547 = vector.shape_cast %546 : vector<1x256x128xbf16> to vector<256x128xbf16>
    %cst_190 = arith.constant dense<0.000000e+00> : vector<8x128xf32>
    %548 = tpu.matmul %545, %547, %cst_190 {dimension_numbers = #tpu.dot_dimension_numbers<[1], [0], [0], [1], [0, 0, 1, 1], [], []>} : vector<8x256xbf16>, vector<256x128xbf16>, vector<8x128xf32> -> vector<8x128xf32>
    %c0_191 = arith.constant 0 : index
    %c0_192 = arith.constant 0 : index
    %c0_193 = arith.constant 0 : index
    %549 = vector.load %arg28[%c0_191, %c0_192, %c0_193] : memref<1x1x128xf32, #tpu.memory_space<vmem>>, vector<1x1x128xf32>
    %550 = vector.shape_cast %549 : vector<1x1x128xf32> to vector<1x128xf32>
    %551 = vector.broadcast %550 : vector<1x128xf32> to vector<8x128xf32>
    %552 = arith.addf %548, %551 : vector<8x128xf32>
    %cst_194 = arith.constant 0.000000e+00 : f32
    %553 = vector.broadcast %cst_194 : f32 to vector<8x128xf32>
    %554 = arith.maximumf %552, %553 : vector<8x128xf32>
    %555 = arith.truncf %554 : vector<8x128xf32> to vector<8x128xbf16>
    %c0_195 = arith.constant 0 : index
    %c0_196 = arith.constant 0 : index
    %c0_197 = arith.constant 0 : index
    %556 = vector.load %arg29[%c0_195, %c0_196, %c0_197] : memref<1x128x256xbf16, #tpu.memory_space<vmem>>, vector<1x128x256xbf16>
    %557 = vector.shape_cast %556 : vector<1x128x256xbf16> to vector<128x256xbf16>
    %cst_198 = arith.constant dense<0.000000e+00> : vector<8x256xf32>
    %558 = tpu.matmul %555, %557, %cst_198 {dimension_numbers = #tpu.dot_dimension_numbers<[1], [0], [0], [1], [0, 0, 1, 1], [], []>} : vector<8x128xbf16>, vector<128x256xbf16>, vector<8x256xf32> -> vector<8x256xf32>
    %c0_199 = arith.constant 0 : index
    %c0_200 = arith.constant 0 : index
    %c0_201 = arith.constant 0 : index
    %559 = vector.load %arg30[%c0_199, %c0_200, %c0_201] : memref<1x1x256xf32, #tpu.memory_space<vmem>>, vector<1x1x256xf32>
    %560 = vector.shape_cast %559 : vector<1x1x256xf32> to vector<1x256xf32>
    %561 = vector.broadcast %560 : vector<1x256xf32> to vector<8x256xf32>
    %562 = arith.addf %558, %561 : vector<8x256xf32>
    %c0_202 = arith.constant 0 : index
    %c4 = arith.constant 4 : index
    %c0_203 = arith.constant 0 : index
    %563 = vector.load %arg31[%c0_202, %c4, %c0_203] : memref<1x6x256xf32, #tpu.memory_space<vmem>>, vector<1x1x256xf32>
    %564 = vector.shape_cast %563 : vector<1x1x256xf32> to vector<1x256xf32>
    %c0_204 = arith.constant 0 : index
    %c5 = arith.constant 5 : index
    %c0_205 = arith.constant 0 : index
    %565 = vector.load %arg31[%c0_204, %c5, %c0_205] : memref<1x6x256xf32, #tpu.memory_space<vmem>>, vector<1x1x256xf32>
    %566 = vector.shape_cast %565 : vector<1x1x256xf32> to vector<1x256xf32>
    %567 = arith.addf %562, %544 : vector<8x256xf32>
    %cst_206 = arith.constant dense<0.000000e+00> : vector<8xf32>
    %568 = vector.multi_reduction <add>, %567, %cst_206 [1] : vector<8x256xf32> to vector<8xf32>
    %569 = vector.shape_cast %568 : vector<8xf32> to vector<8x1xf32>
    %cst_207 = arith.constant 2.560000e+02 : f32
    %570 = vector.broadcast %cst_207 : f32 to vector<8x1xf32>
    %571 = arith.divf %569, %570 : vector<8x1xf32>
    %572 = vector.broadcast %571 : vector<8x1xf32> to vector<8x256xf32>
    %573 = arith.subf %567, %572 : vector<8x256xf32>
    %574 = arith.mulf %573, %573 : vector<8x256xf32>
    %cst_208 = arith.constant dense<0.000000e+00> : vector<8xf32>
    %575 = vector.multi_reduction <add>, %574, %cst_208 [1] : vector<8x256xf32> to vector<8xf32>
    %576 = vector.shape_cast %575 : vector<8xf32> to vector<8x1xf32>
    %cst_209 = arith.constant 2.560000e+02 : f32
    %577 = vector.broadcast %cst_209 : f32 to vector<8x1xf32>
    %578 = arith.divf %576, %577 : vector<8x1xf32>
    %cst_210 = arith.constant 9.99999974E-6 : f32
    %579 = vector.broadcast %cst_210 : f32 to vector<8x1xf32>
    %580 = arith.addf %578, %579 : vector<8x1xf32>
    %581 = math.rsqrt %580 : vector<8x1xf32>
    %582 = vector.broadcast %581 : vector<8x1xf32> to vector<8x256xf32>
    %583 = arith.mulf %573, %582 : vector<8x256xf32>
    %584 = vector.broadcast %564 : vector<1x256xf32> to vector<8x256xf32>
    %585 = arith.mulf %583, %584 : vector<8x256xf32>
    %586 = vector.broadcast %566 : vector<1x256xf32> to vector<8x256xf32>
    %587 = arith.addf %585, %586 : vector<8x256xf32>
    %c0_211 = arith.constant 0 : index
    %c0_212 = arith.constant 0 : index
    %588 = vector.load %arg33[%c0_211, %c0_212] : memref<8x256xf32, #tpu.memory_space<vmem>>, vector<8x256xf32>
    tpu.vector_store %arg33[%c0_211, %c0_212], %587 {strides = array<i32>} : memref<8x256xf32, #tpu.memory_space<vmem>>, vector<8x256xf32>,
    return
  }
  func.func @transform_0(%arg0: i32, %arg1: i32) -> (i32, i32) {
    %c0_i32 = arith.constant 0 : i32
    %c0_i32_0 = arith.constant 0 : i32
    return %arg0, %c0_i32 : i32, i32
  }
  func.func @transform_1(%arg0: i32, %arg1: i32) -> (i32, i32) {
    %c0_i32 = arith.constant 0 : i32
    %c0_i32_0 = arith.constant 0 : i32
    return %arg0, %c0_i32 : i32, i32
  }
  func.func @transform_2(%arg0: i32, %arg1: i32) -> (i32, i32) {
    %c0_i32 = arith.constant 0 : i32
    %c0_i32_0 = arith.constant 0 : i32
    return %arg0, %c0_i32 : i32, i32
  }
  func.func @transform_3(%arg0: i32, %arg1: i32) -> (i32, i32) {
    %c0_i32 = arith.constant 0 : i32
    %c0_i32_0 = arith.constant 0 : i32
    return %arg0, %c0_i32 : i32, i32
  }
  func.func @transform_4(%arg0: i32, %arg1: i32) -> (i32, i32) {
    %c0_i32 = arith.constant 0 : i32
    %c0_i32_0 = arith.constant 0 : i32
    return %arg0, %c0_i32 : i32, i32
  }
  func.func @transform_5(%arg0: i32, %arg1: i32) -> (i32, i32) {
    %c0_i32 = arith.constant 0 : i32
    %c0_i32_0 = arith.constant 0 : i32
    %c0_i32_1 = arith.constant 0 : i32
    return %c0_i32, %c0_i32_0 : i32, i32
  }
  func.func @transform_6(%arg0: i32, %arg1: i32) -> (i32, i32) {
    %c0_i32 = arith.constant 0 : i32
    %c0_i32_0 = arith.constant 0 : i32
    %c0_i32_1 = arith.constant 0 : i32
    return %c0_i32, %c0_i32_0 : i32, i32
  }
  func.func @transform_7(%arg0: i32, %arg1: i32) -> (i32, i32) {
    %c0_i32 = arith.constant 0 : i32
    %c0_i32_0 = arith.constant 0 : i32
    %c0_i32_1 = arith.constant 0 : i32
    return %c0_i32, %c0_i32_0 : i32, i32
  }
  func.func @transform_8(%arg0: i32, %arg1: i32) -> (i32, i32) {
    %c0_i32 = arith.constant 0 : i32
    %c0_i32_0 = arith.constant 0 : i32
    %c0_i32_1 = arith.constant 0 : i32
    return %c0_i32, %c0_i32_0 : i32, i32
  }
  func.func @transform_9(%arg0: i32, %arg1: i32) -> (i32, i32, i32) {
    %c0_i32 = arith.constant 0 : i32
    %c0_i32_0 = arith.constant 0 : i32
    %c0_i32_1 = arith.constant 0 : i32
    return %arg1, %c0_i32, %c0_i32_0 : i32, i32, i32
  }
  func.func @transform_10(%arg0: i32, %arg1: i32) -> (i32, i32, i32) {
    %c0_i32 = arith.constant 0 : i32
    %c0_i32_0 = arith.constant 0 : i32
    %c0_i32_1 = arith.constant 0 : i32
    return %arg1, %c0_i32, %c0_i32_0 : i32, i32, i32
  }
  func.func @transform_11(%arg0: i32, %arg1: i32) -> (i32, i32, i32) {
    %c0_i32 = arith.constant 0 : i32
    %c0_i32_0 = arith.constant 0 : i32
    %c0_i32_1 = arith.constant 0 : i32
    return %arg1, %c0_i32, %c0_i32_0 : i32, i32, i32
  }
  func.func @transform_12(%arg0: i32, %arg1: i32) -> (i32, i32, i32) {
    %c0_i32 = arith.constant 0 : i32
    %c0_i32_0 = arith.constant 0 : i32
    %c0_i32_1 = arith.constant 0 : i32
    return %arg1, %c0_i32, %c0_i32_0 : i32, i32, i32
  }
  func.func @transform_13(%arg0: i32, %arg1: i32) -> (i32, i32, i32) {
    %c0_i32 = arith.constant 0 : i32
    %c0_i32_0 = arith.constant 0 : i32
    %c0_i32_1 = arith.constant 0 : i32
    return %arg1, %c0_i32, %c0_i32_0 : i32, i32, i32
  }
  func.func @transform_14(%arg0: i32, %arg1: i32) -> (i32, i32, i32) {
    %c0_i32 = arith.constant 0 : i32
    %c0_i32_0 = arith.constant 0 : i32
    %c0_i32_1 = arith.constant 0 : i32
    return %arg1, %c0_i32, %c0_i32_0 : i32, i32, i32
  }
  func.func @transform_15(%arg0: i32, %arg1: i32) -> (i32, i32, i32) {
    %c0_i32 = arith.constant 0 : i32
    %c0_i32_0 = arith.constant 0 : i32
    %c0_i32_1 = arith.constant 0 : i32
    return %arg1, %c0_i32, %c0_i32_0 : i32, i32, i32
  }
  func.func @transform_16(%arg0: i32, %arg1: i32) -> (i32, i32, i32) {
    %c0_i32 = arith.constant 0 : i32
    %c0_i32_0 = arith.constant 0 : i32
    %c0_i32_1 = arith.constant 0 : i32
    return %arg1, %c0_i32, %c0_i32_0 : i32, i32, i32
  }
  func.func @transform_17(%arg0: i32, %arg1: i32) -> (i32, i32, i32) {
    %c0_i32 = arith.constant 0 : i32
    %c0_i32_0 = arith.constant 0 : i32
    %c0_i32_1 = arith.constant 0 : i32
    return %arg1, %c0_i32, %c0_i32_0 : i32, i32, i32
  }
  func.func @transform_18(%arg0: i32, %arg1: i32) -> (i32, i32, i32) {
    %c0_i32 = arith.constant 0 : i32
    %c0_i32_0 = arith.constant 0 : i32
    %c0_i32_1 = arith.constant 0 : i32
    return %arg1, %c0_i32, %c0_i32_0 : i32, i32, i32
  }
  func.func @transform_19(%arg0: i32, %arg1: i32) -> (i32, i32, i32) {
    %c0_i32 = arith.constant 0 : i32
    %c0_i32_0 = arith.constant 0 : i32
    %c0_i32_1 = arith.constant 0 : i32
    return %arg1, %c0_i32, %c0_i32_0 : i32, i32, i32
  }
  func.func @transform_20(%arg0: i32, %arg1: i32) -> (i32, i32, i32) {
    %c0_i32 = arith.constant 0 : i32
    %c0_i32_0 = arith.constant 0 : i32
    %c0_i32_1 = arith.constant 0 : i32
    return %arg1, %c0_i32, %c0_i32_0 : i32, i32, i32
  }
  func.func @transform_21(%arg0: i32, %arg1: i32) -> (i32, i32, i32) {
    %c0_i32 = arith.constant 0 : i32
    %c0_i32_0 = arith.constant 0 : i32
    %c0_i32_1 = arith.constant 0 : i32
    return %arg1, %c0_i32, %c0_i32_0 : i32, i32, i32
  }
  func.func @transform_22(%arg0: i32, %arg1: i32) -> (i32, i32, i32) {
    %c0_i32 = arith.constant 0 : i32
    %c0_i32_0 = arith.constant 0 : i32
    %c0_i32_1 = arith.constant 0 : i32
    return %arg1, %c0_i32, %c0_i32_0 : i32, i32, i32
  }
  func.func @transform_23(%arg0: i32, %arg1: i32) -> (i32, i32, i32) {
    %c0_i32 = arith.constant 0 : i32
    %c0_i32_0 = arith.constant 0 : i32
    %c0_i32_1 = arith.constant 0 : i32
    return %arg1, %c0_i32, %c0_i32_0 : i32, i32, i32
  }
  func.func @transform_24(%arg0: i32, %arg1: i32) -> (i32, i32, i32) {
    %c0_i32 = arith.constant 0 : i32
    %c0_i32_0 = arith.constant 0 : i32
    %c0_i32_1 = arith.constant 0 : i32
    return %arg1, %c0_i32, %c0_i32_0 : i32, i32, i32
  }
  func.func @transform_25(%arg0: i32, %arg1: i32) -> (i32, i32, i32) {
    %c0_i32 = arith.constant 0 : i32
    %c0_i32_0 = arith.constant 0 : i32
    %c0_i32_1 = arith.constant 0 : i32
    return %arg1, %c0_i32, %c0_i32_0 : i32, i32, i32
  }
  func.func @transform_26(%arg0: i32, %arg1: i32) -> (i32, i32, i32) {
    %c0_i32 = arith.constant 0 : i32
    %c0_i32_0 = arith.constant 0 : i32
    %c0_i32_1 = arith.constant 0 : i32
    return %arg1, %c0_i32, %c0_i32_0 : i32, i32, i32
  }
  func.func @transform_27(%arg0: i32, %arg1: i32) -> (i32, i32, i32) {
    %c0_i32 = arith.constant 0 : i32
    %c0_i32_0 = arith.constant 0 : i32
    %c0_i32_1 = arith.constant 0 : i32
    return %arg1, %c0_i32, %c0_i32_0 : i32, i32, i32
  }
  func.func @transform_28(%arg0: i32, %arg1: i32) -> (i32, i32, i32) {
    %c0_i32 = arith.constant 0 : i32
    %c0_i32_0 = arith.constant 0 : i32
    %c0_i32_1 = arith.constant 0 : i32
    return %arg1, %c0_i32, %c0_i32_0 : i32, i32, i32
  }
  func.func @transform_29(%arg0: i32, %arg1: i32) -> (i32, i32, i32) {
    %c0_i32 = arith.constant 0 : i32
    %c0_i32_0 = arith.constant 0 : i32
    %c0_i32_1 = arith.constant 0 : i32
    return %arg1, %c0_i32, %c0_i32_0 : i32, i32, i32
  }
  func.func @transform_30(%arg0: i32, %arg1: i32) -> (i32, i32, i32) {
    %c0_i32 = arith.constant 0 : i32
    %c0_i32_0 = arith.constant 0 : i32
    %c0_i32_1 = arith.constant 0 : i32
    return %arg1, %c0_i32, %c0_i32_0 : i32, i32, i32
  }
  func.func @transform_31(%arg0: i32, %arg1: i32) -> (i32, i32) {
    %c0_i32 = arith.constant 0 : i32
    %c0_i32_0 = arith.constant 0 : i32
    return %arg0, %c0_i32 : i32, i32
  }
}

</mosaic_0001>

<bundles_post_ra>
// kernel: transformer_decoder_forward.2
= control target key start
LH: loop header
LB: loop body
LE: loop exit
PB: predicated region body
PF: predicated region fallthrough
CT: control target
= control target key end

     0   :  { %13 = vsyncpa [#allocation3], 0  ;;  %s1738_s0 = inlined_call_operand.vmem [shape: f32[16,256], index: 0, kind: input, shape index: {}]   ;;  %s1739_s1 = inlined_call_operand.hbm [shape: bf16[256,256], index: 1, kind: input, shape index: {}]   ;;  %s1740_s2 = inlined_call_operand.hbm [shape: f32[1,256], index: 2, kind: input, shape index: {}]   ;;  %s1741_s3 = inlined_call_operand.hbm [shape: bf16[256,128], index: 3, kind: input, shape index: {}]   ;;  %s1742_s4 = inlined_call_operand.hbm [shape: f32[1,128], index: 4, kind: input, shape index: {}]   ;;  %s1743_s5 = inlined_call_operand.vmem [shape: f32[1,256], index: 5, kind: input, shape index: {}]   ;;  %s1744_s6 = inlined_call_operand.vmem [shape: f32[1,256], index: 6, kind: input, shape index: {}]   ;;  %s1745_s7 = inlined_call_operand.vmem [shape: f32[1,256], index: 7, kind: input, shape index: {}]   ;;  %s1746_s8 = inlined_call_operand.vmem [shape: f32[16,256], index: 8, kind: output, shape index: {}]  }
   0x1   :  { %14 = vsyncpa [#allocation5], 0 }
   0x2   :  { %15 = vsyncpa [#allocation8], 0  ;;  %s1339_s27 = smov [#allocation4]   ;;  %s1340_s29 = smov [#allocation2]  }
   0x3   :  { %s36_s28 = sshll.u32 %s1339_s27, 4  ;;  %s23_s30 = sshll.u32 %s1340_s29, 4  ;;  %s37_s28 = int_to_ptr.vmem [resolvable:$true] %s36_s28  ;;  %s24_s30 = int_to_ptr.vmem [resolvable:$true] %s23_s30 }
   0x4   :  { %s1261_s9 = scalar_lea.vmem %s37_s28, 32  ;;  %p1266_p1 = scmp.lt.s32.totalorder %s37_s28, %s37_s28 }
   0x5   :  { %p1262_p0 = scmp.ne.s32.totalorder %s37_s28, %s1261_s9  ;;  %p1267_p2 = scmp.lt.s32.totalorder %s1261_s9, %s1261_s9 }
   0x7   :  { %p1268_p3 = por %p1267_p2, %p1266_p1 }
   0x9   :  { %p1269_p4 = pnand %p1268_p3, %p1262_p0 }
   0xb   :  { %1272 = shalt.err (!%p1269_p4)
}
   0xc   :  { %39 = dma.hbm_to_vmem [thread:$0]  %s1740_s2, 32, %s37_s28, [#allocation5]  }
   0xd   :  { %s1281_s12 = scalar_lea.vmem %s24_s30, 4096  ;;  %p1286_p6 = scmp.lt.s32.totalorder %s24_s30, %s24_s30 }
   0xe   :  { %p1282_p5 = scmp.ne.s32.totalorder %s24_s30, %s1281_s12  ;;  %p1287_p7 = scmp.lt.s32.totalorder %s1281_s12, %s1281_s12 }
  0x10   :  { %p1288_p8 = por %p1287_p7, %p1286_p6 }
  0x12   :  { %p1289_p9 = pnand %p1288_p8, %p1282_p5 }
  0x14   :  { %1292 = shalt.err (!%p1289_p9)
}
  0x15   :  { %s1341_s13 = smov 128   ;;  %s1342_s14 = smov 8  }
  0x16   :  { %29 = dma.hbm_to_vmem [thread:$0]  %s1739_s1, 4096, %s24_s30, [#allocation3], %s1341_s13, %s1341_s13, %s1342_s14  }
  0x17   :  { %s1343_s17 = smov [#allocation6]  }
  0x18   :  { %s45_s18 = sshll.u32 %s1343_s17, 4  ;;  %s46_s18 = int_to_ptr.vmem [resolvable:$true] %s45_s18 }
  0x19   :  { %s1301_s19 = scalar_lea.vmem %s46_s18, 2048  ;;  %p1306_p11 = scmp.lt.s32.totalorder %s46_s18, %s46_s18 }
  0x1a   :  { %p1302_p10 = scmp.ne.s32.totalorder %s46_s18, %s1301_s19  ;;  %p1307_p12 = scmp.lt.s32.totalorder %s1301_s19, %s1301_s19 }
  0x1c   :  { %p1308_p13 = por %p1307_p12, %p1306_p11 }
  0x1e   :  { %p1309_p0 = pnand %p1308_p13, %p1302_p10 }
  0x20   :  { %1312 = shalt.err (!%p1309_p0)
}
  0x21   :  { %s1344_s2 = smov 64   ;;  %s1345_s20 = smov 4  }
  0x22   :  { %51 = dma.hbm_to_vmem [thread:$0]  %s1741_s3, 2048, %s46_s18, [#allocation5], %s1344_s2, %s1344_s2, %s1345_s20  }
  0x23   :  { %s1346_s23 = smov [#allocation7]  }
  0x24   :  { %s58_s24 = sshll.u32 %s1346_s23, 4  ;;  %s59_s24 = int_to_ptr.vmem [resolvable:$true] %s58_s24 }
  0x25   :  { %s1321_s1 = scalar_lea.vmem %s59_s24, 16  ;;  %s1325_s25 = scalar_lea.vmem %s59_s24, 32 }
  0x26   :  { %p1322_p1 = scmp.ne.s32.totalorder %s59_s24, %s1321_s1  ;;  %p1326_p2 = scmp.lt.s32.totalorder %s59_s24, %s59_s24 }
  0x27   :  { %p1327_p3 = scmp.lt.s32.totalorder %s1325_s25, %s1321_s1 }
  0x29   :  { %p1328_p4 = por %p1327_p3, %p1326_p2 }
  0x2b   :  { %p1329_p5 = pnand %p1328_p4, %p1322_p1 }
  0x2d   :  { %1332 = shalt.err (!%p1329_p5)
}
  0x2e   :  { %61 = dma.hbm_to_vmem [thread:$0]  %s1742_s4, 16, %s59_s24, [#allocation8]  }
  0x2f   :  { %1333 = dma.done.wait [#allocation3], 4096  }
  0x30   :  { %1334 = vsyncadd [#allocation3], 4294963200 }
  0x31   :  { %1335 = dma.done.wait [#allocation5], 2080  }
  0x32   :  { %1336 = vsyncadd [#allocation5], 4294965216 }
  0x33   :  { %1337 = dma.done.wait [#allocation8], 16  }
  0x34   :  { %1338 = vsyncadd [#allocation8], 4294967280  ;;  %v1165_v0 = vld [vmem:[#allocation2 + $0x74] ss:$8 sps:$4 sm:$0xff]   ;;  %v1167_v1 = vld [vmem:[#allocation2 + $0x70] ss:$8 sps:$4 sm:$0xff]   ;;  %v121_v54 = vlaneseq }
  0x35   :  { %291 = vmatprep.subr.bf16.mxu0 %v1165_v0  ;;  %v1168_v2 = vld [vmem:[#allocation2 + $0x64] ss:$8 sps:$4 sm:$0xff]   ;;  %v1170_v3 = vld [vmem:[#allocation2 + $0x60] ss:$8 sps:$4 sm:$0xff]   ;;  %v1171_v4 = vld [vmem:[#allocation2 + $0x54] ss:$8 sps:$4 sm:$0xff]  }
  0x36   :  { %292 = vmatpush1.bf16.msra.mxu0 %v1167_v1  ;;  %v1173_v5 = vld [vmem:[#allocation2 + $0x50] ss:$8 sps:$4 sm:$0xff]   ;;  %v1174_v6 = vld [vmem:[#allocation2 + $0x44] ss:$8 sps:$4 sm:$0xff]   ;;  %v1176_v7 = vld [vmem:[#allocation2 + $0x40] ss:$8 sps:$4 sm:$0xff]  }
  0x37   :  { %293 = vmatprep.subr.bf16.mxu0 %v1168_v2  ;;  %v1177_v8 = vld [vmem:[#allocation2 + $0x34] ss:$8 sps:$4 sm:$0xff]   ;;  %v1179_v9 = vld [vmem:[#allocation2 + $0x30] ss:$8 sps:$4 sm:$0xff]   ;;  %v1180_v10 = vld [vmem:[#allocation2 + $0x24] ss:$8 sps:$4 sm:$0xff]  }
  0x38   :  { %v1182_v11 = vld [vmem:[#allocation2 + $0x20] ss:$8 sps:$4 sm:$0xff]   ;;  %v1183_v12 = vld [vmem:[#allocation2 + $0x14] ss:$8 sps:$4 sm:$0xff]   ;;  %v1185_v15 = vld [vmem:[#allocation2 + $0x10] ss:$8 sps:$4 sm:$0xff]  }
  0x39   :  { %v82_v13 = vld [vmem:[%s1738_s0 + $0x8] sm:$0xff]  ;;  %v84_v14 = vld [vmem:[%s1738_s0 + $0x18] sm:$0xff]  ;;  %v81_v45 = vld [vmem:[%s1738_s0] sm:$0xff]  ;;  %v122_v55 = vshrl.u32 %v121_v54, 7 }
  0x3a   :  { %294 = vmatpush1.bf16.msra.mxu0 %v1170_v3  ;;  %v1186_v16 = vld [vmem:[#allocation2 + $0x4] ss:$8 sps:$4 sm:$0xff]   ;;  %v86_v17 = vpack.c.bf16 %v84_v14, %v82_v13  ;;  %v1213_v18 = vld [vmem:[#allocation6 + $0x78] sm:$0xff]   ;;  %v1215_v21 = vld [vmem:[#allocation6 + $0x70] sm:$0xff]  }
  0x3b   :  { %295 = vmatprep.subr.bf16.mxu0 %v1171_v4  ;;  %v1214_v19 = vld [vmem:[#allocation6 + $0x38] sm:$0xff]   ;;  %1108 = vmatprep.subr.bf16.mxu1 %v1213_v18  ;;  %v1216_v22 = vld [vmem:[#allocation6 + $0x30] sm:$0xff]   ;;  %v1217_v23 = vld [vmem:[#allocation6 + $0x68] sm:$0xff]   ;;  %v1424_v56 = vsub.s32 1, %v122_v55  ;;  %v1426_v57 = vsub.s32 0, %v122_v55 }
  0x3c   :  { %323 = vmatprep.mubr.bf16.mxu0 %v86_v17  ;;  %v1188_v20 = vld [vmem:[#allocation2] ss:$8 sps:$4 sm:$0xff]   ;;  %1109 = vmatpush3.bf16.msra.mxu1 %v1214_v19  ;;  %v1189_v24 = vld [vmem:[#allocation2 + $0xf4] ss:$8 sps:$4 sm:$0xff]   ;;  %v1191_v25 = vld [vmem:[#allocation2 + $0xf0] ss:$8 sps:$4 sm:$0xff]  }
  0x3d   :  { %1110 = vmatprep.subr.bf16.mxu1 %v1215_v21  ;;  %v1218_v26 = vld [vmem:[#allocation6 + $0x28] sm:$0xff]   ;;  %v1219_v27 = vld [vmem:[#allocation6 + $0x60] sm:$0xff]   ;;  %v1221_v31 = vld [vmem:[#allocation6 + $0x58] sm:$0xff]  }
  0x3e   :  { %296 = vmatpush1.bf16.msra.mxu0 %v1173_v5  ;;  %v1192_v28 = vld [vmem:[#allocation2 + $0xe4] ss:$8 sps:$4 sm:$0xff]   ;;  %v1194_v30 = vld [vmem:[#allocation2 + $0xe0] ss:$8 sps:$4 sm:$0xff]   ;;  %v1195_v32 = vld [vmem:[#allocation2 + $0xd4] ss:$8 sps:$4 sm:$0xff]  }
  0x3f   :  { %297 = vmatprep.subr.bf16.mxu0 %v1174_v6  ;;  %v1220_v29 = vld [vmem:[#allocation6 + $0x20] sm:$0xff]   ;;  %v1222_v33 = vld [vmem:[#allocation6 + $0x18] sm:$0xff]   ;;  %v83_v46 = vld [vmem:[%s1738_s0 + $0x10] sm:$0xff] }
  0x40   :  { %1111 = vmatpush3.bf16.msra.mxu1 %v1216_v22  ;;  %v1197_v34 = vld [vmem:[#allocation2 + $0xd0] ss:$8 sps:$4 sm:$0xff]   ;;  %v1198_v35 = vld [vmem:[#allocation2 + $0xc4] ss:$8 sps:$4 sm:$0xff]   ;;  %v1200_v36 = vld [vmem:[#allocation2 + $0xc0] ss:$8 sps:$4 sm:$0xff]   ;;  %v85_v47 = vpack.c.bf16 %v83_v46, %v81_v45 }
  0x41   :  { %1112 = vmatprep.subr.bf16.mxu1 %v1217_v23  ;;  %v1201_v37 = vld [vmem:[#allocation2 + $0xb4] ss:$8 sps:$4 sm:$0xff]   ;;  %v1203_v38 = vld [vmem:[#allocation2 + $0xb0] ss:$8 sps:$4 sm:$0xff]   ;;  %v1204_v39 = vld [vmem:[#allocation2 + $0xa4] ss:$8 sps:$4 sm:$0xff]  }
  0x42   :  { %298 = vmatpush1.bf16.msra.mxu0 %v1176_v7  ;;  %v1206_v40 = vld [vmem:[#allocation2 + $0xa0] ss:$8 sps:$4 sm:$0xff]   ;;  %v1207_v41 = vld [vmem:[#allocation2 + $0x94] ss:$8 sps:$4 sm:$0xff]   ;;  %v1209_v42 = vld [vmem:[#allocation2 + $0x90] ss:$8 sps:$4 sm:$0xff]  }
  0x43   :  { %299 = vmatprep.subr.bf16.mxu0 %v1177_v8  ;;  %v1210_v43 = vld [vmem:[#allocation2 + $0x84] ss:$8 sps:$4 sm:$0xff]   ;;  %v1212_v44 = vld [vmem:[#allocation2 + $0x80] ss:$8 sps:$4 sm:$0xff]   ;;  %v1223_v48 = vld [vmem:[#allocation6 + $0x50] sm:$0xff]  }
  0x44   :  { %1113 = vmatpush3.bf16.msra.mxu1 %v1218_v26  ;;  %v1224_v49 = vld [vmem:[#allocation6 + $0x10] sm:$0xff]   ;;  %v1225_v50 = vld [vmem:[#allocation6 + $0x48] sm:$0xff]   ;;  %v1227_v52 = vld [vmem:[#allocation6 + $0x40] sm:$0xff]  }
  0x45   :  { %1114 = vmatprep.subr.bf16.mxu1 %v1219_v27  ;;  %v1226_v51 = vld [vmem:[#allocation6 + $0x8] sm:$0xff]   ;;  %v1228_v53 = vld [vmem:[#allocation6] sm:$0xff]   ;;  %v119_v58 = vld [vmem:[#allocation4] sm:$0x3] }
  0x46   :  { %300 = vmatpush1.bf16.msra.mxu0 %v1179_v9  ;;  %v128_v60 = vrot.slane %v119_v58, %v1424_v56  ;;  %v124_v61 = vrot.slane %v119_v58, %v1426_v57  ;;  %v1075_v14 = vld [vmem:[#allocation7] ss:$0 sm:$0xff] }
  0x47   :  { %301 = vmatprep.subr.bf16.mxu0 %v1180_v10 }
  0x48   :  { %1115 = vmatpush3.bf16.msra.mxu1 %v1220_v29 }
  0x49   :  { %1116 = vmatprep.subr.bf16.mxu1 %v1221_v31 }
  0x4a   :  { %302 = vmatpush1.bf16.msra.mxu0 %v1182_v11  ;;  %v1347_v11 = vmov 0  }
  0x4b   :  { %303 = vmatprep.subr.bf16.mxu0 %v1183_v12  ;;  %1163 = vset.pattern.permute.xlu1 %v1347_v11  ;;  %v1348_v12 = vmov 1  }
  0x4c   :  { %1117 = vmatpush3.bf16.msra.mxu1 %v1222_v33  ;;  %1162 = vset.pattern.permute.xlu0 %v1348_v12 }
  0x4d   :  { %1118 = vmatprep.subr.bf16.mxu1 %v1223_v48 }
  0x4e   :  { %304 = vmatpush1.bf16.msra.mxu0 %v1185_v15 }
  0x4f   :  { %305 = vmatprep.subr.bf16.mxu0 %v1186_v16 }
  0x50   :  { %1119 = vmatpush3.bf16.msra.mxu1 %v1224_v49 }
  0x51   :  { %1120 = vmatprep.subr.bf16.mxu1 %v1225_v50 }
  0x52   :  { %306 = vmatpush1.bf16.msra.mxu0 %v1188_v20 }
  0x53   :  { %307 = vmatprep.subr.bf16.mxu0 %v1189_v24 }
  0x54   :  { %1121 = vmatpush3.bf16.msra.mxu1 %v1226_v51 }
  0x55   :  { %1122 = vmatprep.subr.bf16.mxu1 %v1227_v52 }
  0x56   :  { %308 = vmatpush2.bf16.msra.mxu0 %v1191_v25 }
  0x57   :  { %309 = vmatprep.subr.bf16.mxu0 %v1192_v28 }
  0x58   :  { %1123 = vmatpush3.bf16.msra.mxu1 %v1228_v53 }
  0x5a   :  { %310 = vmatpush2.bf16.msra.mxu0 %v1194_v30 }
  0x5b   :  { %311 = vmatprep.subr.bf16.mxu0 %v1195_v32 }
  0x5e   :  { %312 = vmatpush2.bf16.msra.mxu0 %v1197_v34  ;;  %v530_v34 = vld [vmem:[%s1745_s7] sm:$0x3] }
  0x5f   :  { %313 = vmatprep.subr.bf16.mxu0 %v1198_v35  ;;  %v556_v35 = vsub.f32 1.0, %v530_v34 }
  0x62   :  { %314 = vmatpush2.bf16.msra.mxu0 %v1200_v36  ;;  %v569_v36 = vrot.slane %v556_v35, %v1426_v57 }
  0x63   :  { %315 = vmatprep.subr.bf16.mxu0 %v1201_v37  ;;  %v573_v37 = vrot.slane %v556_v35, %v1424_v56 }
  0x66   :  { %316 = vmatpush2.bf16.msra.mxu0 %v1203_v38  ;;  %v545_v38 = vrot.slane %v530_v34, %v1426_v57 }
  0x67   :  { %317 = vmatprep.subr.bf16.mxu0 %v1204_v39  ;;  %v549_v39 = vrot.slane %v530_v34, %v1424_v56  ;;  %v1351_v34 = vmov 2131351028  }
  0x6a   :  { %318 = vmatpush2.bf16.msra.mxu0 %v1206_v40  ;;  %v584_v40 = vld [vmem:[%s1743_s5] sm:$0x3] }
  0x6b   :  { %319 = vmatprep.subr.bf16.mxu0 %v1207_v41 }
  0x6e   :  { %320 = vmatpush2.bf16.msra.mxu0 %v1209_v42  ;;  %v589_v42 = vrot.slane %v584_v40, %v1426_v57 }
  0x6f   :  { %321 = vmatprep.subr.bf16.mxu0 %v1210_v43  ;;  %v1442_v43 = vrot.slane %v584_v40, %v1424_v56 }
  0x72   :  { %322 = vmatpush2.bf16.msra.mxu0 %v1212_v44  ;;  %v600_v44 = vld [vmem:[%s1744_s6] sm:$0x3] }
  0x73   :  { %v605_v50 = vrot.slane %v600_v44, %v1426_v57  ;;  %v1449_v51 = vrot.slane %v600_v44, %v1424_v56 }
  0x75   :  { %324 = vmatmul.mubr.bf16.vlgmr.msra.gmra.mxu0 %v85_v47 }
 0x135   :  { %v325_v59 = vpop.f32.mrf.mxu0 }
 0x136   :  { %v326_v2 = vadd.f32 %v325_v59, %v124_v61 }
 0x137   :  { %v327_v62 = vpop.f32.mrf.mxu0 }
 0x138   :  { %v328_v0 = vadd.f32 %v327_v62, %v128_v60  ;;  %v334_v8 = vmax.f32 %v326_v2, 0.0 }
 0x139   :  { %v329_v63 = vpop.f32.mrf.mxu0 }
 0x13a   :  { %v330_v1 = vadd.f32 %v329_v63, %v124_v61  ;;  %v335_v6 = vmax.f32 %v328_v0, 0.0 }
 0x13b   :  { %v331_v3 = vpop.f32.mrf.mxu0 }
 0x13c   :  { %v332_v4 = vadd.f32 %v331_v3, %v128_v60  ;;  %v336_v5 = vmax.f32 %v330_v1, 0.0 }
 0x13e   :  { %v337_v7 = vmax.f32 %v332_v4, 0.0  ;;  %v338_v10 = vpack.c.bf16 %v336_v5, %v334_v8 }
 0x140   :  { %v339_v9 = vpack.c.bf16 %v337_v7, %v335_v6 }
 0x142   :  { %507 = vmatprep.mubr.bf16.mxu1 %v339_v9 }
 0x143   :  { %508 = vmatmul.mubr.bf16.vlgmr.msra.gmra.mxu1 %v338_v10 }
 0x203   :  { %v1124_v13 = vpop.f32.mrf.mxu1 }
 0x205   :  { %v1125_v15 = vpop.f32.mrf.mxu1 }
 0x206   :  { %v1126_v16 = vadd.f32 %v1125_v15, %v1124_v13 }
 0x207   :  { %v1127_v17 = vpop.f32.mrf.mxu1 }
 0x208   :  { %v510_v18 = vadd.f32 %v1126_v16, %v1075_v14 }
 0x209   :  { %v1128_v19 = vpop.f32.mrf.mxu1 }
 0x20a   :  { %v516_v20 = vsub.f32 0.0, %v510_v18  ;;  %v1129_v21 = vadd.f32 %v1128_v19, %v1127_v17 }
 0x20c   :  { %v518_v22 = vmul.f32 1.442695, %v516_v20  ;;  %v513_v23 = vadd.f32 %v1129_v21, %v1075_v14 }
 0x20e   :  { %1229 = vpow2.f32 %v518_v22  ;;  %v517_v24 = vsub.f32 0.0, %v513_v23 }
 0x210   :  { %v520_v25 = vmul.f32 1.442695, %v517_v24 }
 0x212   :  { %1231 = vpow2.f32 %v520_v25 }
 0x21b   :  { %v1230_v26 = vpop.eup %1229 }
 0x21c   :  { %v522_v27 = vadd.f32 1.0, %v1230_v26 }
 0x21e   :  { %1233 = vrcp.f32 %v522_v27 }
 0x21f   :  { %v1232_v28 = vpop.eup %1231 }
 0x220   :  { %v523_v29 = vadd.f32 1.0, %v1232_v28  ;;  %v1349_v28 = vmov 683565275  }
 0x222   :  { %1235 = vrcp.f32 %v523_v29 }
 0x22b   :  { %v1234_v30 = vpop.eup %1233 }
 0x22c   :  { %v528_v31 = vmul.f32 6.2831855, %v1234_v30 }
 0x22e   :  { %558 = vperm.xlu1 %1163, %v528_v31   ;;  %533 = vperm.xlu0 %1162, %v528_v31  }
 0x22f   :  { %v1236_v32 = vpop.eup %1235 }
 0x230   :  { %v529_v33 = vmul.f32 6.2831855, %v1236_v32  ;;  %v1350_v32 = vmov 2475754826  }
 0x232   :  { %562 = vperm.xlu1 %1163, %v529_v33   ;;  %538 = vperm.xlu0 %1162, %v529_v33  }
 0x236   :  { %1164 = vset.pattern.permute.xlu0 %v1347_v11 }
 0x2a9   :  { %v559_v41 = vpop.permute.xlu1 %558  ;;  %v534_v45 = vpop.permute.xlu0 %533 }
 0x2aa   :  { %v576_v46 = vmul.f32 %v569_v36, %v559_v41  ;;  %v577_v47 = vmul.f32 %v573_v37, %v559_v41  ;;  %v552_v48 = vmul.f32 %v545_v38, %v534_v45  ;;  %v553_v49 = vmul.f32 %v549_v39, %v534_v45 }
 0x2ac   :  { %v580_v52 = vadd.f32 %v576_v46, %v552_v48  ;;  %v581_v53 = vadd.f32 %v577_v47, %v553_v49  ;;  %v1354_v46 = vmov 1326507024  }
 0x2ad   :  { %v563_v54 = vpop.permute.xlu1 %562  ;;  %v539_v55 = vpop.permute.xlu0 %538 }
 0x2ae   :  { %v596_v58 = vmul.f32 %v589_v42, %v580_v52  ;;  %v597_v59 = vmul.f32 %v1442_v43, %v581_v53  ;;  %v578_v60 = vmul.f32 %v569_v36, %v563_v54  ;;  %v554_v61 = vmul.f32 %v545_v38, %v539_v55 }
 0x2af   :  { %v579_v12 = vmul.f32 %v573_v37, %v563_v54  ;;  %v555_v13 = vmul.f32 %v549_v39, %v539_v55  ;;  %v1352_v36 = vmov 2102212464   ;;  %v1353_v38 = vmov 920167782  }
 0x2b0   :  { %v1452_v62 = vadd.f32 %v605_v50, %v596_v58  ;;  %v1455_v63 = vadd.f32 %v1449_v51, %v597_v59  ;;  %v582_v0 = vadd.f32 %v578_v60, %v554_v61 }
 0x2b1   :  { %v1474_v26 = vadd.f32 %v579_v12, %v555_v13 }
 0x2b2   :  { %v616_v57 = vand.u32 2147483647, %v1452_v62  ;;  %v619_v56 = vand.u32 2139095040, %v1452_v62  ;;  %v720_v1 = vand.u32 2147483647, %v1455_v63  ;;  %v723_v2 = vand.u32 2139095040, %v1455_v63 }
 0x2b3   :  { %v598_v4 = vmul.f32 %v589_v42, %v582_v0  ;;  %vm618_vm13 = vcmp.lt.s32.totalorder %v1452_v62, 0 }
 0x2b4   :  { %v620_v3 = vshrl.u32 %v619_v56, 23  ;;  %v623_v5 = vand.u32 8388607, %v616_v57  ;;  %v724_v6 = vshrl.u32 %v723_v2, 23  ;;  %v727_v7 = vand.u32 8388607, %v720_v1 }
 0x2b5   :  { %v1465_v9 = vadd.f32 %v605_v50, %v598_v4 }
 0x2b6   :  { %v1092_v8 = vadd.s32 4294967169, %v620_v3  ;;  %v1096_v10 = vadd.s32 4294967169, %v724_v6  ;;  %v624_v14 = vor.u32 8388608, %v623_v5  ;;  %v728_v15 = vor.u32 8388608, %v727_v7 }
 0x2b7   :  { %v827_v17 = vand.u32 2139095040, %v1465_v9 }
 0x2b8   :  { %v626_v11 = vadd.s32 1, %v1092_v8  ;;  %v730_v16 = vadd.s32 1, %v1096_v10  ;;  %v1468_v23 = vshll.u32 %v624_v14, 8  ;;  %v1472_v25 = vshll.u32 %v728_v15, 8 }
 0x2b9   :  { %v828_v19 = vshrl.u32 %v827_v17, 23 }
 0x2ba   :  { %vm627_vm0 = vcmp.gt.s32.totalorder %v626_v11, 0  ;;  %vm731_vm1 = vcmp.gt.s32.totalorder %v730_v16, 0 }
 0x2bb   :  { %v628_v18 = vsel %vm627_vm0, %v626_v11, 0  ;;  %v732_v22 = vsel %vm731_vm1, %v730_v16, 0  ;;  %v1477_v31 = vadd.s32 4294967169, %v828_v19 }
 0x2bc   :  { %v629_v20 = vshrl.u32 %v628_v18, 5  ;;  %v630_v21 = vand.u32 31, %v628_v18  ;;  %v1470_v24 = vshrl.u32 %v732_v22, 5  ;;  %v734_v30 = vand.u32 31, %v732_v22 }
 0x2be   :  { %v631_v27 = vsub.s32 32, %v630_v21  ;;  %v633_v29 = vshll.u32 %v1349_v28, %v630_v21  ;;  %v636_v33 = vshll.u32 %v1350_v32, %v630_v21  ;;  %v639_v35 = vshll.u32 %v1351_v34, %v630_v21 }
 0x2bf   :  { %v642_v37 = vshll.u32 %v1352_v36, %v630_v21  ;;  %v645_v39 = vshll.u32 %v1353_v38, %v630_v21  ;;  %vm648_vm2 = vcmp.lt.s32.totalorder %v629_v20, 1  ;;  %vm649_vm3 = vcmp.lt.s32.totalorder %v629_v20, 2 }
 0x2c0   :  { %v634_v40 = vshrl.u32 %v1350_v32, %v631_v27  ;;  %v637_v41 = vshrl.u32 %v1351_v34, %v631_v27  ;;  %v640_v42 = vshrl.u32 %v1352_v36, %v631_v27  ;;  %v632_v44 = vshrl.u32 %v1349_v28, %v631_v27 }
 0x2c1   :  { %v643_v45 = vshrl.u32 %v1353_v38, %v631_v27  ;;  %v646_v47 = vshrl.u32 %v1354_v46, %v631_v27  ;;  %v735_v52 = vsub.s32 32, %v734_v30  ;;  %vm650_vm4 = vcmp.lt.s32.totalorder %v629_v20, 3 }
 0x2c2   :  { %v635_v48 = vor.u32 %v634_v40, %v633_v29  ;;  %v638_v49 = vor.u32 %v637_v41, %v636_v33  ;;  %v641_v50 = vor.u32 %v640_v42, %v639_v35  ;;  %vm651_vm5 = vcmp.lt.s32.totalorder %v629_v20, 4 }
 0x2c3   :  { %v644_v53 = vor.u32 %v643_v45, %v642_v37  ;;  %v647_v54 = vor.u32 %v646_v47, %v645_v39  ;;  %v737_v2 = vshll.u32 %v1349_v28, %v734_v30  ;;  %v738_v5 = vshrl.u32 %v1350_v32, %v735_v52 }
 0x2c4   :  { %v652_v55 = vsel %vm648_vm2, %v632_v44, %v635_v48  ;;  %v653_v58 = vsel %vm651_vm5, %v641_v50, 2102212464  ;;  %v656_v59 = vsel %vm648_vm2, %v635_v48, %v638_v49  ;;  %v660_v60 = vsel %vm648_vm2, %v638_v49, %v641_v50 }
 0x2c5   :  { %v654_v61 = vsel %vm650_vm4, %v638_v49, %v653_v58  ;;  %v657_v0 = vsel %vm651_vm5, %v644_v53, 920167782  ;;  %v661_v56 = vsel %vm651_vm5, %v647_v54, 1326507024  ;;  %v740_v6 = vshll.u32 %v1350_v32, %v734_v30 }
 0x2c6   :  { %v658_v3 = vsel %vm650_vm4, %v641_v50, %v657_v0  ;;  %v662_v4 = vsel %vm650_vm4, %v644_v53, %v661_v56  ;;  %v655_v7 = vsel %vm649_vm3, %v652_v55, %v654_v61  ;;  %v741_v11 = vshrl.u32 %v1351_v34, %v735_v52 }
 0x2c7   :  { %v659_v8 = vsel %vm649_vm3, %v656_v59, %v658_v3  ;;  %v663_v10 = vsel %vm649_vm3, %v660_v60, %v662_v4  ;;  %v739_v16 = vor.u32 %v738_v5, %v737_v2  ;;  %v743_v18 = vshll.u32 %v1351_v34, %v734_v30 }
 0x2c8   :  { %v1500_v12 = vmul.u32.u64.low %v1468_v23, %v663_v10  ;;  %v1501_v13 = vmul.u32.u64.high %v1468_v23, %v663_v10, %v1500_v12  ;;  %v1504_v14 = vmul.u32.u64.low %v1468_v23, %v659_v8  ;;  %v1505_v15 = vmul.u32.u64.high %v1468_v23, %v659_v8, %v1504_v14 }
 0x2c9   :  { %v742_v17 = vor.u32 %v741_v11, %v740_v6  ;;  %v744_v19 = vshrl.u32 %v1352_v36, %v735_v52  ;;  %v736_v21 = vshrl.u32 %v1349_v28, %v735_v52  ;;  %v746_v20 = vshll.u32 %v1352_v36, %v734_v30 }
 0x2ca   :  { %v747_v22 = vshrl.u32 %v1353_v38, %v735_v52  ;;  %v750_v27 = vshrl.u32 %v1354_v46, %v735_v52  ;;  %v671_v29 = vmul.u32 %v1468_v23, %v655_v7  ;;  %v749_v35 = vshll.u32 %v1353_v38, %v734_v30 }
 0x2cb   :  { %v745_v33 = vor.u32 %v744_v19, %v743_v18  ;;  %vm752_vm6 = vcmp.lt.s32.totalorder %v1470_v24, 1  ;;  %vm673_vm7 = vc.u32 %v1501_v13, %v1504_v14  ;;  %v674_v37 = vadd.s32 1, %v1505_v15 }
 0x2cc   :  { %v748_v39 = vor.u32 %v747_v22, %v746_v20  ;;  %vm753_vm8 = vcmp.lt.s32.totalorder %v1470_v24, 2  ;;  %v751_v40 = vor.u32 %v750_v27, %v749_v35  ;;  %vm754_vm9 = vcmp.lt.s32.totalorder %v1470_v24, 3 }
 0x2cd   :  { %vm755_vm10 = vcmp.lt.s32.totalorder %v1470_v24, 4  ;;  %v760_v41 = vsel %vm752_vm6, %v739_v16, %v742_v17  ;;  %v675_v23 = vsel %vm673_vm7, %v674_v37, %v1505_v15  ;;  %v764_v30 = vsel %vm752_vm6, %v742_v17, %v745_v33 }
 0x2ce   :  { %v757_v42 = vsel %vm755_vm10, %v745_v33, 2102212464  ;;  %v761_v44 = vsel %vm755_vm10, %v748_v39, 920167782  ;;  %v676_v45 = vadd.s32 %v675_v23, %v671_v29  ;;  %v756_v47 = vsel %vm752_vm6, %v736_v21, %v739_v16 }
 0x2cf   :  { %v762_v48 = vsel %vm754_vm9, %v745_v33, %v761_v44  ;;  %v765_v49 = vsel %vm755_vm10, %v751_v40, 1326507024  ;;  %v758_v50 = vsel %vm754_vm9, %v742_v17, %v757_v42  ;;  %v834_v54 = vadd.s32 1, %v1477_v31 }
 0x2d0   :  { %v763_v52 = vsel %vm753_vm8, %v760_v41, %v762_v48  ;;  %v766_v53 = vsel %vm754_vm9, %v748_v39, %v765_v49  ;;  %v677_v55 = vadd.s32 536870912, %v676_v45  ;;  %v824_v56 = vand.u32 2147483647, %v1465_v9 }
 0x2d1   :  { %v767_v58 = vsel %vm753_vm8, %v764_v30, %v766_v53  ;;  %v1528_v59 = vmul.u32.u64.low %v1472_v25, %v763_v52  ;;  %v1529_v60 = vmul.u32.u64.high %v1472_v25, %v763_v52, %v1528_v59  ;;  %vm835_vm11 = vcmp.gt.s32.totalorder %v834_v54, 0 }
 0x2d2   :  { %v1533_v61 = vmul.u32.u64.low %v1472_v25, %v767_v58  ;;  %v1534_v0 = vmul.u32.u64.high %v1472_v25, %v767_v58, %v1533_v61  ;;  %v1537_v2 = vshrl.u32 %v677_v55, 30  ;;  %v759_v31 = vsel %vm753_vm8, %v756_v47, %v758_v50 }
 0x2d3   :  { %v599_v3 = vmul.f32 %v1442_v43, %v1474_v26  ;;  %v836_v4 = vsel %vm835_vm11, %v834_v54, 0  ;;  %v778_v7 = vadd.s32 1, %v1529_v60  ;;  %v775_v8 = vmul.u32 %v1472_v25, %v759_v31 }
 0x2d4   :  { %v838_v5 = vand.u32 31, %v836_v4  ;;  %v679_v6 = vshll.u32 %v1537_v2, 30  ;;  %vm777_vm12 = vc.u32 %v1534_v0, %v1528_v59  ;;  %v831_v10 = vand.u32 8388607, %v824_v56 }
 0x2d5   :  { %v779_v12 = vsel %vm777_vm12, %v778_v7, %v1529_v60  ;;  %v1552_v43 = vadd.f32 %v1449_v51, %v599_v3  ;;  %v672_v16 = vadd.s32 %v1504_v14, %v1501_v13  ;;  %v837_v29 = vshrl.u32 %v836_v4, 5 }
 0x2d6   :  { %v839_v11 = vsub.s32 32, %v838_v5  ;;  %v680_v24 = vsub.s32 %v676_v45, %v679_v6  ;;  %v780_v26 = vadd.s32 %v779_v12, %v775_v8  ;;  %v832_v18 = vor.u32 8388608, %v831_v10 }
 0x2d7   :  { %v931_v22 = vand.u32 2139095040, %v1552_v43  ;;  %v841_v51 = vshll.u32 %v1349_v28, %v838_v5  ;;  %v844_v13 = vshll.u32 %v1350_v32, %v838_v5  ;;  %v847_v14 = vshll.u32 %v1351_v34, %v838_v5 }
 0x2d8   :  { %v682_v15 = vsub.s32 0, %v680_v24  ;;  %v781_v17 = vadd.s32 536870912, %v780_v26  ;;  %v842_v25 = vshrl.u32 %v1350_v32, %v839_v11  ;;  %v845_v21 = vshrl.u32 %v1351_v34, %v839_v11 }
 0x2d9   :  { %v848_v20 = vshrl.u32 %v1352_v36, %v839_v11  ;;  %v851_v33 = vshrl.u32 %v1353_v38, %v839_v11  ;;  %v854_v37 = vshrl.u32 %v1354_v46, %v839_v11  ;;  %v850_v41 = vshll.u32 %v1352_v36, %v838_v5 }
 0x2da   :  { %v1093_v19 = vmin.u32 %v682_v15, %v680_v24  ;;  %v1559_v27 = vshrl.u32 %v781_v17, 30  ;;  %v843_v40 = vor.u32 %v842_v25, %v841_v51  ;;  %v1568_v23 = vshll.u32 %v832_v18, 8 }
 0x2db   :  { %v846_v44 = vor.u32 %v845_v21, %v844_v13  ;;  %v849_v30 = vor.u32 %v848_v20, %v847_v14  ;;  %v853_v45 = vshll.u32 %v1353_v38, %v838_v5  ;;  %v702_v47 = vsub.s32 4, %v1537_v2 }
 0x2dc   :  { %v684_v35 = vclz %v1093_v19  ;;  %v783_v39 = vshll.u32 %v1559_v27, 30  ;;  %v852_v49 = vor.u32 %v851_v33, %v850_v41  ;;  %v932_v50 = vshrl.u32 %v931_v22, 23 }
 0x2dd   :  { %v840_v52 = vshrl.u32 %v1349_v28, %v839_v11  ;;  %v855_v53 = vor.u32 %v854_v37, %v853_v45  ;;  %vm856_vm15 = vcmp.lt.s32.totalorder %v837_v29, 1  ;;  %vm858_vm0 = vcmp.lt.s32.totalorder %v837_v29, 3 }
 0x2de   :  { %v1094_v42 = vadd.s32 4294967294, %v684_v35  ;;  %v1573_v48 = vsub.s32 %v780_v26, %v783_v39  ;;  %vm859_vm1 = vcmp.lt.s32.totalorder %v837_v29, 4  ;;  %vm1579_vm2 = vcmp.le.f32.partialorder %v616_v57, 0.7853982 }
 0x2df   :  { %v861_v31 = vsel %vm859_vm1, %v849_v30, 2102212464  ;;  %v864_v3 = vsel %vm856_vm15, %v843_v40, %v846_v44  ;;  %v865_v6 = vsel %vm859_vm1, %v852_v49, 920167782  ;;  %v868_v7 = vsel %vm856_vm15, %v846_v44, %v849_v30 }
 0x2e0   :  { %vm1095_vm14 = vcmp.lt.s32.totalorder %v1094_v42, 0  ;;  %v786_v55 = vsub.s32 0, %v1573_v48  ;;  %v866_v11 = vsel %vm858_vm0, %v849_v30, %v865_v6  ;;  %v869_v12 = vsel %vm859_vm1, %v855_v53, 1326507024 }
 0x2e1   :  { %v687_v54 = vsel %vm1095_vm14, 0, %v1094_v42  ;;  %vm857_vm3 = vcmp.lt.s32.totalorder %v837_v29, 2  ;;  %v860_v26 = vsel %vm856_vm15, %v840_v52, %v843_v40  ;;  %v862_v15 = vsel %vm858_vm0, %v846_v44, %v861_v31 }
 0x2e2   :  { %v688_v60 = vsub.s32 32, %v687_v54  ;;  %v692_v61 = vsub.s32 4294967266, %v687_v54  ;;  %v689_v4 = vshll.u32 %v680_v24, %v687_v54  ;;  %v1097_v5 = vmin.u32 %v786_v55, %v1573_v48 }
 0x2e3   :  { %v867_v25 = vsel %vm857_vm3, %v864_v3, %v866_v11  ;;  %v870_v24 = vsel %vm858_vm0, %v852_v49, %v869_v12  ;;  %v703_v51 = vsel %vm618_vm13, %v702_v47, %v1537_v2  ;;  %v863_v13 = vsel %vm857_vm3, %v860_v26, %v862_v15 }
 0x2e4   :  { %v690_v8 = vshrl.u32 %v672_v16, %v688_v60  ;;  %v693_v10 = vadd.s32 127, %v692_v61  ;;  %v788_v57 = vclz %v1097_v5  ;;  %v871_v21 = vsel %vm857_vm3, %v868_v7, %v870_v24 }
 0x2e5   :  { %v1591_v20 = vmul.u32.u64.low %v1568_v23, %v867_v25  ;;  %v1592_v16 = vmul.u32.u64.high %v1568_v23, %v867_v25, %v1591_v20  ;;  %v1599_v33 = vmul.u32.u64.low %v1568_v23, %v871_v21  ;;  %v1600_v35 = vmul.u32.u64.high %v1568_v23, %v871_v21, %v1599_v33 }
 0x2e6   :  { %v691_v17 = vor.u32 %v690_v8, %v689_v4  ;;  %v694_v18 = vshll.u32 %v693_v10, 23  ;;  %v1098_v19 = vadd.s32 4294967294, %v788_v57  ;;  %v928_v29 = vand.u32 2147483647, %v1552_v43 }
 0x2e7   :  { %v1104_v14 = vadd.s32 4294967169, %v932_v50  ;;  %v776_v40 = vadd.s32 %v1528_v59, %v1534_v0  ;;  %v705_v42 = vsel %vm1579_vm2, 0, %v703_v51  ;;  %v882_v30 = vadd.s32 1, %v1592_v16 }
 0x2e8   :  { %v695_v22 = vor.u32 4788187, %v694_v18  ;;  %vm1099_vm4 = vcmp.lt.s32.totalorder %v1098_v19, 0  ;;  %v698_v39 = vcvt.s32.f32 %v691_v17  ;;  %v879_v47 = vmul.u32 %v1568_v23, %v863_v13 }
 0x2e9   :  { %v791_v41 = vsel %vm1099_vm4, 0, %v1098_v19  ;;  %vm881_vm5 = vc.u32 %v1600_v35, %v1591_v20  ;;  %v938_v49 = vadd.s32 1, %v1104_v14  ;;  %v806_v54 = vsub.s32 4, %v1559_v27 }
 0x2ea   :  { %v696_v37 = vand.u32 2147483647, %v695_v22  ;;  %v792_v44 = vsub.s32 32, %v791_v41  ;;  %v796_v2 = vsub.s32 4294967266, %v791_v41  ;;  %v793_v50 = vshll.u32 %v1573_v48, %v791_v41 }
 0x2eb   :  { %v883_v59 = vsel %vm881_vm5, %v882_v30, %v1592_v16  ;;  %vm939_vm6 = vcmp.gt.s32.totalorder %v938_v49, 0  ;;  %vm722_vm7 = vcmp.lt.s32.totalorder %v1455_v63, 0  ;;  %v709_v5 = vadd.s32 3, %v705_v42 }
 0x2ec   :  { %v699_v45 = vmul.f32 %v698_v39, %v696_v37  ;;  %v794_v52 = vshrl.u32 %v776_v40, %v792_v44  ;;  %v797_v53 = vadd.s32 127, %v796_v2  ;;  %v884_v55 = vadd.s32 %v883_v59, %v879_v47 }
 0x2ed   :  { %v940_v31 = vsel %vm939_vm6, %v938_v49, 0  ;;  %v935_v7 = vand.u32 8388607, %v928_v29  ;;  %v807_v8 = vsel %vm722_vm7, %v806_v54, %v1559_v27  ;;  %vm1629_vm8 = vcmp.le.f32.partialorder %v720_v1, 0.7853982 }
 0x2ee   :  { %v700_v0 = vxor.u32 2147483648, %v699_v45  ;;  %v795_v60 = vor.u32 %v794_v52, %v793_v50  ;;  %v798_v61 = vshll.u32 %v797_v53, 23  ;;  %v885_v3 = vadd.s32 536870912, %v884_v55 }
 0x2ef   :  { %v942_v4 = vand.u32 31, %v940_v31  ;;  %v1634_v15 = vand.u32 3, %v709_v5  ;;  %v809_v27 = vsel %vm1629_vm8, 0, %v807_v8  ;;  %v936_v18 = vor.u32 8388608, %v935_v7 }
 0x2f0   :  { %v701_v23 = vsel %vm618_vm13, %v700_v0, %v699_v45  ;;  %v799_v6 = vor.u32 4788187, %v798_v61  ;;  %v1625_v10 = vshrl.u32 %v885_v3, 30  ;;  %v802_v57 = vcvt.s32.f32 %v795_v60 }
 0x2f1   :  { %v704_v48 = vsel %vm1579_vm2, %v1452_v62, %v701_v23  ;;  %v943_v11 = vsub.s32 32, %v942_v4  ;;  %v1643_v16 = vshrl.u32 %v940_v31, 5  ;;  %v954_v51 = vshll.u32 %v1352_v36, %v942_v4 }
 0x2f2   :  { %1237 = vcosq.f32 %v704_v48  ;;  %v800_v12 = vand.u32 2147483647, %v799_v6  ;;  %v887_v26 = vshll.u32 %v1625_v10, 30  ;;  %v945_v13 = vshll.u32 %v1349_v28, %v942_v4 }
 0x2f3   :  { %1239 = vsinq.f32 %v704_v48  ;;  %v949_v24 = vshrl.u32 %v1351_v34, %v943_v11  ;;  %v952_v19 = vshrl.u32 %v1352_v36, %v943_v11  ;;  %v955_v1 = vshrl.u32 %v1353_v38, %v943_v11 }
 0x2f4   :  { %v803_v17 = vmul.f32 %v802_v57, %v800_v12  ;;  %v1638_v25 = vsub.s32 %v884_v55, %v887_v26  ;;  %v946_v22 = vshrl.u32 %v1350_v32, %v943_v11  ;;  %v948_v14 = vshll.u32 %v1350_v32, %v942_v4 }
 0x2f5   :  { %v951_v37 = vshll.u32 %v1351_v34, %v942_v4  ;;  %v956_v40 = vor.u32 %v955_v1, %v954_v51  ;;  %v957_v41 = vshll.u32 %v1353_v38, %v942_v4  ;;  %v958_v42 = vshrl.u32 %v1354_v46, %v943_v11 }
 0x2f6   :  { %v804_v21 = vxor.u32 2147483648, %v803_v17  ;;  %v890_v33 = vsub.s32 0, %v1638_v25  ;;  %vm712_vm9 = vcmp.eq.s32.totalorder %v1634_v15, 0  ;;  %v950_v2 = vor.u32 %v949_v24, %v948_v14 }
 0x2f7   :  { %v953_v32 = vor.u32 %v952_v19, %v951_v37  ;;  %vm711_vm10 = vcmp.lt.s32.totalorder %v1634_v15, 2  ;;  %vm715_vm11 = vcmp.eq.s32.totalorder %v1634_v15, 2  ;;  %v947_v34 = vor.u32 %v946_v22, %v945_v13 }
 0x2f8   :  { %v805_v39 = vsel %vm722_vm7, %v804_v21, %v803_v17  ;;  %v1101_v44 = vmin.u32 %v890_v33, %v1638_v25  ;;  %v959_v30 = vor.u32 %v958_v42, %v957_v41  ;;  %vm708_vm12 = vweird.f32 %v1452_v62 }
 0x2f9   :  { %v808_v36 = vsel %vm1629_vm8, %v1455_v63, %v805_v39  ;;  %v813_v38 = vadd.s32 3, %v809_v27  ;;  %vm963_vm13 = vcmp.lt.s32.totalorder %v1643_v16, 4  ;;  %v880_v45 = vadd.s32 %v1591_v20, %v1600_v35 }
 0x2fa   :  { %1241 = vcosq.f32 %v808_v36  ;;  %v892_v46 = vclz %v1101_v44  ;;  %vm960_vm14 = vcmp.lt.s32.totalorder %v1643_v16, 1  ;;  %v969_v47 = vsel %vm963_vm13, %v956_v40, 920167782 }
 0x2fb   :  { %1243 = vsinq.f32 %v808_v36  ;;  %v976_v49 = vshll.u32 %v936_v18, 8  ;;  %v944_v52 = vshrl.u32 %v1349_v28, %v943_v11  ;;  %vm962_vm15 = vcmp.lt.s32.totalorder %v1643_v16, 3 }
 0x2fc   :  { %v1102_v50 = vadd.s32 4294967294, %v892_v46  ;;  %v972_v53 = vsel %vm960_vm14, %v950_v2, %v953_v32  ;;  %vm961_vm0 = vcmp.lt.s32.totalorder %v1643_v16, 2  ;;  %v968_v20 = vsel %vm960_vm14, %v947_v34, %v950_v2 }
 0x2fd   :  { %v970_v35 = vsel %vm962_vm15, %v953_v32, %v969_v47  ;;  %v973_v0 = vsel %vm963_vm13, %v959_v30, 1326507024  ;;  %v965_v28 = vsel %vm963_vm13, %v953_v32, 2102212464  ;;  %v964_v23 = vsel %vm960_vm14, %v944_v52, %v947_v34 }
 0x2fe   :  { %vm1103_vm1 = vcmp.lt.s32.totalorder %v1102_v50, 0  ;;  %v974_v60 = vsel %vm962_vm15, %v956_v40, %v973_v0  ;;  %v971_v6 = vsel %vm961_vm0, %v968_v20, %v970_v35  ;;  %v966_v8 = vsel %vm962_vm15, %v950_v2, %v965_v28 }
 0x2ff   :  { %v1238_v59 = vpop.eup %1237  ;;  %v895_v31 = vsel %vm1103_vm1, 0, %v1102_v50  ;;  %v975_v3 = vsel %vm961_vm0, %v972_v53, %v974_v60  ;;  %v814_v18 = vand.u32 3, %v813_v38  ;;  %v967_v15 = vsel %vm961_vm0, %v964_v23, %v966_v8 }
 0x300   :  { %v1240_v54 = vpop.eup %1239  ;;  %v716_v55 = vxor.u32 2147483648, %v1238_v59  ;;  %v896_v48 = vsub.s32 32, %v895_v31  ;;  %v900_v5 = vsub.s32 4294967266, %v895_v31  ;;  %v897_v58 = vshll.u32 %v1638_v25, %v895_v31 }
 0x301   :  { %v713_v61 = vxor.u32 2147483648, %v1240_v54  ;;  %v1696_v11 = vmul.u32.u64.low %v976_v49, %v975_v3  ;;  %v1697_v12 = vmul.u32.u64.high %v976_v49, %v975_v3, %v1696_v11  ;;  %vm819_vm3 = vcmp.eq.s32.totalorder %v814_v18, 2 }
 0x302   :  { %v717_v4 = vsel %vm715_vm11, %v716_v55, %v1240_v54  ;;  %v898_v26 = vshrl.u32 %v880_v45, %v896_v48  ;;  %v901_v17 = vadd.s32 127, %v900_v5  ;;  %v983_v39 = vmul.u32 %v976_v49, %v967_v15 }
 0x303   :  { %v714_v7 = vsel %vm712_vm9, %v1238_v59, %v713_v61  ;;  %v1704_v24 = vmul.u32.u64.low %v976_v49, %v971_v6  ;;  %v1705_v19 = vmul.u32.u64.high %v976_v49, %v971_v6, %v1704_v24  ;;  %vm816_vm4 = vcmp.eq.s32.totalorder %v814_v18, 0 }
 0x304   :  { %v718_v57 = vsel %vm711_vm10, %v714_v7, %v717_v4  ;;  %v899_v1 = vor.u32 %v898_v26, %v897_v58  ;;  %v902_v21 = vshll.u32 %v901_v17, 23  ;;  %vm815_vm5 = vcmp.lt.s32.totalorder %v814_v18, 2 }
 0x305   :  { %v719_v27 = vsel %vm708_vm12, nan, %v718_v57  ;;  %vm985_vm2 = vc.u32 %v1697_v12, %v1704_v24  ;;  %v986_v33 = vadd.s32 1, %v1705_v19  ;;  %vm812_vm6 = vweird.f32 %v1455_v63 }
 0x306   :  { %1032 = vst [vmem:[%s1746_s8] sm:$0xff] %v719_v27  ;;  %v903_v25 = vor.u32 4788187, %v902_v21  ;;  %v906_v37 = vcvt.s32.f32 %v899_v1  ;;  %vm826_vm7 = vcmp.lt.s32.totalorder %v1465_v9, 0  ;;  %v910_v30 = vsub.s32 4, %v1625_v10 }
 0x307   :  { %v1242_v22 = vpop.eup %1241  ;;  %v987_v41 = vsel %vm985_vm2, %v986_v33, %v1705_v19  ;;  %vm825_vm8 = vcmp.le.f32.partialorder %v824_v56, 0.7853982  ;;  %v984_v60 = vadd.s32 %v1704_v24, %v1697_v12  ;;  %vm916_vm13 = vweird.f32 %v1465_v9 }
 0x308   :  { %v1244_v51 = vpop.eup %1243  ;;  %v820_v62 = vxor.u32 2147483648, %v1242_v22  ;;  %v904_v14 = vand.u32 2147483647, %v903_v25  ;;  %v988_v36 = vadd.s32 %v987_v41, %v983_v39  ;;  %v911_v47 = vsel %vm826_vm7, %v910_v30, %v1625_v10 }
 0x309   :  { %v817_v13 = vxor.u32 2147483648, %v1244_v51  ;;  %v913_v50 = vsel %vm825_vm8, 0, %v911_v47  ;;  %vm930_vm14 = vcmp.lt.s32.totalorder %v1552_v43, 0  ;;  %vm929_vm15 = vcmp.le.f32.partialorder %v928_v29, 0.7853982 }
 0x30a   :  { %v821_v40 = vsel %vm819_vm3, %v820_v62, %v1244_v51  ;;  %v907_v42 = vmul.f32 %v906_v37, %v904_v14  ;;  %v989_v34 = vadd.s32 536870912, %v988_v36  ;;  %v917_v59 = vadd.s32 3, %v913_v50 }
 0x30b   :  { %v818_v16 = vsel %vm816_vm4, %v1242_v22, %v817_v13  ;;  %vm1020_vm3 = vweird.f32 %v1552_v43 }
 0x30c   :  { %v822_v44 = vsel %vm815_vm5, %v818_v16, %v821_v40  ;;  %v908_v32 = vxor.u32 2147483648, %v907_v42  ;;  %v990_v46 = vshrl.u32 %v989_v34, 30  ;;  %v918_v0 = vand.u32 3, %v917_v59 }
 0x30d   :  { %v823_v2 = vsel %vm812_vm6, nan, %v822_v44 }
 0x30e   :  { %1033 = vst [vmem:[%s1746_s8 + $0x8] sm:$0xff] %v823_v2  ;;  %v909_v38 = vsel %vm826_vm7, %v908_v32, %v907_v42  ;;  %v991_v63 = vshll.u32 %v990_v46, 30  ;;  %vm920_vm10 = vcmp.eq.s32.totalorder %v918_v0, 0  ;;  %vm923_vm11 = vcmp.eq.s32.totalorder %v918_v0, 2 }
 0x30f   :  { %v912_v45 = vsel %vm825_vm8, %v1465_v9, %v909_v38  ;;  %vm919_vm12 = vcmp.lt.s32.totalorder %v918_v0, 2  ;;  %v1014_v27 = vsub.s32 4, %v990_v46 }
 0x310   :  { %1245 = vcosq.f32 %v912_v45  ;;  %v992_v49 = vsub.s32 %v988_v36, %v991_v63 }
 0x311   :  { %1247 = vsinq.f32 %v912_v45  ;;  %v1015_v24 = vsel %vm930_vm14, %v1014_v27, %v990_v46 }
 0x312   :  { %v994_v52 = vsub.s32 0, %v992_v49  ;;  %v1017_v19 = vsel %vm929_vm15, 0, %v1015_v24 }
 0x313   :  { %v1021_v1 = vadd.s32 3, %v1017_v19 }
 0x314   :  { %v1105_v53 = vmin.u32 %v994_v52, %v992_v49 }
 0x315   :  { %v1022_v21 = vand.u32 3, %v1021_v1 }
 0x316   :  { %v996_v20 = vclz %v1105_v53 }
 0x317   :  { %vm1027_vm0 = vcmp.eq.s32.totalorder %v1022_v21, 2  ;;  %vm1024_vm1 = vcmp.eq.s32.totalorder %v1022_v21, 0  ;;  %vm1023_vm2 = vcmp.lt.s32.totalorder %v1022_v21, 2 }
 0x318   :  { %v1106_v35 = vadd.s32 4294967294, %v996_v20 }
 0x31a   :  { %vm1107_vm9 = vcmp.lt.s32.totalorder %v1106_v35, 0 }
 0x31b   :  { %v999_v56 = vsel %vm1107_vm9, 0, %v1106_v35 }
 0x31c   :  { %v1000_v61 = vsub.s32 32, %v999_v56  ;;  %v1004_v31 = vsub.s32 4294967266, %v999_v56  ;;  %v1001_v3 = vshll.u32 %v992_v49, %v999_v56 }
 0x31d   :  { %v1246_v54 = vpop.eup %1245 }
 0x31e   :  { %v1248_v55 = vpop.eup %1247  ;;  %v924_v28 = vxor.u32 2147483648, %v1246_v54  ;;  %v1002_v4 = vshrl.u32 %v984_v60, %v1000_v61  ;;  %v1005_v48 = vadd.s32 127, %v1004_v31 }
 0x31f   :  { %v921_v10 = vxor.u32 2147483648, %v1248_v55 }
 0x320   :  { %v925_v23 = vsel %vm923_vm11, %v924_v28, %v1248_v55  ;;  %v1003_v7 = vor.u32 %v1002_v4, %v1001_v3  ;;  %v1006_v8 = vshll.u32 %v1005_v48, 23 }
 0x321   :  { %v922_v5 = vsel %vm920_vm10, %v1246_v54, %v921_v10 }
 0x322   :  { %v926_v6 = vsel %vm919_vm12, %v922_v5, %v925_v23  ;;  %v1007_v57 = vor.u32 4788187, %v1006_v8  ;;  %v1010_v58 = vcvt.s32.f32 %v1003_v7 }
 0x323   :  { %v927_v11 = vsel %vm916_vm13, nan, %v926_v6 }
 0x324   :  { %1034 = vst [vmem:[%s1746_s8 + $0x10] sm:$0xff] %v927_v11  ;;  %v1008_v12 = vand.u32 2147483647, %v1007_v57 }
 0x326   :  { %v1011_v26 = vmul.f32 %v1010_v58, %v1008_v12 }
 0x328   :  { %v1012_v17 = vxor.u32 2147483648, %v1011_v26 }
 0x32a   :  { %v1013_v9 = vsel %vm930_vm14, %v1012_v17, %v1011_v26 }
 0x32b   :  { %v1016_v18 = vsel %vm929_vm15, %v1552_v43, %v1013_v9 }
 0x32c   :  { %1249 = vcosq.f32 %v1016_v18 }
 0x32d   :  { %1251 = vsinq.f32 %v1016_v18 }
 0x339   :  { %v1250_v15 = vpop.eup %1249 }
 0x33a   :  { %v1252_v22 = vpop.eup %1251  ;;  %v1028_v25 = vxor.u32 2147483648, %v1250_v15 }
 0x33b   :  { %v1025_v51 = vxor.u32 2147483648, %v1252_v22 }
 0x33c   :  { %v1029_v62 = vsel %vm1027_vm0, %v1028_v25, %v1252_v22 }
 0x33d   :  { %v1026_v33 = vsel %vm1024_vm1, %v1250_v15, %v1025_v51 }
 0x33e   :  { %v1030_v29 = vsel %vm1023_vm2, %v1026_v33, %v1029_v62 }
 0x33f   :  { %v1031_v13 = vsel %vm1020_vm3, nan, %v1030_v29 }
 0x340   :  { %1035 = vst [vmem:[%s1746_s8 + $0x18] sm:$0xff] %v1031_v13 }
 0x341   :  { %1040 = vsyncpa [#allocation3], 1 }
 0x342   :  { %1041 = vsyncpa [#allocation5], 1 }
 0x343   :  { %1042 = vsyncpa [#allocation8], 1 }

// kernel: transformer_decoder_forward.3
= control target key start
LH: loop header
LB: loop body
LE: loop exit
PB: predicated region body
PF: predicated region fallthrough
CT: control target
= control target key end

     0   :  { %s11474_s6 = smov 1   ;;  %s11475_s10 = smov 2   ;;  %s13448_s0 = inlined_call_operand.smem [shape: u32[32], index: -1, kind: input, shape index: {}] }
   0x1   :  { %s11549_s5 = sld [smem:[%s13448_s0]]   ;;  %s11476_s14 = smov 3  }
   0x2   :  { %s11554_s9 = sld [smem:[%s13448_s0 + %s11474_s6]]   ;;  %s11477_s18 = smov 4  }
   0x3   :  { %s11559_s13 = sld [smem:[%s13448_s0 + %s11475_s10]]   ;;  %s11478_s22 = smov 5  }
   0x4   :  { %s11564_s17 = sld [smem:[%s13448_s0 + %s11476_s14]]   ;;  %s11479_s26 = smov 6  }
   0x5   :  { %s11569_s21 = sld [smem:[%s13448_s0 + %s11477_s18]]   ;;  %s11480_s30 = smov 7  }
   0x6   :  { %s11574_s25 = sld [smem:[%s13448_s0 + %s11478_s22]]   ;;  %s11481_s4 = smov 8  }
   0x7   :  { %13498 = sst [smem:[#allocation27_spill]] %s11549_s5  ;;  %s11482_s10 = smov 9  }
   0x8   :  { %13499 = sst [smem:[#allocation28_spill]] %s11554_s9  ;;  %s11483_s15 = smov 10  }
   0x9   :  { %13500 = sst [smem:[#allocation29_spill]] %s11559_s13  ;;  %s11484_s20 = smov 11  }
   0xa   :  { %13501 = sst [smem:[#allocation30_spill]] %s11564_s17  ;;  %s11486_s1 = smov 13  }
   0xb   :  { %13502 = sst [smem:[#allocation31_spill]] %s11569_s21  ;;  %s11487_s7 = smov 14  }
   0xc   :  { %13503 = sst [smem:[#allocation32_spill]] %s11574_s25  ;;  %s11489_s22 = smov 16  }
   0xd   :  { %s11579_s29 = sld [smem:[%s13448_s0 + %s11479_s26]]   ;;  %s11485_s26 = smov 12  }
   0xe   :  { %s11584_s3 = sld [smem:[%s13448_s0 + %s11480_s30]]   ;;  %s11490_s28 = smov 17  }
   0xf   :  { %s11589_s8 = sld [smem:[%s13448_s0 + %s11481_s4]]  }
  0x10   :  { %s11594_s14 = sld [smem:[%s13448_s0 + %s11482_s10]]  }
  0x11   :  { %s11599_s19 = sld [smem:[%s13448_s0 + %s11483_s15]]   ;;  %s11488_s15 = smov 15  }
  0x12   :  { %s11604_s24 = sld [smem:[%s13448_s0 + %s11484_s20]]  }
  0x13   :  { %13504 = sst [smem:[#allocation33_spill]] %s11579_s29 }
  0x14   :  { %13505 = sst [smem:[#allocation34_spill]] %s11584_s3 }
  0x15   :  { %13506 = sst [smem:[#allocation35_spill]] %s11589_s8 }
  0x16   :  { %13507 = sst [smem:[#allocation36_spill]] %s11594_s14 }
  0x17   :  { %13508 = sst [smem:[#allocation37_spill]] %s11599_s19 }
  0x18   :  { %13509 = sst [smem:[#allocation38_spill]] %s11604_s24 }
  0x19   :  { %s11609_s30 = sld [smem:[%s13448_s0 + %s11485_s26]]  }
  0x1a   :  { %s11614_s6 = sld [smem:[%s13448_s0 + %s11486_s1]]  }
  0x1b   :  { %s11619_s12 = sld [smem:[%s13448_s0 + %s11487_s7]]   ;;  %s11491_s7 = smov 18  }
  0x1c   :  { %s11624_s20 = sld [smem:[%s13448_s0 + %s11488_s15]]   ;;  %s11492_s15 = smov 19  }
  0x1d   :  { %s11629_s27 = sld [smem:[%s13448_s0 + %s11489_s22]]   ;;  %s11493_s22 = smov 20  }
  0x1e   :  { %s11634_s4 = sld [smem:[%s13448_s0 + %s11490_s28]]   ;;  %s11494_s28 = smov 21  }
  0x1f   :  { %13510 = sst [smem:[#allocation39_spill]] %s11609_s30 }
  0x20   :  { %13511 = sst [smem:[#allocation40_spill]] %s11614_s6 }
  0x21   :  { %13512 = sst [smem:[#allocation41_spill]] %s11619_s12 }
  0x22   :  { %13513 = sst [smem:[#allocation42_spill]] %s11624_s20 }
  0x23   :  { %13514 = sst [smem:[#allocation43_spill]] %s11629_s27 }
  0x24   :  { %13515 = sst [smem:[#allocation44_spill]] %s11634_s4 }
  0x25   :  { %s11639_s29 = sld [smem:[%s13448_s0 + %s11491_s7]]   ;;  %s11495_s7 = smov 22  }
  0x26   :  { %s11644_s25 = sld [smem:[%s13448_s0 + %s11492_s15]]   ;;  %s11496_s15 = smov 23  }
  0x27   :  { %s11649_s21 = sld [smem:[%s13448_s0 + %s11493_s22]]   ;;  %s11497_s22 = smov 24  }
  0x28   :  { %s11654_s17 = sld [smem:[%s13448_s0 + %s11494_s28]]   ;;  %s11498_s28 = smov 25  }
  0x29   :  { %s11659_s13 = sld [smem:[%s13448_s0 + %s11495_s7]]   ;;  %s11499_s7 = smov 26  }
  0x2a   :  { %s11664_s9 = sld [smem:[%s13448_s0 + %s11496_s15]]   ;;  %s11500_s15 = smov 27  }
  0x2b   :  { %13516 = sst [smem:[#allocation45_spill]] %s11639_s29 }
  0x2c   :  { %13517 = sst [smem:[#allocation46_spill]] %s11644_s25 }
  0x2d   :  { %13518 = sst [smem:[#allocation47_spill]] %s11649_s21 }
  0x2e   :  { %13519 = sst [smem:[#allocation48_spill]] %s11654_s17 }
  0x2f   :  { %13520 = sst [smem:[#allocation49_spill]] %s11659_s13 }
  0x30   :  { %13521 = sst [smem:[#allocation50_spill]] %s11664_s9 }
  0x31   :  { %s11669_s5 = sld [smem:[%s13448_s0 + %s11497_s22]]   ;;  %s11501_s22 = smov 28  }
  0x32   :  { %s11674_s29 = sld [smem:[%s13448_s0 + %s11498_s28]]   ;;  %s11502_s28 = smov 29  }
  0x33   :  { %s11679_s6 = sld [smem:[%s13448_s0 + %s11499_s7]]   ;;  %s11503_s7 = smov 30  }
  0x34   :  { %s11684_s9 = sld [smem:[%s13448_s0 + %s11500_s15]]   ;;  %s11504_s15 = smov 31  }
  0x37   :  { %13522 = sst [smem:[#allocation51_spill]] %s11669_s5 }
  0x38   :  { %13523 = sst [smem:[#allocation52_spill]] %s11674_s29 }
  0x39   :  { %13524 = sst [smem:[#allocation53_spill]] %s11679_s6 }
  0x3a   :  { %13525 = sst [smem:[#allocation54_spill]] %s11684_s9 }
  0x3b   :  { %s11689_s5 = sld [smem:[%s13448_s0 + %s11501_s22]]  }
  0x3c   :  { %s11694_s29 = sld [smem:[%s13448_s0 + %s11502_s28]]  }
  0x3d   :  { %s11699_s6 = sld [smem:[%s13448_s0 + %s11503_s7]]  }
  0x3e   :  { %s11704_s9 = sld [smem:[%s13448_s0 + %s11504_s15]]  }
  0x41   :  { %13526 = sst [smem:[#allocation55_spill]] %s11689_s5 }
  0x42   :  { %13527 = sst [smem:[#allocation56_spill]] %s11694_s29 }
  0x43   :  { %13528 = sst [smem:[#allocation57_spill]] %s11699_s6 }
  0x44   :  { %13529 = sst [smem:[#allocation58_spill]] %s11704_s9 }
  0x45   :  { %68 = vsyncpa [#allocation3], 0 }
  0x46   :  { %69 = vsyncpa [#allocation5], 0  ;;  %s11706_s22 = smov 0   ;;  %s11708_s23 = smov 0  }
  0x47   :  { %s11710_s26 = smov 0   ;;  %s11712_s28 = smov 0  }
  0x48   :  { %s11714_s1 = smov 0   ;;  %s11716_s2 = smov 0  }
  0x49   :  { %s11718_s7 = smov 0   ;;  %s11720_s10 = smov 0  }
  0x4a LB: > { %s13530_s30 = sld [smem:[#allocation39_spill]]  ;;  %s84_s11 = sadd.s32 1, %s11464_s2  ;;  %s11460_s1 = sphi %s11714_s1, %s13605_s1   ;;  %s11456_s28 = sphi %s11712_s28, %s13604_s28   ;;  %s11452_s26 = sphi %s11710_s26, %s13603_s26   ;;  %s11448_s23 = sphi %s11708_s23, %s13602_s23   ;;  %s11444_s22 = sphi %s11706_s22, %s13601_s22   ;;  %s11472_s10 = sphi %s11720_s10, %s75_s10   ;;  %s11468_s7 = sphi %s11718_s7, %s13607_s7   ;;  %s11464_s2 = sphi %s11716_s2, %s13606_s2  }
  0x4b   : > { %s13531_s27 = sld [smem:[#allocation43_spill]]  ;;  %p85_p0 = scmp.ge.s32.totalorder %s84_s11, 2 }
  0x4c   : > { %s13532_s25 = sld [smem:[#allocation46_spill]]  ;;  %s87_s15 = sadd.s32 1, %s11468_s7 }
  0x4d   : > { %s13533_s24 = sld [smem:[#allocation38_spill]]  ;;  %s308_s16 = sadd.s32 1, %s11452_s26 }
  0x4e   : > { %s13534_s21 = sld [smem:[#allocation47_spill]]  ;;  %p315_p1 = scmp.ne.s32.totalorder %s11452_s26, %s11448_s23 }
  0x4f   : > { %s13535_s20 = sld [smem:[#allocation42_spill]]  ;;  %s13609_s11 = smov (%p85_p0, %s84_s11), 0 }
  0x50   : > { %s13536_s17 = sld [smem:[#allocation48_spill]]  ;;  %s13611_s15 = smov (!%p85_p0, %s87_s15), %s11468_s7 }
  0x51   : > { %s13537_s13 = sld [smem:[#allocation49_spill]]  ;;  %s305_s18 = ssub.s32 %s11464_s2, %s13609_s11 }
  0x52   : > { %s13538_s5 = sld [smem:[#allocation55_spill]]  ;;  %p316_p2 = scmp.eq.s32.totalorder %s11472_s10, 0 }
  0x53   : > { %s13539_s4 = sld [smem:[#allocation44_spill]]  ;;  %p89_p3 = scmp.ge.s32.totalorder %s13611_s15, 2 }
  0x54   : > { %s13540_s19 = sld [smem:[#allocation37_spill]]  ;;  %p306_p4 = scmp.eq.s32.totalorder %s305_s18, 0 }
  0x55   : > { %s13541_s12 = sld [smem:[#allocation41_spill]]  ;;  %p11756_p5 = por %p316_p2, %p315_p1 }
  0x56   : > { %s13542_s14 = sld [smem:[#allocation36_spill]]  ;;  %p321_p6 = scmp.ne.s32.totalorder %s11448_s23, %s11444_s22 }
  0x57   : > { %13543 = sst [smem:[#allocation59_spill]] %s11448_s23  ;;  %s13613_s15 = smov (%p89_p3, %s13611_s15), 0 }
  0x58   : > { %13544 = sst [smem:[#allocation60_spill]] %s11452_s26  ;;  %p8828_p8 = scmp.ge.s32.totalorder %s11472_s10, 1 }
  0x59   : > { %13545 = sst [smem:[#allocation61_spill]] %s11456_s28  ;;  %p904_p9 = scmp.lt.s32.totalorder %s11472_s10, 5 }
  0x5a   : > { %13546 = sst [smem:[#allocation62_spill]] %s11460_s1  ;;  %s13554_s1 = sadd.s32 4294967295, %s11472_s10  }
  0x5b   : > { %13547 = sst [smem:[#allocation63_spill]] %s11464_s2  ;;  %p11768_p7 = scmp.eq.s32.totalorder %s13554_s1, 0 }
  0x5c   : > { %13548 = sst [smem:[#allocation64_spill]] %s11468_s7  ;;  %p11780_p11 = pnand %p8828_p8, %p904_p9 }
  0x5d   : > { %13549 = sst [smem:[#allocation65_spill]] %s11472_s10  ;;  %p11776_p10 = por %p11768_p7, %p321_p6 }
  0x5e   : > { %13550 = sst [smem:[#allocation66_spill]] %s13609_s11  ;;  %p9889_p12 = pneg %p11780_p11 }
  0x5f   : > { %s13551_s9 = scalar_select %p11756_p5, 1, 0 }
  0x60   : > { %13552 = sst [smem:[#allocation67_spill]] %s13613_s15  ;;  %p11788_p13 = pnand %p9889_p12, %p11768_p7 }
  0x61   : > { %s11764_s0 = scalar_select %p306_p4, %s11452_s26, %s308_s16  }
  0x62   : > { %s13555_s29 = scalar_select %p11768_p7, 1, 0 }
  0x63   : > { %13553 = sst [smem:[#allocation68_spill]] %s11764_s0  ;;  %s11505_s16 = smov [#allocation2]  }
  0x64   : > { %s13556_s18 = scalar_select %p11776_p10, 1, 0 }
  0x65   : > { %s13558_s22 = scalar_select %p11780_p11, 1, 0 }
  0x66   : > { %13557 = sst [smem:[#allocation69_spill]] %s13556_s18  ;;  %s922_s15 = sshll.u32 %s11505_s16, 4  ;;  %s923_s15 = int_to_ptr.vmem [resolvable:$true] %s922_s15 }
  0x67   : > { %s11506_s11 = smov [#allocation4]   ;;  %p10880_p0 = pneg %p11788_p13 }
  0x68   : > { %s936_s7 = sshll.u32 %s11506_s11, 4  ;;  %s10889_s0 = scalar_lea.vmem %s923_s15, 4096  ;;  %s937_s7 = int_to_ptr.vmem [resolvable:$true] %s936_s7 }
  0x69   : > { %p10890_p1 = scmp.ne.s32.totalorder %s923_s15, %s10889_s0  ;;  %p10897_p4 = scmp.lt.s32.totalorder %s923_s15, %s923_s15 }
  0x6a   : > { %p10898_p6 = scmp.lt.s32.totalorder %s10889_s0, %s10889_s0 }
  0x6b   : > { %p10892_p2 = pnand %p10890_p1, %p10880_p0 }
  0x6c   : > { %p10899_p8 = por %p10898_p6, %p10897_p4 }
  0x6d   : > { %p10893_p3 = pneg %p10892_p2 }
  0x6f   : > { %p10900_p9 = pnand %p10899_p8, %p10893_p3 }
  0x71   : > { %10903 = shalt.err (!%p10900_p9)
}
  0x72   : > { %s11507_s16 = smov 128   ;;  %s13560_s3 = sld [smem:[#allocation34_spill]] }
  0x73   : > { %s11508_s6 = smov 8   ;;  %s10915_s11 = scalar_lea.vmem %s937_s7, 32 }
  0x74   : > { %p10916_p12 = scmp.ne.s32.totalorder %s937_s7, %s10915_s11  ;;  %p10923_p1 = scmp.lt.s32.totalorder %s937_s7, %s937_s7 }
  0x75   : > { %p10924_p2 = scmp.lt.s32.totalorder %s10915_s11, %s10915_s11 }
  0x76   : > { %p10918_p10 = pnand %p10916_p12, %p10880_p0 }
  0x77   : > { %p10925_p11 = por %p10924_p2, %p10923_p1 }
  0x78   : > { %9892 = dma.hbm_to_vmem [thread:$0]  (!%p11788_p13), %s13560_s3, 4096, %s923_s15, [#allocation3], %s11507_s16, %s11507_s16, %s11508_s6  }
  0x79   : > { %p10919_p7 = pneg %p10918_p10 }
  0x7b   : > { %p10926_p5 = pnand %p10925_p11, %p10919_p7 }
  0x7d   : > { %10929 = shalt.err (!%p10926_p5)
}
  0x7e   : > { %s13561_s8 = sld [smem:[#allocation35_spill]]  ;;  %p8831_p3 = scmp.ge.s32.totalorder %s11472_s10, 4 }
  0x7f   : > { %s991_s6 = sand.u32 (!%p8831_p3), 1, %s11472_s10   ;;  %s11809_s0 = sand.u32 (!%p8831_p3), 1, %s11452_s26  }
  0x80   : > { %943 = sbr.rel (%p8831_p3) target bundleno = 566 (0x236), region = 32  ;;  %p13562_p7 = scmp.ne.s32.totalorder (!%p8831_p3), %s13551_s9, 0 }
  0x81   : > { %s13465_s15 = smul.u32 (!%p8831_p3), 768, %s11809_s0  ;;  %s10934_s28 = scalar_lea.hbm (!%p8831_p3), %s13542_s14, 24576 }
  0x82   : > { %s13466_s1 = smul.u32 (!%p8831_p3), 12288, %s11464_s2 }
  0x83   : > { %s995_s16 = scalar_lea.vmem (!%p8831_p3), [#allocation6], %s13465_s15  ;;  %s13471_s3 = smul.u32 (!%p8831_p3), 6, %s11809_s0 }
  0x84   : > { %9895 = dma.hbm_to_vmem [thread:$0]  (!%p11788_p13), %s13561_s8, 32, %s937_s7, [#allocation5]  }
  0x85   : > { %s11816_s7 = scalar_lea.hbm %s13542_s14, %s13466_s1  ;;  %s1002_s11 = sshll.u32 %s995_s16, 4  ;;  %s11820_s11 = int_to_ptr.vmem [resolvable:$true] %s1002_s11 }
  0x86   : > { %s11823_s8 = scalar_lea.sflag [#allocation3], %s991_s6  ;;  %s10930_s26 = scalar_lea.hbm %s11816_s7, 12288 }
  0x87   : > { %p10931_p5 = scmp.ne.s32.totalorder %s11816_s7, %s10930_s26  ;;  %p10935_p13 = scmp.lt.s32.totalorder %s11816_s7, %s13542_s14 }
  0x88   : > { %p10936_p0 = scmp.lt.s32.totalorder %s10934_s28, %s10930_s26 }
  0x89   : > { %p10932_p10 = pnand %p10931_p5, %p13562_p7 }
  0x8a   : > { %p10937_p4 = por %p10936_p0, %p10935_p13 }
  0x8b   : > { %p10933_p11 = pneg %p10932_p10 }
  0x8d   : > { %p10938_p6 = pnand %p10937_p4, %p10933_p11 }
  0x8f   : > { %10941 = shalt.err (!%p10938_p6)
}
  0x90   : > { %s10942_s16 = scalar_lea.vmem %s11820_s11, 12288  ;;  %s11509_s6 = smov [#allocation6]  }
  0x91   : > { %p10943_p8 = scmp.ne.s32.totalorder %s11820_s11, %s10942_s16  ;;  %s10946_s15 = sshll.u32 %s11509_s6, 4  ;;  %s10947_s15 = int_to_ptr.vmem [resolvable:$false] %s10946_s15 }
  0x92   : > { %s10948_s1 = scalar_lea.vmem %s10947_s15, 24576  ;;  %p10949_p1 = scmp.lt.s32.totalorder %s11820_s11, %s10947_s15 }
  0x93   : > { %p10944_p9 = pnand %p10943_p8, %p13562_p7  ;;  %p10950_p2 = scmp.lt.s32.totalorder %s10948_s1, %s10942_s16 }
  0x95   : > { %p10945_p12 = pneg %p10944_p9  ;;  %p10951_p3 = por %p10950_p2, %p10949_p1 }
  0x97   : > { %p10952_p5 = pnand %p10951_p3, %p10945_p12 }
  0x99   : > { %10955 = shalt.err (!%p10952_p5)
}
  0x9a   : > { %s11510_s26 = smov 384   ;;  %s11511_s28 = smov 24  }
  0x9b   : > { %9849 = dma.hbm_to_vmem [thread:$0]  (%p13562_p7), %s11816_s7, 12288, %s11820_s11, %s11823_s8, %s11510_s26, %s11510_s26, %s11511_s28  }
  0x9c   : > { %s9838_s15 = smul.u32 96, %s11464_s2  ;;  %s1016_s1 = scalar_lea.vmem [#allocation7], %s13471_s3 }
  0x9d   : > { %s1024_s16 = sshll.u32 %s1016_s1, 4  ;;  %s10960_s18 = scalar_lea.hbm %s13540_s19, 192  ;;  %s1025_s16 = int_to_ptr.vmem [resolvable:$true] %s1024_s16 }
  0x9e   : > { %s1022_s6 = scalar_lea.hbm %s13540_s19, %s9838_s15 }
  0x9f   : > { %s10956_s14 = scalar_lea.hbm %s1022_s6, 96  ;;  %p10961_p0 = scmp.lt.s32.totalorder %s1022_s6, %s13540_s19 }
  0xa0   : > { %p10957_p10 = scmp.ne.s32.totalorder %s1022_s6, %s10956_s14  ;;  %p10962_p4 = scmp.lt.s32.totalorder %s10960_s18, %s10956_s14 }
  0xa2   : > { %p10958_p11 = pnand %p10957_p10, %p13562_p7  ;;  %p10963_p6 = por %p10962_p4, %p10961_p0 }
  0xa4   : > { %p10959_p13 = pneg %p10958_p11 }
  0xa6   : > { %p10964_p8 = pnand %p10963_p6, %p10959_p13 }
  0xa8   : > { %10967 = shalt.err (!%p10964_p8)
}
  0xa9   : > { %s10968_s23 = scalar_lea.vmem %s1025_s16, 96  ;;  %s11512_s7 = smov [#allocation7]  }
  0xaa   : > { %p10969_p9 = scmp.ne.s32.totalorder %s1025_s16, %s10968_s23  ;;  %s10972_s11 = sshll.u32 %s11512_s7, 4  ;;  %s10973_s11 = int_to_ptr.vmem [resolvable:$false] %s10972_s11 }
  0xab   : > { %s10974_s1 = scalar_lea.vmem %s10973_s11, 192  ;;  %p10975_p2 = scmp.lt.s32.totalorder %s1025_s16, %s10973_s11 }
  0xac   : > { %p10970_p12 = pnand %p10969_p9, %p13562_p7  ;;  %p10976_p3 = scmp.lt.s32.totalorder %s10974_s1, %s10968_s23 }
  0xae   : > { %p10971_p1 = pneg %p10970_p12  ;;  %p10977_p5 = por %p10976_p3, %p10975_p2 }
  0xb0   : > { %p10978_p10 = pnand %p10977_p5, %p10971_p1 }
  0xb2   : > { %10981 = shalt.err (!%p10978_p10)
}
  0xb3   : > { %9850 = dma.hbm_to_vmem [thread:$0]  (%p13562_p7), %s1022_s6, 96, %s1025_s16, %s11823_s8  }
  0xb4   : > { %s13563_s14 = smul.u32 12288, %s11464_s2  ;;  %s10986_s3 = scalar_lea.hbm %s13533_s24, 24576 }
  0xb5   : > { %s13564_s7 = smul.u32 768, %s11809_s0 }
  0xb6   : > { %s11863_s18 = scalar_lea.hbm %s13533_s24, %s13563_s14 }
  0xb7   : > { %s1035_s23 = scalar_lea.vmem [#allocation8], %s13564_s7  ;;  %s10982_s1 = scalar_lea.hbm %s11863_s18, 12288 }
  0xb8   : > { %s1042_s11 = sshll.u32 %s1035_s23, 4  ;;  %p10983_p11 = scmp.ne.s32.totalorder %s11863_s18, %s10982_s1  ;;  %s1043_s11 = int_to_ptr.vmem [resolvable:$true] %s1042_s11 }
  0xb9   : > { %p10987_p4 = scmp.lt.s32.totalorder %s11863_s18, %s13533_s24  ;;  %p10988_p6 = scmp.lt.s32.totalorder %s10986_s3, %s10982_s1 }
  0xba   : > { %p10984_p13 = pnand %p10983_p11, %p13562_p7 }
  0xbb   : > { %p10989_p8 = por %p10988_p6, %p10987_p4 }
  0xbc   : > { %p10985_p0 = pneg %p10984_p13 }
  0xbe   : > { %p10990_p9 = pnand %p10989_p8, %p10985_p0 }
  0xc0   : > { %10993 = shalt.err (!%p10990_p9)
}
  0xc1   : > { %s10994_s16 = scalar_lea.vmem %s1043_s11, 12288  ;;  %s11513_s6 = smov [#allocation8]  }
  0xc2   : > { %p10995_p12 = scmp.ne.s32.totalorder %s1043_s11, %s10994_s16  ;;  %s10998_s14 = sshll.u32 %s11513_s6, 4  ;;  %s10999_s14 = int_to_ptr.vmem [resolvable:$false] %s10998_s14 }
  0xc3   : > { %s11000_s7 = scalar_lea.vmem %s10999_s14, 24576  ;;  %p11001_p3 = scmp.lt.s32.totalorder %s1043_s11, %s10999_s14 }
  0xc4   : > { %p10996_p1 = pnand %p10995_p12, %p13562_p7  ;;  %p11002_p5 = scmp.lt.s32.totalorder %s11000_s7, %s10994_s16 }
  0xc6   : > { %p10997_p2 = pneg %p10996_p1  ;;  %p11003_p10 = por %p11002_p5, %p11001_p3 }
  0xc8   : > { %p11004_p11 = pnand %p11003_p10, %p10997_p2 }
  0xca   : > { %11007 = shalt.err (!%p11004_p11)
}
  0xcb   : > { %9851 = dma.hbm_to_vmem [thread:$0]  (%p13562_p7), %s11863_s18, 12288, %s1043_s11, %s11823_s8, %s11510_s26, %s11510_s26, %s11511_s28  }
  0xcc   : > { %s11886_s3 = scalar_lea.hbm %s13530_s30, %s9838_s15  ;;  %s13565_s23 = smul.u32 6, %s11809_s0 }
  0xcd   : > { %s11891_s6 = sshll.u32 %s11809_s0, 1  ;;  %s11008_s14 = scalar_lea.hbm %s11886_s3, 96 }
  0xce   : > { %s1056_s1 = scalar_lea.vmem [#allocation9], %s13565_s23  ;;  %p11009_p13 = scmp.ne.s32.totalorder %s11886_s3, %s11008_s14 }
  0xcf   : > { %s1064_s16 = sshll.u32 %s1056_s1, 4  ;;  %s11012_s7 = scalar_lea.hbm %s13530_s30, 192  ;;  %s1065_s16 = int_to_ptr.vmem [resolvable:$true] %s1064_s16 }
  0xd0   : > { %p11010_p0 = pnand %p11009_p13, %p13562_p7  ;;  %p11013_p6 = scmp.lt.s32.totalorder %s11886_s3, %s13530_s30 }
  0xd1   : > { %p11014_p8 = scmp.lt.s32.totalorder %s11012_s7, %s11008_s14 }
  0xd2   : > { %p11011_p4 = pneg %p11010_p0 }
  0xd3   : > { %p11015_p9 = por %p11014_p8, %p11013_p6 }
  0xd5   : > { %p11016_p12 = pnand %p11015_p9, %p11011_p4 }
  0xd7   : > { %11019 = shalt.err (!%p11016_p12)
}
  0xd8   : > { %s11020_s26 = scalar_lea.vmem %s1065_s16, 96  ;;  %s11514_s28 = smov [#allocation9]  }
  0xd9   : > { %p11021_p1 = scmp.ne.s32.totalorder %s1065_s16, %s11020_s26  ;;  %s11024_s15 = sshll.u32 %s11514_s28, 4  ;;  %s11025_s15 = int_to_ptr.vmem [resolvable:$false] %s11024_s15 }
  0xda   : > { %s11026_s18 = scalar_lea.vmem %s11025_s15, 192  ;;  %p11027_p5 = scmp.lt.s32.totalorder %s1065_s16, %s11025_s15 }
  0xdb   : > { %p11022_p2 = pnand %p11021_p1, %p13562_p7  ;;  %p11028_p10 = scmp.lt.s32.totalorder %s11026_s18, %s11020_s26 }
  0xdd   : > { %p11023_p3 = pneg %p11022_p2  ;;  %p11029_p11 = por %p11028_p10, %p11027_p5 }
  0xdf   : > { %p11030_p13 = pnand %p11029_p11, %p11023_p3 }
  0xe1   : > { %11033 = shalt.err (!%p11030_p13)
}
  0xe2   : > { %9852 = dma.hbm_to_vmem [thread:$0]  (%p13562_p7), %s11886_s3, 96, %s1065_s16, %s11823_s8  }
  0xe3   : > { %s11907_s11 = sshll.u32 %s11464_s2, 5  ;;  %s1083_s1 = scalar_lea.vmem [#allocation10], %s11891_s6 }
  0xe4   : > { %s11911_s23 = scalar_lea.hbm %s13541_s12, %s11907_s11  ;;  %s1091_s14 = sshll.u32 %s1083_s1, 4  ;;  %s1092_s14 = int_to_ptr.vmem [resolvable:$true] %s1091_s14 }
  0xe5   : > { %s11915_s7 = sshll.u32 %s11809_s0, 8  ;;  %s11034_s26 = scalar_lea.hbm %s11911_s23, 32 }
  0xe6   : > { %p11035_p0 = scmp.ne.s32.totalorder %s11911_s23, %s11034_s26  ;;  %s11038_s28 = scalar_lea.hbm %s13541_s12, 64 }
  0xe7   : > { %p11039_p8 = scmp.lt.s32.totalorder %s11911_s23, %s13541_s12  ;;  %p11040_p9 = scmp.lt.s32.totalorder %s11038_s28, %s11034_s26 }
  0xe8   : > { %p11036_p4 = pnand %p11035_p0, %p13562_p7 }
  0xe9   : > { %p11041_p12 = por %p11040_p9, %p11039_p8 }
  0xea   : > { %p11037_p6 = pneg %p11036_p4 }
  0xec   : > { %p11042_p1 = pnand %p11041_p12, %p11037_p6 }
  0xee   : > { %11045 = shalt.err (!%p11042_p1)
}
  0xef   : > { %s11046_s3 = scalar_lea.vmem %s1092_s14, 32  ;;  %s11515_s16 = smov [#allocation10]  }
  0xf0   : > { %p11047_p2 = scmp.ne.s32.totalorder %s1092_s14, %s11046_s3  ;;  %s11050_s15 = sshll.u32 %s11515_s16, 4  ;;  %s11051_s15 = int_to_ptr.vmem [resolvable:$false] %s11050_s15 }
  0xf1   : > { %s11052_s18 = scalar_lea.vmem %s11051_s15, 64  ;;  %p11053_p10 = scmp.lt.s32.totalorder %s1092_s14, %s11051_s15 }
  0xf2   : > { %p11048_p3 = pnand %p11047_p2, %p13562_p7  ;;  %p11054_p11 = scmp.lt.s32.totalorder %s11052_s18, %s11046_s3 }
  0xf4   : > { %p11049_p5 = pneg %p11048_p3  ;;  %p11055_p13 = por %p11054_p11, %p11053_p10 }
  0xf6   : > { %p11056_p0 = pnand %p11055_p13, %p11049_p5 }
  0xf8   : > { %11059 = shalt.err (!%p11056_p0)
}
  0xf9   : > { %9853 = dma.hbm_to_vmem [thread:$0]  (%p13562_p7), %s11911_s23, 32, %s1092_s14, %s11823_s8  }
  0xfa   : > { %s11931_s1 = sshll.u32 %s11464_s2, 12  ;;  %s1102_s28 = scalar_lea.vmem [#allocation11], %s11915_s7 }
  0xfb   : > { %s11935_s26 = scalar_lea.hbm %s13535_s20, %s11931_s1  ;;  %s1109_s3 = sshll.u32 %s1102_s28, 4  ;;  %s11938_s3 = int_to_ptr.vmem [resolvable:$true] %s1109_s3 }
  0xfc   : > { %s11060_s16 = scalar_lea.hbm %s11935_s26, 4096  ;;  %s11064_s15 = scalar_lea.hbm %s13535_s20, 8192 }
  0xfd   : > { %p11061_p4 = scmp.ne.s32.totalorder %s11935_s26, %s11060_s16  ;;  %p11065_p9 = scmp.lt.s32.totalorder %s11935_s26, %s13535_s20 }
  0xfe   : > { %p11066_p12 = scmp.lt.s32.totalorder %s11064_s15, %s11060_s16 }
  0xff   : > { %p11062_p6 = pnand %p11061_p4, %p13562_p7 }
 0x100   : > { %p11067_p1 = por %p11066_p12, %p11065_p9 }
 0x101   : > { %p11063_p8 = pneg %p11062_p6 }
 0x103   : > { %p11068_p2 = pnand %p11067_p1, %p11063_p8 }
 0x105   : > { %11071 = shalt.err (!%p11068_p2)
}
 0x106   : > { %s11072_s23 = scalar_lea.vmem %s11938_s3, 4096  ;;  %s11516_s14 = smov [#allocation11]  }
 0x107   : > { %p11073_p3 = scmp.ne.s32.totalorder %s11938_s3, %s11072_s23  ;;  %s11076_s18 = sshll.u32 %s11516_s14, 4  ;;  %s11077_s18 = int_to_ptr.vmem [resolvable:$false] %s11076_s18 }
 0x108   : > { %s11078_s28 = scalar_lea.vmem %s11077_s18, 8192  ;;  %p11079_p11 = scmp.lt.s32.totalorder %s11938_s3, %s11077_s18 }
 0x109   : > { %p11074_p5 = pnand %p11073_p3, %p13562_p7  ;;  %p11080_p13 = scmp.lt.s32.totalorder %s11078_s28, %s11072_s23 }
 0x10b   : > { %p11075_p10 = pneg %p11074_p5  ;;  %p11081_p0 = por %p11080_p13, %p11079_p11 }
 0x10d   : > { %p11082_p4 = pnand %p11081_p0, %p11075_p10 }
 0x10f   : > { %11085 = shalt.err (!%p11082_p4)
}
 0x110   : > { %s13474_s16 = smov 128   ;;  %s13477_s15 = smov 8  }
 0x111   : > { %9854 = dma.hbm_to_vmem [thread:$0]  (%p13562_p7), %s11935_s26, 4096, %s11938_s3, %s11823_s8, %s13474_s16, %s13474_s16, %s13477_s15  }
 0x112   : > { %s11962_s23 = scalar_lea.hbm %s13531_s27, %s11907_s11  ;;  %s1123_s14 = scalar_lea.vmem [#allocation12], %s11891_s6 }
 0x113   : > { %s1131_s18 = sshll.u32 %s1123_s14, 4  ;;  %s8845_s28 = sshll.u32 %s11809_s0, 9  ;;  %s1132_s18 = int_to_ptr.vmem [resolvable:$true] %s1131_s18 }
 0x114   : > { %s11086_s12 = scalar_lea.hbm %s11962_s23, 32  ;;  %s11090_s19 = scalar_lea.hbm %s13531_s27, 64 }
 0x115   : > { %p11087_p6 = scmp.ne.s32.totalorder %s11962_s23, %s11086_s12  ;;  %p11091_p12 = scmp.lt.s32.totalorder %s11962_s23, %s13531_s27 }
 0x116   : > { %p11092_p1 = scmp.lt.s32.totalorder %s11090_s19, %s11086_s12 }
 0x117   : > { %p11088_p8 = pnand %p11087_p6, %p13562_p7 }
 0x118   : > { %p11093_p2 = por %p11092_p1, %p11091_p12 }
 0x119   : > { %p11089_p9 = pneg %p11088_p8 }
 0x11b   : > { %p11094_p3 = pnand %p11093_p2, %p11089_p9 }
 0x11d   : > { %11097 = shalt.err (!%p11094_p3)
}
 0x11e   : > { %s11098_s26 = scalar_lea.vmem %s1132_s18, 32  ;;  %s11519_s3 = smov [#allocation12]  }
 0x11f   : > { %p11099_p5 = scmp.ne.s32.totalorder %s1132_s18, %s11098_s26  ;;  %s11102_s14 = sshll.u32 %s11519_s3, 4  ;;  %s11103_s14 = int_to_ptr.vmem [resolvable:$false] %s11102_s14 }
 0x120   : > { %s11104_s16 = scalar_lea.vmem %s11103_s14, 64  ;;  %p11105_p13 = scmp.lt.s32.totalorder %s1132_s18, %s11103_s14 }
 0x121   : > { %p11100_p10 = pnand %p11099_p5, %p13562_p7  ;;  %p11106_p0 = scmp.lt.s32.totalorder %s11104_s16, %s11098_s26 }
 0x123   : > { %p11101_p11 = pneg %p11100_p10  ;;  %p11107_p4 = por %p11106_p0, %p11105_p13 }
 0x125   : > { %p11108_p6 = pnand %p11107_p4, %p11101_p11 }
 0x127   : > { %11111 = shalt.err (!%p11108_p6)
}
 0x128   : > { %9855 = dma.hbm_to_vmem [thread:$0]  (%p13562_p7), %s11962_s23, 32, %s1132_s18, %s11823_s8  }
 0x129   : > { %s9475_s19 = sshll.u32 %s11464_s2, 13  ;;  %s1142_s16 = scalar_lea.vmem [#allocation13], %s8845_s28 }
 0x12a   : > { %s11981_s12 = scalar_lea.hbm %s13539_s4, %s9475_s19  ;;  %s1149_s26 = sshll.u32 %s1142_s16, 4  ;;  %s11983_s26 = int_to_ptr.vmem [resolvable:$true] %s1149_s26 }
 0x12b   : > { %s11112_s3 = scalar_lea.hbm %s11981_s12, 8192  ;;  %s11116_s14 = scalar_lea.hbm %s13539_s4, 16384 }
 0x12c   : > { %p11113_p8 = scmp.ne.s32.totalorder %s11981_s12, %s11112_s3  ;;  %p11117_p1 = scmp.lt.s32.totalorder %s11981_s12, %s13539_s4 }
 0x12d   : > { %p11118_p2 = scmp.lt.s32.totalorder %s11116_s14, %s11112_s3 }
 0x12e   : > { %p11114_p9 = pnand %p11113_p8, %p13562_p7 }
 0x12f   : > { %p11119_p3 = por %p11118_p2, %p11117_p1 }
 0x130   : > { %p11115_p12 = pneg %p11114_p9 }
 0x132   : > { %p11120_p5 = pnand %p11119_p3, %p11115_p12 }
 0x134   : > { %11123 = shalt.err (!%p11120_p5)
}
 0x135   : > { %s11124_s23 = scalar_lea.vmem %s11983_s26, 8192  ;;  %s11520_s18 = smov [#allocation13]  }
 0x136   : > { %p11125_p10 = scmp.ne.s32.totalorder %s11983_s26, %s11124_s23  ;;  %s11128_s28 = sshll.u32 %s11520_s18, 4  ;;  %s11129_s28 = int_to_ptr.vmem [resolvable:$false] %s11128_s28 }
 0x137   : > { %s11130_s19 = scalar_lea.vmem %s11129_s28, 16384  ;;  %p11131_p0 = scmp.lt.s32.totalorder %s11983_s26, %s11129_s28 }
 0x138   : > { %p11126_p11 = pnand %p11125_p10, %p13562_p7  ;;  %p11132_p4 = scmp.lt.s32.totalorder %s11130_s19, %s11124_s23 }
 0x13a   : > { %p11127_p13 = pneg %p11126_p11  ;;  %p11133_p6 = por %p11132_p4, %p11131_p0 }
 0x13c   : > { %p11134_p8 = pnand %p11133_p6, %p11127_p13 }
 0x13e   : > { %11137 = shalt.err (!%p11134_p8)
}
 0x13f   : > { %s11521_s16 = smov 256   ;;  %s11522_s3 = smov 16  }
 0x140   : > { %9856 = dma.hbm_to_vmem [thread:$0]  (%p13562_p7), %s11981_s12, 8192, %s11983_s26, %s11823_s8, %s11521_s16, %s11521_s16, %s11522_s3  }
 0x141   : > { %s12004_s14 = scalar_lea.hbm %s13532_s25, %s11931_s1  ;;  %s1170_s23 = scalar_lea.vmem [#allocation14], %s11915_s7 }
 0x142   : > { %s1177_s18 = sshll.u32 %s1170_s23, 4  ;;  %s11138_s28 = scalar_lea.hbm %s12004_s14, 4096  ;;  %s1178_s18 = int_to_ptr.vmem [resolvable:$true] %s1177_s18 }
 0x143   : > { %p11139_p9 = scmp.ne.s32.totalorder %s12004_s14, %s11138_s28  ;;  %s11142_s19 = scalar_lea.hbm %s13532_s25, 8192 }
 0x144   : > { %p11143_p2 = scmp.lt.s32.totalorder %s12004_s14, %s13532_s25  ;;  %p11144_p3 = scmp.lt.s32.totalorder %s11142_s19, %s11138_s28 }
 0x145   : > { %p11140_p12 = pnand %p11139_p9, %p13562_p7 }
 0x146   : > { %p11145_p5 = por %p11144_p3, %p11143_p2 }
 0x147   : > { %p11141_p1 = pneg %p11140_p12 }
 0x149   : > { %p11146_p10 = pnand %p11145_p5, %p11141_p1 }
 0x14b   : > { %11149 = shalt.err (!%p11146_p10)
}
 0x14c   : > { %s11150_s12 = scalar_lea.vmem %s1178_s18, 4096  ;;  %s11523_s26 = smov [#allocation14]  }
 0x14d   : > { %p11151_p11 = scmp.ne.s32.totalorder %s1178_s18, %s11150_s12  ;;  %s11154_s16 = sshll.u32 %s11523_s26, 4  ;;  %s11155_s16 = int_to_ptr.vmem [resolvable:$false] %s11154_s16 }
 0x14e   : > { %s11156_s3 = scalar_lea.vmem %s11155_s16, 8192  ;;  %p11157_p4 = scmp.lt.s32.totalorder %s1178_s18, %s11155_s16 }
 0x14f   : > { %p11152_p13 = pnand %p11151_p11, %p13562_p7  ;;  %p11158_p6 = scmp.lt.s32.totalorder %s11156_s3, %s11150_s12 }
 0x151   : > { %p11153_p0 = pneg %p11152_p13  ;;  %p11159_p8 = por %p11158_p6, %p11157_p4 }
 0x153   : > { %p11160_p9 = pnand %p11159_p8, %p11153_p0 }
 0x155   : > { %11163 = shalt.err (!%p11160_p9)
}
 0x156   : > { %s13566_s23 = smov 128   ;;  %s1197_s28 = scalar_lea.hbm %s13534_s21, %s11907_s11 }
 0x157   : > { %9857 = dma.hbm_to_vmem [thread:$0]  (%p13562_p7), %s12004_s14, 4096, %s1178_s18, %s11823_s8, %s13566_s23, %s13566_s23, %s13477_s15  }
 0x158   : > { %s1191_s19 = scalar_lea.vmem [#allocation15], %s11891_s6  ;;  %s11164_s26 = scalar_lea.hbm %s1197_s28, 32 }
 0x159   : > { %s1199_s12 = sshll.u32 %s1191_s19, 4  ;;  %p11165_p12 = scmp.ne.s32.totalorder %s1197_s28, %s11164_s26  ;;  %s1200_s12 = int_to_ptr.vmem [resolvable:$true] %s1199_s12 }
 0x15a   : > { %s11168_s16 = scalar_lea.hbm %s13534_s21, 64  ;;  %p11169_p3 = scmp.lt.s32.totalorder %s1197_s28, %s13534_s21 }
 0x15b   : > { %p11166_p1 = pnand %p11165_p12, %p13562_p7  ;;  %p11170_p5 = scmp.lt.s32.totalorder %s11168_s16, %s11164_s26 }
 0x15d   : > { %p11167_p2 = pneg %p11166_p1  ;;  %p11171_p10 = por %p11170_p5, %p11169_p3 }
 0x15f   : > { %p11172_p11 = pnand %p11171_p10, %p11167_p2 }
 0x161   : > { %11175 = shalt.err (!%p11172_p11)
}
 0x162   : > { %s11176_s3 = scalar_lea.vmem %s1200_s12, 32  ;;  %s11524_s14 = smov [#allocation15]  }
 0x163   : > { %p11177_p13 = scmp.ne.s32.totalorder %s1200_s12, %s11176_s3  ;;  %s11180_s18 = sshll.u32 %s11524_s14, 4  ;;  %s11181_s18 = int_to_ptr.vmem [resolvable:$false] %s11180_s18 }
 0x164   : > { %s11182_s19 = scalar_lea.vmem %s11181_s18, 64  ;;  %p11183_p6 = scmp.lt.s32.totalorder %s1200_s12, %s11181_s18 }
 0x165   : > { %p11178_p0 = pnand %p11177_p13, %p13562_p7  ;;  %p11184_p8 = scmp.lt.s32.totalorder %s11182_s19, %s11176_s3 }
 0x167   : > { %p11179_p4 = pneg %p11178_p0  ;;  %p11185_p9 = por %p11184_p8, %p11183_p6 }
 0x169   : > { %p11186_p12 = pnand %p11185_p9, %p11179_p4 }
 0x16b   : > { %11189 = shalt.err (!%p11186_p12)
}
 0x16c   : > { %9858 = dma.hbm_to_vmem [thread:$0]  (%p13562_p7), %s1197_s28, 32, %s1200_s12, %s11823_s8  }
 0x16d   : > { %s12037_s26 = scalar_lea.hbm %s13536_s17, %s11931_s1  ;;  %s1210_s16 = scalar_lea.vmem [#allocation16], %s11915_s7 }
 0x16e   : > { %s1217_s3 = sshll.u32 %s1210_s16, 4  ;;  %s11190_s14 = scalar_lea.hbm %s12037_s26, 4096  ;;  %s1218_s3 = int_to_ptr.vmem [resolvable:$true] %s1217_s3 }
 0x16f   : > { %p11191_p1 = scmp.ne.s32.totalorder %s12037_s26, %s11190_s14  ;;  %s11194_s18 = scalar_lea.hbm %s13536_s17, 8192 }
 0x170   : > { %p11195_p5 = scmp.lt.s32.totalorder %s12037_s26, %s13536_s17  ;;  %p11196_p10 = scmp.lt.s32.totalorder %s11194_s18, %s11190_s14 }
 0x171   : > { %p11192_p2 = pnand %p11191_p1, %p13562_p7 }
 0x172   : > { %p11197_p11 = por %p11196_p10, %p11195_p5 }
 0x173   : > { %p11193_p3 = pneg %p11192_p2 }
 0x175   : > { %p11198_p13 = pnand %p11197_p11, %p11193_p3 }
 0x177   : > { %11201 = shalt.err (!%p11198_p13)
}
 0x178   : > { %s11202_s28 = scalar_lea.vmem %s1218_s3, 4096  ;;  %s11525_s12 = smov [#allocation16]  }
 0x179   : > { %p11203_p0 = scmp.ne.s32.totalorder %s1218_s3, %s11202_s28  ;;  %s11206_s19 = sshll.u32 %s11525_s12, 4  ;;  %s11207_s19 = int_to_ptr.vmem [resolvable:$false] %s11206_s19 }
 0x17a   : > { %s11208_s16 = scalar_lea.vmem %s11207_s19, 8192  ;;  %p11209_p8 = scmp.lt.s32.totalorder %s1218_s3, %s11207_s19 }
 0x17b   : > { %p11204_p4 = pnand %p11203_p0, %p13562_p7  ;;  %p11210_p9 = scmp.lt.s32.totalorder %s11208_s16, %s11202_s28 }
 0x17d   : > { %p11205_p6 = pneg %p11204_p4  ;;  %p11211_p12 = por %p11210_p9, %p11209_p8 }
 0x17f   : > { %p11212_p1 = pnand %p11211_p12, %p11205_p6 }
 0x181   : > { %11215 = shalt.err (!%p11212_p1)
}
 0x182   : > { %9859 = dma.hbm_to_vmem [thread:$0]  (%p13562_p7), %s12037_s26, 4096, %s1218_s3, %s11823_s8, %s13566_s23, %s13566_s23, %s13477_s15  }
 0x183   : > { %s1237_s14 = scalar_lea.hbm %s13537_s13, %s11907_s11  ;;  %s1231_s18 = scalar_lea.vmem [#allocation17], %s11891_s6 }
 0x184   : > { %s1239_s28 = sshll.u32 %s1231_s18, 4  ;;  %s11216_s12 = scalar_lea.hbm %s1237_s14, 32  ;;  %s1240_s28 = int_to_ptr.vmem [resolvable:$true] %s1239_s28 }
 0x185   : > { %p11217_p2 = scmp.ne.s32.totalorder %s1237_s14, %s11216_s12  ;;  %s11220_s19 = scalar_lea.hbm %s13537_s13, 64 }
 0x186   : > { %p11221_p10 = scmp.lt.s32.totalorder %s1237_s14, %s13537_s13  ;;  %p11222_p11 = scmp.lt.s32.totalorder %s11220_s19, %s11216_s12 }
 0x187   : > { %p11218_p3 = pnand %p11217_p2, %p13562_p7 }
 0x188   : > { %p11223_p13 = por %p11222_p11, %p11221_p10 }
 0x189   : > { %p11219_p5 = pneg %p11218_p3 }
 0x18b   : > { %p11224_p0 = pnand %p11223_p13, %p11219_p5 }
 0x18d   : > { %11227 = shalt.err (!%p11224_p0)
}
 0x18e   : > { %s11228_s16 = scalar_lea.vmem %s1240_s28, 32  ;;  %s11526_s26 = smov [#allocation17]  }
 0x18f   : > { %p11229_p4 = scmp.ne.s32.totalorder %s1240_s28, %s11228_s16  ;;  %s11232_s3 = sshll.u32 %s11526_s26, 4  ;;  %s11233_s3 = int_to_ptr.vmem [resolvable:$false] %s11232_s3 }
 0x190   : > { %s11234_s18 = scalar_lea.vmem %s11233_s3, 64  ;;  %p11235_p9 = scmp.lt.s32.totalorder %s1240_s28, %s11233_s3 }
 0x191   : > { %p11230_p6 = pnand %p11229_p4, %p13562_p7  ;;  %p11236_p12 = scmp.lt.s32.totalorder %s11234_s18, %s11228_s16 }
 0x193   : > { %p11231_p8 = pneg %p11230_p6  ;;  %p11237_p1 = por %p11236_p12, %p11235_p9 }
 0x195   : > { %p11238_p2 = pnand %p11237_p1, %p11231_p8 }
 0x197   : > { %11241 = shalt.err (!%p11238_p2)
}
 0x198   : > { %s13567_s12 = sld [smem:[#allocation50_spill]]  ;;  %s1250_s26 = scalar_lea.vmem [#allocation18], %s11915_s7 }
 0x199   : > { %9860 = dma.hbm_to_vmem [thread:$0]  (%p13562_p7), %s1237_s14, 32, %s1240_s28, %s11823_s8  }
 0x19a   : > { %s1257_s16 = sshll.u32 %s1250_s26, 4  ;;  %s1258_s16 = int_to_ptr.vmem [resolvable:$true] %s1257_s16 }
 0x19e   : > { %s12070_s19 = scalar_lea.hbm %s13567_s12, %s11931_s1  ;;  %s11246_s18 = scalar_lea.hbm %s13567_s12, 8192 }
 0x19f   : > { %s11242_s3 = scalar_lea.hbm %s12070_s19, 4096  ;;  %p11247_p11 = scmp.lt.s32.totalorder %s12070_s19, %s13567_s12 }
 0x1a0   : > { %p11243_p3 = scmp.ne.s32.totalorder %s12070_s19, %s11242_s3  ;;  %p11248_p13 = scmp.lt.s32.totalorder %s11246_s18, %s11242_s3 }
 0x1a2   : > { %p11244_p5 = pnand %p11243_p3, %p13562_p7  ;;  %p11249_p0 = por %p11248_p13, %p11247_p11 }
 0x1a4   : > { %p11245_p10 = pneg %p11244_p5 }
 0x1a6   : > { %p11250_p4 = pnand %p11249_p0, %p11245_p10 }
 0x1a8   : > { %11253 = shalt.err (!%p11250_p4)
}
 0x1a9   : > { %s11254_s14 = scalar_lea.vmem %s1258_s16, 4096  ;;  %s11527_s7 = smov [#allocation18]  }
 0x1aa   : > { %p11255_p6 = scmp.ne.s32.totalorder %s1258_s16, %s11254_s14  ;;  %s11258_s1 = sshll.u32 %s11527_s7, 4  ;;  %s11259_s1 = int_to_ptr.vmem [resolvable:$false] %s11258_s1 }
 0x1ab   : > { %s11260_s28 = scalar_lea.vmem %s11259_s1, 8192  ;;  %p11261_p12 = scmp.lt.s32.totalorder %s1258_s16, %s11259_s1 }
 0x1ac   : > { %p11256_p8 = pnand %p11255_p6, %p13562_p7  ;;  %p11262_p1 = scmp.lt.s32.totalorder %s11260_s28, %s11254_s14 }
 0x1ae   : > { %p11257_p9 = pneg %p11256_p8  ;;  %p11263_p2 = por %p11262_p1, %p11261_p12 }
 0x1b0   : > { %p11264_p3 = pnand %p11263_p2, %p11257_p9 }
 0x1b2   : > { %11267 = shalt.err (!%p11264_p3)
}
 0x1b3   : > { %s13568_s26 = sld [smem:[#allocation51_spill]]  ;;  %s1271_s14 = scalar_lea.vmem [#allocation19], %s11891_s6 }
 0x1b4   : > { %9861 = dma.hbm_to_vmem [thread:$0]  (%p13562_p7), %s12070_s19, 4096, %s1258_s16, %s11823_s8, %s13566_s23, %s13566_s23, %s13477_s15  }
 0x1b5   : > { %s1279_s7 = sshll.u32 %s1271_s14, 4  ;;  %s13478_s1 = sshll.u32 %s11809_s0, 7  ;;  %s1280_s7 = int_to_ptr.vmem [resolvable:$true] %s1279_s7 }
 0x1b9   : > { %s13569_s3 = smov %s13568_s26  ;;  %s12091_s18 = scalar_lea.hbm %s13568_s26, %s11907_s11 }
 0x1ba   : > { %s11268_s28 = scalar_lea.hbm %s12091_s18, 32  ;;  %s11272_s4 = scalar_lea.hbm %s13569_s3, 64 }
 0x1bb   : > { %p11269_p5 = scmp.ne.s32.totalorder %s12091_s18, %s11268_s28  ;;  %p11273_p13 = scmp.lt.s32.totalorder %s12091_s18, %s13569_s3 }
 0x1bc   : > { %p11274_p0 = scmp.lt.s32.totalorder %s11272_s4, %s11268_s28 }
 0x1bd   : > { %p11270_p10 = pnand %p11269_p5, %p13562_p7 }
 0x1be   : > { %p11275_p4 = por %p11274_p0, %p11273_p13 }
 0x1bf   : > { %p11271_p11 = pneg %p11270_p10 }
 0x1c1   : > { %p11276_p6 = pnand %p11275_p4, %p11271_p11 }
 0x1c3   : > { %11279 = shalt.err (!%p11276_p6)
}
 0x1c4   : > { %s11280_s19 = scalar_lea.vmem %s1280_s7, 32  ;;  %s11528_s16 = smov [#allocation19]  }
 0x1c5   : > { %p11281_p8 = scmp.ne.s32.totalorder %s1280_s7, %s11280_s19  ;;  %s11284_s26 = sshll.u32 %s11528_s16, 4  ;;  %s11285_s26 = int_to_ptr.vmem [resolvable:$false] %s11284_s26 }
 0x1c6   : > { %s11286_s14 = scalar_lea.vmem %s11285_s26, 64  ;;  %p11287_p1 = scmp.lt.s32.totalorder %s1280_s7, %s11285_s26 }
 0x1c7   : > { %p11282_p9 = pnand %p11281_p8, %p13562_p7  ;;  %p11288_p2 = scmp.lt.s32.totalorder %s11286_s14, %s11280_s19 }
 0x1c9   : > { %p11283_p12 = pneg %p11282_p9  ;;  %p11289_p3 = por %p11288_p2, %p11287_p1 }
 0x1cb   : > { %p11290_p5 = pnand %p11289_p3, %p11283_p12 }
 0x1cd   : > { %11293 = shalt.err (!%p11290_p5)
}
 0x1ce   : > { %s13570_s4 = sld [smem:[#allocation52_spill]]  ;;  %s13479_s28 = sshll.u32 %s11464_s2, 11 }
 0x1cf   : > { %9862 = dma.hbm_to_vmem [thread:$0]  (%p13562_p7), %s12091_s18, 32, %s1280_s7, %s11823_s8  }
 0x1d0   : > { %s1290_s19 = scalar_lea.vmem [#allocation20], %s13478_s1 }
 0x1d1   : > { %s1297_s26 = sshll.u32 %s1290_s19, 4  ;;  %s12116_s26 = int_to_ptr.vmem [resolvable:$true] %s1297_s26 }
 0x1d4   : > { %s12112_s16 = scalar_lea.hbm %s13570_s4, %s13479_s28  ;;  %s11298_s15 = scalar_lea.hbm %s13570_s4, 4096 }
 0x1d5   : > { %s11294_s14 = scalar_lea.hbm %s12112_s16, 2048  ;;  %p11299_p0 = scmp.lt.s32.totalorder %s12112_s16, %s13570_s4 }
 0x1d6   : > { %p11295_p10 = scmp.ne.s32.totalorder %s12112_s16, %s11294_s14  ;;  %p11300_p4 = scmp.lt.s32.totalorder %s11298_s15, %s11294_s14 }
 0x1d8   : > { %p11296_p11 = pnand %p11295_p10, %p13562_p7  ;;  %p11301_p6 = por %p11300_p4, %p11299_p0 }
 0x1da   : > { %p11297_p13 = pneg %p11296_p11 }
 0x1dc   : > { %p11302_p8 = pnand %p11301_p6, %p11297_p13 }
 0x1de   : > { %11305 = shalt.err (!%p11302_p8)
}
 0x1df   : > { %s11306_s18 = scalar_lea.vmem %s12116_s26, 2048  ;;  %s11529_s7 = smov [#allocation20]  }
 0x1e0   : > { %p11307_p9 = scmp.ne.s32.totalorder %s12116_s26, %s11306_s18  ;;  %s11310_s19 = sshll.u32 %s11529_s7, 4  ;;  %s11311_s19 = int_to_ptr.vmem [resolvable:$false] %s11310_s19 }
 0x1e1   : > { %s11312_s1 = scalar_lea.vmem %s11311_s19, 4096  ;;  %p11313_p2 = scmp.lt.s32.totalorder %s12116_s26, %s11311_s19 }
 0x1e2   : > { %p11308_p12 = pnand %p11307_p9, %p13562_p7  ;;  %p11314_p3 = scmp.lt.s32.totalorder %s11312_s1, %s11306_s18 }
 0x1e4   : > { %p11309_p1 = pneg %p11308_p12  ;;  %p11315_p5 = por %p11314_p3, %p11313_p2 }
 0x1e6   : > { %p11316_p10 = pnand %p11315_p5, %p11309_p1 }
 0x1e8   : > { %11319 = shalt.err (!%p11316_p10)
}
 0x1e9   : > { %s11530_s15 = smov 64   ;;  %s13571_s14 = sld [smem:[#allocation53_spill]] }
 0x1ea   : > { %s11531_s28 = smov 4   ;;  %s8869_s7 = sshll.u32 %s11464_s2, 4 }
 0x1eb   : > { %9863 = dma.hbm_to_vmem [thread:$0]  (%p13562_p7), %s12112_s16, 2048, %s12116_s26, %s11823_s8, %s11530_s15, %s11530_s15, %s11531_s28  }
 0x1ec   : > { %s1310_s19 = scalar_lea.vmem [#allocation21], %s11809_s0 }
 0x1ed   : > { %s1317_s1 = sshll.u32 %s1310_s19, 4  ;;  %s1318_s1 = int_to_ptr.vmem [resolvable:$true] %s1317_s1 }
 0x1ef   : > { %s1315_s18 = scalar_lea.hbm %s13571_s14, %s8869_s7  ;;  %s11324_s4 = scalar_lea.hbm %s13571_s14, 32 }
 0x1f0   : > { %s11320_s3 = scalar_lea.hbm %s1315_s18, 16  ;;  %p11325_p4 = scmp.lt.s32.totalorder %s1315_s18, %s13571_s14 }
 0x1f1   : > { %p11321_p11 = scmp.ne.s32.totalorder %s1315_s18, %s11320_s3  ;;  %p11326_p6 = scmp.lt.s32.totalorder %s11324_s4, %s11320_s3 }
 0x1f3   : > { %p11322_p13 = pnand %p11321_p11, %p13562_p7  ;;  %p11327_p8 = por %p11326_p6, %p11325_p4 }
 0x1f5   : > { %p11323_p0 = pneg %p11322_p13 }
 0x1f7   : > { %p11328_p9 = pnand %p11327_p8, %p11323_p0 }
 0x1f9   : > { %11331 = shalt.err (!%p11328_p9)
}
 0x1fa   : > { %s11332_s12 = scalar_lea.vmem %s1318_s1, 16  ;;  %s11532_s28 = smov [#allocation21]  }
 0x1fb   : > { %p11333_p12 = scmp.ne.s32.totalorder %s1318_s1, %s11332_s12  ;;  %s11336_s16 = sshll.u32 %s11532_s28, 4  ;;  %s11337_s16 = int_to_ptr.vmem [resolvable:$false] %s11336_s16 }
 0x1fc   : > { %s11338_s26 = scalar_lea.vmem %s11337_s16, 32  ;;  %p11339_p3 = scmp.lt.s32.totalorder %s1318_s1, %s11337_s16 }
 0x1fd   : > { %p11334_p1 = pnand %p11333_p12, %p13562_p7  ;;  %p11340_p5 = scmp.lt.s32.totalorder %s11338_s26, %s11332_s12 }
 0x1ff   : > { %p11335_p2 = pneg %p11334_p1  ;;  %p11341_p10 = por %p11340_p5, %p11339_p3 }
 0x201   : > { %p11342_p11 = pnand %p11341_p10, %p11335_p2 }
 0x203   : > { %11345 = shalt.err (!%p11342_p11)
}
 0x204   : > { %s13572_s3 = sld [smem:[#allocation54_spill]]  ;;  %s13573_s4 = sshll.u32 %s11464_s2, 11 }
 0x205   : > { %9864 = dma.hbm_to_vmem [thread:$0]  (%p13562_p7), %s1315_s18, 16, %s1318_s1, %s11823_s8  }
 0x206   : > { %s13574_s7 = sshll.u32 %s11809_s0, 7  ;;  %s12158_s28 = scalar_lea.hbm %s13538_s5, %s11907_s11 }
 0x207   : > { %s1328_s12 = scalar_lea.vmem [#allocation22], %s13574_s7 }
 0x208   : > { %s1335_s19 = sshll.u32 %s1328_s12, 4  ;;  %s12154_s19 = int_to_ptr.vmem [resolvable:$true] %s1335_s19 }
 0x20a   : > { %s12150_s15 = scalar_lea.hbm %s13572_s3, %s13573_s4  ;;  %s11350_s26 = scalar_lea.hbm %s13572_s3, 4096 }
 0x20b   : > { %s11346_s16 = scalar_lea.hbm %s12150_s15, 2048  ;;  %p11351_p6 = scmp.lt.s32.totalorder %s12150_s15, %s13572_s3 }
 0x20c   : > { %p11347_p13 = scmp.ne.s32.totalorder %s12150_s15, %s11346_s16  ;;  %p11352_p8 = scmp.lt.s32.totalorder %s11350_s26, %s11346_s16 }
 0x20e   : > { %p11348_p0 = pnand %p11347_p13, %p13562_p7  ;;  %p11353_p9 = por %p11352_p8, %p11351_p6 }
 0x210   : > { %p11349_p4 = pneg %p11348_p0 }
 0x212   : > { %p11354_p12 = pnand %p11353_p9, %p11349_p4 }
 0x214   : > { %11357 = shalt.err (!%p11354_p12)
}
 0x215   : > { %s11358_s0 = scalar_lea.vmem %s12154_s19, 2048  ;;  %s11533_s11 = smov [#allocation22]  }
 0x216   : > { %p11359_p1 = scmp.ne.s32.totalorder %s12154_s19, %s11358_s0  ;;  %s11362_s1 = sshll.u32 %s11533_s11, 4  ;;  %s11363_s1 = int_to_ptr.vmem [resolvable:$false] %s11362_s1 }
 0x217   : > { %s11364_s18 = scalar_lea.vmem %s11363_s1, 4096  ;;  %p11365_p5 = scmp.lt.s32.totalorder %s12154_s19, %s11363_s1 }
 0x218   : > { %p11360_p2 = pnand %p11359_p1, %p13562_p7  ;;  %p11366_p10 = scmp.lt.s32.totalorder %s11364_s18, %s11358_s0 }
 0x21a   : > { %p11361_p3 = pneg %p11360_p2  ;;  %p11367_p11 = por %p11366_p10, %p11365_p5 }
 0x21c   : > { %p11368_p13 = pnand %p11367_p11, %p11361_p3 }
 0x21e   : > { %11371 = shalt.err (!%p11368_p13)
}
 0x21f   : > { %s13575_s4 = smov 8   ;;  %s1349_s7 = scalar_lea.vmem [#allocation23], %s11891_s6 }
 0x220   : > { %9865 = dma.hbm_to_vmem [thread:$0]  (%p13562_p7), %s12150_s15, 2048, %s12154_s19, %s11823_s8, %s13566_s23, %s13566_s23, %s13575_s4  }
 0x221   : > { %s1357_s12 = sshll.u32 %s1349_s7, 4  ;;  %s11372_s16 = scalar_lea.hbm %s12158_s28, 32  ;;  %s1358_s12 = int_to_ptr.vmem [resolvable:$true] %s1357_s12 }
 0x222   : > { %p11373_p0 = scmp.ne.s32.totalorder %s12158_s28, %s11372_s16  ;;  %s11376_s26 = scalar_lea.hbm %s13538_s5, 64 }
 0x223   : > { %p11377_p8 = scmp.lt.s32.totalorder %s12158_s28, %s13538_s5  ;;  %p11378_p9 = scmp.lt.s32.totalorder %s11376_s26, %s11372_s16 }
 0x224   : > { %p11374_p4 = pnand %p11373_p0, %p13562_p7 }
 0x225   : > { %p11379_p12 = por %p11378_p9, %p11377_p8 }
 0x226   : > { %p11375_p6 = pneg %p11374_p4 }
 0x228   : > { %p11380_p1 = pnand %p11379_p12, %p11375_p6 }
 0x22a   : > { %11383 = shalt.err (!%p11380_p1)
}
 0x22b   : > { %s11384_s0 = scalar_lea.vmem %s1358_s12, 32  ;;  %s11534_s6 = smov [#allocation23]  }
 0x22c   : > { %p11385_p2 = scmp.ne.s32.totalorder %s1358_s12, %s11384_s0  ;;  %s11388_s23 = sshll.u32 %s11534_s6, 4  ;;  %s11389_s23 = int_to_ptr.vmem [resolvable:$false] %s11388_s23 }
 0x22d   : > { %s11390_s15 = scalar_lea.vmem %s11389_s23, 64  ;;  %p11391_p10 = scmp.lt.s32.totalorder %s1358_s12, %s11389_s23 }
 0x22e   : > { %p11386_p3 = pnand %p11385_p2, %p13562_p7  ;;  %p11392_p11 = scmp.lt.s32.totalorder %s11390_s15, %s11384_s0 }
 0x230   : > { %p11387_p5 = pneg %p11386_p3  ;;  %p11393_p13 = por %p11392_p11, %p11391_p10 }
 0x232   : > { %p11394_p0 = pnand %p11393_p13, %p11387_p5 }
 0x234   : > { %11397 = shalt.err (!%p11394_p0)
}
 0x235   : > { %9866 = dma.hbm_to_vmem [thread:$0]  (%p13562_p7), %s12158_s28, 32, %s1358_s12, %s11823_s8  }
 0x236 PF: > { %p13576_p4 = scmp.ne.s32.totalorder %s13558_s22, 0 }
 0x238   : > { %1380 = sbr.rel (%p13576_p4) target bundleno = 8778 (0x224a), region = 144 }
 0x23d   : > { %p13577_p6 = scmp.ne.s32.totalorder %s13555_s29, 0 }
 0x23f   : > { %11431 = dma.done.wait (%p13577_p6), [#allocation3], 4096  }
 0x240   : > { %11433 = vsyncadd (%p13577_p6), [#allocation3], 4294963200 }
 0x241   : > { %11435 = dma.done.wait (%p13577_p6), [#allocation5], 32  }
 0x242   : > { %11437 = vsyncadd (%p13577_p6), [#allocation5], 4294967264  ;;  %s13578_s9 = sadd.s32 4294967295, %s11472_s10   ;;  %s13579_s19 = sld [smem:[#allocation59_spill]] }
 0x243   : > { %s13580_s8 = sld [smem:[#allocation69_spill]]  ;;  %s1390_s28 = sand.u32 1, %s13578_s9  }
 0x244   : > { %s1391_s1 = scalar_lea.sflag [#allocation3], %s1390_s28 }
 0x248   : > { %s12207_s11 = sand.u32 1, %s13579_s19  }
 0x249   : > { %s13483_s22 = smul.u32 768, %s12207_s11  ;;  %p13581_p7 = scmp.ne.s32.totalorder %s13580_s8, 0 }
 0x24b   : > { %s12212_s18 = scalar_lea.vmem [#allocation6], %s13483_s22 }
 0x24c   : > { %11439 = dma.done.wait (%p13581_p7), %s1391_s1, 53648  }
 0x24d   : > { %11441 = vsyncadd (%p13581_p7), %s1391_s1, 4294913648  ;;  %s13582_s29 = sld [smem:[#allocation61_spill]]  ;;  %s9844_s0 = smul.u32 6, %s12207_s11 }
 0x24e   : > { %s13583_s4 = sld [smem:[#allocation40_spill]]  ;;  %s12221_s6 = sshll.u32 %s12207_s11, 1 }
 0x24f   : > { %s13584_s7 = sld [smem:[#allocation45_spill]]  ;;  %s8880_s21 = sshll.u32 %s12207_s11, 8 }
 0x250   : > { %s13585_s12 = sld [smem:[#allocation57_spill]]  ;;  %s8882_s24 = sshll.u32 %s12207_s11, 9 }
 0x251   : > { %s13586_s16 = sld [smem:[#allocation56_spill]]  ;;  %s8889_s25 = sshll.u32 %s12207_s11, 7 }
 0x252   : > { %s13587_s26 = sld [smem:[#allocation62_spill]]  ;;  %s12258_s27 = scalar_lea.vmem [#allocation7], %s9844_s0 }
 0x253   : > { %p1782_p8 = scmp.lt.s32.totalorder %s13582_s29, 1  ;;  %s13588_s19 = sld [smem:[#allocation27_spill]] }
 0x254   : > { %s13589_s28 = sld [smem:[#allocation28_spill]]  ;;  %s13595_s30 = smul.u32 768, %s12207_s11 }
 0x255   : > { %s1783_s23 = scalar_select %p1782_p8, %s13582_s29, 1 }
 0x256   : > { %s13590_s22 = sld [smem:[#allocation29_spill]]  ;;  %s12270_s2 = scalar_lea.vmem [#allocation13], %s8882_s24 }
 0x257   : > { %s9490_s15 = sshll.u32 %s1783_s23, 8  ;;  %s8906_s9 = sshll.u32 %s1783_s23, 2 }
 0x258   : > { %s12225_s8 = scalar_lea.vmem %s13583_s4, %s9490_s15  ;;  %s12228_s1 = scalar_lea.vmem %s13584_s7, %s8906_s9 }
 0x259   : > { %s9491_s3 = sshll.u32 %s1783_s23, 4  ;;  %s1798_s5 = scalar_lea.vmem %s13585_s12, %s1783_s23 }
 0x25a   : > { %s13591_s13 = sld [smem:[#allocation30_spill]]  ;;  %s12232_s14 = scalar_lea.vmem %s13586_s16, %s9491_s3  ;;  %v12234_v0 = vld [vmem:[%s1798_s5] sm:$0x1] }
 0x25b   : > { %s13592_s17 = sld [smem:[#allocation31_spill]]  ;;  %p1753_p9 = scmp.lt.s32.totalorder %s13587_s26, 1 }
 0x25c   : > { %s13593_s20 = sld [smem:[#allocation58_spill]]  ;;  %s8898_s4 = sshll.u32 %s13587_s26, 1 }
 0x25d   : > { %p1769_p12 = scmp.lt.s32.totalorder %s8898_s4, 3  ;;  %s13615_s26 = smov (!%p1753_p9, %s13587_s26), 1 }
 0x25e   : > { %s9485_s7 = sshll.u32 %s13615_s26, 4  ;;  %s12262_s26 = scalar_lea.vmem [#allocation8], %s13595_s30 }
 0x25f   : > { %s13617_s4 = smov (!%p1769_p12, %s8898_s4), 3  ;;  %s1757_s12 = scalar_lea.vmem %s13588_s19, %s9485_s7 }
 0x260   : > { %s12244_s3 = scalar_lea.vmem %s13589_s28, %s9485_s7  ;;  %s12247_s5 = scalar_lea.vmem %s13590_s22, %s9485_s7 }
 0x261   : > { %13594 = sst [smem:[#allocation70_spill]] %s12247_s5  ;;  %s9488_s16 = sshll.u32 %s13617_s4, 4 }
 0x262   : > { %s12250_s23 = scalar_lea.vmem %s13591_s13, %s9488_s16  ;;  %s12253_s15 = scalar_lea.vmem %s13592_s17, %s9488_s16 }
 0x263   : > { %s12256_s9 = scalar_lea.vmem %s13593_s20, %s9485_s7  ;;  %s12264_s19 = scalar_lea.vmem [#allocation9], %s9844_s0 }
 0x264   : > { %s12267_s22 = scalar_lea.vmem [#allocation11], %s8880_s21  ;;  %s1448_s4 = scalar_lea.vmem [#allocation12], %s12221_s6 }
 0x265   : > { %s12272_s13 = scalar_lea.vmem [#allocation14], %s8880_s21  ;;  %s1475_s17 = scalar_lea.vmem [#allocation15], %s12221_s6 }
 0x266   : > { %s12275_s16 = scalar_lea.vmem [#allocation16], %s8880_s21  ;;  %s1493_s20 = scalar_lea.vmem [#allocation17], %s12221_s6 }
 0x267   : > { %s12278_s7 = scalar_lea.vmem [#allocation18], %s8880_s21  ;;  %s1511_s10 = scalar_lea.vmem [#allocation19], %s12221_s6 }
 0x268   : > { %s12281_s5 = scalar_lea.vmem [#allocation20], %s8889_s25  ;;  %s1528_s30 = scalar_lea.vmem [#allocation21], %s12207_s11 }
 0x269   : > { %s12284_s0 = scalar_lea.vmem [#allocation22], %s8889_s25  ;;  %s1546_s28 = scalar_lea.vmem [#allocation23], %s12221_s6 }
 0x26a   : > { %p8911_p1 = scmp.ne.s32.totalorder %s13582_s29, 0 }
 0x26c   : > { %1809 = sbr.rel (%p8911_p1) target bundleno = 627 (0x273), region = 228 }
 0x271   : > { %v1810_v1 = vld [vmem:[%s1757_s12] sm:$0xff]  ;;  %v1811_v2 = vld [vmem:[%s1757_s12 + $0x8] sm:$0xff] }
 0x272   : > { %1812 = vst [vmem:[%s12256_s9] sm:$0xff] %v1810_v1  ;;  %1813 = vst [vmem:[%s12256_s9 + $0x8] sm:$0xff] %v1811_v2 }
 0x273 PF: > { %s13596_s24 = sld [smem:[#allocation32_spill]]  ;;  %v10141_v30 = vld [vmem:[#allocation2 + $0x74] ss:$8 sps:$4 sm:$0xff]   ;;  %v10146_v31 = vld [vmem:[#allocation2 + $0x70] ss:$8 sps:$4 sm:$0xff]   ;;  %vm3876_vm0 = vcmask 1043456  }
 0x274   : > { %2271 = vmatprep.subr.bf16.mxu1 %v10141_v30  ;;  %v10147_v32 = vld [vmem:[#allocation2 + $0x64] ss:$8 sps:$4 sm:$0xff]   ;;  %v10152_v35 = vld [vmem:[#allocation2 + $0x60] ss:$8 sps:$4 sm:$0xff]   ;;  %v10153_v36 = vld [vmem:[#allocation2 + $0x54] ss:$8 sps:$4 sm:$0xff]  }
 0x275   : > { %2272 = vmatpush1.bf16.msra.mxu1 %v10146_v31  ;;  %v10158_v39 = vld [vmem:[#allocation2 + $0x50] ss:$8 sps:$4 sm:$0xff]   ;;  %v10159_v40 = vld [vmem:[#allocation2 + $0x44] ss:$8 sps:$4 sm:$0xff]   ;;  %v10164_v42 = vld [vmem:[#allocation2 + $0x40] ss:$8 sps:$4 sm:$0xff]  }
 0x276   : > { %2273 = vmatprep.subr.bf16.mxu1 %v10147_v32  ;;  %v10165_v44 = vld [vmem:[#allocation2 + $0x34] ss:$8 sps:$4 sm:$0xff]   ;;  %v10170_v48 = vld [vmem:[#allocation2 + $0x30] ss:$8 sps:$4 sm:$0xff]   ;;  %v10171_v49 = vld [vmem:[#allocation2 + $0x24] ss:$8 sps:$4 sm:$0xff]  }
 0x277   : > { %v10095_v47 = vld [vmem:[%s12212_s18 + $0x154] ss:$24 sps:$4 sm:$0xff]   ;;  %v10093_v51 = vld [vmem:[%s12212_s18 + $0x150] ss:$24 sps:$4 sm:$0xff]   ;;  %v10098_v52 = vld [vmem:[%s12212_s18 + $0x124] ss:$24 sps:$4 sm:$0xff]  }
 0x278   : > { %v10176_v53 = vld [vmem:[#allocation2 + $0x20] ss:$8 sps:$4 sm:$0xff]   ;;  %v10177_v54 = vld [vmem:[#allocation2 + $0x14] ss:$8 sps:$4 sm:$0xff]   ;;  %v10182_v57 = vld [vmem:[#allocation2 + $0x10] ss:$8 sps:$4 sm:$0xff]  }
 0x279   : > { %v10045_v3 = vld [vmem:[%s13596_s24 + $0x74] ss:$8 sps:$4 sm:$0xff]   ;;  %v10047_v4 = vld [vmem:[%s13596_s24 + $0x70] ss:$8 sps:$4 sm:$0xff]   ;;  %v10048_v5 = vld [vmem:[%s13596_s24 + $0x64] ss:$8 sps:$4 sm:$0xff]   ;;  %2274 = vmatpush1.bf16.msra.mxu1 %v10152_v35 }
 0x27a   : > { %2022 = vmatprep.subr.bf16.mxu0 %v10045_v3  ;;  %v10050_v6 = vld [vmem:[%s13596_s24 + $0x60] ss:$8 sps:$4 sm:$0xff]   ;;  %v10051_v7 = vld [vmem:[%s13596_s24 + $0x54] ss:$8 sps:$4 sm:$0xff]   ;;  %v10053_v8 = vld [vmem:[%s13596_s24 + $0x50] ss:$8 sps:$4 sm:$0xff]   ;;  %2275 = vmatprep.subr.bf16.mxu1 %v10153_v36 }
 0x27b   : > { %2023 = vmatpush1.bf16.msra.mxu0 %v10047_v4  ;;  %v10054_v9 = vld [vmem:[%s13596_s24 + $0x44] ss:$8 sps:$4 sm:$0xff]   ;;  %v10056_v10 = vld [vmem:[%s13596_s24 + $0x40] ss:$8 sps:$4 sm:$0xff]   ;;  %v10057_v11 = vld [vmem:[%s13596_s24 + $0x34] ss:$8 sps:$4 sm:$0xff]  }
 0x27c   : > { %2024 = vmatprep.subr.bf16.mxu0 %v10048_v5  ;;  %v10059_v12 = vld [vmem:[%s13596_s24 + $0x30] ss:$8 sps:$4 sm:$0xff]   ;;  %v10060_v13 = vld [vmem:[%s13596_s24 + $0x24] ss:$8 sps:$4 sm:$0xff]   ;;  %v10062_v14 = vld [vmem:[%s13596_s24 + $0x20] ss:$8 sps:$4 sm:$0xff]  }
 0x27d   : > { %v10063_v15 = vld [vmem:[%s13596_s24 + $0x14] ss:$8 sps:$4 sm:$0xff]   ;;  %v1815_v16 = vld [vmem:[%s12256_s9 + $0x8] sm:$0xff]  ;;  %v10065_v18 = vld [vmem:[%s13596_s24 + $0x10] ss:$8 sps:$4 sm:$0xff]   ;;  %2276 = vmatpush1.bf16.msra.mxu1 %v10158_v39  ;;  %s13597_s21 = sld [smem:[#allocation33_spill]] }
 0x27e   : > { %v12304_v17 = vpack.c.bf16 %v1815_v16, %v1815_v16  ;;  %v10066_v19 = vld [vmem:[%s13596_s24 + $0x4] ss:$8 sps:$4 sm:$0xff]   ;;  %v10068_v20 = vld [vmem:[%s13596_s24] ss:$8 sps:$4 sm:$0xff]   ;;  %v10069_v21 = vld [vmem:[%s13596_s24 + $0xf4] ss:$8 sps:$4 sm:$0xff]   ;;  %2277 = vmatprep.subr.bf16.mxu1 %v10159_v40 }
 0x27f   : > { %2025 = vmatpush1.bf16.msra.mxu0 %v10050_v6  ;;  %v10071_v22 = vld [vmem:[%s13596_s24 + $0xf0] ss:$8 sps:$4 sm:$0xff]   ;;  %v10072_v23 = vld [vmem:[%s13596_s24 + $0xe4] ss:$8 sps:$4 sm:$0xff]   ;;  %v10074_v24 = vld [vmem:[%s13596_s24 + $0xe0] ss:$8 sps:$4 sm:$0xff]  }
 0x280   : > { %2026 = vmatprep.subr.bf16.mxu0 %v10051_v7  ;;  %2054 = vmatprep.mubr.bf16.mxu0 %v12304_v17  ;;  %v10075_v25 = vld [vmem:[%s13596_s24 + $0xd4] ss:$8 sps:$4 sm:$0xff]   ;;  %v10077_v26 = vld [vmem:[%s13596_s24 + $0xd0] ss:$8 sps:$4 sm:$0xff]   ;;  %v10078_v27 = vld [vmem:[%s13596_s24 + $0xc4] ss:$8 sps:$4 sm:$0xff]  }
 0x281   : > { %v10080_v28 = vld [vmem:[%s13596_s24 + $0xc0] ss:$8 sps:$4 sm:$0xff]   ;;  %v10081_v29 = vld [vmem:[%s13596_s24 + $0xb4] ss:$8 sps:$4 sm:$0xff]   ;;  %v10083_v33 = vld [vmem:[%s13596_s24 + $0xb0] ss:$8 sps:$4 sm:$0xff]   ;;  %2278 = vmatpush1.bf16.msra.mxu1 %v10164_v42 }
 0x282   : > { %v10084_v34 = vld [vmem:[%s13596_s24 + $0xa4] ss:$8 sps:$4 sm:$0xff]   ;;  %v10086_v37 = vld [vmem:[%s13596_s24 + $0xa0] ss:$8 sps:$4 sm:$0xff]   ;;  %v10087_v38 = vld [vmem:[%s13596_s24 + $0x94] ss:$8 sps:$4 sm:$0xff]   ;;  %2279 = vmatprep.subr.bf16.mxu1 %v10165_v44 }
 0x283   : > { %2027 = vmatpush1.bf16.msra.mxu0 %v10053_v8  ;;  %v10089_v41 = vld [vmem:[%s13596_s24 + $0x90] ss:$8 sps:$4 sm:$0xff]   ;;  %v10090_v43 = vld [vmem:[%s13596_s24 + $0x84] ss:$8 sps:$4 sm:$0xff]   ;;  %v10092_v45 = vld [vmem:[%s13596_s24 + $0x80] ss:$8 sps:$4 sm:$0xff]  }
 0x284   : > { %2028 = vmatprep.subr.bf16.mxu0 %v10054_v9  ;;  %v1814_v46 = vld [vmem:[%s12256_s9] sm:$0xff]  ;;  %v10101_v56 = vld [vmem:[%s12212_s18 + $0xf4] ss:$24 sps:$4 sm:$0xff]   ;;  %v10099_v59 = vld [vmem:[%s12212_s18 + $0xf0] ss:$24 sps:$4 sm:$0xff]   ;;  %vm11536_vm1 = vmmov 0  }
 0x285   : > { %v12328_v50 = vpack.c.bf16 %v1814_v46, %v1814_v46  ;;  %2280 = vmatpush1.bf16.msra.mxu1 %v10170_v48  ;;  %v10096_v55 = vld [vmem:[%s12212_s18 + $0x120] ss:$24 sps:$4 sm:$0xff]   ;;  %v10104_v60 = vld [vmem:[%s12212_s18 + $0xc4] ss:$24 sps:$4 sm:$0xff]   ;;  %v10107_v1 = vld [vmem:[%s12212_s18 + $0x94] ss:$24 sps:$4 sm:$0xff]  }
 0x286   : > { %2281 = vmatprep.subr.bf16.mxu1 %v10171_v49  ;;  %v10183_v58 = vld [vmem:[#allocation2 + $0x4] ss:$8 sps:$4 sm:$0xff]   ;;  %v10188_v61 = vld [vmem:[#allocation2] ss:$8 sps:$4 sm:$0xff]   ;;  %v10189_v62 = vld [vmem:[#allocation2 + $0xf4] ss:$8 sps:$4 sm:$0xff]  }
 0x287   : > { %2029 = vmatpush1.bf16.msra.mxu0 %v10056_v10  ;;  %v10102_v63 = vld [vmem:[%s12212_s18 + $0xc0] ss:$24 sps:$4 sm:$0xff]   ;;  %v10105_v4 = vld [vmem:[%s12212_s18 + $0x90] ss:$24 sps:$4 sm:$0xff]   ;;  %v10110_v5 = vld [vmem:[%s12212_s18 + $0x64] ss:$24 sps:$4 sm:$0xff]  }
 0x288   : > { %2030 = vmatprep.subr.bf16.mxu0 %v10057_v11  ;;  %v10194_v2 = vld [vmem:[#allocation2 + $0xf0] ss:$8 sps:$4 sm:$0xff]   ;;  %v10195_v3 = vld [vmem:[#allocation2 + $0xe4] ss:$8 sps:$4 sm:$0xff]   ;;  %v10200_v6 = vld [vmem:[#allocation2 + $0xe0] ss:$8 sps:$4 sm:$0xff]  }
 0x289   : > { %2282 = vmatpush1.bf16.msra.mxu1 %v10176_v53  ;;  %v10201_v7 = vld [vmem:[#allocation2 + $0xd4] ss:$8 sps:$4 sm:$0xff]   ;;  %v10206_v10 = vld [vmem:[#allocation2 + $0xd0] ss:$8 sps:$4 sm:$0xff]   ;;  %v10207_v11 = vld [vmem:[#allocation2 + $0xc4] ss:$8 sps:$4 sm:$0xff]  }
 0x28a   : > { %2283 = vmatprep.subr.bf16.mxu1 %v10177_v54  ;;  %v10108_v8 = vld [vmem:[%s12212_s18 + $0x60] ss:$24 sps:$4 sm:$0xff]   ;;  %v10113_v9 = vld [vmem:[%s12212_s18 + $0x34] ss:$24 sps:$4 sm:$0xff]   ;;  %v10129_v30 = vld [vmem:[%s12212_s18 + $0x210] ss:$24 sps:$4 sm:$0xff]  }
 0x28b   : > { %2031 = vmatpush1.bf16.msra.mxu0 %v10059_v12  ;;  %v10111_v12 = vld [vmem:[%s12212_s18 + $0x30] ss:$24 sps:$4 sm:$0xff]   ;;  %v10114_v16 = vld [vmem:[%s12212_s18] ss:$24 sps:$4 sm:$0xff]   ;;  %v10134_v31 = vld [vmem:[%s12212_s18 + $0x1e4] ss:$24 sps:$4 sm:$0xff]  }
 0x28c   : > { %2032 = vmatprep.subr.bf16.mxu0 %v10060_v13  ;;  %v10116_v13 = vld [vmem:[%s12212_s18 + $0x4] ss:$24 sps:$4 sm:$0xff]   ;;  %v10132_v32 = vld [vmem:[%s12212_s18 + $0x1e0] ss:$24 sps:$4 sm:$0xff]   ;;  %v10151_v39 = vld [vmem:[%s12212_s18 + $0x134] ss:$24 sps:$4 sm:$0xff]  }
 0x28d   : > { %2284 = vmatpush1.bf16.msra.mxu1 %v10182_v57  ;;  %v10140_v35 = vld [vmem:[%s12212_s18 + $0x184] ss:$24 sps:$4 sm:$0xff]   ;;  %v10138_v36 = vld [vmem:[%s12212_s18 + $0x180] ss:$24 sps:$4 sm:$0xff]   ;;  %v10149_v40 = vld [vmem:[%s12212_s18 + $0x130] ss:$24 sps:$4 sm:$0xff]  }
 0x28e   : > { %2285 = vmatprep.subr.bf16.mxu1 %v10183_v58  ;;  %v10157_v42 = vld [vmem:[%s12212_s18 + $0x104] ss:$24 sps:$4 sm:$0xff]   ;;  %v10155_v44 = vld [vmem:[%s12212_s18 + $0x100] ss:$24 sps:$4 sm:$0xff]   ;;  %v10163_v46 = vld [vmem:[%s12212_s18 + $0xd4] ss:$24 sps:$4 sm:$0xff]  }
 0x28f   : > { %2033 = vmatpush1.bf16.msra.mxu0 %v10062_v14  ;;  %v10212_v14 = vld [vmem:[#allocation2 + $0xc0] ss:$8 sps:$4 sm:$0xff]   ;;  %v10175_v53 = vld [vmem:[%s12212_s18 + $0x74] ss:$24 sps:$4 sm:$0xff]   ;;  %vm3811_vm2 = vcmask 261120   ;;  %s11537_s25 = smov 64  }
 0x290   : > { %2034 = vmatprep.subr.bf16.mxu0 %v10063_v15  ;;  %v10213_v15 = vld [vmem:[#allocation2 + $0xb4] ss:$8 sps:$4 sm:$0xff]   ;;  %vm3859_vm3 = vcmask 64512   ;;  %vm4725_vm4 = vcmask 523264   ;;  %vm4727_vm5 = vcmask 785408   ;;  %s13598_s29 = scalar_lea.vmem [#allocation10], %s12221_s6 }
 0x291   : > { %2286 = vmatpush1.bf16.msra.mxu1 %v10188_v61  ;;  %v10239_v48 = vld [vmem:[%s12212_s18 + $0x15c] ss:$24 sps:$4 sm:$0xff]   ;;  %v10161_v49 = vld [vmem:[%s12212_s18 + $0xd0] ss:$24 sps:$4 sm:$0xff]   ;;  %vm6379_vm6 = vcmask 130048  }
 0x292   : > { %2287 = vmatprep.subr.bf16.mxu1 %v10189_v62  ;;  %v10173_v54 = vld [vmem:[%s12212_s18 + $0x70] ss:$24 sps:$4 sm:$0xff]   ;;  %v10187_v57 = vld [vmem:[%s12212_s18 + $0x14] ss:$24 sps:$4 sm:$0xff]  }
 0x293   : > { %2035 = vmatpush1.bf16.msra.mxu0 %v10065_v18  ;;  %v10119_v18 = vld [vmem:[%s12212_s18 + $0x2d4] ss:$24 sps:$4 sm:$0xff]   ;;  %v10185_v58 = vld [vmem:[%s12212_s18 + $0x10] ss:$24 sps:$4 sm:$0xff]  }
 0x294   : > { %2036 = vmatprep.subr.bf16.mxu0 %v10066_v19  ;;  %v10218_v19 = vld [vmem:[#allocation2 + $0xb0] ss:$8 sps:$4 sm:$0xff]  }
 0x295   : > { %2288 = vmatpush2.bf16.msra.mxu1 %v10194_v2  ;;  %v10199_v61 = vld [vmem:[%s12212_s18 + $0x2b4] ss:$24 sps:$4 sm:$0xff]   ;;  %v10197_v62 = vld [vmem:[%s12212_s18 + $0x2b0] ss:$24 sps:$4 sm:$0xff]  }
 0x296   : > { %2289 = vmatprep.subr.bf16.mxu1 %v10195_v3  ;;  %v10211_v2 = vld [vmem:[%s12212_s18 + $0x254] ss:$24 sps:$4 sm:$0xff]   ;;  %v10209_v3 = vld [vmem:[%s12212_s18 + $0x250] ss:$24 sps:$4 sm:$0xff]  }
 0x297   : > { %2037 = vmatpush1.bf16.msra.mxu0 %v10068_v20  ;;  %v10219_v20 = vld [vmem:[#allocation2 + $0xa4] ss:$8 sps:$4 sm:$0xff]  }
 0x298   : > { %2038 = vmatprep.subr.bf16.mxu0 %v10069_v21  ;;  %v10117_v21 = vld [vmem:[%s12212_s18 + $0x2d0] ss:$24 sps:$4 sm:$0xff]  }
 0x299   : > { %2290 = vmatpush2.bf16.msra.mxu1 %v10200_v6  ;;  %v10223_v6 = vld [vmem:[%s12212_s18 + $0x1f4] ss:$24 sps:$4 sm:$0xff]  }
 0x29a   : > { %2291 = vmatprep.subr.bf16.mxu1 %v10201_v7  ;;  %v10221_v7 = vld [vmem:[%s12212_s18 + $0x1f0] ss:$24 sps:$4 sm:$0xff]  }
 0x29b   : > { %2039 = vmatpush2.bf16.msra.mxu0 %v10071_v22  ;;  %v10122_v22 = vld [vmem:[%s12212_s18 + $0x2a4] ss:$24 sps:$4 sm:$0xff]  }
 0x29c   : > { %2040 = vmatprep.subr.bf16.mxu0 %v10072_v23  ;;  %v10224_v23 = vld [vmem:[#allocation2 + $0xa0] ss:$8 sps:$4 sm:$0xff]  }
 0x29d   : > { %2292 = vmatpush2.bf16.msra.mxu1 %v10206_v10  ;;  %v10235_v10 = vld [vmem:[%s12212_s18 + $0x194] ss:$24 sps:$4 sm:$0xff]  }
 0x29e   : > { %2293 = vmatprep.subr.bf16.mxu1 %v10207_v11  ;;  %v10233_v11 = vld [vmem:[%s12212_s18 + $0x190] ss:$24 sps:$4 sm:$0xff]  }
 0x29f   : > { %2041 = vmatpush2.bf16.msra.mxu0 %v10074_v24  ;;  %v10120_v24 = vld [vmem:[%s12212_s18 + $0x2a0] ss:$24 sps:$4 sm:$0xff]  }
 0x2a0   : > { %2042 = vmatprep.subr.bf16.mxu0 %v10075_v25  ;;  %v10125_v25 = vld [vmem:[%s12212_s18 + $0x274] ss:$24 sps:$4 sm:$0xff]  }
 0x2a1   : > { %2294 = vmatpush2.bf16.msra.mxu1 %v10212_v14  ;;  %v10248_v14 = vld [vmem:[%s12262_s26 + $0x12c] ss:$24 sps:$4 sm:$0xff]  }
 0x2a2   : > { %2295 = vmatprep.subr.bf16.mxu1 %v10213_v15  ;;  %v10246_v15 = vld [vmem:[%s12262_s26 + $0x128] ss:$24 sps:$4 sm:$0xff]  }
 0x2a3   : > { %2043 = vmatpush2.bf16.msra.mxu0 %v10077_v26  ;;  %v10123_v26 = vld [vmem:[%s12212_s18 + $0x270] ss:$24 sps:$4 sm:$0xff]  }
 0x2a4   : > { %2044 = vmatprep.subr.bf16.mxu0 %v10078_v27  ;;  %v10128_v27 = vld [vmem:[%s12212_s18 + $0x244] ss:$24 sps:$4 sm:$0xff]  }
 0x2a5   : > { %2296 = vmatpush2.bf16.msra.mxu1 %v10218_v19  ;;  %v10260_v19 = vld [vmem:[%s12262_s26 + $0xcc] ss:$24 sps:$4 sm:$0xff]  }
 0x2a6   : > { %2297 = vmatprep.subr.bf16.mxu1 %v10219_v20  ;;  %v3071_v20 = vld [vmem:[%s12244_s3 + $0x8] sm:$0xff] }
 0x2a7   : > { %2045 = vmatpush2.bf16.msra.mxu0 %v10080_v28  ;;  %v10126_v28 = vld [vmem:[%s12212_s18 + $0x240] ss:$24 sps:$4 sm:$0xff]  }
 0x2a8   : > { %2046 = vmatprep.subr.bf16.mxu0 %v10081_v29  ;;  %v10131_v29 = vld [vmem:[%s12212_s18 + $0x214] ss:$24 sps:$4 sm:$0xff]  }
 0x2a9   : > { %2298 = vmatpush2.bf16.msra.mxu1 %v10224_v23  ;;  %v10266_v23 = vld [vmem:[%s12262_s26 + $0x9c] ss:$24 sps:$4 sm:$0xff]  }
 0x2ab   : > { %2047 = vmatpush2.bf16.msra.mxu0 %v10083_v33  ;;  %v10137_v33 = vld [vmem:[%s12212_s18 + $0x1b4] ss:$24 sps:$4 sm:$0xff]  }
 0x2ac   : > { %2048 = vmatprep.subr.bf16.mxu0 %v10084_v34  ;;  %v10135_v34 = vld [vmem:[%s12212_s18 + $0x1b0] ss:$24 sps:$4 sm:$0xff]  }
 0x2af   : > { %2049 = vmatpush2.bf16.msra.mxu0 %v10086_v37  ;;  %v10145_v37 = vld [vmem:[%s12212_s18 + $0x164] ss:$24 sps:$4 sm:$0xff]  }
 0x2b0   : > { %2050 = vmatprep.subr.bf16.mxu0 %v10087_v38  ;;  %v10143_v38 = vld [vmem:[%s12212_s18 + $0x160] ss:$24 sps:$4 sm:$0xff]  }
 0x2b3   : > { %2051 = vmatpush2.bf16.msra.mxu0 %v10089_v41  ;;  %v10225_v41 = vld [vmem:[#allocation2 + $0x94] ss:$8 sps:$4 sm:$0xff]  }
 0x2b4   : > { %2052 = vmatprep.subr.bf16.mxu0 %v10090_v43  ;;  %v10230_v43 = vld [vmem:[#allocation2 + $0x90] ss:$8 sps:$4 sm:$0xff]   ;;  %2299 = vmatprep.subr.bf16.mxu1 %v10225_v41 }
 0x2b5   : > { %2300 = vmatpush2.bf16.msra.mxu1 %v10230_v43  ;;  %v10320_v41 = vld [vmem:[%s12262_s26 + $0x1ec] ss:$24 sps:$4 sm:$0xff]   ;;  %v10326_v43 = vld [vmem:[%s12262_s26 + $0x1bc] ss:$24 sps:$4 sm:$0xff]  }
 0x2b7   : > { %2053 = vmatpush2.bf16.msra.mxu0 %v10092_v45  ;;  %v10231_v45 = vld [vmem:[#allocation2 + $0x84] ss:$8 sps:$4 sm:$0xff]  }
 0x2b8   : > { %2947 = vmatprep.subr.bf16.mxu0 %v10095_v47  ;;  %v10236_v47 = vld [vmem:[#allocation2 + $0x80] ss:$8 sps:$4 sm:$0xff]   ;;  %2301 = vmatprep.subr.bf16.mxu1 %v10231_v45 }
 0x2b9   : > { %2302 = vmatpush2.bf16.msra.mxu1 %v10236_v47  ;;  %v10324_v45 = vld [vmem:[%s12262_s26 + $0x1b8] ss:$24 sps:$4 sm:$0xff]  }
 0x2ba   : > { %2055 = vmatmul.mubr.bf16.vlgmr.msra.gmra.mxu0 %v12328_v50  ;;  %2988 = vmatprep.subr.bf16.mxu1 %v10239_v48 }
 0x2bb   : > { %2948 = vmatpush1.bf16.msra.mxu0 %v10093_v51  ;;  %2979 = vmatprep.mubr.bf16.mxu0 %v12304_v17  ;;  %v10169_v51 = vld [vmem:[%s12212_s18 + $0xa4] ss:$24 sps:$4 sm:$0xff]  }
 0x2bc   : > { %2949 = vmatprep.subr.bf16.mxu0 %v10098_v52  ;;  %v10167_v52 = vld [vmem:[%s12212_s18 + $0xa0] ss:$24 sps:$4 sm:$0xff]  }
 0x2bf   : > { %2950 = vmatpush1.bf16.msra.mxu0 %v10096_v55  ;;  %v10181_v55 = vld [vmem:[%s12212_s18 + $0x44] ss:$24 sps:$4 sm:$0xff]  }
 0x2c0   : > { %2951 = vmatprep.subr.bf16.mxu0 %v10101_v56  ;;  %v10179_v56 = vld [vmem:[%s12212_s18 + $0x40] ss:$24 sps:$4 sm:$0xff]  }
 0x2c3   : > { %2952 = vmatpush1.bf16.msra.mxu0 %v10099_v59  ;;  %v10193_v59 = vld [vmem:[%s12212_s18 + $0x2e4] ss:$24 sps:$4 sm:$0xff]  }
 0x2c4   : > { %2953 = vmatprep.subr.bf16.mxu0 %v10104_v60  ;;  %v10191_v60 = vld [vmem:[%s12212_s18 + $0x2e0] ss:$24 sps:$4 sm:$0xff]  }
 0x2c7   : > { %2954 = vmatpush1.bf16.msra.mxu0 %v10102_v63  ;;  %v10205_v63 = vld [vmem:[%s12212_s18 + $0x284] ss:$24 sps:$4 sm:$0xff]  }
 0x2c8   : > { %2955 = vmatprep.subr.bf16.mxu0 %v10107_v1  ;;  %v10203_v1 = vld [vmem:[%s12212_s18 + $0x280] ss:$24 sps:$4 sm:$0xff]  }
 0x2cb   : > { %2956 = vmatpush1.bf16.msra.mxu0 %v10105_v4  ;;  %v10217_v4 = vld [vmem:[%s12212_s18 + $0x224] ss:$24 sps:$4 sm:$0xff]  }
 0x2cc   : > { %2957 = vmatprep.subr.bf16.mxu0 %v10110_v5  ;;  %v10215_v5 = vld [vmem:[%s12212_s18 + $0x220] ss:$24 sps:$4 sm:$0xff]  }
 0x2cf   : > { %2958 = vmatpush1.bf16.msra.mxu0 %v10108_v8  ;;  %v10229_v8 = vld [vmem:[%s12212_s18 + $0x1c4] ss:$24 sps:$4 sm:$0xff]  }
 0x2d0   : > { %2959 = vmatprep.subr.bf16.mxu0 %v10113_v9  ;;  %v10227_v9 = vld [vmem:[%s12212_s18 + $0x1c0] ss:$24 sps:$4 sm:$0xff]  }
 0x2d3   : > { %2960 = vmatpush1.bf16.msra.mxu0 %v10111_v12  ;;  %v10242_v12 = vld [vmem:[%s12262_s26 + $0x15c] ss:$24 sps:$4 sm:$0xff]  }
 0x2d4   : > { %2961 = vmatprep.subr.bf16.mxu0 %v10116_v13  ;;  %v10240_v13 = vld [vmem:[%s12262_s26 + $0x158] ss:$24 sps:$4 sm:$0xff]  }
 0x2d7   : > { %2962 = vmatpush1.bf16.msra.mxu0 %v10114_v16  ;;  %v10254_v16 = vld [vmem:[%s12262_s26 + $0xfc] ss:$24 sps:$4 sm:$0xff]  }
 0x2d8   : > { %2963 = vmatprep.subr.bf16.mxu0 %v10119_v18  ;;  %v10252_v18 = vld [vmem:[%s12262_s26 + $0xf8] ss:$24 sps:$4 sm:$0xff]  }
 0x2db   : > { %2964 = vmatpush2.bf16.msra.mxu0 %v10117_v21  ;;  %v12407_v21 = vpack.c.bf16 %v3071_v20, %v3071_v20  ;;  %v10285_v20 = vld [vmem:[%s12212_s18 + $0x2d8] ss:$24 sps:$4 sm:$0xff]  }
 0x2dc   : > { %2965 = vmatprep.subr.bf16.mxu0 %v10122_v22  ;;  %v10258_v22 = vld [vmem:[%s12262_s26 + $0xc8] ss:$24 sps:$4 sm:$0xff]  }
 0x2df   : > { %2966 = vmatpush2.bf16.msra.mxu0 %v10120_v24  ;;  %v10264_v24 = vld [vmem:[%s12262_s26 + $0x98] ss:$24 sps:$4 sm:$0xff]  }
 0x2e0   : > { %2967 = vmatprep.subr.bf16.mxu0 %v10125_v25  ;;  %v10272_v25 = vld [vmem:[%s12262_s26 + $0x6c] ss:$24 sps:$4 sm:$0xff]  }
 0x2e3   : > { %2968 = vmatpush2.bf16.msra.mxu0 %v10123_v26  ;;  %v10270_v26 = vld [vmem:[%s12262_s26 + $0x68] ss:$24 sps:$4 sm:$0xff]  }
 0x2e4   : > { %2969 = vmatprep.subr.bf16.mxu0 %v10128_v27  ;;  %v10278_v27 = vld [vmem:[%s12262_s26 + $0x3c] ss:$24 sps:$4 sm:$0xff]  }
 0x2e7   : > { %2970 = vmatpush2.bf16.msra.mxu0 %v10126_v28  ;;  %v10276_v28 = vld [vmem:[%s12262_s26 + $0x38] ss:$24 sps:$4 sm:$0xff]  }
 0x2e8   : > { %2971 = vmatprep.subr.bf16.mxu0 %v10131_v29  ;;  %v10284_v29 = vld [vmem:[%s12262_s26 + $0xc] ss:$24 sps:$4 sm:$0xff]  }
 0x2eb   : > { %2972 = vmatpush2.bf16.msra.mxu0 %v10129_v30  ;;  %v10282_v30 = vld [vmem:[%s12262_s26 + $0x8] ss:$24 sps:$4 sm:$0xff]  }
 0x2ec   : > { %2973 = vmatprep.subr.bf16.mxu0 %v10134_v31  ;;  %v10290_v31 = vld [vmem:[%s12262_s26 + $0x2dc] ss:$24 sps:$4 sm:$0xff]  }
 0x2ef   : > { %2974 = vmatpush2.bf16.msra.mxu0 %v10132_v32  ;;  %v10288_v32 = vld [vmem:[%s12262_s26 + $0x2d8] ss:$24 sps:$4 sm:$0xff]  }
 0x2f0   : > { %2975 = vmatprep.subr.bf16.mxu0 %v10137_v33  ;;  %v10296_v33 = vld [vmem:[%s12262_s26 + $0x2ac] ss:$24 sps:$4 sm:$0xff]  }
 0x2f3   : > { %2976 = vmatpush2.bf16.msra.mxu0 %v10135_v34  ;;  %v10294_v34 = vld [vmem:[%s12262_s26 + $0x2a8] ss:$24 sps:$4 sm:$0xff]  }
 0x2f4   : > { %2977 = vmatprep.subr.bf16.mxu0 %v10140_v35  ;;  %v10302_v35 = vld [vmem:[%s12262_s26 + $0x27c] ss:$24 sps:$4 sm:$0xff]  }
 0x2f7   : > { %2978 = vmatpush2.bf16.msra.mxu0 %v10138_v36  ;;  %v10300_v36 = vld [vmem:[%s12262_s26 + $0x278] ss:$24 sps:$4 sm:$0xff]  }
 0x2f8   : > { %3029 = vmatprep.subr.bf16.mxu0 %v10145_v37  ;;  %v10308_v37 = vld [vmem:[%s12262_s26 + $0x24c] ss:$24 sps:$4 sm:$0xff]  }
 0x2fa   : > { %2980 = vmatmul.mubr.bf16.vlgmr.msra.gmra.mxu0 %v12328_v50 }
 0x2fb   : > { %3030 = vmatpush1.bf16.msra.mxu0 %v10143_v38  ;;  %3061 = vmatprep.mubr.bf16.mxu0 %v12304_v17  ;;  %v10306_v38 = vld [vmem:[%s12262_s26 + $0x248] ss:$24 sps:$4 sm:$0xff]  }
 0x2fc   : > { %3031 = vmatprep.subr.bf16.mxu0 %v10151_v39  ;;  %v10314_v39 = vld [vmem:[%s12262_s26 + $0x21c] ss:$24 sps:$4 sm:$0xff]  }
 0x2ff   : > { %3032 = vmatpush1.bf16.msra.mxu0 %v10149_v40  ;;  %v10312_v40 = vld [vmem:[%s12262_s26 + $0x218] ss:$24 sps:$4 sm:$0xff]  }
 0x300   : > { %3033 = vmatprep.subr.bf16.mxu0 %v10157_v42  ;;  %v10318_v42 = vld [vmem:[%s12262_s26 + $0x1e8] ss:$24 sps:$4 sm:$0xff]  }
 0x303   : > { %3034 = vmatpush1.bf16.msra.mxu0 %v10155_v44  ;;  %v1852_v44 = vlaneseq }
 0x304   : > { %3035 = vmatprep.subr.bf16.mxu0 %v10163_v46  ;;  %v10332_v46 = vld [vmem:[%s12262_s26 + $0x18c] ss:$24 sps:$4 sm:$0xff]  }
 0x305   : > { %v12434_v47 = vshrl.u32 %v1852_v44, 7  ;;  %v10341_v44 = vld [vmem:[%s12262_s26 + $0xf4] ss:$24 sps:$4 sm:$0xff]  }
 0x307   : > { %3036 = vmatpush1.bf16.msra.mxu0 %v10161_v49  ;;  %v12437_v48 = vsub.s32 0, %v12434_v47  ;;  %v10330_v49 = vld [vmem:[%s12262_s26 + $0x188] ss:$24 sps:$4 sm:$0xff]  }
 0x308   : > { %3037 = vmatprep.subr.bf16.mxu0 %v10169_v51  ;;  %v3070_v51 = vld [vmem:[%s12244_s3] sm:$0xff] }
 0x30b   : > { %3038 = vmatpush1.bf16.msra.mxu0 %v10167_v52  ;;  %v1850_v52 = vld [vmem:[%s13597_s21] sm:$0x3] }
 0x30c   : > { %3039 = vmatprep.subr.bf16.mxu0 %v10175_v53  ;;  %v12443_v53 = vsub.s32 1, %v12434_v47 }
 0x30f   : > { %3040 = vmatpush1.bf16.msra.mxu0 %v10173_v54  ;;  %v12445_v54 = vpack.c.bf16 %v3070_v51, %v3070_v51  ;;  %v10347_v51 = vld [vmem:[%s12262_s26 + $0x94] ss:$24 sps:$4 sm:$0xff]  }
 0x310   : > { %3041 = vmatprep.subr.bf16.mxu0 %v10181_v55  ;;  %v1855_v55 = vrot.slane %v1850_v52, %v12437_v48 }
 0x313   : > { %3042 = vmatpush1.bf16.msra.mxu0 %v10179_v56  ;;  %v1859_v56 = vrot.slane %v1850_v52, %v12443_v53  ;;  %v10350_v52 = vld [vmem:[%s12262_s26 + $0x64] ss:$24 sps:$4 sm:$0xff]  }
 0x314   : > { %3043 = vmatprep.subr.bf16.mxu0 %v10187_v57 }
 0x317   : > { %3044 = vmatpush1.bf16.msra.mxu0 %v10185_v58 }
 0x318   : > { %3045 = vmatprep.subr.bf16.mxu0 %v10193_v59 }
 0x31b   : > { %3046 = vmatpush2.bf16.msra.mxu0 %v10191_v60 }
 0x31c   : > { %3047 = vmatprep.subr.bf16.mxu0 %v10199_v61 }
 0x31f   : > { %3048 = vmatpush2.bf16.msra.mxu0 %v10197_v62 }
 0x320   : > { %3049 = vmatprep.subr.bf16.mxu0 %v10205_v63 }
 0x323   : > { %3050 = vmatpush2.bf16.msra.mxu0 %v10203_v1 }
 0x324   : > { %3051 = vmatprep.subr.bf16.mxu0 %v10211_v2 }
 0x327   : > { %3052 = vmatpush2.bf16.msra.mxu0 %v10209_v3  ;;  %v10237_v3 = vld [vmem:[%s12212_s18 + $0x158] ss:$24 sps:$4 sm:$0xff]  }
 0x328   : > { %3053 = vmatprep.subr.bf16.mxu0 %v10217_v4 }
 0x32b   : > { %3054 = vmatpush2.bf16.msra.mxu0 %v10215_v5  ;;  %v10245_v5 = vld [vmem:[%s12212_s18 + $0x12c] ss:$24 sps:$4 sm:$0xff]  }
 0x32c   : > { %3055 = vmatprep.subr.bf16.mxu0 %v10223_v6  ;;  %v10243_v6 = vld [vmem:[%s12212_s18 + $0x128] ss:$24 sps:$4 sm:$0xff]  }
 0x32f   : > { %3056 = vmatpush2.bf16.msra.mxu0 %v10221_v7  ;;  %v10251_v7 = vld [vmem:[%s12212_s18 + $0xfc] ss:$24 sps:$4 sm:$0xff]  }
 0x330   : > { %3057 = vmatprep.subr.bf16.mxu0 %v10229_v8  ;;  %v10249_v8 = vld [vmem:[%s12212_s18 + $0xf8] ss:$24 sps:$4 sm:$0xff]  }
 0x333   : > { %3058 = vmatpush2.bf16.msra.mxu0 %v10227_v9  ;;  %v10257_v9 = vld [vmem:[%s12212_s18 + $0xcc] ss:$24 sps:$4 sm:$0xff]  }
 0x334   : > { %3059 = vmatprep.subr.bf16.mxu0 %v10235_v10  ;;  %v10255_v10 = vld [vmem:[%s12212_s18 + $0xc8] ss:$24 sps:$4 sm:$0xff]  }
 0x337   : > { %3060 = vmatpush2.bf16.msra.mxu0 %v10233_v11  ;;  %v10263_v11 = vld [vmem:[%s12212_s18 + $0x9c] ss:$24 sps:$4 sm:$0xff]  }
 0x338   : > { %3723 = vmatprep.subr.bf16.mxu0 %v10242_v12  ;;  %v10261_v12 = vld [vmem:[%s12212_s18 + $0x98] ss:$24 sps:$4 sm:$0xff]  }
 0x33a   : > { %3062 = vmatmul.mubr.bf16.vlgmr.msra.gmra.mxu0 %v12328_v50 }
 0x33b   : > { %3724 = vmatpush1.bf16.msra.mxu0 %v10240_v13  ;;  %3755 = vmatprep.mubr.bf16.mxu0 %v12407_v21  ;;  %v10267_v13 = vld [vmem:[%s12212_s18 + $0x68] ss:$24 sps:$4 sm:$0xff]  }
 0x33c   : > { %3725 = vmatprep.subr.bf16.mxu0 %v10248_v14  ;;  %v10275_v14 = vld [vmem:[%s12212_s18 + $0x3c] ss:$24 sps:$4 sm:$0xff]  }
 0x33f   : > { %3726 = vmatpush1.bf16.msra.mxu0 %v10246_v15  ;;  %v10273_v15 = vld [vmem:[%s12212_s18 + $0x38] ss:$24 sps:$4 sm:$0xff]  }
 0x340   : > { %3727 = vmatprep.subr.bf16.mxu0 %v10254_v16  ;;  %v10281_v16 = vld [vmem:[%s12212_s18 + $0xc] ss:$24 sps:$4 sm:$0xff]  }
 0x343   : > { %3728 = vmatpush1.bf16.msra.mxu0 %v10252_v18  ;;  %v10279_v18 = vld [vmem:[%s12212_s18 + $0x8] ss:$24 sps:$4 sm:$0xff]  }
 0x344   : > { %3729 = vmatprep.subr.bf16.mxu0 %v10260_v19  ;;  %v10287_v19 = vld [vmem:[%s12212_s18 + $0x2dc] ss:$24 sps:$4 sm:$0xff]  }
 0x347   : > { %3730 = vmatpush1.bf16.msra.mxu0 %v10258_v22  ;;  %v10293_v22 = vld [vmem:[%s12212_s18 + $0x2ac] ss:$24 sps:$4 sm:$0xff]  }
 0x348   : > { %3731 = vmatprep.subr.bf16.mxu0 %v10266_v23  ;;  %v10291_v23 = vld [vmem:[%s12212_s18 + $0x2a8] ss:$24 sps:$4 sm:$0xff]  }
 0x34b   : > { %3732 = vmatpush1.bf16.msra.mxu0 %v10264_v24  ;;  %v10299_v24 = vld [vmem:[%s12212_s18 + $0x27c] ss:$24 sps:$4 sm:$0xff]  }
 0x34c   : > { %3733 = vmatprep.subr.bf16.mxu0 %v10272_v25  ;;  %v10297_v25 = vld [vmem:[%s12212_s18 + $0x278] ss:$24 sps:$4 sm:$0xff]  }
 0x34f   : > { %3734 = vmatpush1.bf16.msra.mxu0 %v10270_v26  ;;  %v10305_v26 = vld [vmem:[%s12212_s18 + $0x24c] ss:$24 sps:$4 sm:$0xff]  }
 0x350   : > { %3735 = vmatprep.subr.bf16.mxu0 %v10278_v27  ;;  %v10303_v27 = vld [vmem:[%s12212_s18 + $0x248] ss:$24 sps:$4 sm:$0xff]  }
 0x353   : > { %3736 = vmatpush1.bf16.msra.mxu0 %v10276_v28  ;;  %v10311_v28 = vld [vmem:[%s12212_s18 + $0x21c] ss:$24 sps:$4 sm:$0xff]  }
 0x354   : > { %3737 = vmatprep.subr.bf16.mxu0 %v10284_v29  ;;  %v10309_v29 = vld [vmem:[%s12212_s18 + $0x218] ss:$24 sps:$4 sm:$0xff]  }
 0x357   : > { %3738 = vmatpush1.bf16.msra.mxu0 %v10282_v30  ;;  %v10317_v30 = vld [vmem:[%s12212_s18 + $0x1ec] ss:$24 sps:$4 sm:$0xff]  }
 0x358   : > { %3739 = vmatprep.subr.bf16.mxu0 %v10290_v31  ;;  %v10315_v31 = vld [vmem:[%s12212_s18 + $0x1e8] ss:$24 sps:$4 sm:$0xff]  }
 0x35b   : > { %3740 = vmatpush2.bf16.msra.mxu0 %v10288_v32  ;;  %v10323_v32 = vld [vmem:[%s12212_s18 + $0x1bc] ss:$24 sps:$4 sm:$0xff]  }
 0x35c   : > { %3741 = vmatprep.subr.bf16.mxu0 %v10296_v33  ;;  %v10321_v33 = vld [vmem:[%s12212_s18 + $0x1b8] ss:$24 sps:$4 sm:$0xff]  }
 0x35f   : > { %3742 = vmatpush2.bf16.msra.mxu0 %v10294_v34  ;;  %v10329_v34 = vld [vmem:[%s12212_s18 + $0x18c] ss:$24 sps:$4 sm:$0xff]  }
 0x360   : > { %3743 = vmatprep.subr.bf16.mxu0 %v10302_v35 }
 0x363   : > { %3744 = vmatpush2.bf16.msra.mxu0 %v10300_v36 }
 0x364   : > { %3745 = vmatprep.subr.bf16.mxu0 %v10308_v37  ;;  %v10327_v37 = vld [vmem:[%s12212_s18 + $0x188] ss:$24 sps:$4 sm:$0xff]  }
 0x367   : > { %3746 = vmatpush2.bf16.msra.mxu0 %v10306_v38  ;;  %v10335_v38 = vld [vmem:[%s12262_s26 + $0x154] ss:$24 sps:$4 sm:$0xff]  }
 0x368   : > { %3747 = vmatprep.subr.bf16.mxu0 %v10314_v39 }
 0x36b   : > { %3748 = vmatpush2.bf16.msra.mxu0 %v10312_v40 }
 0x36c   : > { %3749 = vmatprep.subr.bf16.mxu0 %v10320_v41  ;;  %v10333_v41 = vld [vmem:[%s12262_s26 + $0x150] ss:$24 sps:$4 sm:$0xff]  }
 0x36f   : > { %3750 = vmatpush2.bf16.msra.mxu0 %v10318_v42  ;;  %v10338_v42 = vld [vmem:[%s12262_s26 + $0x124] ss:$24 sps:$4 sm:$0xff]  }
 0x370   : > { %3751 = vmatprep.subr.bf16.mxu0 %v10326_v43  ;;  %v10336_v43 = vld [vmem:[%s12262_s26 + $0x120] ss:$24 sps:$4 sm:$0xff]  }
 0x373   : > { %3752 = vmatpush2.bf16.msra.mxu0 %v10324_v45  ;;  %v10339_v45 = vld [vmem:[%s12262_s26 + $0xf0] ss:$24 sps:$4 sm:$0xff]  }
 0x374   : > { %3753 = vmatprep.subr.bf16.mxu0 %v10332_v46  ;;  %v10344_v46 = vld [vmem:[%s12262_s26 + $0xc4] ss:$24 sps:$4 sm:$0xff]  }
 0x377   : > { %3754 = vmatpush2.bf16.msra.mxu0 %v10330_v49  ;;  %v10342_v49 = vld [vmem:[%s12262_s26 + $0xc0] ss:$24 sps:$4 sm:$0xff]  }
 0x37a   : > { %v2056_v57 = vpop.f32.mrf.mxu0  ;;  %3756 = vmatmul.mubr.bf16.vlgmr.msra.gmra.mxu0 %v12445_v54 }
 0x37b   : > { %v2057_v58 = vadd.f32 %v2056_v57, %v1855_v55  ;;  %v11535_v55 = vmov 0.0   ;;  %v10353_v57 = vld [vmem:[%s12262_s26 + $0x34] ss:$24 sps:$4 sm:$0xff]  }
 0x37c   : > { %v2058_v59 = vpop.f32.mrf.mxu0  ;;  %9595 = vmatprep.subr.bf16.mxu0 %v11535_v55  ;;  %9597 = vmatprep.mubr.msk.bf16.mxu0 %vm11536_vm1, %v11535_v55 }
 0x37d   : > { %v2059_v60 = vadd.f32 %v2058_v59, %v1859_v56  ;;  %v2063_v61 = vmax.f32 %v2057_v58, 0.0  ;;  %v10348_v56 = vld [vmem:[%s12262_s26 + $0x60] ss:$24 sps:$4 sm:$0xff]   ;;  %v10351_v58 = vld [vmem:[%s12262_s26 + $0x30] ss:$24 sps:$4 sm:$0xff]  }
 0x37e   : > { %v2060_v62 = vpop.f32.mrf.mxu0  ;;  %v10356_v59 = vld [vmem:[%s12262_s26 + $0x4] ss:$24 sps:$4 sm:$0xff]  }
 0x37f   : > { %v2064_v63 = vmax.f32 %v2059_v60, 0.0  ;;  %v2065_v4 = vpack.c.bf16 %v2063_v61, %v2063_v61  ;;  %v10354_v60 = vld [vmem:[%s12262_s26] ss:$24 sps:$4 sm:$0xff]   ;;  %v10359_v61 = vld [vmem:[%s12262_s26 + $0x2d4] ss:$24 sps:$4 sm:$0xff]  }
 0x380   : > { %v2061_v1 = vpop.f32.mrf.mxu0  ;;  %v10357_v62 = vld [vmem:[%s12262_s26 + $0x2d0] ss:$24 sps:$4 sm:$0xff]  }
 0x381   : > { %v2066_v2 = vpack.c.bf16 %v2064_v63, %v2064_v63  ;;  %v10362_v63 = vld [vmem:[%s12262_s26 + $0x2a4] ss:$24 sps:$4 sm:$0xff]   ;;  %v10360_v1 = vld [vmem:[%s12262_s26 + $0x2a0] ss:$24 sps:$4 sm:$0xff]  }
 0x383   : > { %2303 = vmatprep.mubr.bf16.mxu1 %v2066_v2  ;;  %v10365_v2 = vld [vmem:[%s12262_s26 + $0x274] ss:$24 sps:$4 sm:$0xff]  }
 0x384   : > { %2304 = vmatmul.mubr.bf16.vlgmr.msra.gmra.mxu1 %v2065_v4  ;;  %v10368_v4 = vld [vmem:[%s12262_s26 + $0x244] ss:$24 sps:$4 sm:$0xff]  }
 0x385   : > { %2989 = vmatpush1.bf16.msra.mxu1 %v10237_v3  ;;  %3020 = vmatprep.mubr.bf16.mxu1 %v12304_v17  ;;  %v10269_v17 = vld [vmem:[%s12212_s18 + $0x6c] ss:$24 sps:$4 sm:$0xff]   ;;  %v10363_v3 = vld [vmem:[%s12262_s26 + $0x270] ss:$24 sps:$4 sm:$0xff]   ;;  %s11539_s18 = smov 32  }
 0x386   : > { %2990 = vmatprep.subr.bf16.mxu1 %v10245_v5  ;;  %v10366_v5 = vld [vmem:[%s12262_s26 + $0x240] ss:$24 sps:$4 sm:$0xff]  }
 0x389   : > { %2991 = vmatpush1.bf16.msra.mxu1 %v10243_v6  ;;  %v10371_v6 = vld [vmem:[%s12262_s26 + $0x214] ss:$24 sps:$4 sm:$0xff]  }
 0x38a   : > { %2992 = vmatprep.subr.bf16.mxu1 %v10251_v7  ;;  %v10369_v7 = vld [vmem:[%s12262_s26 + $0x210] ss:$24 sps:$4 sm:$0xff]  }
 0x38d   : > { %2993 = vmatpush1.bf16.msra.mxu1 %v10249_v8  ;;  %v10374_v8 = vld [vmem:[%s12262_s26 + $0x1e4] ss:$24 sps:$4 sm:$0xff]  }
 0x38e   : > { %2994 = vmatprep.subr.bf16.mxu1 %v10257_v9  ;;  %v10372_v9 = vld [vmem:[%s12262_s26 + $0x1e0] ss:$24 sps:$4 sm:$0xff]  }
 0x391   : > { %2995 = vmatpush1.bf16.msra.mxu1 %v10255_v10  ;;  %v10377_v10 = vld [vmem:[%s12262_s26 + $0x1b4] ss:$24 sps:$4 sm:$0xff]  }
 0x392   : > { %2996 = vmatprep.subr.bf16.mxu1 %v10263_v11  ;;  %v10375_v11 = vld [vmem:[%s12262_s26 + $0x1b0] ss:$24 sps:$4 sm:$0xff]  }
 0x395   : > { %2997 = vmatpush1.bf16.msra.mxu1 %v10261_v12  ;;  %v10380_v12 = vld [vmem:[%s12262_s26 + $0x184] ss:$24 sps:$4 sm:$0xff]  }
 0x396   : > { %2998 = vmatprep.subr.bf16.mxu1 %v10269_v17 }
 0x399   : > { %2999 = vmatpush1.bf16.msra.mxu1 %v10267_v13 }
 0x39a   : > { %3000 = vmatprep.subr.bf16.mxu1 %v10275_v14  ;;  %v10378_v14 = vld [vmem:[%s12262_s26 + $0x180] ss:$24 sps:$4 sm:$0xff]  }
 0x39d   : > { %3001 = vmatpush1.bf16.msra.mxu1 %v10273_v15  ;;  %v10383_v15 = vld [vmem:[%s12262_s26 + $0x164] ss:$24 sps:$4 sm:$0xff]  }
 0x39e   : > { %3002 = vmatprep.subr.bf16.mxu1 %v10281_v16 }
 0x3a1   : > { %3003 = vmatpush1.bf16.msra.mxu1 %v10279_v18 }
 0x3a2   : > { %3004 = vmatprep.subr.bf16.mxu1 %v10287_v19  ;;  %v10381_v19 = vld [vmem:[%s12262_s26 + $0x160] ss:$24 sps:$4 sm:$0xff]  }
 0x3a5   : > { %3005 = vmatpush2.bf16.msra.mxu1 %v10285_v20  ;;  %v10386_v20 = vld [vmem:[%s12262_s26 + $0x134] ss:$24 sps:$4 sm:$0xff]  }
 0x3a6   : > { %3006 = vmatprep.subr.bf16.mxu1 %v10293_v22  ;;  %v10384_v22 = vld [vmem:[%s12262_s26 + $0x130] ss:$24 sps:$4 sm:$0xff]  }
 0x3a9   : > { %3007 = vmatpush2.bf16.msra.mxu1 %v10291_v23  ;;  %v10389_v23 = vld [vmem:[%s12262_s26 + $0x104] ss:$24 sps:$4 sm:$0xff]  }
 0x3aa   : > { %3008 = vmatprep.subr.bf16.mxu1 %v10299_v24  ;;  %v10387_v24 = vld [vmem:[%s12262_s26 + $0x100] ss:$24 sps:$4 sm:$0xff]  }
 0x3ad   : > { %3009 = vmatpush2.bf16.msra.mxu1 %v10297_v25  ;;  %v10392_v25 = vld [vmem:[%s12262_s26 + $0xd4] ss:$24 sps:$4 sm:$0xff]  }
 0x3ae   : > { %3010 = vmatprep.subr.bf16.mxu1 %v10305_v26  ;;  %v10390_v26 = vld [vmem:[%s12262_s26 + $0xd0] ss:$24 sps:$4 sm:$0xff]  }
 0x3b1   : > { %3011 = vmatpush2.bf16.msra.mxu1 %v10303_v27  ;;  %v10395_v27 = vld [vmem:[%s12262_s26 + $0xa4] ss:$24 sps:$4 sm:$0xff]  }
 0x3b2   : > { %3012 = vmatprep.subr.bf16.mxu1 %v10311_v28  ;;  %v10393_v28 = vld [vmem:[%s12262_s26 + $0xa0] ss:$24 sps:$4 sm:$0xff]  }
 0x3b5   : > { %3013 = vmatpush2.bf16.msra.mxu1 %v10309_v29  ;;  %v10396_v29 = vld [vmem:[%s12262_s26 + $0x70] ss:$24 sps:$4 sm:$0xff]  }
 0x3b6   : > { %3014 = vmatprep.subr.bf16.mxu1 %v10317_v30  ;;  %v10401_v30 = vld [vmem:[%s12262_s26 + $0x44] ss:$24 sps:$4 sm:$0xff]  }
 0x3b9   : > { %3015 = vmatpush2.bf16.msra.mxu1 %v10315_v31  ;;  %v10399_v31 = vld [vmem:[%s12262_s26 + $0x40] ss:$24 sps:$4 sm:$0xff]  }
 0x3ba   : > { %3016 = vmatprep.subr.bf16.mxu1 %v10323_v32  ;;  %v12481_v35 = vpop.f32.mrf.mxu0  ;;  %v10404_v32 = vld [vmem:[%s12262_s26 + $0x14] ss:$24 sps:$4 sm:$0xff]  }
 0x3bc   : > { %v12483_v36 = vpop.f32.mrf.mxu0 }
 0x3bd   : > { %3017 = vmatpush2.bf16.msra.mxu1 %v10321_v33  ;;  %v10402_v33 = vld [vmem:[%s12262_s26 + $0x10] ss:$24 sps:$4 sm:$0xff]  }
 0x3be   : > { %3018 = vmatprep.subr.bf16.mxu1 %v10329_v34  ;;  %v2985_v39 = vpop.f32.mrf.mxu0  ;;  %v10407_v34 = vld [vmem:[%s12262_s26 + $0x2e4] ss:$24 sps:$4 sm:$0xff]  }
 0x3bf   : > { %v10408_v39 = vld [vmem:[%s12262_s26 + $0x2b0] ss:$24 sps:$4 sm:$0xff]  }
 0x3c0   : > { %v2986_v40 = vpop.f32.mrf.mxu0 }
 0x3c1   : > { %3019 = vmatpush2.bf16.msra.mxu1 %v10327_v37  ;;  %v10405_v37 = vld [vmem:[%s12262_s26 + $0x2e0] ss:$24 sps:$4 sm:$0xff]   ;;  %v10413_v40 = vld [vmem:[%s12262_s26 + $0x284] ss:$24 sps:$4 sm:$0xff]  }
 0x3c2   : > { %3682 = vmatprep.subr.bf16.mxu1 %v10335_v38  ;;  %v10410_v38 = vld [vmem:[%s12262_s26 + $0x2b4] ss:$24 sps:$4 sm:$0xff]  }
 0x3c4   : > { %3021 = vmatmul.mubr.bf16.vlgmr.msra.gmra.mxu1 %v12328_v50  ;;  %v10345_v50 = vld [vmem:[%s12262_s26 + $0x90] ss:$24 sps:$4 sm:$0xff]  }
 0x3c5   : > { %3683 = vmatpush1.bf16.msra.mxu1 %v10333_v41  ;;  %3714 = vmatprep.mubr.bf16.mxu1 %v12407_v21  ;;  %v10411_v41 = vld [vmem:[%s12262_s26 + $0x280] ss:$24 sps:$4 sm:$0xff]  }
 0x3c6   : > { %3684 = vmatprep.subr.bf16.mxu1 %v10338_v42  ;;  %v10416_v42 = vld [vmem:[%s12262_s26 + $0x254] ss:$24 sps:$4 sm:$0xff]  }
 0x3c9   : > { %3685 = vmatpush1.bf16.msra.mxu1 %v10336_v43  ;;  %v10414_v43 = vld [vmem:[%s12262_s26 + $0x250] ss:$24 sps:$4 sm:$0xff]  }
 0x3ca   : > { %3686 = vmatprep.subr.bf16.mxu1 %v10341_v44  ;;  %v10419_v44 = vld [vmem:[%s12262_s26 + $0x224] ss:$24 sps:$4 sm:$0xff]  }
 0x3cd   : > { %3687 = vmatpush1.bf16.msra.mxu1 %v10339_v45  ;;  %v10417_v45 = vld [vmem:[%s12262_s26 + $0x220] ss:$24 sps:$4 sm:$0xff]  }
 0x3ce   : > { %3688 = vmatprep.subr.bf16.mxu1 %v10344_v46  ;;  %v10422_v46 = vld [vmem:[%s12262_s26 + $0x1f4] ss:$24 sps:$4 sm:$0xff]  }
 0x3d1   : > { %3689 = vmatpush1.bf16.msra.mxu1 %v10342_v49  ;;  %v2455_v49 = vsub.s32 4, %v12434_v47 }
 0x3d2   : > { %3690 = vmatprep.subr.bf16.mxu1 %v10347_v51  ;;  %v12556_v51 = vld [vmem:[%s12258_s27] sm:$0x3f]  ;;  %s11538_s27 = smov 96  }
 0x3d5   : > { %3691 = vmatpush1.bf16.msra.mxu1 %v10345_v50  ;;  %v10420_v50 = vld [vmem:[%s12262_s26 + $0x1f0] ss:$24 sps:$4 sm:$0xff]  }
 0x3d6   : > { %3692 = vmatprep.subr.bf16.mxu1 %v10350_v52  ;;  %v2456_v52 = vrot.slane %v12556_v51, %v2455_v49 }
 0x3d9   : > { %3693 = vmatpush1.bf16.msra.mxu1 %v10348_v56  ;;  %v10425_v56 = vld [vmem:[%s12262_s26 + $0x1c4] ss:$24 sps:$4 sm:$0xff]  }
 0x3da   : > { %3694 = vmatprep.subr.bf16.mxu1 %v10353_v57  ;;  %v10423_v57 = vld [vmem:[%s12262_s26 + $0x1c0] ss:$24 sps:$4 sm:$0xff]  }
 0x3dd   : > { %3695 = vmatpush1.bf16.msra.mxu1 %v10351_v58 }
 0x3de   : > { %3696 = vmatprep.subr.bf16.mxu1 %v10356_v59  ;;  %v10428_v59 = vld [vmem:[%s12262_s26 + $0x194] ss:$24 sps:$4 sm:$0xff]  }
 0x3e1   : > { %3697 = vmatpush1.bf16.msra.mxu1 %v10354_v60 }
 0x3e2   : > { %3698 = vmatprep.subr.bf16.mxu1 %v10359_v61 }
 0x3e5   : > { %3699 = vmatpush2.bf16.msra.mxu1 %v10357_v62  ;;  %v10426_v62 = vld [vmem:[%s12262_s26 + $0x190] ss:$24 sps:$4 sm:$0xff]  }
 0x3e6   : > { %3700 = vmatprep.subr.bf16.mxu1 %v10362_v63 }
 0x3e9   : > { %3701 = vmatpush2.bf16.msra.mxu1 %v10360_v1 }
 0x3ea   : > { %3702 = vmatprep.subr.bf16.mxu1 %v10365_v2 }
 0x3ed   : > { %3703 = vmatpush2.bf16.msra.mxu1 %v10363_v3 }
 0x3ee   : > { %3704 = vmatprep.subr.bf16.mxu1 %v10368_v4 }
 0x3f1   : > { %3705 = vmatpush2.bf16.msra.mxu1 %v10366_v5 }
 0x3f2   : > { %3706 = vmatprep.subr.bf16.mxu1 %v10371_v6 }
 0x3f5   : > { %3707 = vmatpush2.bf16.msra.mxu1 %v10369_v7 }
 0x3f6   : > { %3708 = vmatprep.subr.bf16.mxu1 %v10374_v8  ;;  %v12583_v8 = vsub.s32 2, %v12434_v47 }
 0x3f9   : > { %3709 = vmatpush2.bf16.msra.mxu1 %v10372_v9  ;;  %v3170_v9 = vld [vmem:[%s12264_s19] sm:$0x3f] }
 0x3fa   : > { %3710 = vmatprep.subr.bf16.mxu1 %v10377_v10  ;;  %v12520_v17 = vpop.f32.mrf.mxu0  ;;  %v3183_v10 = vrot.slane %v3170_v9, %v12583_v8 }
 0x3fb   : > { %v3064_v58 = vadd.f32 %v12520_v17, %v2456_v52 }
 0x3fc   : > { %v12522_v13 = vpop.f32.mrf.mxu0 }
 0x3fd   : > { %3711 = vmatpush2.bf16.msra.mxu1 %v10375_v11  ;;  %v12567_v63 = vpack.c.bf16 %v3064_v58, %v3064_v58  ;;  %v2448_v11 = vrot.slane %v12556_v51, %v12583_v8 }
 0x3fe   : > { %3712 = vmatprep.subr.bf16.mxu1 %v10380_v12  ;;  %v3067_v16 = vpop.f32.mrf.mxu0 }
 0x3ff   : > { %v3878_v3 = vsel %vm3876_vm0, %v12567_v63, 0 }
 0x400   : > { %v3068_v18 = vpop.f32.mrf.mxu0 }
 0x401   : > { %3713 = vmatpush2.bf16.msra.mxu1 %v10378_v14 }
 0x402   : > { %3764 = vmatprep.subr.bf16.mxu1 %v10383_v15 }
 0x404   : > { %3715 = vmatmul.mubr.bf16.vlgmr.msra.gmra.mxu1 %v12445_v54 }
 0x405   : > { %3765 = vmatpush1.bf16.msra.mxu1 %v10381_v19  ;;  %3796 = vmatprep.mubr.bf16.mxu1 %v12407_v21  ;;  %v10398_v21 = vld [vmem:[%s12262_s26 + $0x74] ss:$24 sps:$4 sm:$0xff]  }
 0x406   : > { %3766 = vmatprep.subr.bf16.mxu1 %v10386_v20 }
 0x409   : > { %3767 = vmatpush1.bf16.msra.mxu1 %v10384_v22 }
 0x40a   : > { %3768 = vmatprep.subr.bf16.mxu1 %v10389_v23 }
 0x40d   : > { %3769 = vmatpush1.bf16.msra.mxu1 %v10387_v24 }
 0x40e   : > { %3770 = vmatprep.subr.bf16.mxu1 %v10392_v25 }
 0x411   : > { %3771 = vmatpush1.bf16.msra.mxu1 %v10390_v26 }
 0x412   : > { %3772 = vmatprep.subr.bf16.mxu1 %v10395_v27 }
 0x415   : > { %3773 = vmatpush1.bf16.msra.mxu1 %v10393_v28  ;;  %v2440_v28 = vrot.slane %v12556_v51, %v12437_v48 }
 0x416   : > { %3774 = vmatprep.subr.bf16.mxu1 %v10398_v21  ;;  %v3175_v21 = vrot.slane %v3170_v9, %v12437_v48 }
 0x419   : > { %3775 = vmatpush1.bf16.msra.mxu1 %v10396_v29 }
 0x41a   : > { %3776 = vmatprep.subr.bf16.mxu1 %v10401_v30  ;;  %v2982_v30 = vadd.f32 %v12481_v35, %v2440_v28 }
 0x41d   : > { %3777 = vmatpush1.bf16.msra.mxu1 %v10399_v31 }
 0x41e   : > { %3778 = vmatprep.subr.bf16.mxu1 %v10404_v32  ;;  %v3179_v32 = vrot.slane %v3170_v9, %v12443_v53 }
 0x421   : > { %3779 = vmatpush1.bf16.msra.mxu1 %v10402_v33 }
 0x422   : > { %3780 = vmatprep.subr.bf16.mxu1 %v10407_v34  ;;  %v2444_v34 = vrot.slane %v12556_v51, %v12443_v53 }
 0x425   : > { %3781 = vmatpush2.bf16.msra.mxu1 %v10405_v37 }
 0x426   : > { %3782 = vmatprep.subr.bf16.mxu1 %v10410_v38 }
 0x429   : > { %3783 = vmatpush2.bf16.msra.mxu1 %v10408_v39 }
 0x42a   : > { %3784 = vmatprep.subr.bf16.mxu1 %v10413_v40 }
 0x42d   : > { %3785 = vmatpush2.bf16.msra.mxu1 %v10411_v41 }
 0x42e   : > { %3786 = vmatprep.subr.bf16.mxu1 %v10416_v42  ;;  %v2984_v42 = vadd.f32 %v12483_v36, %v2444_v34 }
 0x431   : > { %3787 = vmatpush2.bf16.msra.mxu1 %v10414_v43 }
 0x432   : > { %3788 = vmatprep.subr.bf16.mxu1 %v10419_v44 }
 0x435   : > { %3789 = vmatpush2.bf16.msra.mxu1 %v10417_v45 }
 0x436   : > { %3790 = vmatprep.subr.bf16.mxu1 %v10422_v46 }
 0x439   : > { %3791 = vmatpush2.bf16.msra.mxu1 %v10420_v50 }
 0x43a   : > { %3792 = vmatprep.subr.bf16.mxu1 %v10425_v56  ;;  %v3757_v60 = vpop.f32.mrf.mxu0 }
 0x43b   : > { %v3758_v17 = vadd.f32 %v3757_v60, %v3183_v10 }
 0x43c   : > { %v3759_v61 = vpop.f32.mrf.mxu0 }
 0x43d   : > { %3793 = vmatpush2.bf16.msra.mxu1 %v10423_v57 }
 0x43e   : > { %3794 = vmatprep.subr.bf16.mxu1 %v10428_v59  ;;  %v3761_v1 = vpop.f32.mrf.mxu0 }
 0x440   : > { %v3762_v2 = vpop.f32.mrf.mxu0 }
 0x441   : > { %3795 = vmatpush2.bf16.msra.mxu1 %v10426_v62 }
 0x442   : > { %9601 = vmatprep.subr.bf16.mxu1 %v11535_v55 }
 0x444   : > { %v12572_v4 = vpop.f32.mrf.mxu1  ;;  %3797 = vmatmul.mubr.bf16.vlgmr.msra.gmra.mxu1 %v12445_v54  ;;  %v12587_v54 = vsub.s32 3, %v12434_v47 }
 0x445   : > { %9602 = vmatpush3.bf16.msra.mxu1 %v3878_v3  ;;  %9603 = vmatprep.mubr.msk.bf16.mxu1 %vm11536_vm1, %v11535_v55 }
 0x446   : > { %v12575_v5 = vpop.f32.mrf.mxu1  ;;  %9613 = vmatprep.subr.bf16.mxu1 %v11535_v55  ;;  %v3187_v12 = vrot.slane %v3170_v9, %v12587_v54  ;;  %v2452_v14 = vrot.slane %v12556_v51, %v12587_v54 }
 0x448   : > { %v2309_v6 = vpop.f32.mrf.mxu1  ;;  %v3760_v18 = vadd.f32 %v3759_v61, %v3187_v12 }
 0x44a   : > { %v2310_v7 = vpop.f32.mrf.mxu1 }
 0x484   : > { %v3022_v15 = vpop.f32.mrf.mxu1 }
 0x485   : > { %v3023_v16 = vadd.f32 %v3022_v15, %v2448_v11 }
 0x486   : > { %v3024_v19 = vpop.f32.mrf.mxu1 }
 0x487   : > { %v3807_v20 = vadd.f32 %v3758_v17, %v3023_v16  ;;  %v3025_v22 = vadd.f32 %v3024_v19, %v2452_v14 }
 0x488   : > { %v3026_v23 = vpop.f32.mrf.mxu1 }
 0x489   : > { %v3810_v24 = vpack.c.bf16 %v3807_v20, %v3807_v20  ;;  %v3808_v25 = vadd.f32 %v3760_v18, %v3025_v22 }
 0x48a   : > { %v3027_v26 = vpop.f32.mrf.mxu1 }
 0x48b   : > { %4036 = vrot.lane.b32.xlu1 %v3810_v24, %s11537_s25  ;;  %3924 = vrot.lane.b32.xlu0 %v3810_v24, %s11538_s27  ;;  %v3816_v27 = vsel %vm3811_vm2, %v3810_v24, 0  ;;  %v4257_v43 = vpack.c.bf16 %v3808_v25, %v3808_v25 }
 0x48c   : > { %9596 = vmatpush3.bf16.xpose.msra.mxu0 %v3816_v27 }
 0x48d   : > { %9607 = vmatprep.subr.bf16.mxu0 %v11535_v55  ;;  %v4262_v60 = vsel %vm3811_vm2, %v4257_v43, 0 }
 0x4c4   : > { %v3716_v29 = vpop.f32.mrf.mxu1 }
 0x4c5   : > { %v3717_v31 = vadd.f32 %v3716_v29, %v3175_v21 }
 0x4c6   : > { %v3718_v33 = vpop.f32.mrf.mxu1 }
 0x4c7   : > { %v3805_v37 = vadd.f32 %v3717_v31, %v2982_v30  ;;  %v3719_v40 = vadd.f32 %v3718_v33, %v3179_v32 }
 0x4c8   : > { %v3720_v38 = vpop.f32.mrf.mxu1 }
 0x4c9   : > { %v3809_v39 = vpack.c.bf16 %v3805_v37, %v3805_v37  ;;  %v3806_v35 = vadd.f32 %v3719_v40, %v2984_v42 }
 0x4ca   : > { %v3721_v41 = vpop.f32.mrf.mxu1 }
 0x4cb   : > { %4034 = vrot.lane.b32.xlu1 %v3809_v39, %s11537_s25  ;;  %3921 = vrot.lane.b32.xlu0 %v3809_v39, %s11538_s27  ;;  %v4256_v44 = vpack.c.bf16 %v3806_v35, %v3806_v35 }
 0x4cc   : > { %9598 = vmatmul.mubr.msk.bf16.vlgmr.msra.gmra.mxu0 %vm3811_vm2, %v3809_v39 }
 0x4cd   : > { %9609 = vmatprep.mubr.msk.bf16.mxu0 %vm11536_vm1, %v11535_v55 }
 0x4cf   : > { %4145 = vrot.lane.b32.xlu1 %v3809_v39, %s11539_s18  ;;  %4147 = vrot.lane.b32.xlu0 %v3810_v24, %s11539_s18 }
 0x4d3   : > { %4365 = vrot.lane.b32.xlu1 %v4256_v44, %s11538_s27  ;;  %4368 = vrot.lane.b32.xlu0 %v4257_v43, %s11538_s27 }
 0x4d7   : > { %4478 = vrot.lane.b32.xlu1 %v4256_v44, %s11537_s25  ;;  %4480 = vrot.lane.b32.xlu0 %v4257_v43, %s11537_s25 }
 0x4db   : > { %4589 = vrot.lane.b32.xlu1 %v4256_v44, %s11539_s18  ;;  %4591 = vrot.lane.b32.xlu0 %v4257_v43, %s11539_s18 }
 0x4fd   : > { %v3925_v36 = vpop.permute.xlu0 %3924  ;;  %v4037_v46 = vpop.permute.xlu1 %4036 }
 0x4fe   : > { %v3930_v45 = vsel %vm3811_vm2, %v3925_v36, 0  ;;  %v4042_v52 = vsel %vm3811_vm2, %v4037_v46, 0 }
 0x4ff   : > { %9608 = vmatpush3.bf16.xpose.msra.mxu0 %v3930_v45 }
 0x500   : > { %9619 = vmatprep.subr.bf16.mxu0 %v11535_v55 }
 0x53d   : > { %v3922_v50 = vpop.permute.xlu0 %3921  ;;  %v4035_v57 = vpop.permute.xlu1 %4034 }
 0x53e   : > { %9610 = vmatmul.mubr.msk.bf16.vlgmr.msra.gmra.mxu0 %vm3811_vm2, %v3922_v50 }
 0x53f   : > { %9620 = vmatpush3.bf16.xpose.msra.mxu0 %v4042_v52  ;;  %9621 = vmatprep.mubr.msk.bf16.mxu0 %vm11536_vm1, %v11535_v55 }
 0x540   : > { %9631 = vmatprep.subr.bf16.mxu0 %v11535_v55 }
 0x541   : > { %v4148_v56 = vpop.permute.xlu0 %4147  ;;  %v4146_v59 = vpop.permute.xlu1 %4145 }
 0x542   : > { %v4153_v58 = vsel %vm3811_vm2, %v4148_v56, 0 }
 0x545   : > { %v4369_v61 = vpop.permute.xlu0 %4368  ;;  %v4366_v2 = vpop.permute.xlu1 %4365 }
 0x546   : > { %9622 = vmatmul.mubr.msk.bf16.vlgmr.msra.gmra.mxu0 %vm3811_vm2, %v4035_v57  ;;  %v4374_v62 = vsel %vm3811_vm2, %v4369_v61, 0 }
 0x547   : > { %9632 = vmatpush3.bf16.xpose.msra.mxu0 %v4153_v58  ;;  %9633 = vmatprep.mubr.msk.bf16.mxu0 %vm11536_vm1, %v11535_v55 }
 0x548   : > { %9643 = vmatprep.subr.bf16.mxu0 %v11535_v55 }
 0x549   : > { %v4481_v1 = vpop.permute.xlu0 %4480  ;;  %v4479_v7 = vpop.permute.xlu1 %4478 }
 0x54a   : > { %v4486_v3 = vsel %vm3811_vm2, %v4481_v1, 0 }
 0x54d   : > { %v4592_v6 = vpop.permute.xlu0 %4591  ;;  %v4590_v10 = vpop.permute.xlu1 %4589 }
 0x54e   : > { %9634 = vmatmul.mubr.msk.bf16.vlgmr.msra.gmra.mxu0 %vm3811_vm2, %v4146_v59  ;;  %v4597_v9 = vsel %vm3811_vm2, %v4592_v6, 0 }
 0x54f   : > { %9644 = vmatpush3.bf16.xpose.msra.mxu0 %v4262_v60  ;;  %9645 = vmatprep.mubr.msk.bf16.mxu0 %vm11536_vm1, %v11535_v55 }
 0x550   : > { %9655 = vmatprep.subr.bf16.mxu0 %v11535_v55 }
 0x556   : > { %9646 = vmatmul.mubr.msk.bf16.vlgmr.msra.gmra.mxu0 %vm3811_vm2, %v4256_v44 }
 0x557   : > { %9656 = vmatpush3.bf16.xpose.msra.mxu0 %v4374_v62  ;;  %9657 = vmatprep.mubr.msk.bf16.mxu0 %vm11536_vm1, %v11535_v55 }
 0x558   : > { %9667 = vmatprep.subr.bf16.mxu0 %v11535_v55 }
 0x55e   : > { %9658 = vmatmul.mubr.msk.bf16.vlgmr.msra.gmra.mxu0 %vm3811_vm2, %v4366_v2 }
 0x55f   : > { %9668 = vmatpush3.bf16.xpose.msra.mxu0 %v4486_v3  ;;  %9669 = vmatprep.mubr.msk.bf16.mxu0 %vm11536_vm1, %v11535_v55 }
 0x560   : > { %9679 = vmatprep.subr.bf16.mxu0 %v11535_v55 }
 0x566   : > { %9670 = vmatmul.mubr.msk.bf16.vlgmr.msra.gmra.mxu0 %vm3811_vm2, %v4479_v7 }
 0x567   : > { %9680 = vmatpush3.bf16.xpose.msra.mxu0 %v4597_v9  ;;  %9681 = vmatprep.mubr.msk.bf16.mxu0 %vm11536_vm1, %v11535_v55 }
 0x56e   : > { %9682 = vmatmul.mubr.msk.bf16.vlgmr.msra.gmra.mxu0 %vm3811_vm2, %v4590_v10 }
 0x58c   : > { %v3852_v11 = vpop.f32.mrf.mxu0 }
 0x58d   : > { %v3858_v12 = vmul.f32 0.17677669, %v3852_v11 }
 0x58e   : > { %v9599_v17 = vpop.f32.mrf.mxu0 }
 0x58f   : > { %v3860_v14 = vsel %vm3859_vm3, %v3858_v12, -inf }
 0x590   : > { %3861 = vmax.xlane.f32.xlu0 %v3860_v14  ;;  %v3855_v15 = vpop.f32.mrf.mxu0 }
 0x592   : > { %v9600_v16 = vpop.f32.mrf.mxu0 }
 0x5fe   : > { %v3966_v18 = vpop.f32.mrf.mxu0 }
 0x5ff   : > { %v3972_v19 = vmul.f32 0.17677669, %v3966_v18 }
 0x600   : > { %v9611_v20 = vpop.f32.mrf.mxu0 }
 0x601   : > { %v3973_v22 = vsel %vm3859_vm3, %v3972_v19, -inf }
 0x602   : > { %3974 = vmax.xlane.f32.xlu1 %v3973_v22  ;;  %v3969_v23 = vpop.f32.mrf.mxu0 }
 0x604   : > { %v9612_v24 = vpop.f32.mrf.mxu0 }
 0x606   : > { %v4078_v25 = vpop.f32.mrf.mxu0 }
 0x607   : > { %v4084_v26 = vmul.f32 0.17677669, %v4078_v25 }
 0x608   : > { %v9623_v27 = vpop.f32.mrf.mxu0 }
 0x609   : > { %v4085_v28 = vsel %vm3859_vm3, %v4084_v26, -inf }
 0x60a   : > { %4086 = vmax.xlane.f32.xlu0 %v4085_v28  ;;  %v4081_v21 = vpop.f32.mrf.mxu0 }
 0x60c   : > { %v9624_v29 = vpop.f32.mrf.mxu0 }
 0x60e   : > { %v4189_v30 = vpop.f32.mrf.mxu0 }
 0x60f   : > { %v4195_v31 = vmul.f32 0.17677669, %v4189_v30 }
 0x610   : > { %v9635_v32 = vpop.f32.mrf.mxu0 }
 0x611   : > { %v4196_v33 = vsel %vm3859_vm3, %v4195_v31, -inf }
 0x612   : > { %4197 = vmax.xlane.f32.xlu0 %v4196_v33  ;;  %v4192_v34 = vpop.f32.mrf.mxu0 }
 0x614   : > { %v9636_v37 = vpop.f32.mrf.mxu0 }
 0x616   : > { %v4298_v38 = vpop.f32.mrf.mxu0 }
 0x617   : > { %v12656_v39 = vmul.f32 0.17677669, %v4298_v38 }
 0x618   : > { %v9647_v40 = vpop.f32.mrf.mxu0 }
 0x619   : > { %v3862_v41 = vpop.xlane.xlu0 %3861  ;;  %v4305_v42 = vsel %vm3859_vm3, %v12656_v39, -inf }
 0x61a   : > { %v3863_v35 = vsub.f32 %v3858_v12, %v3862_v41  ;;  %4306 = vmax.xlane.f32.xlu1 %v4305_v42  ;;  %v4301_v43 = vpop.f32.mrf.mxu0 }
 0x61c   : > { %v3864_v44 = vmul.f32 1.442695, %v3863_v35  ;;  %v9648_v36 = vpop.f32.mrf.mxu0 }
 0x61e   : > { %10805 = vpow2.f32 %v3864_v44  ;;  %v4410_v45 = vpop.f32.mrf.mxu0 }
 0x61f   : > { %v4416_v46 = vmul.f32 0.17677669, %v4410_v45 }
 0x620   : > { %v9659_v50 = vpop.f32.mrf.mxu0 }
 0x621   : > { %v4417_v52 = vsel %vm3859_vm3, %v4416_v46, -inf }
 0x622   : > { %4418 = vmax.xlane.f32.xlu0 %v4417_v52  ;;  %v4413_v56 = vpop.f32.mrf.mxu0 }
 0x624   : > { %v9660_v57 = vpop.f32.mrf.mxu0 }
 0x626   : > { %v4522_v58 = vpop.f32.mrf.mxu0 }
 0x627   : > { %v4528_v59 = vmul.f32 0.17677669, %v4522_v58 }
 0x628   : > { %v9671_v60 = vpop.f32.mrf.mxu0 }
 0x629   : > { %v4529_v61 = vsel %vm3859_vm3, %v4528_v59, -inf }
 0x62a   : > { %4530 = vmax.xlane.f32.xlu1 %v4529_v61  ;;  %v4525_v62 = vpop.f32.mrf.mxu0 }
 0x62b   : > { %v10806_v1 = vpop.eup %10805 }
 0x62c   : > { %v9672_v2 = vpop.f32.mrf.mxu0  ;;  %v3866_v3 = vsel %vm3859_vm3, %v10806_v1, 0.0 }
 0x62e   : > { %3867 = vadd.xlane.f32.xlu1 %v3866_v3  ;;  %v4633_v6 = vpop.f32.mrf.mxu0 }
 0x62f   : > { %v4639_v7 = vmul.f32 0.17677669, %v4633_v6 }
 0x630   : > { %v9683_v9 = vpop.f32.mrf.mxu0 }
 0x631   : > { %v4640_v10 = vsel %vm3859_vm3, %v4639_v7, -inf }
 0x632   : > { %4641 = vmax.xlane.f32.xlu0 %v4640_v10  ;;  %v4636_v11 = vpop.f32.mrf.mxu0 }
 0x634   : > { %v9684_v12 = vpop.f32.mrf.mxu0 }
 0x68b   : > { %v3975_v17 = vpop.xlane.xlu1 %3974 }
 0x68c   : > { %v3976_v14 = vsub.f32 %v3972_v19, %v3975_v17 }
 0x68e   : > { %v3977_v15 = vmul.f32 1.442695, %v3976_v14 }
 0x690   : > { %10807 = vpow2.f32 %v3977_v15 }
 0x693   : > { %v4087_v16 = vpop.xlane.xlu0 %4086 }
 0x694   : > { %v4088_v18 = vsub.f32 %v4084_v26, %v4087_v16 }
 0x696   : > { %v4089_v20 = vmul.f32 1.442695, %v4088_v18 }
 0x698   : > { %10809 = vpow2.f32 %v4089_v20 }
 0x69b   : > { %v4198_v22 = vpop.xlane.xlu0 %4197 }
 0x69c   : > { %v4199_v23 = vsub.f32 %v4195_v31, %v4198_v22 }
 0x69d   : > { %v12664_v24 = vpop.eup %10807 }
 0x69e   : > { %v4200_v25 = vmul.f32 1.442695, %v4199_v23  ;;  %v3979_v27 = vsel %vm3859_vm3, %v12664_v24, 0.0 }
 0x69f   : > { %3980 = vadd.xlane.f32.xlu0 %v3979_v27 }
 0x6a0   : > { %10811 = vpow2.f32 %v4200_v25 }
 0x6a3   : > { %v4307_v29 = vpop.xlane.xlu1 %4306 }
 0x6a4   : > { %v4308_v33 = vsub.f32 %v12656_v39, %v4307_v29 }
 0x6a5   : > { %v12668_v28 = vpop.eup %10809 }
 0x6a6   : > { %v4091_v19 = vsel %vm3859_vm3, %v12668_v28, 0.0  ;;  %v4309_v41 = vmul.f32 1.442695, %v4308_v33 }
 0x6a7   : > { %4092 = vadd.xlane.f32.xlu1 %v4091_v19 }
 0x6ab   : > { %v4419_v34 = vpop.xlane.xlu0 %4418 }
 0x6ac   : > { %v4420_v40 = vsub.f32 %v4416_v46, %v4419_v34 }
 0x6ad   : > { %v12672_v21 = vpop.eup %10811 }
 0x6ae   : > { %v4202_v26 = vsel %vm3859_vm3, %v12672_v21, 0.0  ;;  %v4421_v43 = vmul.f32 1.442695, %v4420_v40 }
 0x6af   : > { %4203 = vadd.xlane.f32.xlu0 %v4202_v26 }
 0x6b3   : > { %v4531_v30 = vpop.xlane.xlu1 %4530 }
 0x6b4   : > { %v4532_v42 = vsub.f32 %v4528_v59, %v4531_v30  ;;  %v2459_v59 = vsub.s32 5, %v12434_v47 }
 0x6b6   : > { %v4533_v44 = vmul.f32 1.442695, %v4532_v42  ;;  %v2460_v60 = vrot.slane %v12556_v51, %v2459_v59 }
 0x6b7   : > { %v3868_v31 = vpop.xlane.xlu1 %3867 }
 0x6b8   : > { %4097 = vrot.lane.b32.xlu1 %v12567_v63, %s11537_s25  ;;  %10813 = vrcp.f32 %v3868_v31  ;;  %v3066_v61 = vadd.f32 %v12522_v13, %v2460_v60  ;;  %v10429_v60 = vld [vmem:[%s12225_s8 + $0x70] ss:$8 sps:$4 sm:$0xff]  }
 0x6b9   : > { %10815 = vpow2.f32 %v4309_v41 }
 0x6ba   : > { %10817 = vpow2.f32 %v4421_v43  ;;  %v4317_v62 = vpack.c.bf16 %v3066_v61, %v3066_v61  ;;  %v10431_v61 = vld [vmem:[%s12225_s8 + $0x74] ss:$8 sps:$4 sm:$0xff]  }
 0x6bb   : > { %v4642_v35 = vpop.xlane.xlu0 %4641  ;;  %10819 = vpow2.f32 %v4533_v44  ;;  %4938 = vmatprep.subr.bf16.mxu0 %v10431_v61  ;;  %v10476_v61 = vld [vmem:[%s12225_s8 + $0x84] ss:$8 sps:$4 sm:$0xff]  }
 0x6bc   : > { %4208 = vrot.lane.b32.xlu1 %v12567_v63, %s11539_s18  ;;  %v4643_v36 = vsub.f32 %v4639_v7, %v4642_v35  ;;  %4939 = vmatpush1.bf16.msra.mxu0 %v10429_v60 }
 0x6c5   : > { %3986 = vrot.lane.b32.xlu0 %v12567_v63, %s11538_s27  ;;  %v10814_v32 = vpop.eup %10813  ;;  %v4644_v63 = vmul.f32 1.442695, %v4643_v36 }
 0x6c6   : > { %v3870_v37 = vmul.f32 %v10814_v32, %v10806_v1  ;;  %v12686_v39 = vpop.eup %10815  ;;  %v12709_v1 = vpop.f32.mrf.mxu1 }
 0x6c7   : > { %10821 = vpow2.f32 %v4644_v63  ;;  %v12688_v45 = vpop.eup %10817  ;;  %v4311_v46 = vsel %vm3859_vm3, %v12686_v39, 0.0 }
 0x6c8   : > { %v3871_v38 = vpack.c.bf16 %v3870_v37, %v3870_v37  ;;  %v12692_v50 = vpop.eup %10819  ;;  %v4423_v52 = vsel %vm3859_vm3, %v12688_v45, 0.0  ;;  %v12712_v2 = vpop.f32.mrf.mxu1 }
 0x6c9   : > { %v4535_v56 = vsel %vm3859_vm3, %v12692_v50, 0.0 }
 0x6ca   : > { %9604 = vmatmul.mubr.msk.bf16.vlgmr.msra.gmra.mxu1 %vm3859_vm3, %v3871_v38  ;;  %v3802_v3 = vpop.f32.mrf.mxu1 }
 0x6cb   : > { %9615 = vmatprep.mubr.msk.bf16.mxu1 %vm11536_vm1, %v11535_v55  ;;  %v10432_v3 = vld [vmem:[%s12225_s8 + $0x60] ss:$8 sps:$4 sm:$0xff]  }
 0x6cc   : > { %v3803_v6 = vpop.f32.mrf.mxu1 }
 0x6cd   : > { %v10437_v6 = vld [vmem:[%s12225_s8 + $0x54] ss:$8 sps:$4 sm:$0xff]  }
 0x6d4   : > { %v12698_v57 = vpop.eup %10821 }
 0x6d5   : > { %v4646_v58 = vsel %vm3859_vm3, %v12698_v57, 0.0 }
 0x6e0   : > { %4312 = vadd.xlane.f32.xlu1 %v4311_v46 }
 0x6e4   : > { %4424 = vadd.xlane.f32.xlu1 %v4423_v52  ;;  %4536 = vadd.xlane.f32.xlu0 %v4535_v56 }
 0x6e8   : > { %4647 = vadd.xlane.f32.xlu1 %v4646_v58 }
 0x6f9   : > { %4541 = vrot.lane.b32.xlu1 %v4317_v62, %s11537_s25 }
 0x6fa   : > { %4430 = vrot.lane.b32.xlu0 %v4317_v62, %s11538_s27 }
 0x6fe   : > { %4652 = vrot.lane.b32.xlu0 %v4317_v62, %s11539_s18 }
 0x728   : > { %v3981_v7 = vpop.xlane.xlu0 %3980 }
 0x729   : > { %10823 = vrcp.f32 %v3981_v7  ;;  %v10440_v7 = vld [vmem:[%s12225_s8 + $0x44] ss:$8 sps:$4 sm:$0xff]  }
 0x730   : > { %v4093_v9 = vpop.xlane.xlu1 %4092 }
 0x731   : > { %10825 = vrcp.f32 %v4093_v9  ;;  %v10438_v9 = vld [vmem:[%s12225_s8 + $0x40] ss:$8 sps:$4 sm:$0xff]  }
 0x734   : > { %v4098_v17 = vpop.permute.xlu1 %4097 }
 0x735   : > { %v4103_v16 = vsel %vm3876_vm0, %v4098_v17, 0  ;;  %v10447_v17 = vld [vmem:[%s12225_s8 + $0x10] ss:$8 sps:$4 sm:$0xff]  }
 0x736   : > { %v10824_v51 = vpop.eup %10823 }
 0x737   : > { %v3983_v13 = vmul.f32 %v10824_v51, %v12664_v24  ;;  %v10443_v51 = vld [vmem:[%s12225_s8 + $0x34] ss:$8 sps:$4 sm:$0xff]  }
 0x738   : > { %v4204_v10 = vpop.xlane.xlu0 %4203  ;;  %v4209_v20 = vpop.permute.xlu1 %4208 }
 0x739   : > { %10827 = vrcp.f32 %v4204_v10  ;;  %v3984_v14 = vpack.c.bf16 %v3983_v13, %v3983_v13  ;;  %v4214_v24 = vsel %vm3876_vm0, %v4209_v20, 0  ;;  %v10441_v10 = vld [vmem:[%s12225_s8 + $0x30] ss:$8 sps:$4 sm:$0xff]   ;;  %v10446_v13 = vld [vmem:[%s12225_s8 + $0x24] ss:$8 sps:$4 sm:$0xff]  }
 0x73a   : > { %v10458_v20 = vld [vmem:[%s12225_s8 + $0xe4] ss:$8 sps:$4 sm:$0xff]  }
 0x73c   : > { %v3987_v11 = vpop.permute.xlu0 %3986 }
 0x73d   : > { %v3992_v12 = vsel %vm3876_vm0, %v3987_v11, 0  ;;  %v10444_v11 = vld [vmem:[%s12225_s8 + $0x20] ss:$8 sps:$4 sm:$0xff]  }
 0x73e   : > { %9614 = vmatpush3.bf16.msra.mxu1 %v3992_v12  ;;  %v10826_v15 = vpop.eup %10825  ;;  %v10449_v12 = vld [vmem:[%s12225_s8 + $0x14] ss:$8 sps:$4 sm:$0xff]  }
 0x73f   : > { %9625 = vmatprep.subr.bf16.mxu1 %v11535_v55  ;;  %v4095_v18 = vmul.f32 %v10826_v15, %v12668_v28  ;;  %v4322_v28 = vsel %vm3876_vm0, %v4317_v62, 0  ;;  %v10434_v62 = vld [vmem:[%s12225_s8 + $0x64] ss:$8 sps:$4 sm:$0xff]   ;;  %v10450_v15 = vld [vmem:[%s12225_s8] ss:$8 sps:$4 sm:$0xff]  }
 0x740   : > { %4940 = vmatprep.subr.bf16.mxu0 %v10434_v62 }
 0x741   : > { %9616 = vmatmul.mubr.msk.bf16.vlgmr.msra.gmra.mxu1 %vm3859_vm3, %v3984_v14  ;;  %v4096_v22 = vpack.c.bf16 %v4095_v18, %v4095_v18  ;;  %4941 = vmatpush1.bf16.msra.mxu0 %v10432_v3  ;;  %v10452_v14 = vld [vmem:[%s12225_s8 + $0x4] ss:$8 sps:$4 sm:$0xff]   ;;  %v10453_v18 = vld [vmem:[%s12225_s8 + $0xf0] ss:$8 sps:$4 sm:$0xff]   ;;  %v10474_v3 = vld [vmem:[%s12225_s8 + $0x80] ss:$8 sps:$4 sm:$0xff]  }
 0x742   : > { %9626 = vmatpush3.bf16.msra.mxu1 %v4103_v16  ;;  %9627 = vmatprep.mubr.msk.bf16.mxu1 %vm11536_vm1, %v11535_v55  ;;  %v10455_v16 = vld [vmem:[%s12225_s8 + $0xf4] ss:$8 sps:$4 sm:$0xff]  }
 0x743   : > { %9637 = vmatprep.subr.bf16.mxu1 %v11535_v55  ;;  %4942 = vmatprep.subr.bf16.mxu0 %v10437_v6 }
 0x746   : > { %v10828_v23 = vpop.eup %10827 }
 0x747   : > { %v4206_v25 = vmul.f32 %v10828_v23, %v12672_v21  ;;  %v10461_v23 = vld [vmem:[%s12225_s8 + $0xd4] ss:$8 sps:$4 sm:$0xff]  }
 0x749   : > { %9628 = vmatmul.mubr.msk.bf16.vlgmr.msra.gmra.mxu1 %vm3859_vm3, %v4096_v22  ;;  %v4207_v27 = vpack.c.bf16 %v4206_v25, %v4206_v25  ;;  %v10456_v22 = vld [vmem:[%s12225_s8 + $0xe0] ss:$8 sps:$4 sm:$0xff]   ;;  %v10459_v25 = vld [vmem:[%s12225_s8 + $0xd0] ss:$8 sps:$4 sm:$0xff]  }
 0x74a   : > { %9638 = vmatpush3.bf16.msra.mxu1 %v4214_v24  ;;  %9639 = vmatprep.mubr.msk.bf16.mxu1 %vm11536_vm1, %v11535_v55 }
 0x74b   : > { %9649 = vmatprep.subr.bf16.mxu1 %v11535_v55 }
 0x751   : > { %9640 = vmatmul.mubr.msk.bf16.vlgmr.msra.gmra.mxu1 %vm3859_vm3, %v4207_v27 }
 0x752   : > { %9650 = vmatpush3.bf16.msra.mxu1 %v4322_v28  ;;  %9651 = vmatprep.mubr.msk.bf16.mxu1 %vm11536_vm1, %v11535_v55 }
 0x753   : > { %9661 = vmatprep.subr.bf16.mxu1 %v11535_v55 }
 0x769   : > { %v4313_v19 = vpop.xlane.xlu1 %4312 }
 0x76a   : > { %10829 = vrcp.f32 %v4313_v19 }
 0x76d   : > { %v4425_v26 = vpop.xlane.xlu1 %4424  ;;  %v4537_v29 = vpop.xlane.xlu0 %4536 }
 0x76e   : > { %10831 = vrcp.f32 %v4425_v26 }
 0x76f   : > { %10833 = vrcp.f32 %v4537_v29 }
 0x771   : > { %v4431_v31 = vpop.permute.xlu0 %4430  ;;  %v4648_v34 = vpop.xlane.xlu1 %4647 }
 0x772   : > { %v4436_v37 = vsel %vm3876_vm0, %v4431_v31, 0  ;;  %10835 = vrcp.f32 %v4648_v34 }
 0x775   : > { %v4542_v40 = vpop.permute.xlu1 %4541  ;;  %v4653_v44 = vpop.permute.xlu0 %4652 }
 0x776   : > { %v4547_v35 = vsel %vm3876_vm0, %v4542_v40, 0  ;;  %v10462_v40 = vld [vmem:[%s12225_s8 + $0xc0] ss:$8 sps:$4 sm:$0xff]  }
 0x777   : > { %v10830_v30 = vpop.eup %10829 }
 0x778   : > { %v4315_v21 = vmul.f32 %v10830_v30, %v12686_v39 }
 0x77a   : > { %v4316_v32 = vpack.c.bf16 %v4315_v21, %v4315_v21 }
 0x77b   : > { %v10832_v33 = vpop.eup %10831 }
 0x77c   : > { %9652 = vmatmul.mubr.msk.bf16.vlgmr.msra.gmra.mxu1 %vm3859_vm3, %v4316_v32  ;;  %v4427_v38 = vmul.f32 %v10832_v33, %v12688_v45  ;;  %v10834_v42 = vpop.eup %10833  ;;  %v4658_v45 = vsel %vm3876_vm0, %v4653_v44, 0 }
 0x77d   : > { %9662 = vmatpush3.bf16.msra.mxu1 %v4436_v37  ;;  %9663 = vmatprep.mubr.msk.bf16.mxu1 %vm11536_vm1, %v11535_v55  ;;  %v4539_v43 = vmul.f32 %v10834_v42, %v12692_v50  ;;  %v10464_v37 = vld [vmem:[%s12225_s8 + $0xc4] ss:$8 sps:$4 sm:$0xff]  }
 0x77e   : > { %9673 = vmatprep.subr.bf16.mxu1 %v11535_v55  ;;  %v4428_v41 = vpack.c.bf16 %v4427_v38, %v4427_v38 }
 0x77f   : > { %v4540_v36 = vpack.c.bf16 %v4539_v43, %v4539_v43  ;;  %v10836_v63 = vpop.eup %10835 }
 0x780   : > { %v4650_v50 = vmul.f32 %v10836_v63, %v12698_v57  ;;  %v10435_v57 = vld [vmem:[%s12225_s8 + $0x50] ss:$8 sps:$4 sm:$0xff]  }
 0x781   : > { %4943 = vmatpush1.bf16.msra.mxu0 %v10435_v57 }
 0x782   : > { %v4651_v58 = vpack.c.bf16 %v4650_v50, %v4650_v50  ;;  %4944 = vmatprep.subr.bf16.mxu0 %v10440_v7 }
 0x784   : > { %9664 = vmatmul.mubr.msk.bf16.vlgmr.msra.gmra.mxu1 %vm3859_vm3, %v4428_v41  ;;  %v10467_v41 = vld [vmem:[%s12225_s8 + $0xb4] ss:$8 sps:$4 sm:$0xff]  }
 0x785   : > { %9674 = vmatpush3.bf16.msra.mxu1 %v4547_v35  ;;  %9675 = vmatprep.mubr.msk.bf16.mxu1 %vm11536_vm1, %v11535_v55  ;;  %v10465_v35 = vld [vmem:[%s12225_s8 + $0xb0] ss:$8 sps:$4 sm:$0xff]  }
 0x786   : > { %9685 = vmatprep.subr.bf16.mxu1 %v11535_v55  ;;  %4945 = vmatpush1.bf16.msra.mxu0 %v10438_v9 }
 0x787   : > { %4946 = vmatprep.subr.bf16.mxu0 %v10443_v51 }
 0x78a   : > { %v12747_v39 = vpop.f32.mrf.mxu1  ;;  %4947 = vmatpush1.bf16.msra.mxu0 %v10441_v10 }
 0x78b   : > { %4948 = vmatprep.subr.bf16.mxu0 %v10446_v13 }
 0x78c   : > { %9676 = vmatmul.mubr.msk.bf16.vlgmr.msra.gmra.mxu1 %vm3859_vm3, %v4540_v36  ;;  %v9605_v46 = vpop.f32.mrf.mxu1  ;;  %v10470_v36 = vld [vmem:[%s12225_s8 + $0xa4] ss:$8 sps:$4 sm:$0xff]  }
 0x78d   : > { %9686 = vmatpush3.bf16.msra.mxu1 %v4658_v45  ;;  %9687 = vmatprep.mubr.msk.bf16.mxu1 %vm11536_vm1, %v11535_v55  ;;  %v10468_v45 = vld [vmem:[%s12225_s8 + $0xa0] ss:$8 sps:$4 sm:$0xff]   ;;  %v10473_v46 = vld [vmem:[%s12225_s8 + $0x94] ss:$8 sps:$4 sm:$0xff]  }
 0x78e   : > { %v3917_v52 = vpop.f32.mrf.mxu1  ;;  %4949 = vmatpush1.bf16.msra.mxu0 %v10444_v11 }
 0x78f   : > { %4950 = vmatprep.subr.bf16.mxu0 %v10449_v12 }
 0x790   : > { %v9606_v56 = vpop.f32.mrf.mxu1 }
 0x791   : > { %v10471_v56 = vld [vmem:[%s12225_s8 + $0x90] ss:$8 sps:$4 sm:$0xff]   ;;  %s13599_s8 = sld [smem:[#allocation70_spill]] }
 0x792   : > { %4951 = vmatpush1.bf16.msra.mxu0 %v10447_v17 }
 0x793   : > { %4952 = vmatprep.subr.bf16.mxu0 %v10452_v14 }
 0x794   : > { %9688 = vmatmul.mubr.msk.bf16.vlgmr.msra.gmra.mxu1 %vm3859_vm3, %v4651_v58 }
 0x796   : > { %4953 = vmatpush1.bf16.msra.mxu0 %v10450_v15 }
 0x797   : > { %4954 = vmatprep.subr.bf16.mxu0 %v10455_v16 }
 0x79a   : > { %4955 = vmatpush2.bf16.msra.mxu0 %v10453_v18 }
 0x79b   : > { %4956 = vmatprep.subr.bf16.mxu0 %v10458_v20 }
 0x79e   : > { %4957 = vmatpush2.bf16.msra.mxu0 %v10456_v22 }
 0x79f   : > { %4958 = vmatprep.subr.bf16.mxu0 %v10461_v23 }
 0x7a2   : > { %4959 = vmatpush2.bf16.msra.mxu0 %v10459_v25 }
 0x7a3   : > { %4960 = vmatprep.subr.bf16.mxu0 %v10464_v37  ;;  %v10483_v37 = vld [vmem:[%s12270_s2 + $0xa0] ss:$16 sps:$4 sm:$0xff]  }
 0x7a6   : > { %4961 = vmatpush2.bf16.msra.mxu0 %v10462_v40  ;;  %v10486_v40 = vld [vmem:[%s12270_s2 + $0x80] ss:$16 sps:$4 sm:$0xff]  }
 0x7a7   : > { %4962 = vmatprep.subr.bf16.mxu0 %v10467_v41  ;;  %v10491_v41 = vld [vmem:[%s12270_s2 + $0x64] ss:$16 sps:$4 sm:$0xff]  }
 0x7aa   : > { %4963 = vmatpush2.bf16.msra.mxu0 %v10465_v35  ;;  %v10494_v35 = vld [vmem:[%s12270_s2 + $0x44] ss:$16 sps:$4 sm:$0xff]  }
 0x7ab   : > { %4964 = vmatprep.subr.bf16.mxu0 %v10470_v36  ;;  %v10495_v36 = vld [vmem:[%s12270_s2 + $0x20] ss:$16 sps:$4 sm:$0xff]  }
 0x7ae   : > { %4965 = vmatpush2.bf16.msra.mxu0 %v10468_v45  ;;  %v10498_v45 = vld [vmem:[%s12270_s2] ss:$16 sps:$4 sm:$0xff]  }
 0x7af   : > { %4966 = vmatprep.subr.bf16.mxu0 %v10473_v46  ;;  %v10503_v46 = vld [vmem:[%s12270_s2 + $0x1e4] ss:$16 sps:$4 sm:$0xff]  }
 0x7b2   : > { %4967 = vmatpush2.bf16.msra.mxu0 %v10471_v56 }
 0x7b3   : > { %4968 = vmatprep.subr.bf16.mxu0 %v10476_v61 }
 0x7b6   : > { %4969 = vmatpush2.bf16.msra.mxu0 %v10474_v3 }
 0x801   : > { %v4028_v24 = vpop.f32.mrf.mxu1 }
 0x803   : > { %v9617_v27 = vpop.f32.mrf.mxu1 }
 0x805   : > { %v4031_v28 = vpop.f32.mrf.mxu1 }
 0x807   : > { %v9618_v19 = vpop.f32.mrf.mxu1 }
 0x809   : > { %v4139_v26 = vpop.f32.mrf.mxu1 }
 0x80b   : > { %v9629_v29 = vpop.f32.mrf.mxu1 }
 0x80d   : > { %v4142_v30 = vpop.f32.mrf.mxu1 }
 0x80f   : > { %v9630_v21 = vpop.f32.mrf.mxu1 }
 0x811   : > { %v4250_v31 = vpop.f32.mrf.mxu1 }
 0x813   : > { %v9641_v32 = vpop.f32.mrf.mxu1 }
 0x814   : > { %v10482_v32 = vld [vmem:[%s12270_s2 + $0xc4] ss:$16 sps:$4 sm:$0xff]  }
 0x815   : > { %v4253_v33 = vpop.f32.mrf.mxu1 }
 0x816   : > { %v10480_v33 = vld [vmem:[%s12270_s2 + $0xc0] ss:$16 sps:$4 sm:$0xff]  }
 0x817   : > { %v9642_v34 = vpop.f32.mrf.mxu1 }
 0x818   : > { %v10485_v34 = vld [vmem:[%s12270_s2 + $0xa4] ss:$16 sps:$4 sm:$0xff]  }
 0x83c   : > { %v4358_v38 = vpop.f32.mrf.mxu1 }
 0x83e   : > { %v9653_v42 = vpop.f32.mrf.mxu1 }
 0x83f   : > { %v10489_v42 = vld [vmem:[%s12270_s2 + $0x60] ss:$16 sps:$4 sm:$0xff]  }
 0x840   : > { %v4361_v43 = vpop.f32.mrf.mxu1 }
 0x841   : > { %v10492_v43 = vld [vmem:[%s12270_s2 + $0x40] ss:$16 sps:$4 sm:$0xff]  }
 0x842   : > { %v9654_v44 = vpop.f32.mrf.mxu1 }
 0x843   : > { %v10497_v44 = vld [vmem:[%s12270_s2 + $0x24] ss:$16 sps:$4 sm:$0xff]  }
 0x844   : > { %v4472_v63 = vpop.f32.mrf.mxu1 }
 0x845   : > { %v10013_v50 = vpack.i.bf16 %v4028_v24, %v4472_v63  ;;  %v10500_v63 = vld [vmem:[%s12270_s2 + $0x4] ss:$16 sps:$4 sm:$0xff]  }
 0x846   : > { %v9665_v52 = vpop.f32.mrf.mxu1 }
 0x847   : > { %10014 = vrot.lane.b32.xlu0 %v10013_v50, %s11539_s18  ;;  %v10501_v50 = vld [vmem:[%s12270_s2 + $0x1e0] ss:$16 sps:$4 sm:$0xff]   ;;  %v4766_v52 = vld [vmem:[%s13598_s29] sm:$0x3] }
 0x848   : > { %v4475_v58 = vpop.f32.mrf.mxu1  ;;  %v4771_v56 = vrot.slane %v4766_v52, %v12437_v48 }
 0x849   : > { %v4775_v58 = vrot.slane %v4766_v52, %v12443_v53  ;;  %v10578_v52 = vld [vmem:[%s12267_s22 + $0x64] ss:$8 sps:$4 sm:$0xff]  }
 0x84a   : > { %v9666_v60 = vpop.f32.mrf.mxu1 }
 0x84c   : > { %v4583_v62 = vpop.f32.mrf.mxu1 }
 0x84d   : > { %v10018_v6 = vpack.i.bf16 %v4139_v26, %v4583_v62 }
 0x84e   : > { %v9677_v57 = vpop.f32.mrf.mxu1 }
 0x84f   : > { %10019 = vrot.lane.b32.xlu1 %v10018_v6, %s11537_s25  ;;  %v10875_v57 = vld [vmem:[%s12256_s9] sm:$0xff] }
 0x850   : > { %v4586_v7 = vpop.f32.mrf.mxu1 }
 0x852   : > { %v9678_v9 = vpop.f32.mrf.mxu1 }
 0x853   : > { %v10876_v9 = vld [vmem:[%s12256_s9 + $0x8] sm:$0xff] }
 0x854   : > { %v4694_v51 = vpop.f32.mrf.mxu1 }
 0x855   : > { %v10023_v10 = vpack.i.bf16 %v4250_v31, %v4694_v51  ;;  %v10479_v31 = vld [vmem:[%s12270_s2 + $0xe4] ss:$16 sps:$4 sm:$0xff]  }
 0x856   : > { %v9689_v13 = vpop.f32.mrf.mxu1  ;;  %5688 = vmatprep.subr.bf16.mxu0 %v10479_v31  ;;  %v10527_v31 = vld [vmem:[%s12272_s13 + $0x74] ss:$8 sps:$4 sm:$0xff]  }
 0x857   : > { %10024 = vrot.lane.b32.xlu0 %v10023_v10, %s11538_s27 }
 0x858   : > { %v4697_v11 = vpop.f32.mrf.mxu1 }
 0x859   : > { %v10506_v11 = vld [vmem:[%s12270_s2 + $0x1c4] ss:$16 sps:$4 sm:$0xff]  }
 0x85a   : > { %v9690_v12 = vpop.f32.mrf.mxu1 }
 0x85b   : > { %v10504_v12 = vld [vmem:[%s12270_s2 + $0x1c0] ss:$16 sps:$4 sm:$0xff]  }
 0x8b9   : > { %v10015_v17 = vpop.permute.xlu0 %10014 }
 0x8ba   : > { %v10017_v15 = vunpack.i.h.bf16 %v10015_v17  ;;  %v10016_v16 = vunpack.i.l.bf16 %v10015_v17  ;;  %v10507_v17 = vld [vmem:[%s12270_s2 + $0x1a0] ss:$16 sps:$4 sm:$0xff]  }
 0x8bc   : > { %v4724_v23 = vsel %vm3811_vm2, %v12747_v39, %v10017_v15  ;;  %v4729_v24 = vsel %vm3811_vm2, %v4358_v38, %v10016_v16  ;;  %v10477_v39 = vld [vmem:[%s12270_s2 + $0xe0] ss:$16 sps:$4 sm:$0xff]   ;;  %v10488_v38 = vld [vmem:[%s12270_s2 + $0x84] ss:$16 sps:$4 sm:$0xff]  }
 0x8bd   : > { %v10512_v15 = vld [vmem:[%s12270_s2 + $0x184] ss:$16 sps:$4 sm:$0xff]   ;;  %v10510_v16 = vld [vmem:[%s12270_s2 + $0x180] ss:$16 sps:$4 sm:$0xff]  }
 0x8c1   : > { %v10020_v14 = vpop.permute.xlu1 %10019 }
 0x8c2   : > { %v10022_v18 = vunpack.i.h.bf16 %v10020_v14  ;;  %v10021_v20 = vunpack.i.l.bf16 %v10020_v14  ;;  %v10509_v14 = vld [vmem:[%s12270_s2 + $0x1a4] ss:$16 sps:$4 sm:$0xff]  }
 0x8c4   : > { %v4726_v28 = vsel %vm4725_vm4, %v4724_v23, %v10022_v18  ;;  %v4730_v19 = vsel %vm4725_vm4, %v4729_v24, %v10021_v20  ;;  %v10515_v18 = vld [vmem:[%s12270_s2 + $0x164] ss:$16 sps:$4 sm:$0xff]   ;;  %v10513_v20 = vld [vmem:[%s12270_s2 + $0x160] ss:$16 sps:$4 sm:$0xff]  }
 0x8c5   : > { %v10518_v23 = vld [vmem:[%s12270_s2 + $0x144] ss:$16 sps:$4 sm:$0xff]  }
 0x8c6   : > { %v5279_v24 = vld [vmem:[%s12250_s23 + $0x18] sm:$0xff] }
 0x8c9   : > { %v10025_v22 = vpop.permute.xlu0 %10024 }
 0x8ca   : > { %v10027_v25 = vunpack.i.h.bf16 %v10025_v22  ;;  %v10026_v27 = vunpack.i.l.bf16 %v10025_v22  ;;  %v5277_v22 = vld [vmem:[%s12250_s23 + $0x8] sm:$0xff] }
 0x8cc   : > { %v4728_v26 = vsel %vm4727_vm5, %v4726_v28, %v10027_v25  ;;  %v4731_v29 = vsel %vm4727_vm5, %v4730_v19, %v10026_v27  ;;  %v11540_v25 = vmov 0   ;;  %v12839_v27 = vpack.c.bf16 %v5279_v24, %v5277_v22  ;;  %v10516_v28 = vld [vmem:[%s12270_s2 + $0x140] ss:$16 sps:$4 sm:$0xff]   ;;  %v10521_v19 = vld [vmem:[%s12270_s2 + $0x124] ss:$16 sps:$4 sm:$0xff]  }
 0x8cd   : > { %v4732_v30 = vpack.c.bf16 %v4728_v26, %v4728_v26  ;;  %v4733_v21 = vpack.c.bf16 %v4731_v29, %v4731_v29  ;;  %10028 = vset.pattern.permute.xlu0 %v11540_v25  ;;  %10029 = vset.pattern.permute.xlu1 %v11540_v25  ;;  %v10519_v26 = vld [vmem:[%s12270_s2 + $0x120] ss:$16 sps:$4 sm:$0xff]   ;;  %v10524_v29 = vld [vmem:[%s12270_s2 + $0x104] ss:$16 sps:$4 sm:$0xff]  }
 0x8ce   : > { %v10593_v22 = vld [vmem:[%s12267_s22 + $0x14] ss:$8 sps:$4 sm:$0xff]   ;;  %v10591_v24 = vld [vmem:[%s12267_s22 + $0x10] ss:$8 sps:$4 sm:$0xff]  }
 0x8cf   : > { %4970 = vmatprep.mubr.bf16.mxu0 %v4733_v21  ;;  %v5276_v21 = vld [vmem:[%s12250_s23] sm:$0xff] }
 0x8d0   : > { %4971 = vmatmul.mubr.bf16.vlgmr.msra.gmra.mxu0 %v4732_v30  ;;  %v10522_v30 = vld [vmem:[%s12270_s2 + $0x100] ss:$16 sps:$4 sm:$0xff]  }
 0x8d1   : > { %5689 = vmatpush1.bf16.msra.mxu0 %v10477_v39  ;;  %5720 = vmatprep.mubr.bf16.mxu0 %v12839_v27  ;;  %v5278_v39 = vld [vmem:[%s12250_s23 + $0x10] sm:$0xff] }
 0x8d2   : > { %5690 = vmatprep.subr.bf16.mxu0 %v10482_v32  ;;  %v12851_v32 = vpack.c.bf16 %v5278_v39, %v5276_v21  ;;  %v10599_v21 = vld [vmem:[%s12267_s22 + $0xf4] ss:$8 sps:$4 sm:$0xff]   ;;  %v10563_v39 = vld [vmem:[%s12272_s13 + $0xb4] ss:$8 sps:$4 sm:$0xff]  }
 0x8d5   : > { %5691 = vmatpush1.bf16.msra.mxu0 %v10480_v33  ;;  %v10525_v33 = vld [vmem:[%s12272_s13 + $0x70] ss:$8 sps:$4 sm:$0xff]  }
 0x8d6   : > { %5692 = vmatprep.subr.bf16.mxu0 %v10485_v34  ;;  %v10528_v34 = vld [vmem:[%s12272_s13 + $0x60] ss:$8 sps:$4 sm:$0xff]  }
 0x8d9   : > { %5693 = vmatpush1.bf16.msra.mxu0 %v10483_v37  ;;  %v10530_v37 = vld [vmem:[%s12272_s13 + $0x64] ss:$8 sps:$4 sm:$0xff]  }
 0x8da   : > { %5694 = vmatprep.subr.bf16.mxu0 %v10488_v38  ;;  %v2328_v38 = vrot.slane %v12234_v0, %v12437_v48 }
 0x8dd   : > { %5695 = vmatpush1.bf16.msra.mxu0 %v10486_v40  ;;  %v10533_v40 = vld [vmem:[%s12272_s13 + $0x54] ss:$8 sps:$4 sm:$0xff]  }
 0x8de   : > { %5696 = vmatprep.subr.bf16.mxu0 %v10491_v41  ;;  %v10531_v41 = vld [vmem:[%s12272_s13 + $0x50] ss:$8 sps:$4 sm:$0xff]  }
 0x8e1   : > { %5697 = vmatpush1.bf16.msra.mxu0 %v10489_v42  ;;  %v10536_v42 = vld [vmem:[%s12272_s13 + $0x44] ss:$8 sps:$4 sm:$0xff]  }
 0x8e2   : > { %5698 = vmatprep.subr.bf16.mxu0 %v10494_v35  ;;  %v10534_v35 = vld [vmem:[%s12272_s13 + $0x40] ss:$8 sps:$4 sm:$0xff]  }
 0x8e5   : > { %5699 = vmatpush1.bf16.msra.mxu0 %v10492_v43  ;;  %v10539_v43 = vld [vmem:[%s12272_s13 + $0x34] ss:$8 sps:$4 sm:$0xff]  }
 0x8e6   : > { %5700 = vmatprep.subr.bf16.mxu0 %v10497_v44  ;;  %v5775_v44 = vld [vmem:[%s12253_s15 + $0x8] sm:$0xff] }
 0x8e9   : > { %5701 = vmatpush1.bf16.msra.mxu0 %v10495_v36  ;;  %v5777_v36 = vld [vmem:[%s12253_s15 + $0x18] sm:$0xff] }
 0x8ea   : > { %5702 = vmatprep.subr.bf16.mxu0 %v10500_v63  ;;  %v5779_v63 = vpack.c.bf16 %v5777_v36, %v5775_v44  ;;  %v5774_v44 = vld [vmem:[%s12253_s15] sm:$0xff]  ;;  %v5776_v36 = vld [vmem:[%s12253_s15 + $0x10] sm:$0xff] }
 0x8ed   : > { %5703 = vmatpush1.bf16.msra.mxu0 %v10498_v45  ;;  %v10573_v45 = vld [vmem:[%s12267_s22 + $0x70] ss:$8 sps:$4 sm:$0xff]  }
 0x8ee   : > { %5704 = vmatprep.subr.bf16.mxu0 %v10503_v46  ;;  %v10575_v46 = vld [vmem:[%s12267_s22 + $0x74] ss:$8 sps:$4 sm:$0xff]  }
 0x8ef   : > { %5233 = vmatprep.subr.bf16.mxu1 %v10575_v46 }
 0x8f0   : > { %5234 = vmatpush1.bf16.msra.mxu1 %v10573_v45 }
 0x8f1   : > { %5705 = vmatpush2.bf16.msra.mxu0 %v10501_v50  ;;  %v10537_v50 = vld [vmem:[%s12272_s13 + $0x30] ss:$8 sps:$4 sm:$0xff]   ;;  %5235 = vmatprep.subr.bf16.mxu1 %v10578_v52 }
 0x8f2   : > { %5706 = vmatprep.subr.bf16.mxu0 %v10506_v11  ;;  %v10587_v11 = vld [vmem:[%s12267_s22 + $0x34] ss:$8 sps:$4 sm:$0xff]  }
 0x8f5   : > { %5707 = vmatpush2.bf16.msra.mxu0 %v10504_v12  ;;  %v10551_v12 = vld [vmem:[%s12272_s13 + $0xf4] ss:$8 sps:$4 sm:$0xff]  }
 0x8f6   : > { %5708 = vmatprep.subr.bf16.mxu0 %v10509_v14  ;;  %v10549_v14 = vld [vmem:[%s12272_s13 + $0xf0] ss:$8 sps:$4 sm:$0xff]  }
 0x8f9   : > { %5709 = vmatpush2.bf16.msra.mxu0 %v10507_v17  ;;  %v10585_v17 = vld [vmem:[%s12267_s22 + $0x30] ss:$8 sps:$4 sm:$0xff]  }
 0x8fa   : > { %5710 = vmatprep.subr.bf16.mxu0 %v10512_v15  ;;  %v10590_v15 = vld [vmem:[%s12267_s22 + $0x24] ss:$8 sps:$4 sm:$0xff]  }
 0x8fd   : > { %5711 = vmatpush2.bf16.msra.mxu0 %v10510_v16  ;;  %v10554_v16 = vld [vmem:[%s12272_s13 + $0xe4] ss:$8 sps:$4 sm:$0xff]  }
 0x8fe   : > { %5712 = vmatprep.subr.bf16.mxu0 %v10515_v18  ;;  %v10588_v18 = vld [vmem:[%s12267_s22 + $0x20] ss:$8 sps:$4 sm:$0xff]  }
 0x901   : > { %5713 = vmatpush2.bf16.msra.mxu0 %v10513_v20  ;;  %v10552_v20 = vld [vmem:[%s12272_s13 + $0xe0] ss:$8 sps:$4 sm:$0xff]  }
 0x902   : > { %5714 = vmatprep.subr.bf16.mxu0 %v10518_v23  ;;  %v10557_v23 = vld [vmem:[%s12272_s13 + $0xd4] ss:$8 sps:$4 sm:$0xff]  }
 0x905   : > { %5715 = vmatpush2.bf16.msra.mxu0 %v10516_v28  ;;  %v10555_v28 = vld [vmem:[%s12272_s13 + $0xd0] ss:$8 sps:$4 sm:$0xff]  }
 0x906   : > { %5716 = vmatprep.subr.bf16.mxu0 %v10521_v19  ;;  %v10596_v19 = vld [vmem:[%s12267_s22 + $0x4] ss:$8 sps:$4 sm:$0xff]  }
 0x909   : > { %5717 = vmatpush2.bf16.msra.mxu0 %v10519_v26  ;;  %v10560_v26 = vld [vmem:[%s12272_s13 + $0xc4] ss:$8 sps:$4 sm:$0xff]  }
 0x90a   : > { %5718 = vmatprep.subr.bf16.mxu0 %v10524_v29  ;;  %v10594_v29 = vld [vmem:[%s12267_s22] ss:$8 sps:$4 sm:$0xff]  }
 0x90d   : > { %5719 = vmatpush2.bf16.msra.mxu0 %v10522_v30  ;;  %v10558_v30 = vld [vmem:[%s12272_s13 + $0xc0] ss:$8 sps:$4 sm:$0xff]  }
 0x90e   : > { %5984 = vmatprep.subr.bf16.mxu0 %v10527_v31  ;;  %v10597_v31 = vld [vmem:[%s12267_s22 + $0xf0] ss:$8 sps:$4 sm:$0xff]  }
 0x910   : > { %5721 = vmatmul.mubr.bf16.vlgmr.msra.gmra.mxu0 %v12851_v32 }
 0x911   : > { %5985 = vmatpush1.bf16.msra.mxu0 %v10525_v33  ;;  %6016 = vmatprep.mubr.bf16.mxu0 %v5779_v63  ;;  %v10561_v33 = vld [vmem:[%s12272_s13 + $0xb0] ss:$8 sps:$4 sm:$0xff]   ;;  %v5778_v63 = vpack.c.bf16 %v5776_v36, %v5774_v44 }
 0x912   : > { %5986 = vmatprep.subr.bf16.mxu0 %v10530_v37  ;;  %v10566_v37 = vld [vmem:[%s12272_s13 + $0xa4] ss:$8 sps:$4 sm:$0xff]  }
 0x915   : > { %5987 = vmatpush1.bf16.msra.mxu0 %v10528_v34  ;;  %v10602_v34 = vld [vmem:[%s12267_s22 + $0xe4] ss:$8 sps:$4 sm:$0xff]  }
 0x916   : > { %5988 = vmatprep.subr.bf16.mxu0 %v10533_v40  ;;  %v10564_v40 = vld [vmem:[%s12272_s13 + $0xa0] ss:$8 sps:$4 sm:$0xff]  }
 0x919   : > { %5989 = vmatpush1.bf16.msra.mxu0 %v10531_v41  ;;  %v10569_v41 = vld [vmem:[%s12272_s13 + $0x94] ss:$8 sps:$4 sm:$0xff]  }
 0x91a   : > { %5990 = vmatprep.subr.bf16.mxu0 %v10536_v42  ;;  %v10567_v42 = vld [vmem:[%s12272_s13 + $0x90] ss:$8 sps:$4 sm:$0xff]  }
 0x91d   : > { %5991 = vmatpush1.bf16.msra.mxu0 %v10534_v35  ;;  %v10572_v35 = vld [vmem:[%s12272_s13 + $0x84] ss:$8 sps:$4 sm:$0xff]  }
 0x91e   : > { %5992 = vmatprep.subr.bf16.mxu0 %v10539_v43  ;;  %v10570_v43 = vld [vmem:[%s12272_s13 + $0x80] ss:$8 sps:$4 sm:$0xff]  }
 0x921   : > { %5993 = vmatpush1.bf16.msra.mxu0 %v10537_v50 }
 0x990   : > { %v4972_v60 = vpop.f32.mrf.mxu0 }
 0x991   : > { %v4973_v61 = vadd.f32 %v4972_v60, %v4771_v56  ;;  %v10542_v56 = vld [vmem:[%s12272_s13 + $0x24] ss:$8 sps:$4 sm:$0xff]   ;;  %v10540_v60 = vld [vmem:[%s12272_s13 + $0x20] ss:$8 sps:$4 sm:$0xff]  }
 0x992   : > { %v4974_v62 = vpop.f32.mrf.mxu0  ;;  %5994 = vmatprep.subr.bf16.mxu0 %v10542_v56 }
 0x993   : > { %v4975_v3 = vadd.f32 %v4974_v62, %v4775_v58  ;;  %v12820_v7 = vadd.f32 %v10875_v57, %v4973_v61  ;;  %v10576_v58 = vld [vmem:[%s12267_s22 + $0x60] ss:$8 sps:$4 sm:$0xff]   ;;  %v10581_v61 = vld [vmem:[%s12267_s22 + $0x54] ss:$8 sps:$4 sm:$0xff]   ;;  %5995 = vmatpush1.bf16.msra.mxu0 %v10540_v60  ;;  %v10584_v57 = vld [vmem:[%s12267_s22 + $0x44] ss:$8 sps:$4 sm:$0xff]  }
 0x994   : > { %v4976_v6 = vpop.f32.mrf.mxu0  ;;  %v10545_v62 = vld [vmem:[%s12272_s13 + $0x14] ss:$8 sps:$4 sm:$0xff]   ;;  %5236 = vmatpush1.bf16.msra.mxu1 %v10576_v58 }
 0x995   : > { %v12823_v51 = vadd.f32 %v10876_v9, %v4975_v3  ;;  %v10579_v3 = vld [vmem:[%s12267_s22 + $0x50] ss:$8 sps:$4 sm:$0xff]   ;;  %v10543_v6 = vld [vmem:[%s12272_s13 + $0x10] ss:$8 sps:$4 sm:$0xff]   ;;  %5237 = vmatprep.subr.bf16.mxu1 %v10581_v61  ;;  %5996 = vmatprep.subr.bf16.mxu0 %v10545_v62 }
 0x996   : > { %v4977_v10 = vpop.f32.mrf.mxu0  ;;  %v10548_v9 = vld [vmem:[%s12272_s13 + $0x4] ss:$8 sps:$4 sm:$0xff]   ;;  %v10605_v61 = vld [vmem:[%s12267_s22 + $0xd4] ss:$8 sps:$4 sm:$0xff]  }
 0x997   : > { %v4984_v13 = vadd.f32 %v12823_v51, %v12820_v7  ;;  %v10582_v10 = vld [vmem:[%s12267_s22 + $0x40] ss:$8 sps:$4 sm:$0xff]   ;;  %5997 = vmatpush1.bf16.msra.mxu0 %v10543_v6  ;;  %v10603_v62 = vld [vmem:[%s12267_s22 + $0xd0] ss:$8 sps:$4 sm:$0xff]   ;;  %v10608_v6 = vld [vmem:[%s12267_s22 + $0xc4] ss:$8 sps:$4 sm:$0xff]  }
 0x998   : > { %5238 = vmatpush1.bf16.msra.mxu1 %v10579_v3  ;;  %5998 = vmatprep.subr.bf16.mxu0 %v10548_v9  ;;  %v2312_v3 = vsub.f32 1.0, %v12234_v0  ;;  %v10611_v9 = vld [vmem:[%s12267_s22 + $0xb4] ss:$8 sps:$4 sm:$0xff]  }
 0x999   : > { %4985 = vadd.xlane.f32.xlu1 %v4984_v13  ;;  %v10546_v13 = vld [vmem:[%s12272_s13] ss:$8 sps:$4 sm:$0xff]   ;;  %5239 = vmatprep.subr.bf16.mxu1 %v10584_v57  ;;  %v10609_v57 = vld [vmem:[%s12267_s22 + $0xb0] ss:$8 sps:$4 sm:$0xff]   ;;  %v10617_v0 = vld [vmem:[%s12267_s22 + $0x94] ss:$8 sps:$4 sm:$0xff]  }
 0x99b   : > { %5999 = vmatpush1.bf16.msra.mxu0 %v10546_v13  ;;  %v10612_v13 = vld [vmem:[%s12267_s22 + $0xa0] ss:$8 sps:$4 sm:$0xff]  }
 0x99c   : > { %5240 = vmatpush1.bf16.msra.mxu1 %v10582_v10  ;;  %6000 = vmatprep.subr.bf16.mxu0 %v10551_v12  ;;  %v10614_v10 = vld [vmem:[%s12267_s22 + $0xa4] ss:$8 sps:$4 sm:$0xff]  }
 0x99d   : > { %5241 = vmatprep.subr.bf16.mxu1 %v10587_v11  ;;  %v10615_v11 = vld [vmem:[%s12267_s22 + $0x90] ss:$8 sps:$4 sm:$0xff]   ;;  %v10620_v12 = vld [vmem:[%s12267_s22 + $0x84] ss:$8 sps:$4 sm:$0xff]  }
 0x99f   : > { %6001 = vmatpush2.bf16.msra.mxu0 %v10549_v14  ;;  %v10623_v14 = vld [vmem:[%s12270_s2 + $0xec] ss:$16 sps:$4 sm:$0xff]  }
 0x9a0   : > { %5242 = vmatpush1.bf16.msra.mxu1 %v10585_v17  ;;  %6002 = vmatprep.subr.bf16.mxu0 %v10554_v16  ;;  %v10618_v17 = vld [vmem:[%s12267_s22 + $0x80] ss:$8 sps:$4 sm:$0xff]  }
 0x9a1   : > { %5243 = vmatprep.subr.bf16.mxu1 %v10590_v15 }
 0x9a3   : > { %6003 = vmatpush2.bf16.msra.mxu0 %v10552_v20 }
 0x9a4   : > { %5244 = vmatpush1.bf16.msra.mxu1 %v10588_v18  ;;  %6004 = vmatprep.subr.bf16.mxu0 %v10557_v23 }
 0x9a5   : > { %5245 = vmatprep.subr.bf16.mxu1 %v10593_v22 }
 0x9a7   : > { %6005 = vmatpush2.bf16.msra.mxu0 %v10555_v28 }
 0x9a8   : > { %5246 = vmatpush1.bf16.msra.mxu1 %v10591_v24  ;;  %6006 = vmatprep.subr.bf16.mxu0 %v10560_v26  ;;  %v12940_v24 = vld [vmem:[%s12228_s1] sm:$0xf] }
 0x9a9   : > { %5247 = vmatprep.subr.bf16.mxu1 %v10596_v19  ;;  %v12944_v19 = vld [vmem:[%s1475_s17] sm:$0x3]  ;;  %v5355_v26 = vrot.slane %v12940_v24, %v12443_v53 }
 0x9aa   : > { %2330 = vperm.xlu1 %10029, %v2328_v38   ;;  %v10600_v38 = vld [vmem:[%s12267_s22 + $0xe0] ss:$8 sps:$4 sm:$0xff]  }
 0x9ab   : > { %6007 = vmatpush2.bf16.msra.mxu0 %v10558_v30  ;;  %v5821_v30 = vrot.slane %v12944_v19, %v12443_v53 }
 0x9ac   : > { %5248 = vmatpush1.bf16.msra.mxu1 %v10594_v29  ;;  %6008 = vmatprep.subr.bf16.mxu0 %v10563_v39 }
 0x9ad   : > { %5249 = vmatprep.subr.bf16.mxu1 %v10599_v21  ;;  %v4979_v21 = vld [vmem:[%s12232_s14] ss:$8 sm:$0x3] }
 0x9af   : > { %6009 = vmatpush2.bf16.msra.mxu0 %v10561_v33 }
 0x9b0   : > { %5250 = vmatpush2.bf16.msra.mxu1 %v10597_v31  ;;  %6010 = vmatprep.subr.bf16.mxu0 %v10566_v37  ;;  %v9216_v31 = vld [vmem:[%s12232_s14 + $0x1] ss:$8 sm:$0x3] }
 0x9b1   : > { %5251 = vmatprep.subr.bf16.mxu1 %v10602_v34 }
 0x9b3   : > { %6011 = vmatpush2.bf16.msra.mxu0 %v10564_v40  ;;  %v5005_v40 = vrot.slane %v4979_v21, %v12437_v48 }
 0x9b4   : > { %5252 = vmatpush2.bf16.msra.mxu1 %v10600_v38  ;;  %6012 = vmatprep.subr.bf16.mxu0 %v10569_v41  ;;  %v5009_v41 = vrot.slane %v4979_v21, %v12443_v53  ;;  %v10645_v21 = vld [vmem:[%s12270_s2 + $0x1e8] ss:$16 sps:$4 sm:$0xff]  }
 0x9b5   : > { %5253 = vmatprep.subr.bf16.mxu1 %v10605_v61 }
 0x9b7   : > { %6013 = vmatpush2.bf16.msra.mxu0 %v10567_v42 }
 0x9b8   : > { %6014 = vmatprep.subr.bf16.mxu0 %v10572_v35  ;;  %5254 = vmatpush2.bf16.msra.mxu1 %v10603_v62 }
 0x9b9   : > { %5255 = vmatprep.subr.bf16.mxu1 %v10608_v6 }
 0x9bb   : > { %6015 = vmatpush2.bf16.msra.mxu0 %v10570_v43  ;;  %v5018_v43 = vrot.slane %v9216_v31, %v12437_v48 }
 0x9bc   : > { %9691 = vmatprep.subr.bf16.mxu0 %v11535_v55 }
 0x9be   : > { %6017 = vmatmul.mubr.bf16.vlgmr.msra.gmra.mxu0 %v5778_v63  ;;  %v5022_v63 = vrot.slane %v9216_v31, %v12443_v53  ;;  %v10648_v31 = vld [vmem:[%s12270_s2 + $0x1c8] ss:$16 sps:$4 sm:$0xff]  }
 0x9bf   : > { %9693 = vmatprep.mubr.msk.bf16.mxu0 %vm11536_vm1, %v11535_v55 }
 0x9d0   : > { %v12935_v18 = vpop.f32.mrf.mxu0 }
 0x9d2   : > { %v5724_v22 = vpop.f32.mrf.mxu0 }
 0x9d3   : > { %v5725_v33 = vadd.f32 %v5724_v22, %v5355_v26  ;;  %v10639_v22 = vld [vmem:[%s12270_s2 + $0x28] ss:$16 sps:$4 sm:$0xff]  }
 0x9d4   : > { %v12937_v23 = vpop.f32.mrf.mxu0 }
 0x9d6   : > { %v5728_v28 = vpop.f32.mrf.mxu0 }
 0xa22   : > { %v4986_v45 = vpop.xlane.xlu1 %4985 }
 0xa23   : > { %v4988_v46 = vmul.f32 0.00390625, %v4986_v45 }
 0xa25   : > { %v12915_v50 = vsub.f32 %v12820_v7, %v4988_v46  ;;  %v4990_v52 = vsub.f32 %v12823_v51, %v4988_v46  ;;  %v10606_v7 = vld [vmem:[%s12267_s22 + $0xc0] ss:$8 sps:$4 sm:$0xff]   ;;  %v2317_v51 = vrot.slane %v2312_v3, %v12437_v48 }
 0xa26   : > { %5256 = vmatpush2.bf16.msra.mxu1 %v10606_v7  ;;  %v12954_v37 = vpop.permute.xlu1 %2330 }
 0xa27   : > { %v4991_v56 = vmul.f32 %v12915_v50, %v12915_v50  ;;  %v4992_v58 = vmul.f32 %v4990_v52, %v4990_v52  ;;  %5257 = vmatprep.subr.bf16.mxu1 %v10611_v9  ;;  %v10626_v9 = vld [vmem:[%s12270_s2 + $0xcc] ss:$16 sps:$4 sm:$0xff]  }
 0xa29   : > { %v4993_v60 = vadd.f32 %v4992_v58, %v4991_v56  ;;  %v5729_v56 = vadd.f32 %v5728_v28, %v5355_v26  ;;  %v10644_v28 = vld [vmem:[%s12270_s2 + $0xc] ss:$16 sps:$4 sm:$0xff]   ;;  %v10642_v26 = vld [vmem:[%s12270_s2 + $0x8] ss:$16 sps:$4 sm:$0xff]  }
 0xa2a   : > { %5258 = vmatpush2.bf16.msra.mxu1 %v10609_v57 }
 0xa2b   : > { %4994 = vadd.xlane.f32.xlu0 %v4993_v60  ;;  %5259 = vmatprep.subr.bf16.mxu1 %v10614_v10 }
 0xa2e   : > { %5260 = vmatpush2.bf16.msra.mxu1 %v10612_v13  ;;  %v10624_v13 = vld [vmem:[%s12270_s2 + $0xc8] ss:$16 sps:$4 sm:$0xff]  }
 0xa2f   : > { %5261 = vmatprep.subr.bf16.mxu1 %v10617_v0  ;;  %v10629_v0 = vld [vmem:[%s12270_s2 + $0xac] ss:$16 sps:$4 sm:$0xff]  }
 0xa32   : > { %5262 = vmatpush2.bf16.msra.mxu1 %v10615_v11  ;;  %v10627_v11 = vld [vmem:[%s12270_s2 + $0xa8] ss:$16 sps:$4 sm:$0xff]  }
 0xa33   : > { %5263 = vmatprep.subr.bf16.mxu1 %v10620_v12  ;;  %v10632_v12 = vld [vmem:[%s12270_s2 + $0x8c] ss:$16 sps:$4 sm:$0xff]  }
 0xa36   : > { %5264 = vmatpush2.bf16.msra.mxu1 %v10618_v17  ;;  %v10630_v17 = vld [vmem:[%s12270_s2 + $0x88] ss:$16 sps:$4 sm:$0xff]  }
 0xa37   : > { %5731 = vmatprep.subr.bf16.mxu1 %v10623_v14  ;;  %v10635_v14 = vld [vmem:[%s12270_s2 + $0x6c] ss:$16 sps:$4 sm:$0xff]  }
 0xa41   : > { %2319 = vperm.xlu0 %10028, %v2317_v51   ;;  %v10621_v51 = vld [vmem:[%s12270_s2 + $0xe8] ss:$16 sps:$4 sm:$0xff]  }
 0xa7e   : > { %v12948_v29 = vpop.f32.mrf.mxu0 }
 0xa80   : > { %v6020_v39 = vpop.f32.mrf.mxu0 }
 0xa81   : > { %v6021_v34 = vadd.f32 %v6020_v39, %v5821_v30  ;;  %v10650_v39 = vld [vmem:[%s12270_s2 + $0x1cc] ss:$16 sps:$4 sm:$0xff]  }
 0xa82   : > { %v12956_v38 = vpop.f32.mrf.mxu0 }
 0xa83   : > { %v6028_v42 = vmul.f32 %v6021_v34, %v12954_v37 }
 0xa84   : > { %v6024_v44 = vpop.f32.mrf.mxu0 }
 0xa85   : > { %v6032_v46 = vadd.f32 %v6028_v42, %v5725_v33  ;;  %v6025_v58 = vadd.f32 %v6024_v44, %v5821_v30  ;;  %v10647_v30 = vld [vmem:[%s12270_s2 + $0x1ec] ss:$16 sps:$4 sm:$0xff]   ;;  %v10657_v44 = vld [vmem:[%s12270_s2 + $0x168] ss:$16 sps:$4 sm:$0xff]  }
 0xa86   : > { %v10653_v33 = vld [vmem:[%s12270_s2 + $0x1ac] ss:$16 sps:$4 sm:$0xff]  }
 0xa87   : > { %v6030_v62 = vmul.f32 %v6025_v58, %v12954_v37  ;;  %v12965_v3 = vpack.c.bf16 %v6025_v58, %v6021_v34  ;;  %v10651_v34 = vld [vmem:[%s12270_s2 + $0x1a8] ss:$16 sps:$4 sm:$0xff]   ;;  %v10659_v42 = vld [vmem:[%s12270_s2 + $0x16c] ss:$16 sps:$4 sm:$0xff]  }
 0xa89   : > { %v6034_v6 = vadd.f32 %v6030_v62, %v5729_v56  ;;  %v10665_v56 = vld [vmem:[%s12270_s2 + $0x12c] ss:$16 sps:$4 sm:$0xff]  }
 0xa8b   : > { %v12977_v10 = vpack.c.bf16 %v6034_v6, %v6032_v46  ;;  %v10660_v46 = vld [vmem:[%s12270_s2 + $0x148] ss:$16 sps:$4 sm:$0xff]  }
 0xa8c   : > { %v2336_v6 = vld [vmem:[%s13599_s8 + $0x8] sm:$0xff] }
 0xab4   : > { %v4995_v15 = vpop.xlane.xlu0 %4994 }
 0xab5   : > { %v4996_v16 = vmul.f32 0.00390625, %v4995_v15  ;;  %v10633_v15 = vld [vmem:[%s12270_s2 + $0x68] ss:$16 sps:$4 sm:$0xff]  }
 0xab7   : > { %v4997_v20 = vadd.f32 1e-05, %v4996_v16  ;;  %v10636_v16 = vld [vmem:[%s12270_s2 + $0x48] ss:$16 sps:$4 sm:$0xff]  }
 0xab9   : > { %10837 = vrsqrt.f32 %v4997_v20  ;;  %v10641_v20 = vld [vmem:[%s12270_s2 + $0x2c] ss:$16 sps:$4 sm:$0xff]  }
 0xac6   : > { %v10838_v35 = vpop.eup %10837 }
 0xac7   : > { %v5000_v36 = vmul.f32 %v10838_v35, %v4990_v52  ;;  %v4999_v45 = vmul.f32 %v10838_v35, %v12915_v50  ;;  %v13002_v35 = vld [vmem:[#allocation4] sm:$0x3] }
 0xac9   : > { %v5013_v60 = vmul.f32 %v5009_v41, %v5000_v36  ;;  %v5012_v61 = vmul.f32 %v5005_v40, %v4999_v45  ;;  %v10656_v40 = vld [vmem:[%s12270_s2 + $0x18c] ss:$16 sps:$4 sm:$0xff]   ;;  %v10654_v41 = vld [vmem:[%s12270_s2 + $0x188] ss:$16 sps:$4 sm:$0xff]  }
 0xaca   : > { %v10662_v36 = vld [vmem:[%s12270_s2 + $0x14c] ss:$16 sps:$4 sm:$0xff]  }
 0xacb   : > { %v12967_v7 = vadd.f32 %v5022_v63, %v5013_v60  ;;  %v12969_v52 = vadd.f32 %v5018_v43, %v5012_v61  ;;  %v2108_v43 = vrot.slane %v13002_v35, %v12443_v53  ;;  %v13008_v63 = vpop.permute.xlu0 %2319  ;;  %v10663_v60 = vld [vmem:[%s12270_s2 + $0x128] ss:$16 sps:$4 sm:$0xff]   ;;  %v10668_v61 = vld [vmem:[%s12270_s2 + $0x10c] ss:$16 sps:$4 sm:$0xff]  }
 0xacd   : > { %v5028_v50 = vpack.c.bf16 %v12967_v7, %v12967_v7  ;;  %v5027_v57 = vpack.c.bf16 %v12969_v52, %v12969_v52  ;;  %v2308_v45 = vadd.f32 %v12575_v5, %v2108_v43  ;;  %v10671_v5 = vld [vmem:[%s12275_s16 + $0x74] ss:$8 sps:$4 sm:$0xff]  }
 0xace   : > { %v10707_v43 = vld [vmem:[%s12275_s16 + $0xb4] ss:$8 sps:$4 sm:$0xff]  }
 0xacf   : > { %5265 = vmatprep.mubr.bf16.mxu1 %v5028_v50  ;;  %v2323_v58 = vmul.f32 %v13008_v63, %v2308_v45  ;;  %v10666_v50 = vld [vmem:[%s12270_s2 + $0x108] ss:$16 sps:$4 sm:$0xff]   ;;  %v10705_v45 = vld [vmem:[%s12275_s16 + $0xb0] ss:$8 sps:$4 sm:$0xff]  }
 0xad0   : > { %5266 = vmatmul.mubr.bf16.vlgmr.msra.gmra.mxu1 %v5027_v57  ;;  %v10669_v57 = vld [vmem:[%s12275_s16 + $0x70] ss:$8 sps:$4 sm:$0xff]  }
 0xad1   : > { %5732 = vmatpush1.bf16.msra.mxu1 %v10621_v51  ;;  %5763 = vmatprep.mubr.bf16.mxu1 %v12839_v27  ;;  %v10638_v27 = vld [vmem:[%s12270_s2 + $0x4c] ss:$16 sps:$4 sm:$0xff]   ;;  %v2334_v62 = vadd.f32 %v12954_v37, %v2323_v58  ;;  %v10710_v58 = vld [vmem:[%s12275_s16 + $0xa4] ss:$8 sps:$4 sm:$0xff]  }
 0xad2   : > { %5733 = vmatprep.subr.bf16.mxu1 %v10626_v9  ;;  %v10674_v9 = vld [vmem:[%s12275_s16 + $0x64] ss:$8 sps:$4 sm:$0xff]  }
 0xad3   : > { %v2338_v51 = vmul.f32 %v2336_v6, %v2334_v62 }
 0xad5   : > { %5734 = vmatpush1.bf16.msra.mxu1 %v10624_v13  ;;  %v6036_v13 = vpack.c.bf16 %v2338_v51, %v2338_v51 }
 0xad6   : > { %5735 = vmatprep.subr.bf16.mxu1 %v10629_v0  ;;  %v10672_v0 = vld [vmem:[%s12275_s16 + $0x60] ss:$8 sps:$4 sm:$0xff]  }
 0xad9   : > { %5736 = vmatpush1.bf16.msra.mxu1 %v10627_v11  ;;  %v10677_v11 = vld [vmem:[%s12275_s16 + $0x54] ss:$8 sps:$4 sm:$0xff]  }
 0xada   : > { %5737 = vmatprep.subr.bf16.mxu1 %v10632_v12  ;;  %v10675_v12 = vld [vmem:[%s12275_s16 + $0x50] ss:$8 sps:$4 sm:$0xff]  }
 0xadd   : > { %5738 = vmatpush1.bf16.msra.mxu1 %v10630_v17  ;;  %v10680_v17 = vld [vmem:[%s12275_s16 + $0x44] ss:$8 sps:$4 sm:$0xff]  }
 0xade   : > { %5739 = vmatprep.subr.bf16.mxu1 %v10635_v14  ;;  %v10678_v14 = vld [vmem:[%s12275_s16 + $0x40] ss:$8 sps:$4 sm:$0xff]  }
 0xae1   : > { %5740 = vmatpush1.bf16.msra.mxu1 %v10633_v15  ;;  %v10683_v15 = vld [vmem:[%s12275_s16 + $0x34] ss:$8 sps:$4 sm:$0xff]  }
 0xae2   : > { %5741 = vmatprep.subr.bf16.mxu1 %v10638_v27  ;;  %v10686_v27 = vld [vmem:[%s12275_s16 + $0x24] ss:$8 sps:$4 sm:$0xff]  }
 0xae5   : > { %5742 = vmatpush1.bf16.msra.mxu1 %v10636_v16  ;;  %v10684_v16 = vld [vmem:[%s12275_s16 + $0x20] ss:$8 sps:$4 sm:$0xff]  }
 0xae6   : > { %5743 = vmatprep.subr.bf16.mxu1 %v10641_v20  ;;  %v10689_v20 = vld [vmem:[%s12275_s16 + $0x14] ss:$8 sps:$4 sm:$0xff]  }
 0xae9   : > { %5744 = vmatpush1.bf16.msra.mxu1 %v10639_v22  ;;  %v10687_v22 = vld [vmem:[%s12275_s16 + $0x10] ss:$8 sps:$4 sm:$0xff]  }
 0xaea   : > { %5745 = vmatprep.subr.bf16.mxu1 %v10644_v28  ;;  %v10692_v28 = vld [vmem:[%s12275_s16 + $0x4] ss:$8 sps:$4 sm:$0xff]  }
 0xaed   : > { %5746 = vmatpush1.bf16.msra.mxu1 %v10642_v26  ;;  %v10690_v26 = vld [vmem:[%s12275_s16] ss:$8 sps:$4 sm:$0xff]  }
 0xaee   : > { %5747 = vmatprep.subr.bf16.mxu1 %v10647_v30  ;;  %v10695_v30 = vld [vmem:[%s12275_s16 + $0xf4] ss:$8 sps:$4 sm:$0xff]  }
 0xaf1   : > { %5748 = vmatpush2.bf16.msra.mxu1 %v10645_v21  ;;  %v10693_v21 = vld [vmem:[%s12275_s16 + $0xf0] ss:$8 sps:$4 sm:$0xff]  }
 0xaf2   : > { %5749 = vmatprep.subr.bf16.mxu1 %v10650_v39  ;;  %v10698_v39 = vld [vmem:[%s12275_s16 + $0xe4] ss:$8 sps:$4 sm:$0xff]  }
 0xaf5   : > { %5750 = vmatpush2.bf16.msra.mxu1 %v10648_v31  ;;  %v10696_v31 = vld [vmem:[%s12275_s16 + $0xe0] ss:$8 sps:$4 sm:$0xff]  }
 0xaf6   : > { %5751 = vmatprep.subr.bf16.mxu1 %v10653_v33  ;;  %v10701_v33 = vld [vmem:[%s12275_s16 + $0xd4] ss:$8 sps:$4 sm:$0xff]  }
 0xaf9   : > { %5752 = vmatpush2.bf16.msra.mxu1 %v10651_v34  ;;  %v10699_v34 = vld [vmem:[%s12275_s16 + $0xd0] ss:$8 sps:$4 sm:$0xff]  }
 0xafa   : > { %5753 = vmatprep.subr.bf16.mxu1 %v10656_v40  ;;  %v10704_v40 = vld [vmem:[%s12275_s16 + $0xc4] ss:$8 sps:$4 sm:$0xff]  }
 0xafd   : > { %5754 = vmatpush2.bf16.msra.mxu1 %v10654_v41  ;;  %v10702_v41 = vld [vmem:[%s12275_s16 + $0xc0] ss:$8 sps:$4 sm:$0xff]  }
 0xafe   : > { %5755 = vmatprep.subr.bf16.mxu1 %v10659_v42  ;;  %v5817_v42 = vrot.slane %v12944_v19, %v12437_v48 }
 0xb01   : > { %5756 = vmatpush2.bf16.msra.mxu1 %v10657_v44  ;;  %v2104_v44 = vrot.slane %v13002_v35, %v12437_v48  ;;  %v10708_v35 = vld [vmem:[%s12275_s16 + $0xa0] ss:$8 sps:$4 sm:$0xff]  }
 0xb02   : > { %5757 = vmatprep.subr.bf16.mxu1 %v10662_v36  ;;  %v5351_v36 = vrot.slane %v12940_v24, %v12437_v48 }
 0xb03   : > { %v2306_v19 = vadd.f32 %v12572_v4, %v2104_v44 }
 0xb04   : > { %v5727_v62 = vadd.f32 %v12937_v23, %v5351_v36 }
 0xb05   : > { %5758 = vmatpush2.bf16.msra.mxu1 %v10660_v46  ;;  %v6019_v46 = vadd.f32 %v12948_v29, %v5817_v42 }
 0xb06   : > { %5759 = vmatprep.subr.bf16.mxu1 %v10665_v56  ;;  %v6023_v56 = vadd.f32 %v12956_v38, %v5817_v42  ;;  %v10713_v38 = vld [vmem:[%s12275_s16 + $0x94] ss:$8 sps:$4 sm:$0xff]  }
 0xb07   : > { %v6027_v6 = vmul.f32 %v6019_v46, %v12954_v37 }
 0xb08   : > { %v6029_v29 = vmul.f32 %v6023_v56, %v12954_v37 }
 0xb09   : > { %5760 = vmatpush2.bf16.msra.mxu1 %v10663_v60  ;;  %v5723_v60 = vadd.f32 %v12935_v18, %v5351_v36  ;;  %v10716_v18 = vld [vmem:[%s12275_s16 + $0x84] ss:$8 sps:$4 sm:$0xff]   ;;  %v5359_v36 = vrot.slane %v12940_v24, %v12583_v8 }
 0xb0a   : > { %5761 = vmatprep.subr.bf16.mxu1 %v10668_v61  ;;  %v2322_v61 = vmul.f32 %v13008_v63, %v2306_v19  ;;  %v6033_v4 = vadd.f32 %v6029_v29, %v5727_v62 }
 0xb0c   : > { %v2333_v51 = vadd.f32 %v12954_v37, %v2322_v61  ;;  %v13076_v37 = vpack.c.bf16 %v6023_v56, %v6019_v46 }
 0xb0d   : > { %5762 = vmatpush2.bf16.msra.mxu1 %v10666_v50  ;;  %v10711_v50 = vld [vmem:[%s12275_s16 + $0x90] ss:$8 sps:$4 sm:$0xff]  }
 0xb0e   : > { %6241 = vmatprep.subr.bf16.mxu1 %v10671_v5  ;;  %v6031_v5 = vadd.f32 %v6027_v6, %v5723_v60 }
 0xb10   : > { %5764 = vmatmul.mubr.bf16.vlgmr.msra.gmra.mxu1 %v12851_v32  ;;  %v10681_v32 = vld [vmem:[%s12275_s16 + $0x30] ss:$8 sps:$4 sm:$0xff]   ;;  %v13068_v63 = vpack.c.bf16 %v6033_v4, %v6031_v5 }
 0xb11   : > { %6242 = vmatpush1.bf16.msra.mxu1 %v10669_v57  ;;  %6273 = vmatprep.mubr.bf16.mxu1 %v6036_v13  ;;  %v2335_v57 = vld [vmem:[%s13599_s8] sm:$0xff] }
 0xb12   : > { %6243 = vmatprep.subr.bf16.mxu1 %v10674_v9  ;;  %v10714_v9 = vld [vmem:[%s12275_s16 + $0x80] ss:$8 sps:$4 sm:$0xff]   ;;  %v2337_v23 = vmul.f32 %v2335_v57, %v2333_v51 }
 0xb14   : > { %v6035_v13 = vpack.c.bf16 %v2337_v23, %v2337_v23 }
 0xb15   : > { %6244 = vmatpush1.bf16.msra.mxu1 %v10672_v0  ;;  %v6336_v0 = vsel %vm3811_vm2, %v13068_v63, 0 }
 0xb16   : > { %6245 = vmatprep.subr.bf16.mxu1 %v10677_v11  ;;  %v6290_v11 = vsel %vm3811_vm2, %v13076_v37, 0 }
 0xb17   : > { %9692 = vmatpush3.bf16.xpose.msra.mxu0 %v6290_v11 }
 0xb18   : > { %9703 = vmatprep.subr.bf16.mxu0 %v11535_v55 }
 0xb19   : > { %6246 = vmatpush1.bf16.msra.mxu1 %v10675_v12  ;;  %v5061_v12 = vld [vmem:[%s1448_s4] sm:$0x3] }
 0xb1a   : > { %6247 = vmatprep.subr.bf16.mxu1 %v10680_v17  ;;  %v10877_v17 = vld [vmem:[%s12264_s19] sm:$0x3f] }
 0xb1d   : > { %6248 = vmatpush1.bf16.msra.mxu1 %v10678_v14  ;;  %v3191_v14 = vrot.slane %v10877_v17, %v2455_v49 }
 0xb1e   : > { %6249 = vmatprep.subr.bf16.mxu1 %v10683_v15  ;;  %v5066_v15 = vrot.slane %v5061_v12, %v12437_v48 }
 0xb21   : > { %6250 = vmatpush1.bf16.msra.mxu1 %v10681_v32  ;;  %v3195_v32 = vrot.slane %v10877_v17, %v2459_v59 }
 0xb22   : > { %6251 = vmatprep.subr.bf16.mxu1 %v10686_v27  ;;  %v5070_v27 = vrot.slane %v5061_v12, %v12443_v53 }
 0xb25   : > { %6252 = vmatpush1.bf16.msra.mxu1 %v10684_v16 }
 0xb26   : > { %6253 = vmatprep.subr.bf16.mxu1 %v10689_v20  ;;  %v3799_v20 = vadd.f32 %v12709_v1, %v3191_v14  ;;  %v5363_v1 = vrot.slane %v12940_v24, %v12587_v54 }
 0xb29   : > { %6254 = vmatpush1.bf16.msra.mxu1 %v10687_v22 }
 0xb2a   : > { %6255 = vmatprep.subr.bf16.mxu1 %v10692_v28 }
 0xb2d   : > { %6256 = vmatpush1.bf16.msra.mxu1 %v10690_v26  ;;  %v3801_v26 = vadd.f32 %v12712_v2, %v3195_v32 }
 0xb2e   : > { %6257 = vmatprep.subr.bf16.mxu1 %v10695_v30 }
 0xb31   : > { %6258 = vmatpush2.bf16.msra.mxu1 %v10693_v21 }
 0xb32   : > { %6259 = vmatprep.subr.bf16.mxu1 %v10698_v39 }
 0xb35   : > { %6260 = vmatpush2.bf16.msra.mxu1 %v10696_v31 }
 0xb36   : > { %6261 = vmatprep.subr.bf16.mxu1 %v10701_v33 }
 0xb39   : > { %6262 = vmatpush2.bf16.msra.mxu1 %v10699_v34 }
 0xb3a   : > { %6263 = vmatprep.subr.bf16.mxu1 %v10704_v40 }
 0xb3d   : > { %6264 = vmatpush2.bf16.msra.mxu1 %v10702_v41 }
 0xb3e   : > { %6265 = vmatprep.subr.bf16.mxu1 %v10707_v43  ;;  %v6069_v43 = vld [vmem:[%s1493_s20] sm:$0x3] }
 0xb3f   : > { %v6074_v44 = vrot.slane %v6069_v43, %v12437_v48 }
 0xb41   : > { %6266 = vmatpush2.bf16.msra.mxu1 %v10705_v45  ;;  %v6078_v45 = vrot.slane %v6069_v43, %v12443_v53 }
 0xb42   : > { %6267 = vmatprep.subr.bf16.mxu1 %v10710_v58 }
 0xb45   : > { %6268 = vmatpush2.bf16.msra.mxu1 %v10708_v35 }
 0xb46   : > { %6269 = vmatprep.subr.bf16.mxu1 %v10713_v38 }
 0xb49   : > { %6270 = vmatpush2.bf16.msra.mxu1 %v10711_v50 }
 0xb4a   : > { %6271 = vmatprep.subr.bf16.mxu1 %v10716_v18 }
 0xb4d   : > { %6272 = vmatpush2.bf16.msra.mxu1 %v10714_v9 }
 0xb4e   : > { %9697 = vmatprep.subr.bf16.mxu1 %v11535_v55 }
 0xb50   : > { %6274 = vmatmul.mubr.bf16.vlgmr.msra.gmra.mxu1 %v6035_v13 }
 0xb51   : > { %9698 = vmatpush3.bf16.xpose.msra.mxu1 %v6336_v0  ;;  %9699 = vmatprep.mubr.msk.bf16.mxu1 %vm11536_vm1, %v11535_v55 }
 0xb52   : > { %9709 = vmatprep.subr.bf16.mxu1 %v11535_v55 }
 0xb90   : > { %v5267_v16 = vpop.f32.mrf.mxu1 }
 0xb91   : > { %v5268_v22 = vadd.f32 %v5267_v16, %v5066_v15 }
 0xb92   : > { %v5269_v28 = vpop.f32.mrf.mxu1 }
 0xb93   : > { %v5274_v30 = vadd.f32 %v5268_v22, %v3799_v20  ;;  %v5270_v21 = vadd.f32 %v5269_v28, %v5070_v27 }
 0xb94   : > { %v5271_v39 = vpop.f32.mrf.mxu1 }
 0xb95   : > { %v13092_v31 = vpack.c.bf16 %v5274_v30, %v5274_v30  ;;  %v13094_v49 = vadd.f32 %v5270_v21, %v3801_v26 }
 0xb96   : > { %v5272_v33 = vpop.f32.mrf.mxu1 }
 0xb97   : > { %9700 = vmatmul.mubr.msk.bf16.vlgmr.msra.gmra.mxu1 %vm3811_vm2, %v13092_v31 }
 0xb98   : > { %9711 = vmatprep.mubr.msk.bf16.mxu1 %vm11536_vm1, %v11535_v55 }
 0xbd0   : > { %v5765_v47 = vpop.f32.mrf.mxu1 }
 0xbd1   : > { %v5766_v19 = vadd.f32 %v5765_v47, %v5359_v36 }
 0xbd2   : > { %v5767_v59 = vpop.f32.mrf.mxu1 }
 0xbd3   : > { %v5768_v40 = vadd.f32 %v5767_v59, %v5363_v1 }
 0xbd4   : > { %v5769_v2 = vpop.f32.mrf.mxu1 }
 0xbd5   : > { %v5770_v46 = vadd.f32 %v5769_v2, %v5359_v36 }
 0xbd6   : > { %v5771_v34 = vpop.f32.mrf.mxu1 }
 0xbd7   : > { %v5772_v41 = vadd.f32 %v5771_v34, %v5363_v1  ;;  %v13114_v61 = vpack.c.bf16 %v5770_v46, %v5766_v19 }
 0xbd9   : > { %v13102_v42 = vpack.c.bf16 %v5772_v41, %v5768_v40 }
 0xc10   : > { %v6275_v56 = vpop.f32.mrf.mxu1 }
 0xc11   : > { %v6276_v58 = vadd.f32 %v6275_v56, %v6074_v44 }
 0xc12   : > { %v6277_v54 = vpop.f32.mrf.mxu1 }
 0xc13   : > { %v13110_v60 = vpack.c.bf16 %v6276_v58, %v6276_v58  ;;  %v13112_v35 = vadd.f32 %v6277_v54, %v6078_v45 }
 0xc14   : > { %v6279_v62 = vpop.f32.mrf.mxu1 }
 0xc15   : > { %9694 = vmatmul.mubr.msk.bf16.vlgmr.msra.gmra.mxu0 %vm3811_vm2, %v13110_v60 }
 0xc16   : > { %9704 = vmatpush3.bf16.msra.mxu0 %v13114_v61  ;;  %v6280_v8 = vpop.f32.mrf.mxu1  ;;  %9705 = vmatprep.mubr.msk.bf16.mxu0 %vm11536_vm1, %v11535_v55 }
 0xc17   : > { %9715 = vmatprep.subr.bf16.mxu0 %v11535_v55 }
 0xc57   : > { %v6372_v24 = vpop.f32.mrf.mxu1 }
 0xc59   : > { %v9701_v6 = vpop.f32.mrf.mxu1 }
 0xc5b   : > { %v6375_v29 = vpop.f32.mrf.mxu1 }
 0xc5d   : > { %v9702_v38 = vpop.f32.mrf.mxu1 }
 0xcd5   : > { %v6326_v50 = vpop.f32.mrf.mxu0 }
 0xcd6   : > { %v6373_v5 = vadd.f32 %v6372_v24, %v6326_v50 }
 0xcd7   : > { %v9695_v4 = vpop.f32.mrf.mxu0 }
 0xcd8   : > { %v6378_v18 = vmul.f32 0.125, %v6373_v5 }
 0xcd9   : > { %v6329_v51 = vpop.f32.mrf.mxu0 }
 0xcda   : > { %v6380_v57 = vsel %vm6379_vm6, %v6378_v18, -inf }
 0xcdb   : > { %6381 = vmax.xlane.f32.xlu1 %v6380_v57  ;;  %v9696_v9 = vpop.f32.mrf.mxu0 }
 0xcec   : > { %6440 = vrot.lane.b32.xlu1 %v13076_v37, %s11538_s27 }
 0xcf0   : > { %6492 = vrot.lane.b32.xlu1 %v13068_v63, %s11538_s27 }
 0xcf4   : > { %6489 = vrot.lane.b32.xlu1 %v13092_v31, %s11538_s27 }
 0xd64   : > { %v6382_v23 = vpop.xlane.xlu1 %6381 }
 0xd65   : > { %v6383_v13 = vsub.f32 %v6378_v18, %v6382_v23 }
 0xd67   : > { %v6384_v0 = vmul.f32 1.442695, %v6383_v13 }
 0xd68   : > { %v6441_v11 = vpop.permute.xlu1 %6440 }
 0xd69   : > { %10839 = vpow2.f32 %v6384_v0  ;;  %v6446_v12 = vsel %vm3811_vm2, %v6441_v11, 0 }
 0xd6a   : > { %9710 = vmatpush3.bf16.xpose.msra.mxu1 %v6446_v12 }
 0xd6b   : > { %9721 = vmatprep.subr.bf16.mxu1 %v11535_v55 }
 0xd6c   : > { %v6493_v20 = vpop.permute.xlu1 %6492 }
 0xd6d   : > { %v6498_v28 = vsel %vm3811_vm2, %v6493_v20, 0 }
 0xd70   : > { %v6490_v26 = vpop.permute.xlu1 %6489 }
 0xd76   : > { %v10840_v17 = vpop.eup %10839 }
 0xd77   : > { %v6386_v14 = vsel %vm6379_vm6, %v10840_v17, 0.0 }
 0xd78   : > { %6387 = vadd.xlane.f32.xlu0 %v6386_v14 }
 0xd8e   : > { %6437 = vrot.lane.b32.xlu0 %v13110_v60, %s11538_s27 }
 0xe01   : > { %v6388_v15 = vpop.xlane.xlu0 %6387 }
 0xe02   : > { %10841 = vrcp.f32 %v6388_v15 }
 0xe05   : > { %v6438_v32 = vpop.permute.xlu0 %6437 }
 0xe06   : > { %9712 = vmatmul.mubr.msk.bf16.vlgmr.msra.gmra.mxu1 %vm3811_vm2, %v6438_v32 }
 0xe07   : > { %9723 = vmatprep.mubr.msk.bf16.mxu1 %vm11536_vm1, %v11535_v55 }
 0xe0f   : > { %v10842_v27 = vpop.eup %10841 }
 0xe10   : > { %v6390_v16 = vmul.f32 %v10842_v27, %v10840_v17 }
 0xe12   : > { %v6391_v22 = vpack.c.bf16 %v6390_v16, %v6390_v16 }
 0xe14   : > { %9706 = vmatmul.mubr.msk.bf16.vlgmr.msra.gmra.mxu0 %vm6379_vm6, %v6391_v22 }
 0xe15   : > { %9716 = vmatpush3.bf16.xpose.msra.mxu0 %v6498_v28  ;;  %9717 = vmatprep.mubr.msk.bf16.mxu0 %vm11536_vm1, %v11535_v55 }
 0xe16   : > { %9727 = vmatprep.subr.bf16.mxu0 %v11535_v55 }
 0xe1c   : > { %9718 = vmatmul.mubr.msk.bf16.vlgmr.msra.gmra.mxu0 %vm3811_vm2, %v6490_v26 }
 0xe1d   : > { %9729 = vmatprep.mubr.msk.bf16.mxu0 %vm11536_vm1, %v11535_v55 }
 0xec6   : > { %v6482_v30 = vpop.f32.mrf.mxu1 }
 0xec8   : > { %v9713_v21 = vpop.f32.mrf.mxu1 }
 0xeca   : > { %v6485_v39 = vpop.f32.mrf.mxu1 }
 0xecc   : > { %v9714_v33 = vpop.f32.mrf.mxu1 }
 0xed4   : > { %v13145_v47 = vpop.f32.mrf.mxu0 }
 0xed6   : > { %v9707_v59 = vpop.f32.mrf.mxu0 }
 0xed8   : > { %v6433_v1 = vpop.f32.mrf.mxu0 }
 0xeda   : > { %v9708_v2 = vpop.f32.mrf.mxu0 }
 0xedc   : > { %v6534_v34 = vpop.f32.mrf.mxu0 }
 0xedd   : > { %v6535_v40 = vadd.f32 %v6534_v34, %v6482_v30 }
 0xede   : > { %v9719_v41 = vpop.f32.mrf.mxu0 }
 0xedf   : > { %v6540_v43 = vmul.f32 0.125, %v6535_v40 }
 0xee0   : > { %v6537_v44 = vpop.f32.mrf.mxu0 }
 0xee1   : > { %v6541_v36 = vsel %vm6379_vm6, %v6540_v43, -inf  ;;  %v13206_v44 = vpack.c.bf16 %v13112_v35, %v13112_v35 }
 0xee2   : > { %6542 = vmax.xlane.f32.xlu1 %v6541_v36  ;;  %v9720_v45 = vpop.f32.mrf.mxu0 }
 0xef3   : > { %6554 = vrot.lane.b32.xlu1 %v13114_v61, %s11538_s27 }
 0xef7   : > { %6652 = vrot.lane.b32.xlu1 %v13068_v63, %s11537_s25 }
 0xefb   : > { %6600 = vrot.lane.b32.xlu1 %v13110_v60, %s11537_s25 }
 0xeff   : > { %6650 = vrot.lane.b32.xlu1 %v13092_v31, %s11537_s25 }
 0xf6b   : > { %v6543_v46 = vpop.xlane.xlu1 %6542 }
 0xf6c   : > { %v6544_v56 = vsub.f32 %v6540_v43, %v6543_v46  ;;  %v6926_v43 = vsel %vm3811_vm2, %v12965_v3, 0 }
 0xf6e   : > { %v6545_v58 = vmul.f32 1.442695, %v6544_v56 }
 0xf6f   : > { %v6555_v19 = vpop.permute.xlu1 %6554 }
 0xf70   : > { %10843 = vpow2.f32 %v6545_v58  ;;  %9722 = vmatpush3.bf16.msra.mxu1 %v6555_v19 }
 0xf71   : > { %9733 = vmatprep.subr.bf16.mxu1 %v11535_v55 }
 0xf73   : > { %v6653_v29 = vpop.permute.xlu1 %6652 }
 0xf74   : > { %v6658_v18 = vsel %vm3811_vm2, %v6653_v29, 0 }
 0xf77   : > { %v6601_v38 = vpop.permute.xlu1 %6600 }
 0xf7b   : > { %v6651_v51 = vpop.permute.xlu1 %6650 }
 0xf7d   : > { %v10844_v54 = vpop.eup %10843 }
 0xf7e   : > { %v6547_v62 = vsel %vm6379_vm6, %v10844_v54, 0.0 }
 0xf7f   : > { %6548 = vadd.xlane.f32.xlu0 %v6547_v62 }
 0xf95   : > { %6602 = vrot.lane.b32.xlu0 %v13076_v37, %s11537_s25 }
0x1008   : > { %v6549_v8 = vpop.xlane.xlu0 %6548 }
0x1009   : > { %10845 = vrcp.f32 %v6549_v8 }
0x100c   : > { %v6603_v24 = vpop.permute.xlu0 %6602 }
0x100d   : > { %v6608_v6 = vsel %vm3811_vm2, %v6603_v24, 0 }
0x100e   : > { %9728 = vmatpush3.bf16.xpose.msra.mxu0 %v6608_v6 }
0x100f   : > { %9739 = vmatprep.subr.bf16.mxu0 %v11535_v55 }
0x1015   : > { %9730 = vmatmul.mubr.msk.bf16.vlgmr.msra.gmra.mxu0 %vm3811_vm2, %v6601_v38 }
0x1016   : > { %v10846_v50 = vpop.eup %10845  ;;  %9741 = vmatprep.mubr.msk.bf16.mxu0 %vm11536_vm1, %v11535_v55 }
0x1017   : > { %v6551_v5 = vmul.f32 %v10846_v50, %v10844_v54 }
0x1019   : > { %v6552_v4 = vpack.c.bf16 %v6551_v5, %v6551_v5 }
0x101b   : > { %9724 = vmatmul.mubr.msk.bf16.vlgmr.msra.gmra.mxu1 %vm6379_vm6, %v6552_v4 }
0x101c   : > { %9734 = vmatpush3.bf16.xpose.msra.mxu1 %v6658_v18  ;;  %9735 = vmatprep.mubr.msk.bf16.mxu1 %vm11536_vm1, %v11535_v55 }
0x101d   : > { %9745 = vmatprep.subr.bf16.mxu1 %v11535_v55 }
0x1023   : > { %9736 = vmatmul.mubr.msk.bf16.vlgmr.msra.gmra.mxu1 %vm3811_vm2, %v6651_v51 }
0x1024   : > { %9747 = vmatprep.mubr.msk.bf16.mxu1 %vm11536_vm1, %v11535_v55 }
0x10d5   : > { %v6644_v57 = vpop.f32.mrf.mxu0 }
0x10d7   : > { %v9731_v9 = vpop.f32.mrf.mxu0 }
0x10d9   : > { %v6647_v23 = vpop.f32.mrf.mxu0 }
0x10db   : > { %v13173_v13 = vpop.f32.mrf.mxu1  ;;  %v9732_v0 = vpop.f32.mrf.mxu0 }
0x10dd   : > { %v9725_v11 = vpop.f32.mrf.mxu1 }
0x10df   : > { %v6597_v12 = vpop.f32.mrf.mxu1 }
0x10e1   : > { %v9726_v17 = vpop.f32.mrf.mxu1 }
0x10e3   : > { %v6694_v14 = vpop.f32.mrf.mxu1 }
0x10e4   : > { %v6695_v15 = vadd.f32 %v6694_v14, %v6644_v57 }
0x10e5   : > { %v9737_v32 = vpop.f32.mrf.mxu1 }
0x10e6   : > { %v6700_v27 = vmul.f32 0.125, %v6695_v15 }
0x10e7   : > { %v6697_v16 = vpop.f32.mrf.mxu1 }
0x10e8   : > { %v6701_v20 = vsel %vm6379_vm6, %v6700_v27, -inf }
0x10e9   : > { %v9738_v22 = vpop.f32.mrf.mxu1  ;;  %6702 = vmax.xlane.f32.xlu1 %v6701_v20 }
0x10fa   : > { %6713 = vrot.lane.b32.xlu1 %v13114_v61, %s11537_s25 }
0x10fe   : > { %6811 = vrot.lane.b32.xlu1 %v13068_v63, %s11539_s18 }
0x1102   : > { %6759 = vrot.lane.b32.xlu1 %v13110_v60, %s11539_s18 }
0x1172   : > { %v6703_v28 = vpop.xlane.xlu1 %6702 }
0x1173   : > { %v6704_v26 = vsub.f32 %v6700_v27, %v6703_v28  ;;  %v13233_v27 = vpack.c.bf16 %v13094_v49, %v13094_v49 }
0x1175   : > { %v6705_v30 = vmul.f32 1.442695, %v6704_v26 }
0x1176   : > { %v6714_v21 = vpop.permute.xlu1 %6713 }
0x1177   : > { %10847 = vpow2.f32 %v6705_v30  ;;  %9740 = vmatpush3.bf16.msra.mxu0 %v6714_v21 }
0x1178   : > { %9751 = vmatprep.subr.bf16.mxu0 %v11535_v55 }
0x117a   : > { %v6812_v1 = vpop.permute.xlu1 %6811 }
0x117e   : > { %v6760_v2 = vpop.permute.xlu1 %6759 }
0x1184   : > { %v10848_v39 = vpop.eup %10847 }
0x1185   : > { %v6707_v33 = vsel %vm6379_vm6, %v10848_v39, 0.0 }
0x1186   : > { %6708 = vadd.xlane.f32.xlu0 %v6707_v33 }
0x119c   : > { %6761 = vrot.lane.b32.xlu0 %v13076_v37, %s11539_s18 }
0x11a0   : > { %6809 = vrot.lane.b32.xlu0 %v13092_v31, %s11539_s18  ;;  %v6817_v31 = vsel %vm3811_vm2, %v6812_v1, 0 }
0x120f   : > { %v6709_v63 = vpop.xlane.xlu0 %6708 }
0x1210   : > { %10849 = vrcp.f32 %v6709_v63 }
0x1213   : > { %v6762_v60 = vpop.permute.xlu0 %6761 }
0x1214   : > { %v6767_v59 = vsel %vm3811_vm2, %v6762_v60, 0 }
0x1215   : > { %9746 = vmatpush3.bf16.xpose.msra.mxu1 %v6767_v59 }
0x1216   : > { %9757 = vmatprep.subr.bf16.mxu1 %v11535_v55 }
0x1217   : > { %v6810_v41 = vpop.permute.xlu0 %6809 }
0x121c   : > { %9748 = vmatmul.mubr.msk.bf16.vlgmr.msra.gmra.mxu1 %vm3811_vm2, %v6760_v2 }
0x121d   : > { %v10850_v34 = vpop.eup %10849  ;;  %9759 = vmatprep.mubr.msk.bf16.mxu1 %vm11536_vm1, %v11535_v55 }
0x121e   : > { %v6711_v37 = vmul.f32 %v10850_v34, %v10848_v39 }
0x1220   : > { %v6712_v40 = vpack.c.bf16 %v6711_v37, %v6711_v37 }
0x1222   : > { %9742 = vmatmul.mubr.msk.bf16.vlgmr.msra.gmra.mxu0 %vm6379_vm6, %v6712_v40 }
0x1223   : > { %9752 = vmatpush3.bf16.xpose.msra.mxu0 %v6817_v31  ;;  %9753 = vmatprep.mubr.msk.bf16.mxu0 %vm11536_vm1, %v11535_v55 }
0x1224   : > { %9763 = vmatprep.subr.bf16.mxu0 %v11535_v55 }
0x122a   : > { %9754 = vmatmul.mubr.msk.bf16.vlgmr.msra.gmra.mxu0 %vm3811_vm2, %v6810_v41 }
0x122b   : > { %9764 = vmatpush3.bf16.xpose.msra.mxu0 %v6926_v43  ;;  %9765 = vmatprep.mubr.msk.bf16.mxu0 %vm11536_vm1, %v11535_v55 }
0x122c   : > { %9775 = vmatprep.subr.bf16.mxu0 %v11535_v55 }
0x1232   : > { %9766 = vmatmul.mubr.msk.bf16.vlgmr.msra.gmra.mxu0 %vm3811_vm2, %v13206_v44 }
0x1233   : > { %9776 = vmatpush3.bf16.msra.mxu0 %v13102_v42  ;;  %9777 = vmatprep.mubr.msk.bf16.mxu0 %vm11536_vm1, %v11535_v55 }
0x1234   : > { %9787 = vmatprep.subr.bf16.mxu0 %v11535_v55 }
0x12dc   : > { %v6803_v36 = vpop.f32.mrf.mxu1 }
0x12de   : > { %v9749_v45 = vpop.f32.mrf.mxu1 }
0x12e0   : > { %v6806_v46 = vpop.f32.mrf.mxu1 }
0x12e2   : > { %v13214_v56 = vpop.f32.mrf.mxu0  ;;  %v9750_v58 = vpop.f32.mrf.mxu1 }
0x12e4   : > { %v9743_v19 = vpop.f32.mrf.mxu0 }
0x12e6   : > { %v6756_v54 = vpop.f32.mrf.mxu0 }
0x12e8   : > { %v9744_v35 = vpop.f32.mrf.mxu0 }
0x12ea   : > { %v6853_v62 = vpop.f32.mrf.mxu0 }
0x12eb   : > { %v6854_v8 = vadd.f32 %v6853_v62, %v6803_v36 }
0x12ec   : > { %v9755_v24 = vpop.f32.mrf.mxu0 }
0x12ed   : > { %v6859_v6 = vmul.f32 0.125, %v6854_v8 }
0x12ee   : > { %v6856_v29 = vpop.f32.mrf.mxu0 }
0x12ef   : > { %v6860_v38 = vsel %vm6379_vm6, %v6859_v6, -inf }
0x12f0   : > { %6861 = vmax.xlane.f32.xlu1 %v6860_v38  ;;  %v9756_v50 = vpop.f32.mrf.mxu0 }
0x12f2   : > { %v6962_v5 = vpop.f32.mrf.mxu0 }
0x12f4   : > { %v9767_v4 = vpop.f32.mrf.mxu0 }
0x12f6   : > { %v6965_v18 = vpop.f32.mrf.mxu0 }
0x12f8   : > { %v9768_v51 = vpop.f32.mrf.mxu0 }
0x1379   : > { %v6862_v57 = vpop.xlane.xlu1 %6861 }
0x137a   : > { %v6863_v9 = vsub.f32 %v6859_v6, %v6862_v57 }
0x137c   : > { %v6864_v23 = vmul.f32 1.442695, %v6863_v9 }
0x137e   : > { %10851 = vpow2.f32 %v6864_v23 }
0x138b   : > { %v10852_v0 = vpop.eup %10851 }
0x138c   : > { %v6866_v11 = vsel %vm6379_vm6, %v10852_v0, 0.0 }
0x138d   : > { %6867 = vadd.xlane.f32.xlu0 %v6866_v11 }
0x13a3   : > { %6872 = vrot.lane.b32.xlu0 %v13114_v61, %s11539_s18  ;;  %v6972_v61 = vsel %vm3811_vm2, %v12977_v10, 0 }
0x13a7   : > { %7127 = vrot.lane.b32.xlu0 %v12977_v10, %s11538_s27 }
0x13ab   : > { %7072 = vrot.lane.b32.xlu0 %v13206_v44, %s11538_s27 }
0x1416   : > { %v6868_v12 = vpop.xlane.xlu0 %6867 }
0x1417   : > { %10853 = vrcp.f32 %v6868_v12 }
0x141a   : > { %v6873_v17 = vpop.permute.xlu0 %6872 }
0x141b   : > { %9758 = vmatpush3.bf16.msra.mxu1 %v6873_v17 }
0x141c   : > { %9769 = vmatprep.subr.bf16.mxu1 %v11535_v55 }
0x141e   : > { %v7128_v41 = vpop.permute.xlu0 %7127 }
0x141f   : > { %v7133_v58 = vsel %vm3811_vm2, %v7128_v41, 0 }
0x1422   : > { %v7073_v43 = vpop.permute.xlu0 %7072 }
0x1424   : > { %v10854_v14 = vpop.eup %10853 }
0x1425   : > { %v6870_v15 = vmul.f32 %v10854_v14, %v10852_v0 }
0x1427   : > { %v6871_v32 = vpack.c.bf16 %v6870_v15, %v6870_v15 }
0x1429   : > { %9760 = vmatmul.mubr.msk.bf16.vlgmr.msra.gmra.mxu1 %vm6379_vm6, %v6871_v32 }
0x142a   : > { %9770 = vmatpush3.bf16.xpose.msra.mxu1 %v6972_v61  ;;  %9771 = vmatprep.mubr.msk.bf16.mxu1 %vm11536_vm1, %v11535_v55 }
0x142b   : > { %9781 = vmatprep.subr.bf16.mxu1 %v11535_v55 }
0x1431   : > { %9772 = vmatmul.mubr.msk.bf16.vlgmr.msra.gmra.mxu1 %vm3811_vm2, %v13233_v27 }
0x1432   : > { %9783 = vmatprep.mubr.msk.bf16.mxu1 %vm11536_vm1, %v11535_v55 }
0x14e9   : > { %v13239_v16 = vpop.f32.mrf.mxu1 }
0x14eb   : > { %v9761_v20 = vpop.f32.mrf.mxu1 }
0x14ed   : > { %v6915_v22 = vpop.f32.mrf.mxu1 }
0x14ef   : > { %v9762_v28 = vpop.f32.mrf.mxu1 }
0x14f1   : > { %v7008_v26 = vpop.f32.mrf.mxu1 }
0x14f2   : > { %v7009_v30 = vadd.f32 %v7008_v26, %v6962_v5 }
0x14f3   : > { %v9773_v21 = vpop.f32.mrf.mxu1 }
0x14f4   : > { %v7014_v39 = vmul.f32 0.125, %v7009_v30 }
0x14f5   : > { %v7011_v33 = vpop.f32.mrf.mxu1 }
0x14f6   : > { %v7015_v63 = vsel %vm6379_vm6, %v7014_v39, -inf }
0x14f7   : > { %v9774_v49 = vpop.f32.mrf.mxu1  ;;  %7016 = vmax.xlane.f32.xlu1 %v7015_v63 }
0x1580   : > { %v7017_v60 = vpop.xlane.xlu1 %7016 }
0x1581   : > { %v7018_v59 = vsub.f32 %v7014_v39, %v7017_v60 }
0x1583   : > { %v7019_v1 = vmul.f32 1.442695, %v7018_v59 }
0x1585   : > { %10855 = vpow2.f32 %v7019_v1 }
0x1592   : > { %v10856_v2 = vpop.eup %10855 }
0x1593   : > { %v7021_v34 = vsel %vm6379_vm6, %v10856_v2, 0.0 }
0x1594   : > { %7022 = vadd.xlane.f32.xlu1 %v7021_v34 }
0x15a5   : > { %7075 = vrot.lane.b32.xlu1 %v12965_v3, %s11538_s27 }
0x15a9   : > { %7124 = vrot.lane.b32.xlu1 %v13233_v27, %s11538_s27 }
0x161d   : > { %v7023_v37 = vpop.xlane.xlu1 %7022 }
0x161e   : > { %10857 = vrcp.f32 %v7023_v37 }
0x1621   : > { %v7076_v40 = vpop.permute.xlu1 %7075 }
0x1622   : > { %v7081_v31 = vsel %vm3811_vm2, %v7076_v40, 0 }
0x1623   : > { %9782 = vmatpush3.bf16.xpose.msra.mxu1 %v7081_v31 }
0x1624   : > { %9793 = vmatprep.subr.bf16.mxu1 %v11535_v55 }
0x1625   : > { %v7125_v19 = vpop.permute.xlu1 %7124 }
0x162a   : > { %9784 = vmatmul.mubr.msk.bf16.vlgmr.msra.gmra.mxu1 %vm3811_vm2, %v7073_v43 }
0x162b   : > { %v10858_v36 = vpop.eup %10857  ;;  %9795 = vmatprep.mubr.msk.bf16.mxu1 %vm11536_vm1, %v11535_v55 }
0x162c   : > { %v7025_v45 = vmul.f32 %v10858_v36, %v10856_v2 }
0x162e   : > { %v7026_v46 = vpack.c.bf16 %v7025_v45, %v7025_v45 }
0x1630   : > { %9778 = vmatmul.mubr.msk.bf16.vlgmr.msra.gmra.mxu0 %vm6379_vm6, %v7026_v46 }
0x1631   : > { %9788 = vmatpush3.bf16.xpose.msra.mxu0 %v7133_v58  ;;  %9789 = vmatprep.mubr.msk.bf16.mxu0 %vm11536_vm1, %v11535_v55 }
0x1632   : > { %9799 = vmatprep.subr.bf16.mxu0 %v11535_v55 }
0x1638   : > { %9790 = vmatmul.mubr.msk.bf16.vlgmr.msra.gmra.mxu0 %vm3811_vm2, %v7125_v19 }
0x1639   : > { %9801 = vmatprep.mubr.msk.bf16.mxu0 %vm11536_vm1, %v11535_v55 }
0x16ea   : > { %v7117_v54 = vpop.f32.mrf.mxu1 }
0x16ec   : > { %v9785_v35 = vpop.f32.mrf.mxu1 }
0x16ee   : > { %v7120_v62 = vpop.f32.mrf.mxu1 }
0x16f0   : > { %v13260_v8 = vpop.f32.mrf.mxu0  ;;  %v9786_v24 = vpop.f32.mrf.mxu1 }
0x16f2   : > { %v9779_v6 = vpop.f32.mrf.mxu0 }
0x16f4   : > { %v7068_v29 = vpop.f32.mrf.mxu0 }
0x16f6   : > { %v9780_v38 = vpop.f32.mrf.mxu0 }
0x16f8   : > { %v7169_v50 = vpop.f32.mrf.mxu0 }
0x16f9   : > { %v7170_v5 = vadd.f32 %v7169_v50, %v7117_v54 }
0x16fa   : > { %v9791_v4 = vpop.f32.mrf.mxu0 }
0x16fb   : > { %v7175_v18 = vmul.f32 0.125, %v7170_v5 }
0x16fc   : > { %v7172_v51 = vpop.f32.mrf.mxu0 }
0x16fd   : > { %v7176_v57 = vsel %vm6379_vm6, %v7175_v18, -inf }
0x16fe   : > { %7177 = vmax.xlane.f32.xlu0 %v7176_v57  ;;  %v9792_v9 = vpop.f32.mrf.mxu0 }
0x1714   : > { %7189 = vrot.lane.b32.xlu0 %v13102_v42, %s11538_s27 }
0x1718   : > { %7287 = vrot.lane.b32.xlu0 %v12977_v10, %s11537_s25 }
0x171c   : > { %7285 = vrot.lane.b32.xlu0 %v13233_v27, %s11537_s25 }
0x1787   : > { %v7178_v23 = vpop.xlane.xlu0 %7177 }
0x1788   : > { %v7179_v0 = vsub.f32 %v7175_v18, %v7178_v23 }
0x178a   : > { %v7180_v11 = vmul.f32 1.442695, %v7179_v0 }
0x178b   : > { %v7190_v12 = vpop.permute.xlu0 %7189 }
0x178c   : > { %10859 = vpow2.f32 %v7180_v11  ;;  %9794 = vmatpush3.bf16.msra.mxu1 %v7190_v12 }
0x178d   : > { %9805 = vmatprep.subr.bf16.mxu1 %v11535_v55 }
0x178f   : > { %v7288_v26 = vpop.permute.xlu0 %7287 }
0x1790   : > { %v7293_v21 = vsel %vm3811_vm2, %v7288_v26, 0 }
0x1793   : > { %v7286_v39 = vpop.permute.xlu0 %7285 }
0x1799   : > { %v10860_v17 = vpop.eup %10859 }
0x179a   : > { %v7182_v14 = vsel %vm6379_vm6, %v10860_v17, 0.0 }
0x179b   : > { %7183 = vadd.xlane.f32.xlu1 %v7182_v14 }
0x17ac   : > { %7237 = vrot.lane.b32.xlu1 %v12965_v3, %s11537_s25 }
0x17b0   : > { %7235 = vrot.lane.b32.xlu1 %v13206_v44, %s11537_s25 }
0x1824   : > { %v7184_v15 = vpop.xlane.xlu1 %7183 }
0x1825   : > { %10861 = vrcp.f32 %v7184_v15 }
0x1828   : > { %v7238_v32 = vpop.permute.xlu1 %7237 }
0x1829   : > { %v7243_v61 = vsel %vm3811_vm2, %v7238_v32, 0 }
0x182a   : > { %9800 = vmatpush3.bf16.xpose.msra.mxu0 %v7243_v61 }
0x182b   : > { %9811 = vmatprep.subr.bf16.mxu0 %v11535_v55 }
0x182c   : > { %v7236_v20 = vpop.permute.xlu1 %7235 }
0x1831   : > { %9802 = vmatmul.mubr.msk.bf16.vlgmr.msra.gmra.mxu0 %vm3811_vm2, %v7236_v20 }
0x1832   : > { %v10862_v22 = vpop.eup %10861  ;;  %9813 = vmatprep.mubr.msk.bf16.mxu0 %vm11536_vm1, %v11535_v55 }
0x1833   : > { %v7186_v28 = vmul.f32 %v10862_v22, %v10860_v17 }
0x1835   : > { %v7187_v30 = vpack.c.bf16 %v7186_v28, %v7186_v28 }
0x1837   : > { %9796 = vmatmul.mubr.msk.bf16.vlgmr.msra.gmra.mxu1 %vm6379_vm6, %v7187_v30 }
0x1838   : > { %9806 = vmatpush3.bf16.xpose.msra.mxu1 %v7293_v21  ;;  %9807 = vmatprep.mubr.msk.bf16.mxu1 %vm11536_vm1, %v11535_v55 }
0x1839   : > { %9817 = vmatprep.subr.bf16.mxu1 %v11535_v55 }
0x183f   : > { %9808 = vmatmul.mubr.msk.bf16.vlgmr.msra.gmra.mxu1 %vm3811_vm2, %v7286_v39 }
0x1840   : > { %9819 = vmatprep.mubr.msk.bf16.mxu1 %vm11536_vm1, %v11535_v55 }
0x18f1   : > { %v7279_v33 = vpop.f32.mrf.mxu0 }
0x18f3   : > { %v9803_v63 = vpop.f32.mrf.mxu0 }
0x18f5   : > { %v7282_v49 = vpop.f32.mrf.mxu0 }
0x18f7   : > { %v13288_v60 = vpop.f32.mrf.mxu1  ;;  %v9804_v59 = vpop.f32.mrf.mxu0 }
0x18f8   : > { %v10717_v59 = vld [vmem:[%s12278_s7 + $0x70] ss:$8 sps:$4 sm:$0xff]  }
0x18f9   : > { %v9797_v1 = vpop.f32.mrf.mxu1 }
0x18fa   : > { %v10719_v1 = vld [vmem:[%s12278_s7 + $0x74] ss:$8 sps:$4 sm:$0xff]  }
0x18fb   : > { %v7232_v2 = vpop.f32.mrf.mxu1 }
0x18fc   : > { %v10722_v2 = vld [vmem:[%s12278_s7 + $0x64] ss:$8 sps:$4 sm:$0xff]  }
0x18fd   : > { %v9798_v34 = vpop.f32.mrf.mxu1 }
0x18fe   : > { %v10723_v34 = vld [vmem:[%s12278_s7 + $0x50] ss:$8 sps:$4 sm:$0xff]  }
0x18ff   : > { %v7329_v37 = vpop.f32.mrf.mxu1 }
0x1900   : > { %v7330_v40 = vadd.f32 %v7329_v37, %v7279_v33  ;;  %v10728_v37 = vld [vmem:[%s12278_s7 + $0x44] ss:$8 sps:$4 sm:$0xff]  }
0x1901   : > { %v9809_v31 = vpop.f32.mrf.mxu1 }
0x1902   : > { %v7335_v41 = vmul.f32 0.125, %v7330_v40  ;;  %v10726_v40 = vld [vmem:[%s12278_s7 + $0x40] ss:$8 sps:$4 sm:$0xff]   ;;  %v10731_v31 = vld [vmem:[%s12278_s7 + $0x34] ss:$8 sps:$4 sm:$0xff]  }
0x1903   : > { %v7332_v43 = vpop.f32.mrf.mxu1 }
0x1904   : > { %v7336_v36 = vsel %vm6379_vm6, %v7335_v41, -inf  ;;  %v10734_v43 = vld [vmem:[%s12278_s7 + $0x24] ss:$8 sps:$4 sm:$0xff]  }
0x1905   : > { %v9810_v45 = vpop.f32.mrf.mxu1  ;;  %7337 = vmax.xlane.f32.xlu1 %v7336_v36  ;;  %v10732_v36 = vld [vmem:[%s12278_s7 + $0x20] ss:$8 sps:$4 sm:$0xff]  }
0x1906   : > { %v10737_v45 = vld [vmem:[%s12278_s7 + $0x14] ss:$8 sps:$4 sm:$0xff]  }
0x1916   : > { %7396 = vrot.lane.b32.xlu1 %v12965_v3, %s11539_s18 }
0x191a   : > { %7446 = vrot.lane.b32.xlu1 %v12977_v10, %s11539_s18 }
0x191e   : > { %7444 = vrot.lane.b32.xlu1 %v13233_v27, %s11539_s18 }
0x198e   : > { %v7338_v46 = vpop.xlane.xlu1 %7337 }
0x198f   : > { %v7339_v58 = vsub.f32 %v7335_v41, %v7338_v46  ;;  %v10729_v41 = vld [vmem:[%s12278_s7 + $0x30] ss:$8 sps:$4 sm:$0xff]  }
0x1990   : > { %v10735_v46 = vld [vmem:[%s12278_s7 + $0x10] ss:$8 sps:$4 sm:$0xff]  }
0x1991   : > { %v7340_v19 = vmul.f32 1.442695, %v7339_v58  ;;  %v10740_v58 = vld [vmem:[%s12278_s7 + $0x4] ss:$8 sps:$4 sm:$0xff]  }
0x1992   : > { %v7397_v54 = vpop.permute.xlu1 %7396 }
0x1993   : > { %10863 = vpow2.f32 %v7340_v19  ;;  %v7402_v35 = vsel %vm3811_vm2, %v7397_v54, 0  ;;  %v10738_v19 = vld [vmem:[%s12278_s7] ss:$8 sps:$4 sm:$0xff]   ;;  %v10743_v54 = vld [vmem:[%s12278_s7 + $0xf4] ss:$8 sps:$4 sm:$0xff]  }
0x1994   : > { %9818 = vmatpush3.bf16.xpose.msra.mxu1 %v7402_v35  ;;  %v10741_v35 = vld [vmem:[%s12278_s7 + $0xf0] ss:$8 sps:$4 sm:$0xff]  }
0x1995   : > { %9829 = vmatprep.subr.bf16.mxu1 %v11535_v55 }
0x1996   : > { %v7447_v38 = vpop.permute.xlu1 %7446 }
0x1997   : > { %v7452_v5 = vsel %vm3811_vm2, %v7447_v38, 0  ;;  %v10753_v38 = vld [vmem:[%s12278_s7 + $0xb0] ss:$8 sps:$4 sm:$0xff]  }
0x19a0   : > { %v10864_v62 = vpop.eup %10863 }
0x19a1   : > { %v7342_v24 = vsel %vm6379_vm6, %v10864_v62, 0.0 }
0x19a2   : > { %7343 = vadd.xlane.f32.xlu0 %v7342_v24  ;;  %v10744_v24 = vld [vmem:[%s12278_s7 + $0xe0] ss:$8 sps:$4 sm:$0xff]  }
0x19b8   : > { %7348 = vrot.lane.b32.xlu0 %v13102_v42, %s11537_s25 }
0x19bc   : > { %7394 = vrot.lane.b32.xlu0 %v13206_v44, %s11539_s18  ;;  %v7445_v44 = vpop.permute.xlu1 %7444 }
0x1a2b   : > { %v7344_v3 = vpop.xlane.xlu0 %7343 }
0x1a2c   : > { %10865 = vrcp.f32 %v7344_v3  ;;  %v10749_v3 = vld [vmem:[%s12278_s7 + $0xd4] ss:$8 sps:$4 sm:$0xff]  }
0x1a2f   : > { %v7349_v10 = vpop.permute.xlu0 %7348 }
0x1a30   : > { %9812 = vmatpush3.bf16.msra.mxu0 %v7349_v10  ;;  %v10747_v10 = vld [vmem:[%s12278_s7 + $0xd0] ss:$8 sps:$4 sm:$0xff]  }
0x1a31   : > { %9823 = vmatprep.subr.bf16.mxu0 %v11535_v55 }
0x1a33   : > { %v7395_v27 = vpop.permute.xlu0 %7394 }
0x1a34   : > { %9820 = vmatmul.mubr.msk.bf16.vlgmr.msra.gmra.mxu1 %vm3811_vm2, %v7395_v27  ;;  %v10752_v27 = vld [vmem:[%s12278_s7 + $0xc4] ss:$8 sps:$4 sm:$0xff]  }
0x1a35   : > { %9831 = vmatprep.mubr.msk.bf16.mxu1 %vm11536_vm1, %v11535_v55 }
0x1a39   : > { %v10866_v6 = vpop.eup %10865 }
0x1a3a   : > { %v7346_v29 = vmul.f32 %v10866_v6, %v10864_v62  ;;  %v10746_v62 = vld [vmem:[%s12278_s7 + $0xe4] ss:$8 sps:$4 sm:$0xff]   ;;  %v10750_v6 = vld [vmem:[%s12278_s7 + $0xc0] ss:$8 sps:$4 sm:$0xff]  }
0x1a3c   : > { %v7347_v50 = vpack.c.bf16 %v7346_v29, %v7346_v29  ;;  %v10755_v29 = vld [vmem:[%s12278_s7 + $0xb4] ss:$8 sps:$4 sm:$0xff]  }
0x1a3e   : > { %9814 = vmatmul.mubr.msk.bf16.vlgmr.msra.gmra.mxu0 %vm6379_vm6, %v7347_v50  ;;  %v10758_v50 = vld [vmem:[%s12278_s7 + $0xa4] ss:$8 sps:$4 sm:$0xff]  }
0x1a3f   : > { %9824 = vmatpush3.bf16.xpose.msra.mxu0 %v7452_v5  ;;  %9825 = vmatprep.mubr.msk.bf16.mxu0 %vm11536_vm1, %v11535_v55  ;;  %v10756_v5 = vld [vmem:[%s12278_s7 + $0xa0] ss:$8 sps:$4 sm:$0xff]  }
0x1a40   : > { %7789 = vmatprep.subr.bf16.mxu0 %v10719_v1 }
0x1a46   : > { %9826 = vmatmul.mubr.msk.bf16.vlgmr.msra.gmra.mxu0 %vm3811_vm2, %v7445_v44  ;;  %v10761_v44 = vld [vmem:[%s12278_s7 + $0x94] ss:$8 sps:$4 sm:$0xff]  }
0x1a47   : > { %7790 = vmatpush1.bf16.msra.mxu0 %v10717_v59 }
0x1a48   : > { %7791 = vmatprep.subr.bf16.mxu0 %v10722_v2 }
0x1af4   : > { %v7438_v4 = vpop.f32.mrf.mxu1 }
0x1af6   : > { %v9821_v18 = vpop.f32.mrf.mxu1 }
0x1af7   : > { %v10764_v18 = vld [vmem:[%s12278_s7 + $0x84] ss:$8 sps:$4 sm:$0xff]  }
0x1af8   : > { %v7441_v51 = vpop.f32.mrf.mxu1 }
0x1af9   : > { %v10762_v51 = vld [vmem:[%s12278_s7 + $0x80] ss:$8 sps:$4 sm:$0xff]  }
0x1afa   : > { %v9822_v57 = vpop.f32.mrf.mxu1 }
0x1afe   : > { %v7388_v9 = vpop.f32.mrf.mxu0 }
0x1aff   : > { %v10035_v20 = vpack.i.bf16 %v13214_v56, %v7388_v9 }
0x1b00   : > { %v9815_v23 = vpop.f32.mrf.mxu0 }
0x1b02   : > { %v7391_v0 = vpop.f32.mrf.mxu0 }
0x1b04   : > { %v9816_v11 = vpop.f32.mrf.mxu0 }
0x1b06   : > { %v7488_v12 = vpop.f32.mrf.mxu0 }
0x1b07   : > { %v7489_v17 = vadd.f32 %v7488_v12, %v7438_v4  ;;  %v10759_v4 = vld [vmem:[%s12278_s7 + $0x90] ss:$8 sps:$4 sm:$0xff]  }
0x1b08   : > { %v9827_v14 = vpop.f32.mrf.mxu0 }
0x1b09   : > { %v7494_v15 = vmul.f32 0.125, %v7489_v17 }
0x1b0a   : > { %v7491_v32 = vpop.f32.mrf.mxu0 }
0x1b0b   : > { %v7495_v61 = vsel %vm6379_vm6, %v7494_v15, -inf }
0x1b0c   : > { %7496 = vmax.xlane.f32.xlu0 %v7495_v61  ;;  %v9828_v55 = vpop.f32.mrf.mxu0 }
0x1b22   : > { %7507 = vrot.lane.b32.xlu0 %v13102_v42, %s11539_s18  ;;  %v10030_v42 = vpack.i.bf16 %v13173_v13, %v13288_v60  ;;  %v10720_v13 = vld [vmem:[%s12278_s7 + $0x60] ss:$8 sps:$4 sm:$0xff]   ;;  %v10725_v60 = vld [vmem:[%s12278_s7 + $0x54] ss:$8 sps:$4 sm:$0xff]  }
0x1b23   : > { %7792 = vmatpush1.bf16.msra.mxu0 %v10720_v13 }
0x1b24   : > { %7793 = vmatprep.subr.bf16.mxu0 %v10725_v60 }
0x1b26   : > { %10036 = vrot.lane.b32.xlu0 %v10035_v20, %s11537_s25 }
0x1b27   : > { %7794 = vmatpush1.bf16.msra.mxu0 %v10723_v34 }
0x1b28   : > { %7795 = vmatprep.subr.bf16.mxu0 %v10728_v37 }
0x1b2b   : > { %7796 = vmatpush1.bf16.msra.mxu0 %v10726_v40  ;;  %v10765_v40 = vld [vmem:[%s12281_s5 + $0x78] sm:$0xff]  }
0x1b2c   : > { %7797 = vmatprep.subr.bf16.mxu0 %v10731_v31  ;;  %v10766_v31 = vld [vmem:[%s12281_s5 + $0x38] sm:$0xff]  }
0x1b2f   : > { %7798 = vmatpush1.bf16.msra.mxu0 %v10729_v41  ;;  %v10767_v41 = vld [vmem:[%s12281_s5 + $0x70] sm:$0xff]  }
0x1b30   : > { %7799 = vmatprep.subr.bf16.mxu0 %v10734_v43 }
0x1b33   : > { %7800 = vmatpush1.bf16.msra.mxu0 %v10732_v36 }
0x1b34   : > { %7801 = vmatprep.subr.bf16.mxu0 %v10737_v45 }
0x1b37   : > { %7802 = vmatpush1.bf16.msra.mxu0 %v10735_v46 }
0x1b38   : > { %7803 = vmatprep.subr.bf16.mxu0 %v10740_v58 }
0x1b3b   : > { %7804 = vmatpush1.bf16.msra.mxu0 %v10738_v19  ;;  %v10768_v19 = vld [vmem:[%s12281_s5 + $0x30] sm:$0xff]  }
0x1b3c   : > { %7805 = vmatprep.subr.bf16.mxu0 %v10743_v54  ;;  %v10769_v54 = vld [vmem:[%s12281_s5 + $0x68] sm:$0xff]  }
0x1b3f   : > { %7806 = vmatpush2.bf16.msra.mxu0 %v10741_v35  ;;  %v10770_v35 = vld [vmem:[%s12281_s5 + $0x28] sm:$0xff]  }
0x1b40   : > { %7807 = vmatprep.subr.bf16.mxu0 %v10746_v62  ;;  %v10771_v62 = vld [vmem:[%s12281_s5 + $0x60] sm:$0xff]  }
0x1b43   : > { %7808 = vmatpush2.bf16.msra.mxu0 %v10744_v24  ;;  %v10772_v24 = vld [vmem:[%s12281_s5 + $0x20] sm:$0xff]  }
0x1b44   : > { %7809 = vmatprep.subr.bf16.mxu0 %v10749_v3  ;;  %v10773_v3 = vld [vmem:[%s12281_s5 + $0x58] sm:$0xff]  }
0x1b47   : > { %7810 = vmatpush2.bf16.msra.mxu0 %v10747_v10  ;;  %v10774_v10 = vld [vmem:[%s12281_s5 + $0x18] sm:$0xff]  }
0x1b48   : > { %7811 = vmatprep.subr.bf16.mxu0 %v10752_v27  ;;  %v10775_v27 = vld [vmem:[%s12281_s5 + $0x50] sm:$0xff]  }
0x1b4b   : > { %7812 = vmatpush2.bf16.msra.mxu0 %v10750_v6  ;;  %v10776_v6 = vld [vmem:[%s12281_s5 + $0x10] sm:$0xff]  }
0x1b4c   : > { %7813 = vmatprep.subr.bf16.mxu0 %v10755_v29  ;;  %v10777_v29 = vld [vmem:[%s12281_s5 + $0x48] sm:$0xff]  }
0x1b4f   : > { %7814 = vmatpush2.bf16.msra.mxu0 %v10753_v38  ;;  %v10778_v38 = vld [vmem:[%s12281_s5 + $0x8] sm:$0xff]  }
0x1b50   : > { %7815 = vmatprep.subr.bf16.mxu0 %v10758_v50  ;;  %v10779_v50 = vld [vmem:[%s12281_s5 + $0x40] sm:$0xff]  }
0x1b53   : > { %7816 = vmatpush2.bf16.msra.mxu0 %v10756_v5  ;;  %v10780_v5 = vld [vmem:[%s12281_s5] sm:$0xff]  }
0x1b54   : > { %7817 = vmatprep.subr.bf16.mxu0 %v10761_v44  ;;  %v10783_v44 = vld [vmem:[%s12284_s0 + $0x74] ss:$8 sps:$4 sm:$0xff]  }
0x1b57   : > { %7818 = vmatpush2.bf16.msra.mxu0 %v10759_v4 }
0x1b58   : > { %7819 = vmatprep.subr.bf16.mxu0 %v10764_v18 }
0x1b5b   : > { %7820 = vmatpush2.bf16.msra.mxu0 %v10762_v51 }
0x1b95   : > { %v7497_v22 = vpop.xlane.xlu0 %7496 }
0x1b96   : > { %v7498_v28 = vsub.f32 %v7494_v15, %v7497_v22 }
0x1b98   : > { %v7499_v26 = vmul.f32 1.442695, %v7498_v28 }
0x1b99   : > { %v7508_v30 = vpop.permute.xlu0 %7507 }
0x1b9a   : > { %10867 = vpow2.f32 %v7499_v26  ;;  %9830 = vmatpush3.bf16.msra.mxu1 %v7508_v30 }
0x1b9b   : > { %9573 = vmatprep.subr.bf16.mxu1 %v10765_v40 }
0x1b9d   : > { %v10037_v15 = vpop.permute.xlu0 %10036 }
0x1b9e   : > { %v10039_v55 = vunpack.i.h.bf16 %v10037_v15  ;;  %v10038_v20 = vunpack.i.l.bf16 %v10037_v15 }
0x1ba7   : > { %v10868_v21 = vpop.eup %10867 }
0x1ba8   : > { %v7501_v39 = vsel %vm6379_vm6, %v10868_v21, 0.0 }
0x1ba9   : > { %7502 = vadd.xlane.f32.xlu1 %v7501_v39 }
0x1bba   : > { %10031 = vrot.lane.b32.xlu1 %v10030_v42, %s11539_s18 }
0x1c32   : > { %v7503_v56 = vpop.xlane.xlu1 %7502 }
0x1c33   : > { %10869 = vrcp.f32 %v7503_v56 }
0x1c36   : > { %v10032_v12 = vpop.permute.xlu1 %10031 }
0x1c37   : > { %v10034_v17 = vunpack.i.h.bf16 %v10032_v12  ;;  %v10033_v14 = vunpack.i.l.bf16 %v10032_v12 }
0x1c39   : > { %v7577_v32 = vsel %vm3811_vm2, %v13145_v47, %v10034_v17  ;;  %v7580_v61 = vsel %vm3811_vm2, %v13260_v8, %v10033_v14  ;;  %v7617_v47 = vld [vmem:[%s1511_s10] sm:$0x3] }
0x1c3a   : > { %v7578_v26 = vsel %vm4725_vm4, %v7577_v32, %v10039_v55  ;;  %v7581_v30 = vsel %vm4725_vm4, %v7580_v61, %v10038_v20  ;;  %v7622_v8 = vrot.slane %v7617_v47, %v12437_v48 }
0x1c40   : > { %v10870_v33 = vpop.eup %10869 }
0x1c41   : > { %v7505_v63 = vmul.f32 %v10870_v33, %v10868_v21  ;;  %v7626_v33 = vrot.slane %v7617_v47, %v12443_v53  ;;  %v10795_v47 = vld [vmem:[%s12284_s0 + $0x34] ss:$8 sps:$4 sm:$0xff]  }
0x1c43   : > { %v7506_v49 = vpack.c.bf16 %v7505_v63, %v7505_v63 }
0x1c45   : > { %9832 = vmatmul.mubr.msk.bf16.vlgmr.msra.gmra.mxu1 %vm6379_vm6, %v7506_v49 }
0x1c46   : > { %9574 = vmatpush3.bf16.msra.mxu1 %v10766_v31 }
0x1c47   : > { %9575 = vmatprep.subr.bf16.mxu1 %v10767_v41 }
0x1c4a   : > { %9576 = vmatpush3.bf16.msra.mxu1 %v10768_v19 }
0x1c4b   : > { %9577 = vmatprep.subr.bf16.mxu1 %v10769_v54 }
0x1c4e   : > { %9578 = vmatpush3.bf16.msra.mxu1 %v10770_v35 }
0x1c4f   : > { %9579 = vmatprep.subr.bf16.mxu1 %v10771_v62 }
0x1c52   : > { %9580 = vmatpush3.bf16.msra.mxu1 %v10772_v24 }
0x1c53   : > { %9581 = vmatprep.subr.bf16.mxu1 %v10773_v3 }
0x1c56   : > { %9582 = vmatpush3.bf16.msra.mxu1 %v10774_v10 }
0x1c57   : > { %9583 = vmatprep.subr.bf16.mxu1 %v10775_v27 }
0x1c5a   : > { %9584 = vmatpush3.bf16.msra.mxu1 %v10776_v6 }
0x1c5b   : > { %9585 = vmatprep.subr.bf16.mxu1 %v10777_v29 }
0x1c5e   : > { %9586 = vmatpush3.bf16.msra.mxu1 %v10778_v38 }
0x1c5f   : > { %9587 = vmatprep.subr.bf16.mxu1 %v10779_v50 }
0x1c62   : > { %9588 = vmatpush3.bf16.msra.mxu1 %v10780_v5 }
0x1c63   : > { %8165 = vmatprep.subr.bf16.mxu1 %v10783_v44 }
0x1d05   : > { %v7547_v57 = vpop.f32.mrf.mxu1 }
0x1d06   : > { %v10040_v9 = vpack.i.bf16 %v13239_v16, %v7547_v57  ;;  %v9433_v57 = vld [vmem:[%s12232_s14 + $0x2] ss:$8 sm:$0x3] }
0x1d07   : > { %v9833_v23 = vpop.f32.mrf.mxu1 }
0x1d08   : > { %10041 = vrot.lane.b32.xlu1 %v10040_v9, %s11538_s27  ;;  %v9434_v9 = vld [vmem:[%s12232_s14 + $0x3] ss:$8 sm:$0x3]  ;;  %v7856_v23 = vrot.slane %v9433_v57, %v12437_v48 }
0x1d09   : > { %v7550_v0 = vpop.f32.mrf.mxu1  ;;  %v7869_v17 = vrot.slane %v9434_v9, %v12437_v48  ;;  %v7873_v14 = vrot.slane %v9434_v9, %v12443_v53 }
0x1d0a   : > { %v7860_v0 = vrot.slane %v9433_v57, %v12443_v53  ;;  %v9469_v57 = vld [vmem:[%s12232_s14 + $0x5] ss:$8 sm:$0x3] }
0x1d0b   : > { %v9834_v11 = vpop.f32.mrf.mxu1 }
0x1d7a   : > { %v10042_v22 = vpop.permute.xlu1 %10041 }
0x1d7b   : > { %v10044_v16 = vunpack.i.h.bf16 %v10042_v22  ;;  %v10043_v28 = vunpack.i.l.bf16 %v10042_v22 }
0x1d7d   : > { %v7579_v21 = vsel %vm4727_vm5, %v7578_v26, %v10044_v16  ;;  %v7582_v39 = vsel %vm4727_vm5, %v7581_v30, %v10043_v28  ;;  %v10781_v28 = vld [vmem:[%s12284_s0 + $0x70] ss:$8 sps:$4 sm:$0xff]   ;;  %v10786_v26 = vld [vmem:[%s12284_s0 + $0x64] ss:$8 sps:$4 sm:$0xff]   ;;  %v10784_v30 = vld [vmem:[%s12284_s0 + $0x60] ss:$8 sps:$4 sm:$0xff]  }
0x1d7e   : > { %v7583_v42 = vpack.c.bf16 %v7579_v21, %v7579_v21  ;;  %v7584_v56 = vpack.c.bf16 %v7582_v39, %v7582_v39  ;;  %v10789_v21 = vld [vmem:[%s12284_s0 + $0x54] ss:$8 sps:$4 sm:$0xff]   ;;  %v10787_v39 = vld [vmem:[%s12284_s0 + $0x50] ss:$8 sps:$4 sm:$0xff]  }
0x1d80   : > { %7821 = vmatprep.mubr.bf16.mxu0 %v7584_v56  ;;  %v10790_v56 = vld [vmem:[%s12284_s0 + $0x40] ss:$8 sps:$4 sm:$0xff]  }
0x1d81   : > { %7822 = vmatmul.mubr.bf16.vlgmr.msra.gmra.mxu0 %v7583_v42  ;;  %v10792_v42 = vld [vmem:[%s12284_s0 + $0x44] ss:$8 sps:$4 sm:$0xff]  }
0x1e41   : > { %v7823_v63 = vpop.f32.mrf.mxu0 }
0x1e42   : > { %v7824_v49 = vadd.f32 %v7823_v63, %v7622_v8  ;;  %v10793_v8 = vld [vmem:[%s12284_s0 + $0x30] ss:$8 sps:$4 sm:$0xff]   ;;  %v10801_v63 = vld [vmem:[%s12284_s0 + $0x14] ss:$8 sps:$4 sm:$0xff]  }
0x1e43   : > { %v7825_v59 = vpop.f32.mrf.mxu0 }
0x1e44   : > { %v7826_v1 = vadd.f32 %v7825_v59, %v7626_v33  ;;  %v7834_v13 = vadd.f32 %v7824_v49, %v12969_v52  ;;  %v10796_v33 = vld [vmem:[%s12284_s0 + $0x20] ss:$8 sps:$4 sm:$0xff]   ;;  %v10799_v49 = vld [vmem:[%s12284_s0 + $0x10] ss:$8 sps:$4 sm:$0xff]   ;;  %v10804_v59 = vld [vmem:[%s12284_s0 + $0x4] ss:$8 sps:$4 sm:$0xff]  }
0x1e45   : > { %v7827_v2 = vpop.f32.mrf.mxu0 }
0x1e46   : > { %v7835_v60 = vadd.f32 %v7826_v1, %v12967_v7  ;;  %v10802_v1 = vld [vmem:[%s12284_s0] ss:$8 sps:$4 sm:$0xff]  }
0x1e47   : > { %v7828_v34 = vpop.f32.mrf.mxu0 }
0x1e48   : > { %v7836_v37 = vadd.f32 %v7835_v60, %v7834_v13 }
0x1e4a   : > { %7837 = vadd.xlane.f32.xlu0 %v7836_v37 }
0x1ed3   : > { %v7838_v43 = vpop.xlane.xlu0 %7837 }
0x1ed4   : > { %v7839_v36 = vmul.f32 0.00390625, %v7838_v43 }
0x1ed6   : > { %v7840_v52 = vsub.f32 %v7834_v13, %v7839_v36  ;;  %v7841_v45 = vsub.f32 %v7835_v60, %v7839_v36  ;;  %v9435_v13 = vld [vmem:[%s1528_s30] ss:$0 sm:$0xff]  ;;  %v8073_v36 = vld [vmem:[%s1546_s28] sm:$0x3] }
0x1ed8   : > { %v7842_v7 = vmul.f32 %v7840_v52, %v7840_v52  ;;  %v7843_v46 = vmul.f32 %v7841_v45, %v7841_v45 }
0x1eda   : > { %v7844_v58 = vadd.f32 %v7843_v46, %v7842_v7 }
0x1edc   : > { %7845 = vadd.xlane.f32.xlu1 %v7844_v58 }
0x1f65   : > { %v7846_v4 = vpop.xlane.xlu1 %7845 }
0x1f66   : > { %v7847_v18 = vmul.f32 0.00390625, %v7846_v4 }
0x1f68   : > { %v7848_v51 = vadd.f32 1e-05, %v7847_v18 }
0x1f6a   : > { %10871 = vrsqrt.f32 %v7848_v51  ;;  %v9468_v51 = vld [vmem:[%s12232_s14 + $0x4] ss:$8 sm:$0x3] }
0x1f6b   : > { %v8232_v9 = vrot.slane %v9468_v51, %v12437_v48 }
0x1f77   : > { %v10872_v11 = vpop.eup %10871 }
0x1f78   : > { %v7851_v12 = vmul.f32 %v10872_v11, %v7841_v45  ;;  %v7850_v15 = vmul.f32 %v10872_v11, %v7840_v52  ;;  %v8078_v52 = vrot.slane %v8073_v36, %v12437_v48  ;;  %v8082_v45 = vrot.slane %v8073_v36, %v12443_v53 }
0x1f79   : > { %v8245_v11 = vrot.slane %v9469_v57, %v12437_v48 }
0x1f7a   : > { %v7864_v32 = vmul.f32 %v7860_v0, %v7851_v12  ;;  %v7863_v61 = vmul.f32 %v7856_v23, %v7850_v15  ;;  %v8236_v23 = vrot.slane %v9468_v51, %v12443_v53  ;;  %v8249_v12 = vrot.slane %v9469_v57, %v12443_v53 }
0x1f7c   : > { %v7877_v55 = vadd.f32 %v7873_v14, %v7864_v32  ;;  %v7876_v20 = vadd.f32 %v7869_v17, %v7863_v61 }
0x1f7e   : > { %v7879_v22 = vpack.c.bf16 %v7877_v55, %v7877_v55  ;;  %v7878_v16 = vpack.c.bf16 %v7876_v20, %v7876_v20 }
0x1f80   : > { %8047 = vmatprep.mubr.bf16.mxu1 %v7879_v22 }
0x1f81   : > { %8048 = vmatmul.mubr.bf16.vlgmr.msra.gmra.mxu1 %v7878_v16 }
0x1f82   : > { %8166 = vmatpush1.bf16.msra.mxu1 %v10781_v28  ;;  %8197 = vmatprep.mubr.bf16.mxu1 %v11540_v25  ;;  %v10798_v25 = vld [vmem:[%s12284_s0 + $0x24] ss:$8 sps:$4 sm:$0xff]  }
0x1f83   : > { %8167 = vmatprep.subr.bf16.mxu1 %v10786_v26 }
0x1f86   : > { %8168 = vmatpush1.bf16.msra.mxu1 %v10784_v30 }
0x1f87   : > { %8169 = vmatprep.subr.bf16.mxu1 %v10789_v21 }
0x1f8a   : > { %8170 = vmatpush1.bf16.msra.mxu1 %v10787_v39 }
0x1f8b   : > { %8171 = vmatprep.subr.bf16.mxu1 %v10792_v42 }
0x1f8e   : > { %8172 = vmatpush1.bf16.msra.mxu1 %v10790_v56 }
0x1f8f   : > { %8173 = vmatprep.subr.bf16.mxu1 %v10795_v47 }
0x1f92   : > { %8174 = vmatpush1.bf16.msra.mxu1 %v10793_v8 }
0x1f93   : > { %8175 = vmatprep.subr.bf16.mxu1 %v10798_v25 }
0x1f96   : > { %8176 = vmatpush1.bf16.msra.mxu1 %v10796_v33 }
0x1f97   : > { %8177 = vmatprep.subr.bf16.mxu1 %v10801_v63 }
0x1f9a   : > { %8178 = vmatpush1.bf16.msra.mxu1 %v10799_v49 }
0x1f9b   : > { %8179 = vmatprep.subr.bf16.mxu1 %v10804_v59 }
0x1f9e   : > { %8180 = vmatpush1.bf16.msra.mxu1 %v10802_v1 }
0x2041   : > { %v9589_v2 = vpop.f32.mrf.mxu1 }
0x2043   : > { %v9590_v60 = vpop.f32.mrf.mxu1 }
0x2044   : > { %v9591_v34 = vadd.f32 %v9590_v60, %v9589_v2 }
0x2045   : > { %v9592_v37 = vpop.f32.mrf.mxu1 }
0x2046   : > { %v8050_v40 = vadd.f32 %v9591_v34, %v9435_v13 }
0x2047   : > { %v9593_v31 = vpop.f32.mrf.mxu1 }
0x2048   : > { %v8055_v41 = vmax.f32 %v8050_v40, 0.0 }
0x204a   : > { %v8056_v43 = vpack.c.bf16 %v8055_v41, %v8055_v41 }
0x204c   : > { %8198 = vmatmul.mubr.bf16.vlgmr.msra.gmra.mxu1 %v8056_v43 }
0x210c   : > { %v8199_v7 = vpop.f32.mrf.mxu1 }
0x210d   : > { %v8200_v46 = vadd.f32 %v8199_v7, %v8078_v52 }
0x210e   : > { %v8201_v58 = vpop.f32.mrf.mxu1 }
0x210f   : > { %v8202_v19 = vadd.f32 %v8201_v58, %v8082_v45  ;;  %v8210_v35 = vadd.f32 %v8200_v46, %v7876_v20 }
0x2110   : > { %v8203_v54 = vpop.f32.mrf.mxu1 }
0x2111   : > { %v8211_v62 = vadd.f32 %v8202_v19, %v7877_v55 }
0x2112   : > { %v8204_v24 = vpop.f32.mrf.mxu1 }
0x2113   : > { %v8212_v3 = vadd.f32 %v8211_v62, %v8210_v35 }
0x2115   : > { %8213 = vadd.xlane.f32.xlu0 %v8212_v3 }
0x219e   : > { %v8214_v10 = vpop.xlane.xlu0 %8213 }
0x219f   : > { %v8215_v27 = vmul.f32 0.00390625, %v8214_v10 }
0x21a1   : > { %v8216_v6 = vsub.f32 %v8210_v35, %v8215_v27  ;;  %v8217_v29 = vsub.f32 %v8211_v62, %v8215_v27 }
0x21a3   : > { %v8218_v38 = vmul.f32 %v8216_v6, %v8216_v6  ;;  %v8219_v50 = vmul.f32 %v8217_v29, %v8217_v29 }
0x21a5   : > { %v8220_v5 = vadd.f32 %v8219_v50, %v8218_v38 }
0x21a7   : > { %8221 = vadd.xlane.f32.xlu0 %v8220_v5 }
0x2230   : > { %v8222_v44 = vpop.xlane.xlu0 %8221 }
0x2231   : > { %v8223_v4 = vmul.f32 0.00390625, %v8222_v44 }
0x2233   : > { %v8224_v18 = vadd.f32 1e-05, %v8223_v4 }
0x2235   : > { %10873 = vrsqrt.f32 %v8224_v18 }
0x2242   : > { %v10874_v0 = vpop.eup %10873 }
0x2243   : > { %v8226_v17 = vmul.f32 %v10874_v0, %v8216_v6  ;;  %v8227_v14 = vmul.f32 %v10874_v0, %v8217_v29 }
0x2245   : > { %v8239_v15 = vmul.f32 %v8232_v9, %v8226_v17  ;;  %v8240_v32 = vmul.f32 %v8236_v23, %v8227_v14 }
0x2247   : > { %v8252_v61 = vadd.f32 %v8245_v11, %v8239_v15  ;;  %v8253_v55 = vadd.f32 %v8249_v12, %v8240_v32 }
0x2249   : > { %8254 = vst [vmem:[%s12256_s9] sm:$0xff] %v8252_v61  ;;  %8255 = vst [vmem:[%s12256_s9 + $0x8] sm:$0xff] %v8253_v55 }
0x224a PF: > { %s13600_s2 = sld [smem:[#allocation65_spill]] }
0x224b   : > { %s13601_s22 = sld [smem:[#allocation59_spill]] }
0x224c   : > { %s13602_s23 = sld [smem:[#allocation60_spill]] }
0x224d   : > { %s13603_s26 = sld [smem:[#allocation68_spill]] }
0x224e   : > { %s13604_s28 = sld [smem:[#allocation63_spill]] }
0x224f   : > { %s13605_s1 = sld [smem:[#allocation64_spill]] }
0x2250   : > { %s75_s10 = sadd.s32 1, %s13600_s2   ;;  %s13606_s2 = sld [smem:[#allocation66_spill]] }
0x2251   : > { %p72_p2 = scmp.ge.s32.totalorder %s75_s10, 6   ;;  %s13607_s7 = sld [smem:[#allocation67_spill]] }
0x2253   :  { %74 = sbr.rel (!%p72_p2) target bundleno = 74 (0x4a), region = 445 }
0x2258   :  { %8277 = vsyncpa [#allocation3], 1 }
0x2259   :  { %8279 = vsyncpa [#allocation3 + $0x1], 1 }
0x225a   :  { %8280 = vsyncpa [#allocation5], 1 }

</bundles_post_ra>
